<compile_context>
chip_gen: v5e
topology: v5e:2x2
jax: 0.10.0
libtpu: 0.0.40
codegen_flags: <defaults>
</compile_context>

<pallas_src>
import math
import numpy as np
import jax
import jax.numpy as jnp
from jax import lax
from jax.experimental import pallas as pl
from jax.experimental.pallas import tpu as pltpu

LANE = 128


# ----------------------------------------------------------------------------
# Kernel 1: conv1 (kernel=(node_num,5), pad=(0,2)) as 5 shifted matmuls + bias
#           + train-mode BatchNorm.  Output padded to 128 lanes.
# ----------------------------------------------------------------------------
def _make_conv_bn_kernel(n_batch, seq_len):
    def kernel(x_ref, w_ref, v_ref, o_ref):
        # x_ref: [N, L+4, F]; w_ref: [5, F, 128]; v_ref: [3, 128] = (bias, gamma, beta)
        ys = []
        for b in range(n_batch):
            xb = x_ref[b]                                            # [L+4, F]
            acc = jnp.dot(xb[0:seq_len, :], w_ref[0],
                          preferred_element_type=jnp.float32)
            for kw in range(1, 5):
                acc = acc + jnp.dot(xb[kw:kw + seq_len, :], w_ref[kw],
                                    preferred_element_type=jnp.float32)
            ys.append(acc + v_ref[0:1, :])
        y = jnp.concatenate(ys, axis=0)                              # [N*L, 128]
        mu = jnp.mean(y, axis=0, keepdims=True)
        var = jnp.mean((y - mu) ** 2, axis=0, keepdims=True)
        y = (y - mu) * lax.rsqrt(var + 1e-5) * v_ref[1:2, :] + v_ref[2:3, :]
        for b in range(n_batch):
            o_ref[b] = y[b * seq_len:(b + 1) * seq_len, :]
    return kernel


def pallas_conv_bn(x_pad, w_taps, conv_vec):
    n, lp4, f = x_pad.shape
    seq_len = lp4 - 4
    flops = 2 * n * seq_len * f * LANE * 5 + 10 * n * seq_len * LANE
    nbytes = 4 * (x_pad.size + w_taps.size + conv_vec.size + n * seq_len * LANE)
    return pl.pallas_call(
        _make_conv_bn_kernel(n, seq_len),
        out_shape=jax.ShapeDtypeStruct((n, seq_len, LANE), jnp.float32),
        cost_estimate=pl.CostEstimate(flops=int(flops), transcendentals=LANE,
                                      bytes_accessed=int(nbytes)),
    )(x_pad, w_taps, conv_vec)


# ----------------------------------------------------------------------------
# Kernel 2: fused encoder + decoder (prep gathers, blocks, norms, heads).
# ----------------------------------------------------------------------------
def _layer_norm(v, g, b):
    mu = jnp.mean(v, axis=-1, keepdims=True)
    var = jnp.mean((v - mu) ** 2, axis=-1, keepdims=True)
    return (v - mu) * lax.rsqrt(var + 1e-5) * g + b


def _make_encdec_kernel(cfg, bblk, len_keep):
    L = cfg["window_size"]
    E, Dd = cfg["embed_dim"], cfg["decoder_embed_dim"]
    de, dd = cfg["depth"], cfg["decoder_depth"]
    he, hd = cfg["num_heads"], cfg["decoder_num_heads"]
    hide, hidd = int(E * cfg["mlp_ratio"]), int(Dd * cfg["mlp_ratio"])

    def run_stack(x, dim, heads, depth, hid, wqkvp_ref, w1_ref, w2_ref, vec_ref):
        dh = dim // heads
        scale = 1.0 / math.sqrt(dh)
        for l in range(depth):
            wqp = wqkvp_ref[l]                                       # [dim, 4*dim]
            vv = vec_ref[l]                                          # [8, W]
            ln1g, ln1b = vv[0:1, :dim], vv[1:2, :dim]
            ln2g, ln2b = vv[2:3, :dim], vv[3:4, :dim]
            bproj, b2 = vv[4:5, :dim], vv[5:6, :dim]
            bqkv, b1 = vv[6:7, :3 * dim], vv[7:8, :hid]
            h = _layer_norm(x, ln1g, ln1b)
            qkv = jnp.dot(h, wqp[:, :3 * dim],
                          preferred_element_type=jnp.float32) + bqkv  # [T, 3*dim]
            ctx = []
            for hh in range(heads):
                q = qkv[:, hh * dh:(hh + 1) * dh]
                k = qkv[:, dim + hh * dh:dim + (hh + 1) * dh]
                v = qkv[:, 2 * dim + hh * dh:2 * dim + (hh + 1) * dh]
                s = jnp.dot(q, k.T, preferred_element_type=jnp.float32) * scale
                s = s - jnp.max(s, axis=-1, keepdims=True)
                p = jnp.exp(s)
                p = p * pl.reciprocal(jnp.sum(p, axis=-1, keepdims=True), approx=True)
                ctx.append(jnp.dot(p, v, preferred_element_type=jnp.float32))
            ctx = jnp.concatenate(ctx, axis=-1)                      # [T, dim]
            x = x + jnp.dot(ctx, wqp[:, 3 * dim:],
                            preferred_element_type=jnp.float32) + bproj
            h = _layer_norm(x, ln2g, ln2b)
            h = jnp.dot(h, w1_ref[l], preferred_element_type=jnp.float32) + b1
            # TODO(synk): PyTorch nn.GELU defaults to erf; tanh approximation used here.
            h = jax.nn.gelu(h, approximate=True)
            x = x + jnp.dot(h, w2_ref[l], preferred_element_type=jnp.float32) + b2
        return x

    def kernel(emb_ref, selk_ref, selr_ref, misc_ref,
               e_wqkvp, e_w1, e_w2, e_vec, e_finw, e_finv,
               d_wqkvp, d_w1, d_w2, d_vec, d_finw, d_finv, o_ref):
        # misc slab (width E): rows 0..L-1 pos_embed[1:], row L cls+pos[0],
        #                      rows L+1..2L+1 decoder pos (padded), row 2L+2 mask token.
        pos_rows = misc_ref[0:L, :]                                  # [L, E]
        cls_row = misc_ref[L:L + 1, :]                               # [1, E]
        dec_pos = misc_ref[L + 1:2 * L + 2, :Dd]                     # [L+1, Dd]
        mask_tok = misc_ref[2 * L + 2:2 * L + 3, :Dd]                # [1, Dd]

        for b in range(bblk):
            # ---- encoder prep: pos add, keep-gather (one-hot matmul), cls concat ----
            xf = emb_ref[b][:, :E] + pos_rows                        # [L, E]
            xk = jnp.dot(selk_ref[b], xf, preferred_element_type=jnp.float32)
            x = jnp.concatenate([cls_row, xk], axis=0)               # [1+keep, E]
            # ---- encoder blocks + norm + decoder_embed ----
            x = run_stack(x, E, he, de, hide, e_wqkvp, e_w1, e_w2, e_vec)
            x = _layer_norm(x, e_finv[0:1, :E], e_finv[1:2, :E])
            lat = jnp.dot(x, e_finw[...], preferred_element_type=jnp.float32) \
                + e_finv[2:3, :Dd]                                   # [1+keep, Dd]
            # ---- decoder prep: unshuffle + mask tokens (one-hot matmul), pos embed ----
            body = jnp.concatenate([lat[1:, :], mask_tok], axis=0)   # [keep+1, Dd]
            restored = jnp.dot(selr_ref[b], body, preferred_element_type=jnp.float32)
            xd = jnp.concatenate([lat[0:1, :], restored], axis=0) + dec_pos
            # ---- decoder blocks + norm + decoder_pred (cls row dropped) ----
            xd = run_stack(xd, Dd, hd, dd, hidd, d_wqkvp, d_w1, d_w2, d_vec)
            xd = _layer_norm(xd, d_finv[0:1, :Dd], d_finv[1:2, :Dd])
            o_ref[b] = jnp.dot(xd[1:, :], d_finw[...],
                               preferred_element_type=jnp.float32) + d_finv[2:3, :]

    return kernel


def _encdec_cost(cfg, n_batch, len_keep, weights, emb, selk, selr):
    E, Dd, L = cfg["embed_dim"], cfg["decoder_embed_dim"], cfg["window_size"]
    te, td = 1 + len_keep, L + 1

    def stack_flops(t, dim, depth, hid):
        return depth * (2 * t * dim * 3 * dim + 4 * t * t * dim
                        + 2 * t * dim * dim + 4 * t * dim * hid)

    flops = n_batch * (stack_flops(te, E, cfg["depth"], int(E * cfg["mlp_ratio"]))
                       + stack_flops(td, Dd, cfg["decoder_depth"], int(Dd * cfg["mlp_ratio"]))
                       + 2 * te * E * Dd + 2 * L * Dd * LANE
                       + 2 * len_keep * L * E + 2 * L * (len_keep + 1) * Dd)
    transc = n_batch * (cfg["depth"] * te * (te * cfg["num_heads"] + int(E * cfg["mlp_ratio"]))
                        + cfg["decoder_depth"] * td * (td * cfg["decoder_num_heads"]
                                                       + int(Dd * cfg["mlp_ratio"])))
    nbytes = 4 * (emb.size + selk.size + selr.size
                  + sum(int(w.size) for w in weights) + n_batch * L * LANE)
    return int(flops), int(transc), int(nbytes)


def pallas_encdec(emb, sel_keep, sel_rest, params, cfg, bblk):
    n_batch, L, emb_w = emb.shape
    len_keep = sel_keep.shape[1]
    kernel = _make_encdec_kernel(cfg, bblk, len_keep)
    enc, dec = params["enc"], params["dec"]
    weights = [params["misc"],
               enc["wqkvp"], enc["w1"], enc["w2"], enc["vec"],
               params["enc_finw"], params["enc_finv"],
               dec["wqkvp"], dec["w1"], dec["w2"], dec["vec"],
               params["dec_finw"], params["dec_finv"]]

    def full_spec(a):
        nd_ = a.ndim
        return pl.BlockSpec(a.shape, lambda i, _n=nd_: (0,) * _n)

    flops, transc, nbytes = _encdec_cost(cfg, n_batch, len_keep, weights,
                                         emb, sel_keep, sel_rest)
    return pl.pallas_call(
        kernel,
        out_shape=jax.ShapeDtypeStruct((n_batch, L, LANE), jnp.float32),
        grid=(n_batch // bblk,),
        in_specs=[pl.BlockSpec((bblk, L, emb_w), lambda i: (i, 0, 0)),
                  pl.BlockSpec((bblk, len_keep, L), lambda i: (i, 0, 0)),
                  pl.BlockSpec((bblk, L, len_keep + 1), lambda i: (i, 0, 0))]
                 + [full_spec(w) for w in weights],
        out_specs=pl.BlockSpec((bblk, L, LANE), lambda i: (i, 0, 0)),
        compiler_params=pltpu.CompilerParams(dimension_semantics=("parallel",)),
        cost_estimate=pl.CostEstimate(flops=flops, transcendentals=transc,
                                      bytes_accessed=nbytes),
    )(emb, sel_keep, sel_rest, *weights)


# ----------------------------------------------------------------------------
# Parameter setup (all reshapes / packing hoisted to init)
# ----------------------------------------------------------------------------
def get_ts_sincos_pos_embed(embed_dim, window_size, cls_token=False):
    assert embed_dim % 2 == 0
    omega = np.arange(embed_dim // 2, dtype=np.float64)
    omega /= embed_dim / 2.0
    omega = 1.0 / 10000 ** omega
    pos = np.arange(window_size, dtype=np.float64)
    out = np.einsum("m,d->md", pos, omega)
    emb = np.concatenate([np.sin(out), np.cos(out)], axis=1)
    if cls_token:
        emb = np.concatenate([np.zeros([1, embed_dim]), emb], axis=0)
    return jnp.asarray(emb, dtype=jnp.float32)


def xavier_uniform(key, shape):
    fan_in, fan_out = shape
    bound = math.sqrt(6.0 / (fan_in + fan_out))
    return jax.random.uniform(key, shape, jnp.float32, -bound, bound)


def block_params(key, dim, hidden):
    ks = jax.random.split(key, 4)
    return dict(
        ln1_g=jnp.ones((dim,), jnp.float32), ln1_b=jnp.zeros((dim,), jnp.float32),
        qkv_w=xavier_uniform(ks[0], (dim, 3 * dim)), qkv_b=jnp.zeros((3 * dim,), jnp.float32),
        proj_w=xavier_uniform(ks[1], (dim, dim)), proj_b=jnp.zeros((dim,), jnp.float32),
        ln2_g=jnp.ones((dim,), jnp.float32), ln2_b=jnp.zeros((dim,), jnp.float32),
        fc1_w=xavier_uniform(ks[2], (dim, hidden)), fc1_b=jnp.zeros((hidden,), jnp.float32),
        fc2_w=xavier_uniform(ks[3], (hidden, dim)), fc2_b=jnp.zeros((dim,), jnp.float32),
    )


def pack_stack(blocks, dim, hidden):
    """Pack per-layer params into 4 stacked slabs (few DMA descriptors)."""
    width = max(hidden, 3 * dim)
    wqkvp, w1, w2, vec = [], [], [], []
    for bp in blocks:
        wqkvp.append(jnp.concatenate([bp["qkv_w"], bp["proj_w"]], axis=1))   # [dim, 4*dim]
        w1.append(bp["fc1_w"])
        w2.append(bp["fc2_w"])
        v = jnp.zeros((8, width), jnp.float32)
        v = v.at[0, :dim].set(bp["ln1_g"]).at[1, :dim].set(bp["ln1_b"])
        v = v.at[2, :dim].set(bp["ln2_g"]).at[3, :dim].set(bp["ln2_b"])
        v = v.at[4, :dim].set(bp["proj_b"]).at[5, :dim].set(bp["fc2_b"])
        v = v.at[6, :3 * dim].set(bp["qkv_b"]).at[7, :hidden].set(bp["fc1_b"])
        vec.append(v)
    return dict(wqkvp=jnp.stack(wqkvp), w1=jnp.stack(w1),
                w2=jnp.stack(w2), vec=jnp.stack(vec))


def init_params(key, cfg):
    E, Dd = cfg["embed_dim"], cfg["decoder_embed_dim"]
    nd, nn_, L = cfg["node_dim"], cfg["node_num"], cfg["window_size"]
    F = nd * nn_
    assert E >= Dd and E <= LANE and F <= LANE
    hid, dhid = int(E * cfg["mlp_ratio"]), int(Dd * cfg["mlp_ratio"])
    ks = list(jax.random.split(key, 8 + cfg["depth"] + cfg["decoder_depth"]))
    it = iter(ks)
    p = {}

    # conv1 as per-tap [F, 128] matmuls (lane-padded); bias/gamma/beta packed.
    conv_w = xavier_uniform(next(it), (E, F * 5)).reshape(E, nd, nn_, 5)
    taps = [conv_w[:, :, :, kw].reshape(E, F).T for kw in range(5)]           # [F, E]
    p["conv_w_taps"] = jnp.stack([jnp.pad(t, ((0, 0), (0, LANE - E))) for t in taps])
    conv_vec = jnp.zeros((3, LANE), jnp.float32)
    p["conv_vec"] = conv_vec.at[1, :E].set(1.0)       # bn gamma=1; conv bias & beta = 0

    # misc slab: pos rows | cls+pos0 | decoder pos rows (padded) | mask token (padded)
    cls_token = 0.02 * jax.random.normal(next(it), (E,), jnp.float32)
    mask_token = 0.02 * jax.random.normal(next(it), (Dd,), jnp.float32)
    pos = get_ts_sincos_pos_embed(E, L, cls_token=True)                       # [L+1, E]
    dpos = get_ts_sincos_pos_embed(Dd, L, cls_token=True)                     # [L+1, Dd]
    misc = jnp.zeros((2 * L + 3, E), jnp.float32)
    misc = misc.at[0:L, :].set(pos[1:])
    misc = misc.at[L, :].set(cls_token + pos[0])
    misc = misc.at[L + 1:2 * L + 2, :Dd].set(dpos)
    misc = misc.at[2 * L + 2, :Dd].set(mask_token)
    p["misc"] = misc

    enc_blocks = [block_params(next(it), E, hid) for _ in range(cfg["depth"])]
    dec_blocks = [block_params(next(it), Dd, dhid) for _ in range(cfg["decoder_depth"])]
    p["enc"] = pack_stack(enc_blocks, E, hid)
    p["dec"] = pack_stack(dec_blocks, Dd, dhid)

    # encoder final: norm + decoder_embed (internal -> no lane padding needed)
    p["enc_finw"] = xavier_uniform(next(it), (E, Dd))
    p["enc_finv"] = jnp.zeros((3, E), jnp.float32).at[0, :].set(1.0)

    # decoder final: norm + decoder_pred, lane-padded to 128 output columns.
    pred_w = xavier_uniform(next(it), (Dd, F))
    p["dec_finw"] = jnp.pad(pred_w, ((0, 0), (0, LANE - F)))
    p["dec_finv"] = jnp.zeros((3, LANE), jnp.float32).at[0, :Dd].set(1.0)
    return p


# ----------------------------------------------------------------------------
# Forward pass (glue: masking indices, padding; compute: 2 pallas_calls)
# ----------------------------------------------------------------------------
def _batch_block(batch):
    try:
        kind = jax.devices()[0].device_kind.lower()
    except Exception:
        kind = ""
    # v7x has two TensorCores per chip -> split the batch across them (grid=(B,),
    # "parallel"); v5e/v6e have one TC, so fold the batch into a single grid step.
    return 1 if ("v7" in kind and batch > 1) else batch


def stmae_pre_forward(params, imgs, cfg, key):
    N, L, _ = imgs.shape
    nd, nn_ = cfg["node_dim"], cfg["node_num"]
    F = nd * nn_
    key_node, key_mask = jax.random.split(key)
    bblk = _batch_block(N)

    # --- node masking (torch.rand -> topk -> zero out nodes) ---
    x4 = imgs.reshape(N, L, nn_, nd).transpose(0, 2, 1, 3)           # [N, nn, L, nd]
    noise_node = jax.random.uniform(key_node, (N, nn_))
    _, top_idx = jax.lax.top_k(noise_node, cfg["len_mask"])
    node_mask = jnp.zeros((N, nn_), bool).at[jnp.arange(N)[:, None], top_idx].set(True)
    x4 = jnp.where(node_mask[:, :, None, None], 0.0, x4)

    # --- conv1 + BN (Pallas kernel 1): time-padded features, per-tap matmuls ---
    feat = x4.transpose(0, 2, 3, 1).reshape(N, L, F)                 # [N, L, nd*nn]
    feat_pad = jnp.pad(feat, ((0, 0), (2, 2), (0, 0)))               # [N, L+4, F]
    emb = pallas_conv_bn(feat_pad, params["conv_w_taps"], params["conv_vec"])  # [N, L, 128]

    # --- MAE random-masking bookkeeping (indices -> one-hot; gathers run in-kernel) ---
    len_keep = int(L * (1.0 - cfg["mask_ratio"]))
    noise = jax.random.uniform(key_mask, (N, L))
    ids_shuffle = jnp.argsort(noise, axis=1)
    ids_restore = jnp.argsort(ids_shuffle, axis=1)
    ids_keep = ids_shuffle[:, :len_keep]
    sel_keep = jax.nn.one_hot(ids_keep, L, dtype=jnp.float32)        # [N, keep, L]
    kept = jnp.sum(sel_keep, axis=1)                                 # [N, L] (1 = kept)
    sel_rest = jnp.concatenate([jnp.swapaxes(sel_keep, 1, 2),
                                (1.0 - kept)[..., None]], axis=-1)   # [N, L, keep+1]

    # --- fused encoder + decoder stacks (Pallas kernel 2) ---
    pred = pallas_encdec(emb, sel_keep, sel_rest, params, cfg, bblk)[..., :F]  # [N, L, F]

    # --- select masked time-steps (torch mask.nonzero() row-major ordering) ---
    mask = jnp.ones((N, L), jnp.float32).at[:, :len_keep].set(0.0)
    mask = jnp.take_along_axis(mask, ids_restore, axis=1)
    num_masked = L - len_keep
    masked_pos = jnp.argsort(-mask, axis=1, stable=True)[:, :num_masked]
    imgs_flat = x4.transpose(0, 2, 1, 3).reshape(N, L, nn_ * nd)
    pred_sel = jnp.take_along_axis(pred, masked_pos[..., None], axis=1)
    imgs_sel = jnp.take_along_axis(imgs_flat, masked_pos[..., None], axis=1)
    return imgs_sel, pred_sel                                        # each [N, num_masked, F]


if __name__ == "__main__":
    cfg = dict(
        embed_dim=32, depth=2, num_heads=4,
        decoder_embed_dim=16, decoder_depth=1, decoder_num_heads=4,
        mlp_ratio=4.0, node_dim=6, window_size=16, node_num=7,
        mask_ratio=0.5, len_mask=1,
    )
    root = jax.random.PRNGKey(0)
    k_param, k_data, k_fwd = jax.random.split(root, 3)
    params = init_params(k_param, cfg)

    # input: [batch, window_size, node_num * node_dim] = [2, 16, 42]
    imgs = jax.random.normal(
        k_data, (2, cfg["window_size"], cfg["node_num"] * cfg["node_dim"]), jnp.float32)

    fwd = jax.jit(lambda p, im, k: stmae_pre_forward(p, im, cfg, k))
    imgs_out, pred_out = fwd(params, imgs, k_fwd)
    jax.block_until_ready((imgs_out, pred_out))
    assert imgs_out.shape == (2, 8, 42) and pred_out.shape == (2, 8, 42)
    assert bool(jnp.all(jnp.isfinite(pred_out))) and bool(jnp.all(jnp.isfinite(imgs_out)))
    print("KERNEL_OK")
</pallas_src>

<mosaic_0001>
module attributes {stable_mosaic.version = 11 : i64} {
  func.func @kernel(%arg0: memref<2x20x42xf32, #tpu.memory_space<vmem>>, %arg1: memref<5x42x128xf32, #tpu.memory_space<vmem>>, %arg2: memref<3x128xf32, #tpu.memory_space<vmem>>, %arg3: memref<2x16x128xf32, #tpu.memory_space<vmem>>) attributes {dimension_semantics = [], scalar_prefetch = 0 : i64, scratch_operands = 0 : i64, tpu.core_type = #tpu.core_type<tc>} {
    %c0 = arith.constant 0 : index
    %c0_0 = arith.constant 0 : index
    %c0_1 = arith.constant 0 : index
    %0 = vector.load %arg0[%c0, %c0_0, %c0_1] : memref<2x20x42xf32, #tpu.memory_space<vmem>>, vector<1x20x42xf32>
    %1 = vector.shape_cast %0 : vector<1x20x42xf32> to vector<20x42xf32>
    %2 = vector.extract_strided_slice %1 {offsets = [0, 0], sizes = [16, 42], strides = [1, 1]} : vector<20x42xf32> to vector<16x42xf32>
    %c0_2 = arith.constant 0 : index
    %c0_3 = arith.constant 0 : index
    %c0_4 = arith.constant 0 : index
    %3 = vector.load %arg1[%c0_2, %c0_3, %c0_4] : memref<5x42x128xf32, #tpu.memory_space<vmem>>, vector<1x42x128xf32>
    %4 = vector.shape_cast %3 : vector<1x42x128xf32> to vector<42x128xf32>
    %cst = arith.constant dense<0.000000e+00> : vector<16x128xf32>
    %5 = tpu.matmul %2, %4, %cst {dimension_numbers = #tpu.dot_dimension_numbers<[1], [0], [0], [1], [0, 0, 1, 1], [], []>} : vector<16x42xf32>, vector<42x128xf32>, vector<16x128xf32> -> vector<16x128xf32>
    %6 = vector.extract_strided_slice %1 {offsets = [1, 0], sizes = [16, 42], strides = [1, 1]} : vector<20x42xf32> to vector<16x42xf32>
    %c1 = arith.constant 1 : index
    %c0_5 = arith.constant 0 : index
    %c0_6 = arith.constant 0 : index
    %7 = vector.load %arg1[%c1, %c0_5, %c0_6] : memref<5x42x128xf32, #tpu.memory_space<vmem>>, vector<1x42x128xf32>
    %8 = vector.shape_cast %7 : vector<1x42x128xf32> to vector<42x128xf32>
    %cst_7 = arith.constant dense<0.000000e+00> : vector<16x128xf32>
    %9 = tpu.matmul %6, %8, %cst_7 {dimension_numbers = #tpu.dot_dimension_numbers<[1], [0], [0], [1], [0, 0, 1, 1], [], []>} : vector<16x42xf32>, vector<42x128xf32>, vector<16x128xf32> -> vector<16x128xf32>
    %10 = arith.addf %5, %9 : vector<16x128xf32>
    %11 = vector.extract_strided_slice %1 {offsets = [2, 0], sizes = [16, 42], strides = [1, 1]} : vector<20x42xf32> to vector<16x42xf32>
    %c2 = arith.constant 2 : index
    %c0_8 = arith.constant 0 : index
    %c0_9 = arith.constant 0 : index
    %12 = vector.load %arg1[%c2, %c0_8, %c0_9] : memref<5x42x128xf32, #tpu.memory_space<vmem>>, vector<1x42x128xf32>
    %13 = vector.shape_cast %12 : vector<1x42x128xf32> to vector<42x128xf32>
    %cst_10 = arith.constant dense<0.000000e+00> : vector<16x128xf32>
    %14 = tpu.matmul %11, %13, %cst_10 {dimension_numbers = #tpu.dot_dimension_numbers<[1], [0], [0], [1], [0, 0, 1, 1], [], []>} : vector<16x42xf32>, vector<42x128xf32>, vector<16x128xf32> -> vector<16x128xf32>
    %15 = arith.addf %10, %14 : vector<16x128xf32>
    %16 = vector.extract_strided_slice %1 {offsets = [3, 0], sizes = [16, 42], strides = [1, 1]} : vector<20x42xf32> to vector<16x42xf32>
    %c3 = arith.constant 3 : index
    %c0_11 = arith.constant 0 : index
    %c0_12 = arith.constant 0 : index
    %17 = vector.load %arg1[%c3, %c0_11, %c0_12] : memref<5x42x128xf32, #tpu.memory_space<vmem>>, vector<1x42x128xf32>
    %18 = vector.shape_cast %17 : vector<1x42x128xf32> to vector<42x128xf32>
    %cst_13 = arith.constant dense<0.000000e+00> : vector<16x128xf32>
    %19 = tpu.matmul %16, %18, %cst_13 {dimension_numbers = #tpu.dot_dimension_numbers<[1], [0], [0], [1], [0, 0, 1, 1], [], []>} : vector<16x42xf32>, vector<42x128xf32>, vector<16x128xf32> -> vector<16x128xf32>
    %20 = arith.addf %15, %19 : vector<16x128xf32>
    %21 = vector.extract_strided_slice %1 {offsets = [4, 0], sizes = [16, 42], strides = [1, 1]} : vector<20x42xf32> to vector<16x42xf32>
    %c4 = arith.constant 4 : index
    %c0_14 = arith.constant 0 : index
    %c0_15 = arith.constant 0 : index
    %22 = vector.load %arg1[%c4, %c0_14, %c0_15] : memref<5x42x128xf32, #tpu.memory_space<vmem>>, vector<1x42x128xf32>
    %23 = vector.shape_cast %22 : vector<1x42x128xf32> to vector<42x128xf32>
    %cst_16 = arith.constant dense<0.000000e+00> : vector<16x128xf32>
    %24 = tpu.matmul %21, %23, %cst_16 {dimension_numbers = #tpu.dot_dimension_numbers<[1], [0], [0], [1], [0, 0, 1, 1], [], []>} : vector<16x42xf32>, vector<42x128xf32>, vector<16x128xf32> -> vector<16x128xf32>
    %25 = arith.addf %20, %24 : vector<16x128xf32>
    %c0_17 = arith.constant 0 : index
    %c0_18 = arith.constant 0 : index
    %26 = vector.load %arg2[%c0_17, %c0_18] : memref<3x128xf32, #tpu.memory_space<vmem>>, vector<1x128xf32>
    %27 = vector.broadcast %26 : vector<1x128xf32> to vector<16x128xf32>
    %28 = arith.addf %25, %27 : vector<16x128xf32>
    %c1_19 = arith.constant 1 : index
    %c0_20 = arith.constant 0 : index
    %c0_21 = arith.constant 0 : index
    %29 = vector.load %arg0[%c1_19, %c0_20, %c0_21] : memref<2x20x42xf32, #tpu.memory_space<vmem>>, vector<1x20x42xf32>
    %30 = vector.shape_cast %29 : vector<1x20x42xf32> to vector<20x42xf32>
    %31 = vector.extract_strided_slice %30 {offsets = [0, 0], sizes = [16, 42], strides = [1, 1]} : vector<20x42xf32> to vector<16x42xf32>
    %c0_22 = arith.constant 0 : index
    %c0_23 = arith.constant 0 : index
    %c0_24 = arith.constant 0 : index
    %32 = vector.load %arg1[%c0_22, %c0_23, %c0_24] : memref<5x42x128xf32, #tpu.memory_space<vmem>>, vector<1x42x128xf32>
    %33 = vector.shape_cast %32 : vector<1x42x128xf32> to vector<42x128xf32>
    %cst_25 = arith.constant dense<0.000000e+00> : vector<16x128xf32>
    %34 = tpu.matmul %31, %33, %cst_25 {dimension_numbers = #tpu.dot_dimension_numbers<[1], [0], [0], [1], [0, 0, 1, 1], [], []>} : vector<16x42xf32>, vector<42x128xf32>, vector<16x128xf32> -> vector<16x128xf32>
    %35 = vector.extract_strided_slice %30 {offsets = [1, 0], sizes = [16, 42], strides = [1, 1]} : vector<20x42xf32> to vector<16x42xf32>
    %c1_26 = arith.constant 1 : index
    %c0_27 = arith.constant 0 : index
    %c0_28 = arith.constant 0 : index
    %36 = vector.load %arg1[%c1_26, %c0_27, %c0_28] : memref<5x42x128xf32, #tpu.memory_space<vmem>>, vector<1x42x128xf32>
    %37 = vector.shape_cast %36 : vector<1x42x128xf32> to vector<42x128xf32>
    %cst_29 = arith.constant dense<0.000000e+00> : vector<16x128xf32>
    %38 = tpu.matmul %35, %37, %cst_29 {dimension_numbers = #tpu.dot_dimension_numbers<[1], [0], [0], [1], [0, 0, 1, 1], [], []>} : vector<16x42xf32>, vector<42x128xf32>, vector<16x128xf32> -> vector<16x128xf32>
    %39 = arith.addf %34, %38 : vector<16x128xf32>
    %40 = vector.extract_strided_slice %30 {offsets = [2, 0], sizes = [16, 42], strides = [1, 1]} : vector<20x42xf32> to vector<16x42xf32>
    %c2_30 = arith.constant 2 : index
    %c0_31 = arith.constant 0 : index
    %c0_32 = arith.constant 0 : index
    %41 = vector.load %arg1[%c2_30, %c0_31, %c0_32] : memref<5x42x128xf32, #tpu.memory_space<vmem>>, vector<1x42x128xf32>
    %42 = vector.shape_cast %41 : vector<1x42x128xf32> to vector<42x128xf32>
    %cst_33 = arith.constant dense<0.000000e+00> : vector<16x128xf32>
    %43 = tpu.matmul %40, %42, %cst_33 {dimension_numbers = #tpu.dot_dimension_numbers<[1], [0], [0], [1], [0, 0, 1, 1], [], []>} : vector<16x42xf32>, vector<42x128xf32>, vector<16x128xf32> -> vector<16x128xf32>
    %44 = arith.addf %39, %43 : vector<16x128xf32>
    %45 = vector.extract_strided_slice %30 {offsets = [3, 0], sizes = [16, 42], strides = [1, 1]} : vector<20x42xf32> to vector<16x42xf32>
    %c3_34 = arith.constant 3 : index
    %c0_35 = arith.constant 0 : index
    %c0_36 = arith.constant 0 : index
    %46 = vector.load %arg1[%c3_34, %c0_35, %c0_36] : memref<5x42x128xf32, #tpu.memory_space<vmem>>, vector<1x42x128xf32>
    %47 = vector.shape_cast %46 : vector<1x42x128xf32> to vector<42x128xf32>
    %cst_37 = arith.constant dense<0.000000e+00> : vector<16x128xf32>
    %48 = tpu.matmul %45, %47, %cst_37 {dimension_numbers = #tpu.dot_dimension_numbers<[1], [0], [0], [1], [0, 0, 1, 1], [], []>} : vector<16x42xf32>, vector<42x128xf32>, vector<16x128xf32> -> vector<16x128xf32>
    %49 = arith.addf %44, %48 : vector<16x128xf32>
    %50 = vector.extract_strided_slice %30 {offsets = [4, 0], sizes = [16, 42], strides = [1, 1]} : vector<20x42xf32> to vector<16x42xf32>
    %c4_38 = arith.constant 4 : index
    %c0_39 = arith.constant 0 : index
    %c0_40 = arith.constant 0 : index
    %51 = vector.load %arg1[%c4_38, %c0_39, %c0_40] : memref<5x42x128xf32, #tpu.memory_space<vmem>>, vector<1x42x128xf32>
    %52 = vector.shape_cast %51 : vector<1x42x128xf32> to vector<42x128xf32>
    %cst_41 = arith.constant dense<0.000000e+00> : vector<16x128xf32>
    %53 = tpu.matmul %50, %52, %cst_41 {dimension_numbers = #tpu.dot_dimension_numbers<[1], [0], [0], [1], [0, 0, 1, 1], [], []>} : vector<16x42xf32>, vector<42x128xf32>, vector<16x128xf32> -> vector<16x128xf32>
    %54 = arith.addf %49, %53 : vector<16x128xf32>
    %c0_42 = arith.constant 0 : index
    %c0_43 = arith.constant 0 : index
    %55 = vector.load %arg2[%c0_42, %c0_43] : memref<3x128xf32, #tpu.memory_space<vmem>>, vector<1x128xf32>
    %56 = vector.broadcast %55 : vector<1x128xf32> to vector<16x128xf32>
    %57 = arith.addf %54, %56 : vector<16x128xf32>
    %58 = tpu.concatenate %28, %57 in 0 : vector<16x128xf32>, vector<16x128xf32> -> vector<32x128xf32>
    %cst_44 = arith.constant dense<0.000000e+00> : vector<128xf32>
    %59 = vector.multi_reduction <add>, %58, %cst_44 [0] : vector<32x128xf32> to vector<128xf32>
    %60 = vector.shape_cast %59 : vector<128xf32> to vector<1x128xf32>
    %cst_45 = arith.constant 3.200000e+01 : f32
    %61 = vector.broadcast %cst_45 : f32 to vector<1x128xf32>
    %62 = arith.divf %60, %61 : vector<1x128xf32>
    %63 = vector.broadcast %62 : vector<1x128xf32> to vector<32x128xf32>
    %64 = arith.subf %58, %63 : vector<32x128xf32>
    %65 = arith.mulf %64, %64 : vector<32x128xf32>
    %cst_46 = arith.constant dense<0.000000e+00> : vector<128xf32>
    %66 = vector.multi_reduction <add>, %65, %cst_46 [0] : vector<32x128xf32> to vector<128xf32>
    %67 = vector.shape_cast %66 : vector<128xf32> to vector<1x128xf32>
    %cst_47 = arith.constant 3.200000e+01 : f32
    %68 = vector.broadcast %cst_47 : f32 to vector<1x128xf32>
    %69 = arith.divf %67, %68 : vector<1x128xf32>
    %70 = vector.broadcast %62 : vector<1x128xf32> to vector<32x128xf32>
    %71 = arith.subf %58, %70 : vector<32x128xf32>
    %cst_48 = arith.constant 9.99999974E-6 : f32
    %72 = vector.broadcast %cst_48 : f32 to vector<1x128xf32>
    %73 = arith.addf %69, %72 : vector<1x128xf32>
    %74 = math.rsqrt %73 : vector<1x128xf32>
    %75 = vector.broadcast %74 : vector<1x128xf32> to vector<32x128xf32>
    %76 = arith.mulf %71, %75 : vector<32x128xf32>
    %c1_49 = arith.constant 1 : index
    %c0_50 = arith.constant 0 : index
    %77 = vector.load %arg2[%c1_49, %c0_50] : memref<3x128xf32, #tpu.memory_space<vmem>>, vector<1x128xf32>
    %78 = vector.broadcast %77 : vector<1x128xf32> to vector<32x128xf32>
    %79 = arith.mulf %76, %78 : vector<32x128xf32>
    %c2_51 = arith.constant 2 : index
    %c0_52 = arith.constant 0 : index
    %80 = vector.load %arg2[%c2_51, %c0_52] : memref<3x128xf32, #tpu.memory_space<vmem>>, vector<1x128xf32>
    %81 = vector.broadcast %80 : vector<1x128xf32> to vector<32x128xf32>
    %82 = arith.addf %79, %81 : vector<32x128xf32>
    %83 = vector.extract_strided_slice %82 {offsets = [0, 0], sizes = [16, 128], strides = [1, 1]} : vector<32x128xf32> to vector<16x128xf32>
    %c0_53 = arith.constant 0 : index
    %c0_54 = arith.constant 0 : index
    %c0_55 = arith.constant 0 : index
    %84 = vector.load %arg3[%c0_53, %c0_54, %c0_55] : memref<2x16x128xf32, #tpu.memory_space<vmem>>, vector<1x16x128xf32>
    %85 = vector.shape_cast %84 : vector<1x16x128xf32> to vector<16x128xf32>
    %86 = vector.shape_cast %83 : vector<16x128xf32> to vector<1x16x128xf32>
    tpu.vector_store %arg3[%c0_53, %c0_54, %c0_55], %86 {strides = array<i32>} : memref<2x16x128xf32, #tpu.memory_space<vmem>>, vector<1x16x128xf32>,
    %87 = vector.extract_strided_slice %82 {offsets = [16, 0], sizes = [16, 128], strides = [1, 1]} : vector<32x128xf32> to vector<16x128xf32>
    %c1_56 = arith.constant 1 : index
    %c0_57 = arith.constant 0 : index
    %c0_58 = arith.constant 0 : index
    %88 = vector.load %arg3[%c1_56, %c0_57, %c0_58] : memref<2x16x128xf32, #tpu.memory_space<vmem>>, vector<1x16x128xf32>
    %89 = vector.shape_cast %88 : vector<1x16x128xf32> to vector<16x128xf32>
    %90 = vector.shape_cast %87 : vector<16x128xf32> to vector<1x16x128xf32>
    tpu.vector_store %arg3[%c1_56, %c0_57, %c0_58], %90 {strides = array<i32>} : memref<2x16x128xf32, #tpu.memory_space<vmem>>, vector<1x16x128xf32>,
    return
  }
}

module attributes {stable_mosaic.version = 11 : i64} {
  func.func @kernel(%arg0: i32, %arg1: memref<2x16x128xf32, #tpu.memory_space<vmem>>, %arg2: memref<2x8x16xf32, #tpu.memory_space<vmem>>, %arg3: memref<2x16x9xf32, #tpu.memory_space<vmem>>, %arg4: memref<35x32xf32, #tpu.memory_space<vmem>>, %arg5: memref<2x32x128xf32, #tpu.memory_space<vmem>>, %arg6: memref<2x32x128xf32, #tpu.memory_space<vmem>>, %arg7: memref<2x128x32xf32, #tpu.memory_space<vmem>>, %arg8: memref<2x8x128xf32, #tpu.memory_space<vmem>>, %arg9: memref<32x16xf32, #tpu.memory_space<vmem>>, %arg10: memref<3x32xf32, #tpu.memory_space<vmem>>, %arg11: memref<1x16x64xf32, #tpu.memory_space<vmem>>, %arg12: memref<1x16x64xf32, #tpu.memory_space<vmem>>, %arg13: memref<1x64x16xf32, #tpu.memory_space<vmem>>, %arg14: memref<1x8x64xf32, #tpu.memory_space<vmem>>, %arg15: memref<16x128xf32, #tpu.memory_space<vmem>>, %arg16: memref<3x128xf32, #tpu.memory_space<vmem>>, %arg17: memref<2x16x128xf32, #tpu.memory_space<vmem>>) attributes {dimension_semantics = [#tpu.dimension_semantics<parallel>], iteration_bounds = array<i64: 1>, scalar_prefetch = 0 : i64, scratch_operands = 0 : i64, tpu.core_type = #tpu.core_type<tc>, window_params = [{transform_indices = @transform_0, window_bounds = array<i64: 2, 16, 128>}, {transform_indices = @transform_1, window_bounds = array<i64: 2, 8, 16>}, {transform_indices = @transform_2, window_bounds = array<i64: 2, 16, 9>}, {pipeline_mode = #tpu.pipeline_mode<synchronous>, transform_indices = @transform_3, window_bounds = array<i64: 35, 32>}, {pipeline_mode = #tpu.pipeline_mode<synchronous>, transform_indices = @transform_4, window_bounds = array<i64: 2, 32, 128>}, {pipeline_mode = #tpu.pipeline_mode<synchronous>, transform_indices = @transform_5, window_bounds = array<i64: 2, 32, 128>}, {pipeline_mode = #tpu.pipeline_mode<synchronous>, transform_indices = @transform_6, window_bounds = array<i64: 2, 128, 32>}, {pipeline_mode = #tpu.pipeline_mode<synchronous>, transform_indices = @transform_7, window_bounds = array<i64: 2, 8, 128>}, {pipeline_mode = #tpu.pipeline_mode<synchronous>, transform_indices = @transform_8, window_bounds = array<i64: 32, 16>}, {pipeline_mode = #tpu.pipeline_mode<synchronous>, transform_indices = @transform_9, window_bounds = array<i64: 3, 32>}, {pipeline_mode = #tpu.pipeline_mode<synchronous>, transform_indices = @transform_10, window_bounds = array<i64: 1, 16, 64>}, {pipeline_mode = #tpu.pipeline_mode<synchronous>, transform_indices = @transform_11, window_bounds = array<i64: 1, 16, 64>}, {pipeline_mode = #tpu.pipeline_mode<synchronous>, transform_indices = @transform_12, window_bounds = array<i64: 1, 64, 16>}, {pipeline_mode = #tpu.pipeline_mode<synchronous>, transform_indices = @transform_13, window_bounds = array<i64: 1, 8, 64>}, {pipeline_mode = #tpu.pipeline_mode<synchronous>, transform_indices = @transform_14, window_bounds = array<i64: 16, 128>}, {pipeline_mode = #tpu.pipeline_mode<synchronous>, transform_indices = @transform_15, window_bounds = array<i64: 3, 128>}, {transform_indices = @transform_16, window_bounds = array<i64: 2, 16, 128>}]} {
    %c0 = arith.constant 0 : index
    %c0_0 = arith.constant 0 : index
    %0 = vector.load %arg4[%c0, %c0_0] : memref<35x32xf32, #tpu.memory_space<vmem>>, vector<16x32xf32>
    %c16 = arith.constant 16 : index
    %c0_1 = arith.constant 0 : index
    %1 = vector.load %arg4[%c16, %c0_1] : memref<35x32xf32, #tpu.memory_space<vmem>>, vector<1x32xf32>
    %c17 = arith.constant 17 : index
    %c0_2 = arith.constant 0 : index
    %2 = vector.load %arg4[%c17, %c0_2] : memref<35x32xf32, #tpu.memory_space<vmem>>, vector<17x16xf32>
    %c34 = arith.constant 34 : index
    %c0_3 = arith.constant 0 : index
    %3 = vector.load %arg4[%c34, %c0_3] : memref<35x32xf32, #tpu.memory_space<vmem>>, vector<1x16xf32>
    %c0_4 = arith.constant 0 : index
    %c0_5 = arith.constant 0 : index
    %c0_6 = arith.constant 0 : index
    %4 = vector.load %arg1[%c0_4, %c0_5, %c0_6] : memref<2x16x128xf32, #tpu.memory_space<vmem>>, vector<1x16x128xf32>
    %5 = vector.shape_cast %4 : vector<1x16x128xf32> to vector<16x128xf32>
    %6 = vector.extract_strided_slice %5 {offsets = [0, 0], sizes = [16, 32], strides = [1, 1]} : vector<16x128xf32> to vector<16x32xf32>
    %7 = arith.addf %6, %0 : vector<16x32xf32>
    %c0_7 = arith.constant 0 : index
    %c0_8 = arith.constant 0 : index
    %c0_9 = arith.constant 0 : index
    %8 = vector.load %arg2[%c0_7, %c0_8, %c0_9] : memref<2x8x16xf32, #tpu.memory_space<vmem>>, vector<1x8x16xf32>
    %9 = vector.shape_cast %8 : vector<1x8x16xf32> to vector<8x16xf32>
    %cst = arith.constant dense<0.000000e+00> : vector<8x32xf32>
    %10 = tpu.matmul %9, %7, %cst {dimension_numbers = #tpu.dot_dimension_numbers<[1], [0], [0], [1], [0, 0, 1, 1], [], []>} : vector<8x16xf32>, vector<16x32xf32>, vector<8x32xf32> -> vector<8x32xf32>
    %11 = tpu.concatenate %1, %10 in 0 : vector<1x32xf32>, vector<8x32xf32> -> vector<9x32xf32>
    %c0_10 = arith.constant 0 : index
    %c0_11 = arith.constant 0 : index
    %c0_12 = arith.constant 0 : index
    %12 = vector.load %arg5[%c0_10, %c0_11, %c0_12] : memref<2x32x128xf32, #tpu.memory_space<vmem>>, vector<1x32x128xf32>
    %13 = vector.shape_cast %12 : vector<1x32x128xf32> to vector<32x128xf32>
    %c0_13 = arith.constant 0 : index
    %c0_14 = arith.constant 0 : index
    %c0_15 = arith.constant 0 : index
    %14 = vector.load %arg8[%c0_13, %c0_14, %c0_15] : memref<2x8x128xf32, #tpu.memory_space<vmem>>, vector<1x8x128xf32>
    %15 = vector.shape_cast %14 : vector<1x8x128xf32> to vector<8x128xf32>
    %16 = vector.extract_strided_slice %15 {offsets = [0, 0], sizes = [1, 32], strides = [1, 1]} : vector<8x128xf32> to vector<1x32xf32>
    %17 = vector.extract_strided_slice %15 {offsets = [1, 0], sizes = [1, 32], strides = [1, 1]} : vector<8x128xf32> to vector<1x32xf32>
    %18 = vector.extract_strided_slice %15 {offsets = [2, 0], sizes = [1, 32], strides = [1, 1]} : vector<8x128xf32> to vector<1x32xf32>
    %19 = vector.extract_strided_slice %15 {offsets = [3, 0], sizes = [1, 32], strides = [1, 1]} : vector<8x128xf32> to vector<1x32xf32>
    %20 = vector.extract_strided_slice %15 {offsets = [4, 0], sizes = [1, 32], strides = [1, 1]} : vector<8x128xf32> to vector<1x32xf32>
    %21 = vector.extract_strided_slice %15 {offsets = [5, 0], sizes = [1, 32], strides = [1, 1]} : vector<8x128xf32> to vector<1x32xf32>
    %22 = vector.extract_strided_slice %15 {offsets = [6, 0], sizes = [1, 96], strides = [1, 1]} : vector<8x128xf32> to vector<1x96xf32>
    %23 = vector.extract_strided_slice %15 {offsets = [7, 0], sizes = [1, 128], strides = [1, 1]} : vector<8x128xf32> to vector<1x128xf32>
    %cst_16 = arith.constant dense<0.000000e+00> : vector<9xf32>
    %24 = vector.multi_reduction <add>, %11, %cst_16 [1] : vector<9x32xf32> to vector<9xf32>
    %25 = vector.shape_cast %24 : vector<9xf32> to vector<9x1xf32>
    %cst_17 = arith.constant 3.200000e+01 : f32
    %26 = vector.broadcast %cst_17 : f32 to vector<9x1xf32>
    %27 = arith.divf %25, %26 : vector<9x1xf32>
    %28 = vector.broadcast %27 : vector<9x1xf32> to vector<9x32xf32>
    %29 = arith.subf %11, %28 : vector<9x32xf32>
    %30 = arith.mulf %29, %29 : vector<9x32xf32>
    %cst_18 = arith.constant dense<0.000000e+00> : vector<9xf32>
    %31 = vector.multi_reduction <add>, %30, %cst_18 [1] : vector<9x32xf32> to vector<9xf32>
    %32 = vector.shape_cast %31 : vector<9xf32> to vector<9x1xf32>
    %cst_19 = arith.constant 3.200000e+01 : f32
    %33 = vector.broadcast %cst_19 : f32 to vector<9x1xf32>
    %34 = arith.divf %32, %33 : vector<9x1xf32>
    %35 = vector.broadcast %27 : vector<9x1xf32> to vector<9x32xf32>
    %36 = arith.subf %11, %35 : vector<9x32xf32>
    %cst_20 = arith.constant 9.99999974E-6 : f32
    %37 = vector.broadcast %cst_20 : f32 to vector<9x1xf32>
    %38 = arith.addf %34, %37 : vector<9x1xf32>
    %39 = math.rsqrt %38 : vector<9x1xf32>
    %40 = vector.broadcast %39 : vector<9x1xf32> to vector<9x32xf32>
    %41 = arith.mulf %36, %40 : vector<9x32xf32>
    %42 = vector.broadcast %16 : vector<1x32xf32> to vector<9x32xf32>
    %43 = arith.mulf %41, %42 : vector<9x32xf32>
    %44 = vector.broadcast %17 : vector<1x32xf32> to vector<9x32xf32>
    %45 = arith.addf %43, %44 : vector<9x32xf32>
    %46 = vector.extract_strided_slice %13 {offsets = [0, 0], sizes = [32, 96], strides = [1, 1]} : vector<32x128xf32> to vector<32x96xf32>
    %cst_21 = arith.constant dense<0.000000e+00> : vector<9x96xf32>
    %47 = tpu.matmul %45, %46, %cst_21 {dimension_numbers = #tpu.dot_dimension_numbers<[1], [0], [0], [1], [0, 0, 1, 1], [], []>} : vector<9x32xf32>, vector<32x96xf32>, vector<9x96xf32> -> vector<9x96xf32>
    %48 = vector.broadcast %22 : vector<1x96xf32> to vector<9x96xf32>
    %49 = arith.addf %47, %48 : vector<9x96xf32>
    %50 = vector.extract_strided_slice %49 {offsets = [0, 0], sizes = [9, 8], strides = [1, 1]} : vector<9x96xf32> to vector<9x8xf32>
    %51 = vector.extract_strided_slice %49 {offsets = [0, 32], sizes = [9, 8], strides = [1, 1]} : vector<9x96xf32> to vector<9x8xf32>
    %52 = vector.extract_strided_slice %49 {offsets = [0, 64], sizes = [9, 8], strides = [1, 1]} : vector<9x96xf32> to vector<9x8xf32>
    %53 = tpu.transpose %51, [1, 0] : vector<9x8xf32> -> vector<8x9xf32>
    %cst_22 = arith.constant dense<0.000000e+00> : vector<9x9xf32>
    %54 = tpu.matmul %50, %53, %cst_22 {dimension_numbers = #tpu.dot_dimension_numbers<[1], [0], [0], [1], [0, 0, 1, 1], [], []>} : vector<9x8xf32>, vector<8x9xf32>, vector<9x9xf32> -> vector<9x9xf32>
    %cst_23 = arith.constant 0.353553385 : f32
    %55 = vector.broadcast %cst_23 : f32 to vector<9x9xf32>
    %56 = arith.mulf %54, %55 : vector<9x9xf32>
    %cst_24 = arith.constant dense<0xFF800000> : vector<9xf32>
    %57 = vector.multi_reduction <maximumf>, %56, %cst_24 [1] : vector<9x9xf32> to vector<9xf32>
    %58 = vector.shape_cast %57 : vector<9xf32> to vector<9x1xf32>
    %59 = vector.broadcast %58 : vector<9x1xf32> to vector<9x9xf32>
    %60 = arith.subf %56, %59 : vector<9x9xf32>
    %61 = math.exp %60 : vector<9x9xf32>
    %cst_25 = arith.constant dense<0.000000e+00> : vector<9xf32>
    %62 = vector.multi_reduction <add>, %61, %cst_25 [1] : vector<9x9xf32> to vector<9xf32>
    %63 = vector.shape_cast %62 : vector<9xf32> to vector<9x1xf32>
    %64 = tpu.reciprocal %63 {approx = true} : vector<9x1xf32> -> vector<9x1xf32>
    %65 = vector.broadcast %64 : vector<9x1xf32> to vector<9x9xf32>
    %66 = arith.mulf %61, %65 : vector<9x9xf32>
    %cst_26 = arith.constant dense<0.000000e+00> : vector<9x8xf32>
    %67 = tpu.matmul %66, %52, %cst_26 {dimension_numbers = #tpu.dot_dimension_numbers<[1], [0], [0], [1], [0, 0, 1, 1], [], []>} : vector<9x9xf32>, vector<9x8xf32>, vector<9x8xf32> -> vector<9x8xf32>
    %68 = vector.extract_strided_slice %49 {offsets = [0, 8], sizes = [9, 8], strides = [1, 1]} : vector<9x96xf32> to vector<9x8xf32>
    %69 = vector.extract_strided_slice %49 {offsets = [0, 40], sizes = [9, 8], strides = [1, 1]} : vector<9x96xf32> to vector<9x8xf32>
    %70 = vector.extract_strided_slice %49 {offsets = [0, 72], sizes = [9, 8], strides = [1, 1]} : vector<9x96xf32> to vector<9x8xf32>
    %71 = tpu.transpose %69, [1, 0] : vector<9x8xf32> -> vector<8x9xf32>
    %cst_27 = arith.constant dense<0.000000e+00> : vector<9x9xf32>
    %72 = tpu.matmul %68, %71, %cst_27 {dimension_numbers = #tpu.dot_dimension_numbers<[1], [0], [0], [1], [0, 0, 1, 1], [], []>} : vector<9x8xf32>, vector<8x9xf32>, vector<9x9xf32> -> vector<9x9xf32>
    %cst_28 = arith.constant 0.353553385 : f32
    %73 = vector.broadcast %cst_28 : f32 to vector<9x9xf32>
    %74 = arith.mulf %72, %73 : vector<9x9xf32>
    %cst_29 = arith.constant dense<0xFF800000> : vector<9xf32>
    %75 = vector.multi_reduction <maximumf>, %74, %cst_29 [1] : vector<9x9xf32> to vector<9xf32>
    %76 = vector.shape_cast %75 : vector<9xf32> to vector<9x1xf32>
    %77 = vector.broadcast %76 : vector<9x1xf32> to vector<9x9xf32>
    %78 = arith.subf %74, %77 : vector<9x9xf32>
    %79 = math.exp %78 : vector<9x9xf32>
    %cst_30 = arith.constant dense<0.000000e+00> : vector<9xf32>
    %80 = vector.multi_reduction <add>, %79, %cst_30 [1] : vector<9x9xf32> to vector<9xf32>
    %81 = vector.shape_cast %80 : vector<9xf32> to vector<9x1xf32>
    %82 = tpu.reciprocal %81 {approx = true} : vector<9x1xf32> -> vector<9x1xf32>
    %83 = vector.broadcast %82 : vector<9x1xf32> to vector<9x9xf32>
    %84 = arith.mulf %79, %83 : vector<9x9xf32>
    %cst_31 = arith.constant dense<0.000000e+00> : vector<9x8xf32>
    %85 = tpu.matmul %84, %70, %cst_31 {dimension_numbers = #tpu.dot_dimension_numbers<[1], [0], [0], [1], [0, 0, 1, 1], [], []>} : vector<9x9xf32>, vector<9x8xf32>, vector<9x8xf32> -> vector<9x8xf32>
    %86 = vector.extract_strided_slice %49 {offsets = [0, 16], sizes = [9, 8], strides = [1, 1]} : vector<9x96xf32> to vector<9x8xf32>
    %87 = vector.extract_strided_slice %49 {offsets = [0, 48], sizes = [9, 8], strides = [1, 1]} : vector<9x96xf32> to vector<9x8xf32>
    %88 = vector.extract_strided_slice %49 {offsets = [0, 80], sizes = [9, 8], strides = [1, 1]} : vector<9x96xf32> to vector<9x8xf32>
    %89 = tpu.transpose %87, [1, 0] : vector<9x8xf32> -> vector<8x9xf32>
    %cst_32 = arith.constant dense<0.000000e+00> : vector<9x9xf32>
    %90 = tpu.matmul %86, %89, %cst_32 {dimension_numbers = #tpu.dot_dimension_numbers<[1], [0], [0], [1], [0, 0, 1, 1], [], []>} : vector<9x8xf32>, vector<8x9xf32>, vector<9x9xf32> -> vector<9x9xf32>
    %cst_33 = arith.constant 0.353553385 : f32
    %91 = vector.broadcast %cst_33 : f32 to vector<9x9xf32>
    %92 = arith.mulf %90, %91 : vector<9x9xf32>
    %cst_34 = arith.constant dense<0xFF800000> : vector<9xf32>
    %93 = vector.multi_reduction <maximumf>, %92, %cst_34 [1] : vector<9x9xf32> to vector<9xf32>
    %94 = vector.shape_cast %93 : vector<9xf32> to vector<9x1xf32>
    %95 = vector.broadcast %94 : vector<9x1xf32> to vector<9x9xf32>
    %96 = arith.subf %92, %95 : vector<9x9xf32>
    %97 = math.exp %96 : vector<9x9xf32>
    %cst_35 = arith.constant dense<0.000000e+00> : vector<9xf32>
    %98 = vector.multi_reduction <add>, %97, %cst_35 [1] : vector<9x9xf32> to vector<9xf32>
    %99 = vector.shape_cast %98 : vector<9xf32> to vector<9x1xf32>
    %100 = tpu.reciprocal %99 {approx = true} : vector<9x1xf32> -> vector<9x1xf32>
    %101 = vector.broadcast %100 : vector<9x1xf32> to vector<9x9xf32>
    %102 = arith.mulf %97, %101 : vector<9x9xf32>
    %cst_36 = arith.constant dense<0.000000e+00> : vector<9x8xf32>
    %103 = tpu.matmul %102, %88, %cst_36 {dimension_numbers = #tpu.dot_dimension_numbers<[1], [0], [0], [1], [0, 0, 1, 1], [], []>} : vector<9x9xf32>, vector<9x8xf32>, vector<9x8xf32> -> vector<9x8xf32>
    %104 = vector.extract_strided_slice %49 {offsets = [0, 24], sizes = [9, 8], strides = [1, 1]} : vector<9x96xf32> to vector<9x8xf32>
    %105 = vector.extract_strided_slice %49 {offsets = [0, 56], sizes = [9, 8], strides = [1, 1]} : vector<9x96xf32> to vector<9x8xf32>
    %106 = vector.extract_strided_slice %49 {offsets = [0, 88], sizes = [9, 8], strides = [1, 1]} : vector<9x96xf32> to vector<9x8xf32>
    %107 = tpu.transpose %105, [1, 0] : vector<9x8xf32> -> vector<8x9xf32>
    %cst_37 = arith.constant dense<0.000000e+00> : vector<9x9xf32>
    %108 = tpu.matmul %104, %107, %cst_37 {dimension_numbers = #tpu.dot_dimension_numbers<[1], [0], [0], [1], [0, 0, 1, 1], [], []>} : vector<9x8xf32>, vector<8x9xf32>, vector<9x9xf32> -> vector<9x9xf32>
    %cst_38 = arith.constant 0.353553385 : f32
    %109 = vector.broadcast %cst_38 : f32 to vector<9x9xf32>
    %110 = arith.mulf %108, %109 : vector<9x9xf32>
    %cst_39 = arith.constant dense<0xFF800000> : vector<9xf32>
    %111 = vector.multi_reduction <maximumf>, %110, %cst_39 [1] : vector<9x9xf32> to vector<9xf32>
    %112 = vector.shape_cast %111 : vector<9xf32> to vector<9x1xf32>
    %113 = vector.broadcast %112 : vector<9x1xf32> to vector<9x9xf32>
    %114 = arith.subf %110, %113 : vector<9x9xf32>
    %115 = math.exp %114 : vector<9x9xf32>
    %cst_40 = arith.constant dense<0.000000e+00> : vector<9xf32>
    %116 = vector.multi_reduction <add>, %115, %cst_40 [1] : vector<9x9xf32> to vector<9xf32>
    %117 = vector.shape_cast %116 : vector<9xf32> to vector<9x1xf32>
    %118 = tpu.reciprocal %117 {approx = true} : vector<9x1xf32> -> vector<9x1xf32>
    %119 = vector.broadcast %118 : vector<9x1xf32> to vector<9x9xf32>
    %120 = arith.mulf %115, %119 : vector<9x9xf32>
    %cst_41 = arith.constant dense<0.000000e+00> : vector<9x8xf32>
    %121 = tpu.matmul %120, %106, %cst_41 {dimension_numbers = #tpu.dot_dimension_numbers<[1], [0], [0], [1], [0, 0, 1, 1], [], []>} : vector<9x9xf32>, vector<9x8xf32>, vector<9x8xf32> -> vector<9x8xf32>
    %122 = tpu.concatenate %67, %85, %103, %121 in 1 : vector<9x8xf32>, vector<9x8xf32>, vector<9x8xf32>, vector<9x8xf32> -> vector<9x32xf32>
    %123 = vector.extract_strided_slice %13 {offsets = [0, 96], sizes = [32, 32], strides = [1, 1]} : vector<32x128xf32> to vector<32x32xf32>
    %cst_42 = arith.constant dense<0.000000e+00> : vector<9x32xf32>
    %124 = tpu.matmul %122, %123, %cst_42 {dimension_numbers = #tpu.dot_dimension_numbers<[1], [0], [0], [1], [0, 0, 1, 1], [], []>} : vector<9x32xf32>, vector<32x32xf32>, vector<9x32xf32> -> vector<9x32xf32>
    %125 = arith.addf %11, %124 : vector<9x32xf32>
    %126 = vector.broadcast %20 : vector<1x32xf32> to vector<9x32xf32>
    %127 = arith.addf %125, %126 : vector<9x32xf32>
    %cst_43 = arith.constant dense<0.000000e+00> : vector<9xf32>
    %128 = vector.multi_reduction <add>, %127, %cst_43 [1] : vector<9x32xf32> to vector<9xf32>
    %129 = vector.shape_cast %128 : vector<9xf32> to vector<9x1xf32>
    %cst_44 = arith.constant 3.200000e+01 : f32
    %130 = vector.broadcast %cst_44 : f32 to vector<9x1xf32>
    %131 = arith.divf %129, %130 : vector<9x1xf32>
    %132 = vector.broadcast %131 : vector<9x1xf32> to vector<9x32xf32>
    %133 = arith.subf %127, %132 : vector<9x32xf32>
    %134 = arith.mulf %133, %133 : vector<9x32xf32>
    %cst_45 = arith.constant dense<0.000000e+00> : vector<9xf32>
    %135 = vector.multi_reduction <add>, %134, %cst_45 [1] : vector<9x32xf32> to vector<9xf32>
    %136 = vector.shape_cast %135 : vector<9xf32> to vector<9x1xf32>
    %cst_46 = arith.constant 3.200000e+01 : f32
    %137 = vector.broadcast %cst_46 : f32 to vector<9x1xf32>
    %138 = arith.divf %136, %137 : vector<9x1xf32>
    %139 = vector.broadcast %131 : vector<9x1xf32> to vector<9x32xf32>
    %140 = arith.subf %127, %139 : vector<9x32xf32>
    %cst_47 = arith.constant 9.99999974E-6 : f32
    %141 = vector.broadcast %cst_47 : f32 to vector<9x1xf32>
    %142 = arith.addf %138, %141 : vector<9x1xf32>
    %143 = math.rsqrt %142 : vector<9x1xf32>
    %144 = vector.broadcast %143 : vector<9x1xf32> to vector<9x32xf32>
    %145 = arith.mulf %140, %144 : vector<9x32xf32>
    %146 = vector.broadcast %18 : vector<1x32xf32> to vector<9x32xf32>
    %147 = arith.mulf %145, %146 : vector<9x32xf32>
    %148 = vector.broadcast %19 : vector<1x32xf32> to vector<9x32xf32>
    %149 = arith.addf %147, %148 : vector<9x32xf32>
    %c0_48 = arith.constant 0 : index
    %c0_49 = arith.constant 0 : index
    %c0_50 = arith.constant 0 : index
    %150 = vector.load %arg6[%c0_48, %c0_49, %c0_50] : memref<2x32x128xf32, #tpu.memory_space<vmem>>, vector<1x32x128xf32>
    %151 = vector.shape_cast %150 : vector<1x32x128xf32> to vector<32x128xf32>
    %cst_51 = arith.constant dense<0.000000e+00> : vector<9x128xf32>
    %152 = tpu.matmul %149, %151, %cst_51 {dimension_numbers = #tpu.dot_dimension_numbers<[1], [0], [0], [1], [0, 0, 1, 1], [], []>} : vector<9x32xf32>, vector<32x128xf32>, vector<9x128xf32> -> vector<9x128xf32>
    %153 = vector.broadcast %23 : vector<1x128xf32> to vector<9x128xf32>
    %154 = arith.addf %152, %153 : vector<9x128xf32>
    %155 = arith.mulf %154, %154 : vector<9x128xf32>
    %156 = arith.mulf %154, %155 : vector<9x128xf32>
    %cst_52 = arith.constant 4.471500e-02 : f32
    %157 = vector.broadcast %cst_52 : f32 to vector<9x128xf32>
    %158 = arith.mulf %157, %156 : vector<9x128xf32>
    %159 = arith.addf %154, %158 : vector<9x128xf32>
    %cst_53 = arith.constant 0.797884583 : f32
    %160 = vector.broadcast %cst_53 : f32 to vector<9x128xf32>
    %161 = arith.mulf %160, %159 : vector<9x128xf32>
    %162 = math.tanh %161 : vector<9x128xf32>
    %cst_54 = arith.constant 1.000000e+00 : f32
    %163 = vector.broadcast %cst_54 : f32 to vector<9x128xf32>
    %164 = arith.addf %163, %162 : vector<9x128xf32>
    %cst_55 = arith.constant 5.000000e-01 : f32
    %165 = vector.broadcast %cst_55 : f32 to vector<9x128xf32>
    %166 = arith.mulf %165, %164 : vector<9x128xf32>
    %167 = arith.mulf %154, %166 : vector<9x128xf32>
    %c0_56 = arith.constant 0 : index
    %c0_57 = arith.constant 0 : index
    %c0_58 = arith.constant 0 : index
    %168 = vector.load %arg7[%c0_56, %c0_57, %c0_58] : memref<2x128x32xf32, #tpu.memory_space<vmem>>, vector<1x128x32xf32>
    %169 = vector.shape_cast %168 : vector<1x128x32xf32> to vector<128x32xf32>
    %cst_59 = arith.constant dense<0.000000e+00> : vector<9x32xf32>
    %170 = tpu.matmul %167, %169, %cst_59 {dimension_numbers = #tpu.dot_dimension_numbers<[1], [0], [0], [1], [0, 0, 1, 1], [], []>} : vector<9x128xf32>, vector<128x32xf32>, vector<9x32xf32> -> vector<9x32xf32>
    %171 = arith.addf %127, %170 : vector<9x32xf32>
    %172 = vector.broadcast %21 : vector<1x32xf32> to vector<9x32xf32>
    %173 = arith.addf %171, %172 : vector<9x32xf32>
    %c1 = arith.constant 1 : index
    %c0_60 = arith.constant 0 : index
    %c0_61 = arith.constant 0 : index
    %174 = vector.load %arg5[%c1, %c0_60, %c0_61] : memref<2x32x128xf32, #tpu.memory_space<vmem>>, vector<1x32x128xf32>
    %175 = vector.shape_cast %174 : vector<1x32x128xf32> to vector<32x128xf32>
    %c1_62 = arith.constant 1 : index
    %c0_63 = arith.constant 0 : index
    %c0_64 = arith.constant 0 : index
    %176 = vector.load %arg8[%c1_62, %c0_63, %c0_64] : memref<2x8x128xf32, #tpu.memory_space<vmem>>, vector<1x8x128xf32>
    %177 = vector.shape_cast %176 : vector<1x8x128xf32> to vector<8x128xf32>
    %178 = vector.extract_strided_slice %177 {offsets = [0, 0], sizes = [1, 32], strides = [1, 1]} : vector<8x128xf32> to vector<1x32xf32>
    %179 = vector.extract_strided_slice %177 {offsets = [1, 0], sizes = [1, 32], strides = [1, 1]} : vector<8x128xf32> to vector<1x32xf32>
    %180 = vector.extract_strided_slice %177 {offsets = [2, 0], sizes = [1, 32], strides = [1, 1]} : vector<8x128xf32> to vector<1x32xf32>
    %181 = vector.extract_strided_slice %177 {offsets = [3, 0], sizes = [1, 32], strides = [1, 1]} : vector<8x128xf32> to vector<1x32xf32>
    %182 = vector.extract_strided_slice %177 {offsets = [4, 0], sizes = [1, 32], strides = [1, 1]} : vector<8x128xf32> to vector<1x32xf32>
    %183 = vector.extract_strided_slice %177 {offsets = [5, 0], sizes = [1, 32], strides = [1, 1]} : vector<8x128xf32> to vector<1x32xf32>
    %184 = vector.extract_strided_slice %177 {offsets = [6, 0], sizes = [1, 96], strides = [1, 1]} : vector<8x128xf32> to vector<1x96xf32>
    %185 = vector.extract_strided_slice %177 {offsets = [7, 0], sizes = [1, 128], strides = [1, 1]} : vector<8x128xf32> to vector<1x128xf32>
    %cst_65 = arith.constant dense<0.000000e+00> : vector<9xf32>
    %186 = vector.multi_reduction <add>, %173, %cst_65 [1] : vector<9x32xf32> to vector<9xf32>
    %187 = vector.shape_cast %186 : vector<9xf32> to vector<9x1xf32>
    %cst_66 = arith.constant 3.200000e+01 : f32
    %188 = vector.broadcast %cst_66 : f32 to vector<9x1xf32>
    %189 = arith.divf %187, %188 : vector<9x1xf32>
    %190 = vector.broadcast %189 : vector<9x1xf32> to vector<9x32xf32>
    %191 = arith.subf %173, %190 : vector<9x32xf32>
    %192 = arith.mulf %191, %191 : vector<9x32xf32>
    %cst_67 = arith.constant dense<0.000000e+00> : vector<9xf32>
    %193 = vector.multi_reduction <add>, %192, %cst_67 [1] : vector<9x32xf32> to vector<9xf32>
    %194 = vector.shape_cast %193 : vector<9xf32> to vector<9x1xf32>
    %cst_68 = arith.constant 3.200000e+01 : f32
    %195 = vector.broadcast %cst_68 : f32 to vector<9x1xf32>
    %196 = arith.divf %194, %195 : vector<9x1xf32>
    %197 = vector.broadcast %189 : vector<9x1xf32> to vector<9x32xf32>
    %198 = arith.subf %173, %197 : vector<9x32xf32>
    %cst_69 = arith.constant 9.99999974E-6 : f32
    %199 = vector.broadcast %cst_69 : f32 to vector<9x1xf32>
    %200 = arith.addf %196, %199 : vector<9x1xf32>
    %201 = math.rsqrt %200 : vector<9x1xf32>
    %202 = vector.broadcast %201 : vector<9x1xf32> to vector<9x32xf32>
    %203 = arith.mulf %198, %202 : vector<9x32xf32>
    %204 = vector.broadcast %178 : vector<1x32xf32> to vector<9x32xf32>
    %205 = arith.mulf %203, %204 : vector<9x32xf32>
    %206 = vector.broadcast %179 : vector<1x32xf32> to vector<9x32xf32>
    %207 = arith.addf %205, %206 : vector<9x32xf32>
    %208 = vector.extract_strided_slice %175 {offsets = [0, 0], sizes = [32, 96], strides = [1, 1]} : vector<32x128xf32> to vector<32x96xf32>
    %cst_70 = arith.constant dense<0.000000e+00> : vector<9x96xf32>
    %209 = tpu.matmul %207, %208, %cst_70 {dimension_numbers = #tpu.dot_dimension_numbers<[1], [0], [0], [1], [0, 0, 1, 1], [], []>} : vector<9x32xf32>, vector<32x96xf32>, vector<9x96xf32> -> vector<9x96xf32>
    %210 = vector.broadcast %184 : vector<1x96xf32> to vector<9x96xf32>
    %211 = arith.addf %209, %210 : vector<9x96xf32>
    %212 = vector.extract_strided_slice %211 {offsets = [0, 0], sizes = [9, 8], strides = [1, 1]} : vector<9x96xf32> to vector<9x8xf32>
    %213 = vector.extract_strided_slice %211 {offsets = [0, 32], sizes = [9, 8], strides = [1, 1]} : vector<9x96xf32> to vector<9x8xf32>
    %214 = vector.extract_strided_slice %211 {offsets = [0, 64], sizes = [9, 8], strides = [1, 1]} : vector<9x96xf32> to vector<9x8xf32>
    %215 = tpu.transpose %213, [1, 0] : vector<9x8xf32> -> vector<8x9xf32>
    %cst_71 = arith.constant dense<0.000000e+00> : vector<9x9xf32>
    %216 = tpu.matmul %212, %215, %cst_71 {dimension_numbers = #tpu.dot_dimension_numbers<[1], [0], [0], [1], [0, 0, 1, 1], [], []>} : vector<9x8xf32>, vector<8x9xf32>, vector<9x9xf32> -> vector<9x9xf32>
    %cst_72 = arith.constant 0.353553385 : f32
    %217 = vector.broadcast %cst_72 : f32 to vector<9x9xf32>
    %218 = arith.mulf %216, %217 : vector<9x9xf32>
    %cst_73 = arith.constant dense<0xFF800000> : vector<9xf32>
    %219 = vector.multi_reduction <maximumf>, %218, %cst_73 [1] : vector<9x9xf32> to vector<9xf32>
    %220 = vector.shape_cast %219 : vector<9xf32> to vector<9x1xf32>
    %221 = vector.broadcast %220 : vector<9x1xf32> to vector<9x9xf32>
    %222 = arith.subf %218, %221 : vector<9x9xf32>
    %223 = math.exp %222 : vector<9x9xf32>
    %cst_74 = arith.constant dense<0.000000e+00> : vector<9xf32>
    %224 = vector.multi_reduction <add>, %223, %cst_74 [1] : vector<9x9xf32> to vector<9xf32>
    %225 = vector.shape_cast %224 : vector<9xf32> to vector<9x1xf32>
    %226 = tpu.reciprocal %225 {approx = true} : vector<9x1xf32> -> vector<9x1xf32>
    %227 = vector.broadcast %226 : vector<9x1xf32> to vector<9x9xf32>
    %228 = arith.mulf %223, %227 : vector<9x9xf32>
    %cst_75 = arith.constant dense<0.000000e+00> : vector<9x8xf32>
    %229 = tpu.matmul %228, %214, %cst_75 {dimension_numbers = #tpu.dot_dimension_numbers<[1], [0], [0], [1], [0, 0, 1, 1], [], []>} : vector<9x9xf32>, vector<9x8xf32>, vector<9x8xf32> -> vector<9x8xf32>
    %230 = vector.extract_strided_slice %211 {offsets = [0, 8], sizes = [9, 8], strides = [1, 1]} : vector<9x96xf32> to vector<9x8xf32>
    %231 = vector.extract_strided_slice %211 {offsets = [0, 40], sizes = [9, 8], strides = [1, 1]} : vector<9x96xf32> to vector<9x8xf32>
    %232 = vector.extract_strided_slice %211 {offsets = [0, 72], sizes = [9, 8], strides = [1, 1]} : vector<9x96xf32> to vector<9x8xf32>
    %233 = tpu.transpose %231, [1, 0] : vector<9x8xf32> -> vector<8x9xf32>
    %cst_76 = arith.constant dense<0.000000e+00> : vector<9x9xf32>
    %234 = tpu.matmul %230, %233, %cst_76 {dimension_numbers = #tpu.dot_dimension_numbers<[1], [0], [0], [1], [0, 0, 1, 1], [], []>} : vector<9x8xf32>, vector<8x9xf32>, vector<9x9xf32> -> vector<9x9xf32>
    %cst_77 = arith.constant 0.353553385 : f32
    %235 = vector.broadcast %cst_77 : f32 to vector<9x9xf32>
    %236 = arith.mulf %234, %235 : vector<9x9xf32>
    %cst_78 = arith.constant dense<0xFF800000> : vector<9xf32>
    %237 = vector.multi_reduction <maximumf>, %236, %cst_78 [1] : vector<9x9xf32> to vector<9xf32>
    %238 = vector.shape_cast %237 : vector<9xf32> to vector<9x1xf32>
    %239 = vector.broadcast %238 : vector<9x1xf32> to vector<9x9xf32>
    %240 = arith.subf %236, %239 : vector<9x9xf32>
    %241 = math.exp %240 : vector<9x9xf32>
    %cst_79 = arith.constant dense<0.000000e+00> : vector<9xf32>
    %242 = vector.multi_reduction <add>, %241, %cst_79 [1] : vector<9x9xf32> to vector<9xf32>
    %243 = vector.shape_cast %242 : vector<9xf32> to vector<9x1xf32>
    %244 = tpu.reciprocal %243 {approx = true} : vector<9x1xf32> -> vector<9x1xf32>
    %245 = vector.broadcast %244 : vector<9x1xf32> to vector<9x9xf32>
    %246 = arith.mulf %241, %245 : vector<9x9xf32>
    %cst_80 = arith.constant dense<0.000000e+00> : vector<9x8xf32>
    %247 = tpu.matmul %246, %232, %cst_80 {dimension_numbers = #tpu.dot_dimension_numbers<[1], [0], [0], [1], [0, 0, 1, 1], [], []>} : vector<9x9xf32>, vector<9x8xf32>, vector<9x8xf32> -> vector<9x8xf32>
    %248 = vector.extract_strided_slice %211 {offsets = [0, 16], sizes = [9, 8], strides = [1, 1]} : vector<9x96xf32> to vector<9x8xf32>
    %249 = vector.extract_strided_slice %211 {offsets = [0, 48], sizes = [9, 8], strides = [1, 1]} : vector<9x96xf32> to vector<9x8xf32>
    %250 = vector.extract_strided_slice %211 {offsets = [0, 80], sizes = [9, 8], strides = [1, 1]} : vector<9x96xf32> to vector<9x8xf32>
    %251 = tpu.transpose %249, [1, 0] : vector<9x8xf32> -> vector<8x9xf32>
    %cst_81 = arith.constant dense<0.000000e+00> : vector<9x9xf32>
    %252 = tpu.matmul %248, %251, %cst_81 {dimension_numbers = #tpu.dot_dimension_numbers<[1], [0], [0], [1], [0, 0, 1, 1], [], []>} : vector<9x8xf32>, vector<8x9xf32>, vector<9x9xf32> -> vector<9x9xf32>
    %cst_82 = arith.constant 0.353553385 : f32
    %253 = vector.broadcast %cst_82 : f32 to vector<9x9xf32>
    %254 = arith.mulf %252, %253 : vector<9x9xf32>
    %cst_83 = arith.constant dense<0xFF800000> : vector<9xf32>
    %255 = vector.multi_reduction <maximumf>, %254, %cst_83 [1] : vector<9x9xf32> to vector<9xf32>
    %256 = vector.shape_cast %255 : vector<9xf32> to vector<9x1xf32>
    %257 = vector.broadcast %256 : vector<9x1xf32> to vector<9x9xf32>
    %258 = arith.subf %254, %257 : vector<9x9xf32>
    %259 = math.exp %258 : vector<9x9xf32>
    %cst_84 = arith.constant dense<0.000000e+00> : vector<9xf32>
    %260 = vector.multi_reduction <add>, %259, %cst_84 [1] : vector<9x9xf32> to vector<9xf32>
    %261 = vector.shape_cast %260 : vector<9xf32> to vector<9x1xf32>
    %262 = tpu.reciprocal %261 {approx = true} : vector<9x1xf32> -> vector<9x1xf32>
    %263 = vector.broadcast %262 : vector<9x1xf32> to vector<9x9xf32>
    %264 = arith.mulf %259, %263 : vector<9x9xf32>
    %cst_85 = arith.constant dense<0.000000e+00> : vector<9x8xf32>
    %265 = tpu.matmul %264, %250, %cst_85 {dimension_numbers = #tpu.dot_dimension_numbers<[1], [0], [0], [1], [0, 0, 1, 1], [], []>} : vector<9x9xf32>, vector<9x8xf32>, vector<9x8xf32> -> vector<9x8xf32>
    %266 = vector.extract_strided_slice %211 {offsets = [0, 24], sizes = [9, 8], strides = [1, 1]} : vector<9x96xf32> to vector<9x8xf32>
    %267 = vector.extract_strided_slice %211 {offsets = [0, 56], sizes = [9, 8], strides = [1, 1]} : vector<9x96xf32> to vector<9x8xf32>
    %268 = vector.extract_strided_slice %211 {offsets = [0, 88], sizes = [9, 8], strides = [1, 1]} : vector<9x96xf32> to vector<9x8xf32>
    %269 = tpu.transpose %267, [1, 0] : vector<9x8xf32> -> vector<8x9xf32>
    %cst_86 = arith.constant dense<0.000000e+00> : vector<9x9xf32>
    %270 = tpu.matmul %266, %269, %cst_86 {dimension_numbers = #tpu.dot_dimension_numbers<[1], [0], [0], [1], [0, 0, 1, 1], [], []>} : vector<9x8xf32>, vector<8x9xf32>, vector<9x9xf32> -> vector<9x9xf32>
    %cst_87 = arith.constant 0.353553385 : f32
    %271 = vector.broadcast %cst_87 : f32 to vector<9x9xf32>
    %272 = arith.mulf %270, %271 : vector<9x9xf32>
    %cst_88 = arith.constant dense<0xFF800000> : vector<9xf32>
    %273 = vector.multi_reduction <maximumf>, %272, %cst_88 [1] : vector<9x9xf32> to vector<9xf32>
    %274 = vector.shape_cast %273 : vector<9xf32> to vector<9x1xf32>
    %275 = vector.broadcast %274 : vector<9x1xf32> to vector<9x9xf32>
    %276 = arith.subf %272, %275 : vector<9x9xf32>
    %277 = math.exp %276 : vector<9x9xf32>
    %cst_89 = arith.constant dense<0.000000e+00> : vector<9xf32>
    %278 = vector.multi_reduction <add>, %277, %cst_89 [1] : vector<9x9xf32> to vector<9xf32>
    %279 = vector.shape_cast %278 : vector<9xf32> to vector<9x1xf32>
    %280 = tpu.reciprocal %279 {approx = true} : vector<9x1xf32> -> vector<9x1xf32>
    %281 = vector.broadcast %280 : vector<9x1xf32> to vector<9x9xf32>
    %282 = arith.mulf %277, %281 : vector<9x9xf32>
    %cst_90 = arith.constant dense<0.000000e+00> : vector<9x8xf32>
    %283 = tpu.matmul %282, %268, %cst_90 {dimension_numbers = #tpu.dot_dimension_numbers<[1], [0], [0], [1], [0, 0, 1, 1], [], []>} : vector<9x9xf32>, vector<9x8xf32>, vector<9x8xf32> -> vector<9x8xf32>
    %284 = tpu.concatenate %229, %247, %265, %283 in 1 : vector<9x8xf32>, vector<9x8xf32>, vector<9x8xf32>, vector<9x8xf32> -> vector<9x32xf32>
    %285 = vector.extract_strided_slice %175 {offsets = [0, 96], sizes = [32, 32], strides = [1, 1]} : vector<32x128xf32> to vector<32x32xf32>
    %cst_91 = arith.constant dense<0.000000e+00> : vector<9x32xf32>
    %286 = tpu.matmul %284, %285, %cst_91 {dimension_numbers = #tpu.dot_dimension_numbers<[1], [0], [0], [1], [0, 0, 1, 1], [], []>} : vector<9x32xf32>, vector<32x32xf32>, vector<9x32xf32> -> vector<9x32xf32>
    %287 = arith.addf %173, %286 : vector<9x32xf32>
    %288 = vector.broadcast %182 : vector<1x32xf32> to vector<9x32xf32>
    %289 = arith.addf %287, %288 : vector<9x32xf32>
    %cst_92 = arith.constant dense<0.000000e+00> : vector<9xf32>
    %290 = vector.multi_reduction <add>, %289, %cst_92 [1] : vector<9x32xf32> to vector<9xf32>
    %291 = vector.shape_cast %290 : vector<9xf32> to vector<9x1xf32>
    %cst_93 = arith.constant 3.200000e+01 : f32
    %292 = vector.broadcast %cst_93 : f32 to vector<9x1xf32>
    %293 = arith.divf %291, %292 : vector<9x1xf32>
    %294 = vector.broadcast %293 : vector<9x1xf32> to vector<9x32xf32>
    %295 = arith.subf %289, %294 : vector<9x32xf32>
    %296 = arith.mulf %295, %295 : vector<9x32xf32>
    %cst_94 = arith.constant dense<0.000000e+00> : vector<9xf32>
    %297 = vector.multi_reduction <add>, %296, %cst_94 [1] : vector<9x32xf32> to vector<9xf32>
    %298 = vector.shape_cast %297 : vector<9xf32> to vector<9x1xf32>
    %cst_95 = arith.constant 3.200000e+01 : f32
    %299 = vector.broadcast %cst_95 : f32 to vector<9x1xf32>
    %300 = arith.divf %298, %299 : vector<9x1xf32>
    %301 = vector.broadcast %293 : vector<9x1xf32> to vector<9x32xf32>
    %302 = arith.subf %289, %301 : vector<9x32xf32>
    %cst_96 = arith.constant 9.99999974E-6 : f32
    %303 = vector.broadcast %cst_96 : f32 to vector<9x1xf32>
    %304 = arith.addf %300, %303 : vector<9x1xf32>
    %305 = math.rsqrt %304 : vector<9x1xf32>
    %306 = vector.broadcast %305 : vector<9x1xf32> to vector<9x32xf32>
    %307 = arith.mulf %302, %306 : vector<9x32xf32>
    %308 = vector.broadcast %180 : vector<1x32xf32> to vector<9x32xf32>
    %309 = arith.mulf %307, %308 : vector<9x32xf32>
    %310 = vector.broadcast %181 : vector<1x32xf32> to vector<9x32xf32>
    %311 = arith.addf %309, %310 : vector<9x32xf32>
    %c1_97 = arith.constant 1 : index
    %c0_98 = arith.constant 0 : index
    %c0_99 = arith.constant 0 : index
    %312 = vector.load %arg6[%c1_97, %c0_98, %c0_99] : memref<2x32x128xf32, #tpu.memory_space<vmem>>, vector<1x32x128xf32>
    %313 = vector.shape_cast %312 : vector<1x32x128xf32> to vector<32x128xf32>
    %cst_100 = arith.constant dense<0.000000e+00> : vector<9x128xf32>
    %314 = tpu.matmul %311, %313, %cst_100 {dimension_numbers = #tpu.dot_dimension_numbers<[1], [0], [0], [1], [0, 0, 1, 1], [], []>} : vector<9x32xf32>, vector<32x128xf32>, vector<9x128xf32> -> vector<9x128xf32>
    %315 = vector.broadcast %185 : vector<1x128xf32> to vector<9x128xf32>
    %316 = arith.addf %314, %315 : vector<9x128xf32>
    %317 = arith.mulf %316, %316 : vector<9x128xf32>
    %318 = arith.mulf %316, %317 : vector<9x128xf32>
    %cst_101 = arith.constant 4.471500e-02 : f32
    %319 = vector.broadcast %cst_101 : f32 to vector<9x128xf32>
    %320 = arith.mulf %319, %318 : vector<9x128xf32>
    %321 = arith.addf %316, %320 : vector<9x128xf32>
    %cst_102 = arith.constant 0.797884583 : f32
    %322 = vector.broadcast %cst_102 : f32 to vector<9x128xf32>
    %323 = arith.mulf %322, %321 : vector<9x128xf32>
    %324 = math.tanh %323 : vector<9x128xf32>
    %cst_103 = arith.constant 1.000000e+00 : f32
    %325 = vector.broadcast %cst_103 : f32 to vector<9x128xf32>
    %326 = arith.addf %325, %324 : vector<9x128xf32>
    %cst_104 = arith.constant 5.000000e-01 : f32
    %327 = vector.broadcast %cst_104 : f32 to vector<9x128xf32>
    %328 = arith.mulf %327, %326 : vector<9x128xf32>
    %329 = arith.mulf %316, %328 : vector<9x128xf32>
    %c1_105 = arith.constant 1 : index
    %c0_106 = arith.constant 0 : index
    %c0_107 = arith.constant 0 : index
    %330 = vector.load %arg7[%c1_105, %c0_106, %c0_107] : memref<2x128x32xf32, #tpu.memory_space<vmem>>, vector<1x128x32xf32>
    %331 = vector.shape_cast %330 : vector<1x128x32xf32> to vector<128x32xf32>
    %cst_108 = arith.constant dense<0.000000e+00> : vector<9x32xf32>
    %332 = tpu.matmul %329, %331, %cst_108 {dimension_numbers = #tpu.dot_dimension_numbers<[1], [0], [0], [1], [0, 0, 1, 1], [], []>} : vector<9x128xf32>, vector<128x32xf32>, vector<9x32xf32> -> vector<9x32xf32>
    %333 = arith.addf %289, %332 : vector<9x32xf32>
    %334 = vector.broadcast %183 : vector<1x32xf32> to vector<9x32xf32>
    %335 = arith.addf %333, %334 : vector<9x32xf32>
    %c0_109 = arith.constant 0 : index
    %c0_110 = arith.constant 0 : index
    %336 = vector.load %arg10[%c0_109, %c0_110] : memref<3x32xf32, #tpu.memory_space<vmem>>, vector<1x32xf32>
    %c1_111 = arith.constant 1 : index
    %c0_112 = arith.constant 0 : index
    %337 = vector.load %arg10[%c1_111, %c0_112] : memref<3x32xf32, #tpu.memory_space<vmem>>, vector<1x32xf32>
    %cst_113 = arith.constant dense<0.000000e+00> : vector<9xf32>
    %338 = vector.multi_reduction <add>, %335, %cst_113 [1] : vector<9x32xf32> to vector<9xf32>
    %339 = vector.shape_cast %338 : vector<9xf32> to vector<9x1xf32>
    %cst_114 = arith.constant 3.200000e+01 : f32
    %340 = vector.broadcast %cst_114 : f32 to vector<9x1xf32>
    %341 = arith.divf %339, %340 : vector<9x1xf32>
    %342 = vector.broadcast %341 : vector<9x1xf32> to vector<9x32xf32>
    %343 = arith.subf %335, %342 : vector<9x32xf32>
    %344 = arith.mulf %343, %343 : vector<9x32xf32>
    %cst_115 = arith.constant dense<0.000000e+00> : vector<9xf32>
    %345 = vector.multi_reduction <add>, %344, %cst_115 [1] : vector<9x32xf32> to vector<9xf32>
    %346 = vector.shape_cast %345 : vector<9xf32> to vector<9x1xf32>
    %cst_116 = arith.constant 3.200000e+01 : f32
    %347 = vector.broadcast %cst_116 : f32 to vector<9x1xf32>
    %348 = arith.divf %346, %347 : vector<9x1xf32>
    %349 = vector.broadcast %341 : vector<9x1xf32> to vector<9x32xf32>
    %350 = arith.subf %335, %349 : vector<9x32xf32>
    %cst_117 = arith.constant 9.99999974E-6 : f32
    %351 = vector.broadcast %cst_117 : f32 to vector<9x1xf32>
    %352 = arith.addf %348, %351 : vector<9x1xf32>
    %353 = math.rsqrt %352 : vector<9x1xf32>
    %354 = vector.broadcast %353 : vector<9x1xf32> to vector<9x32xf32>
    %355 = arith.mulf %350, %354 : vector<9x32xf32>
    %356 = vector.broadcast %336 : vector<1x32xf32> to vector<9x32xf32>
    %357 = arith.mulf %355, %356 : vector<9x32xf32>
    %358 = vector.broadcast %337 : vector<1x32xf32> to vector<9x32xf32>
    %359 = arith.addf %357, %358 : vector<9x32xf32>
    %c0_118 = arith.constant 0 : index
    %c0_119 = arith.constant 0 : index
    %360 = vector.load %arg9[%c0_118, %c0_119] : memref<32x16xf32, #tpu.memory_space<vmem>>, vector<32x16xf32>
    %cst_120 = arith.constant dense<0.000000e+00> : vector<9x16xf32>
    %361 = tpu.matmul %359, %360, %cst_120 {dimension_numbers = #tpu.dot_dimension_numbers<[1], [0], [0], [1], [0, 0, 1, 1], [], []>} : vector<9x32xf32>, vector<32x16xf32>, vector<9x16xf32> -> vector<9x16xf32>
    %c2 = arith.constant 2 : index
    %c0_121 = arith.constant 0 : index
    %362 = vector.load %arg10[%c2, %c0_121] : memref<3x32xf32, #tpu.memory_space<vmem>>, vector<1x16xf32>
    %363 = vector.broadcast %362 : vector<1x16xf32> to vector<9x16xf32>
    %364 = arith.addf %361, %363 : vector<9x16xf32>
    %365 = vector.extract_strided_slice %364 {offsets = [1, 0], sizes = [8, 16], strides = [1, 1]} : vector<9x16xf32> to vector<8x16xf32>
    %366 = tpu.concatenate %365, %3 in 0 : vector<8x16xf32>, vector<1x16xf32> -> vector<9x16xf32>
    %c0_122 = arith.constant 0 : index
    %c0_123 = arith.constant 0 : index
    %c0_124 = arith.constant 0 : index
    %367 = vector.load %arg3[%c0_122, %c0_123, %c0_124] : memref<2x16x9xf32, #tpu.memory_space<vmem>>, vector<1x16x9xf32>
    %368 = vector.shape_cast %367 : vector<1x16x9xf32> to vector<16x9xf32>
    %cst_125 = arith.constant dense<0.000000e+00> : vector<16x16xf32>
    %369 = tpu.matmul %368, %366, %cst_125 {dimension_numbers = #tpu.dot_dimension_numbers<[1], [0], [0], [1], [0, 0, 1, 1], [], []>} : vector<16x9xf32>, vector<9x16xf32>, vector<16x16xf32> -> vector<16x16xf32>
    %370 = vector.extract_strided_slice %364 {offsets = [0, 0], sizes = [1, 16], strides = [1, 1]} : vector<9x16xf32> to vector<1x16xf32>
    %371 = tpu.concatenate %370, %369 in 0 : vector<1x16xf32>, vector<16x16xf32> -> vector<17x16xf32>
    %372 = arith.addf %371, %2 : vector<17x16xf32>
    %c0_126 = arith.constant 0 : index
    %c0_127 = arith.constant 0 : index
    %c0_128 = arith.constant 0 : index
    %373 = vector.load %arg11[%c0_126, %c0_127, %c0_128] : memref<1x16x64xf32, #tpu.memory_space<vmem>>, vector<1x16x64xf32>
    %374 = vector.shape_cast %373 : vector<1x16x64xf32> to vector<16x64xf32>
    %c0_129 = arith.constant 0 : index
    %c0_130 = arith.constant 0 : index
    %c0_131 = arith.constant 0 : index
    %375 = vector.load %arg14[%c0_129, %c0_130, %c0_131] : memref<1x8x64xf32, #tpu.memory_space<vmem>>, vector<1x8x64xf32>
    %376 = vector.shape_cast %375 : vector<1x8x64xf32> to vector<8x64xf32>
    %377 = vector.extract_strided_slice %376 {offsets = [0, 0], sizes = [1, 16], strides = [1, 1]} : vector<8x64xf32> to vector<1x16xf32>
    %378 = vector.extract_strided_slice %376 {offsets = [1, 0], sizes = [1, 16], strides = [1, 1]} : vector<8x64xf32> to vector<1x16xf32>
    %379 = vector.extract_strided_slice %376 {offsets = [2, 0], sizes = [1, 16], strides = [1, 1]} : vector<8x64xf32> to vector<1x16xf32>
    %380 = vector.extract_strided_slice %376 {offsets = [3, 0], sizes = [1, 16], strides = [1, 1]} : vector<8x64xf32> to vector<1x16xf32>
    %381 = vector.extract_strided_slice %376 {offsets = [4, 0], sizes = [1, 16], strides = [1, 1]} : vector<8x64xf32> to vector<1x16xf32>
    %382 = vector.extract_strided_slice %376 {offsets = [5, 0], sizes = [1, 16], strides = [1, 1]} : vector<8x64xf32> to vector<1x16xf32>
    %383 = vector.extract_strided_slice %376 {offsets = [6, 0], sizes = [1, 48], strides = [1, 1]} : vector<8x64xf32> to vector<1x48xf32>
    %384 = vector.extract_strided_slice %376 {offsets = [7, 0], sizes = [1, 64], strides = [1, 1]} : vector<8x64xf32> to vector<1x64xf32>
    %cst_132 = arith.constant dense<0.000000e+00> : vector<17xf32>
    %385 = vector.multi_reduction <add>, %372, %cst_132 [1] : vector<17x16xf32> to vector<17xf32>
    %386 = vector.shape_cast %385 : vector<17xf32> to vector<17x1xf32>
    %cst_133 = arith.constant 1.600000e+01 : f32
    %387 = vector.broadcast %cst_133 : f32 to vector<17x1xf32>
    %388 = arith.divf %386, %387 : vector<17x1xf32>
    %389 = vector.broadcast %388 : vector<17x1xf32> to vector<17x16xf32>
    %390 = arith.subf %372, %389 : vector<17x16xf32>
    %391 = arith.mulf %390, %390 : vector<17x16xf32>
    %cst_134 = arith.constant dense<0.000000e+00> : vector<17xf32>
    %392 = vector.multi_reduction <add>, %391, %cst_134 [1] : vector<17x16xf32> to vector<17xf32>
    %393 = vector.shape_cast %392 : vector<17xf32> to vector<17x1xf32>
    %cst_135 = arith.constant 1.600000e+01 : f32
    %394 = vector.broadcast %cst_135 : f32 to vector<17x1xf32>
    %395 = arith.divf %393, %394 : vector<17x1xf32>
    %396 = vector.broadcast %388 : vector<17x1xf32> to vector<17x16xf32>
    %397 = arith.subf %372, %396 : vector<17x16xf32>
    %cst_136 = arith.constant 9.99999974E-6 : f32
    %398 = vector.broadcast %cst_136 : f32 to vector<17x1xf32>
    %399 = arith.addf %395, %398 : vector<17x1xf32>
    %400 = math.rsqrt %399 : vector<17x1xf32>
    %401 = vector.broadcast %400 : vector<17x1xf32> to vector<17x16xf32>
    %402 = arith.mulf %397, %401 : vector<17x16xf32>
    %403 = vector.broadcast %377 : vector<1x16xf32> to vector<17x16xf32>
    %404 = arith.mulf %402, %403 : vector<17x16xf32>
    %405 = vector.broadcast %378 : vector<1x16xf32> to vector<17x16xf32>
    %406 = arith.addf %404, %405 : vector<17x16xf32>
    %407 = vector.extract_strided_slice %374 {offsets = [0, 0], sizes = [16, 48], strides = [1, 1]} : vector<16x64xf32> to vector<16x48xf32>
    %cst_137 = arith.constant dense<0.000000e+00> : vector<17x48xf32>
    %408 = tpu.matmul %406, %407, %cst_137 {dimension_numbers = #tpu.dot_dimension_numbers<[1], [0], [0], [1], [0, 0, 1, 1], [], []>} : vector<17x16xf32>, vector<16x48xf32>, vector<17x48xf32> -> vector<17x48xf32>
    %409 = vector.broadcast %383 : vector<1x48xf32> to vector<17x48xf32>
    %410 = arith.addf %408, %409 : vector<17x48xf32>
    %411 = vector.extract_strided_slice %410 {offsets = [0, 0], sizes = [17, 4], strides = [1, 1]} : vector<17x48xf32> to vector<17x4xf32>
    %412 = vector.extract_strided_slice %410 {offsets = [0, 16], sizes = [17, 4], strides = [1, 1]} : vector<17x48xf32> to vector<17x4xf32>
    %413 = vector.extract_strided_slice %410 {offsets = [0, 32], sizes = [17, 4], strides = [1, 1]} : vector<17x48xf32> to vector<17x4xf32>
    %414 = tpu.transpose %412, [1, 0] : vector<17x4xf32> -> vector<4x17xf32>
    %cst_138 = arith.constant dense<0.000000e+00> : vector<17x17xf32>
    %415 = tpu.matmul %411, %414, %cst_138 {dimension_numbers = #tpu.dot_dimension_numbers<[1], [0], [0], [1], [0, 0, 1, 1], [], []>} : vector<17x4xf32>, vector<4x17xf32>, vector<17x17xf32> -> vector<17x17xf32>
    %cst_139 = arith.constant 5.000000e-01 : f32
    %416 = vector.broadcast %cst_139 : f32 to vector<17x17xf32>
    %417 = arith.mulf %415, %416 : vector<17x17xf32>
    %cst_140 = arith.constant dense<0xFF800000> : vector<17xf32>
    %418 = vector.multi_reduction <maximumf>, %417, %cst_140 [1] : vector<17x17xf32> to vector<17xf32>
    %419 = vector.shape_cast %418 : vector<17xf32> to vector<17x1xf32>
    %420 = vector.broadcast %419 : vector<17x1xf32> to vector<17x17xf32>
    %421 = arith.subf %417, %420 : vector<17x17xf32>
    %422 = math.exp %421 : vector<17x17xf32>
    %cst_141 = arith.constant dense<0.000000e+00> : vector<17xf32>
    %423 = vector.multi_reduction <add>, %422, %cst_141 [1] : vector<17x17xf32> to vector<17xf32>
    %424 = vector.shape_cast %423 : vector<17xf32> to vector<17x1xf32>
    %425 = tpu.reciprocal %424 {approx = true} : vector<17x1xf32> -> vector<17x1xf32>
    %426 = vector.broadcast %425 : vector<17x1xf32> to vector<17x17xf32>
    %427 = arith.mulf %422, %426 : vector<17x17xf32>
    %cst_142 = arith.constant dense<0.000000e+00> : vector<17x4xf32>
    %428 = tpu.matmul %427, %413, %cst_142 {dimension_numbers = #tpu.dot_dimension_numbers<[1], [0], [0], [1], [0, 0, 1, 1], [], []>} : vector<17x17xf32>, vector<17x4xf32>, vector<17x4xf32> -> vector<17x4xf32>
    %429 = vector.extract_strided_slice %410 {offsets = [0, 4], sizes = [17, 4], strides = [1, 1]} : vector<17x48xf32> to vector<17x4xf32>
    %430 = vector.extract_strided_slice %410 {offsets = [0, 20], sizes = [17, 4], strides = [1, 1]} : vector<17x48xf32> to vector<17x4xf32>
    %431 = vector.extract_strided_slice %410 {offsets = [0, 36], sizes = [17, 4], strides = [1, 1]} : vector<17x48xf32> to vector<17x4xf32>
    %432 = tpu.transpose %430, [1, 0] : vector<17x4xf32> -> vector<4x17xf32>
    %cst_143 = arith.constant dense<0.000000e+00> : vector<17x17xf32>
    %433 = tpu.matmul %429, %432, %cst_143 {dimension_numbers = #tpu.dot_dimension_numbers<[1], [0], [0], [1], [0, 0, 1, 1], [], []>} : vector<17x4xf32>, vector<4x17xf32>, vector<17x17xf32> -> vector<17x17xf32>
    %cst_144 = arith.constant 5.000000e-01 : f32
    %434 = vector.broadcast %cst_144 : f32 to vector<17x17xf32>
    %435 = arith.mulf %433, %434 : vector<17x17xf32>
    %cst_145 = arith.constant dense<0xFF800000> : vector<17xf32>
    %436 = vector.multi_reduction <maximumf>, %435, %cst_145 [1] : vector<17x17xf32> to vector<17xf32>
    %437 = vector.shape_cast %436 : vector<17xf32> to vector<17x1xf32>
    %438 = vector.broadcast %437 : vector<17x1xf32> to vector<17x17xf32>
    %439 = arith.subf %435, %438 : vector<17x17xf32>
    %440 = math.exp %439 : vector<17x17xf32>
    %cst_146 = arith.constant dense<0.000000e+00> : vector<17xf32>
    %441 = vector.multi_reduction <add>, %440, %cst_146 [1] : vector<17x17xf32> to vector<17xf32>
    %442 = vector.shape_cast %441 : vector<17xf32> to vector<17x1xf32>
    %443 = tpu.reciprocal %442 {approx = true} : vector<17x1xf32> -> vector<17x1xf32>
    %444 = vector.broadcast %443 : vector<17x1xf32> to vector<17x17xf32>
    %445 = arith.mulf %440, %444 : vector<17x17xf32>
    %cst_147 = arith.constant dense<0.000000e+00> : vector<17x4xf32>
    %446 = tpu.matmul %445, %431, %cst_147 {dimension_numbers = #tpu.dot_dimension_numbers<[1], [0], [0], [1], [0, 0, 1, 1], [], []>} : vector<17x17xf32>, vector<17x4xf32>, vector<17x4xf32> -> vector<17x4xf32>
    %447 = vector.extract_strided_slice %410 {offsets = [0, 8], sizes = [17, 4], strides = [1, 1]} : vector<17x48xf32> to vector<17x4xf32>
    %448 = vector.extract_strided_slice %410 {offsets = [0, 24], sizes = [17, 4], strides = [1, 1]} : vector<17x48xf32> to vector<17x4xf32>
    %449 = vector.extract_strided_slice %410 {offsets = [0, 40], sizes = [17, 4], strides = [1, 1]} : vector<17x48xf32> to vector<17x4xf32>
    %450 = tpu.transpose %448, [1, 0] : vector<17x4xf32> -> vector<4x17xf32>
    %cst_148 = arith.constant dense<0.000000e+00> : vector<17x17xf32>
    %451 = tpu.matmul %447, %450, %cst_148 {dimension_numbers = #tpu.dot_dimension_numbers<[1], [0], [0], [1], [0, 0, 1, 1], [], []>} : vector<17x4xf32>, vector<4x17xf32>, vector<17x17xf32> -> vector<17x17xf32>
    %cst_149 = arith.constant 5.000000e-01 : f32
    %452 = vector.broadcast %cst_149 : f32 to vector<17x17xf32>
    %453 = arith.mulf %451, %452 : vector<17x17xf32>
    %cst_150 = arith.constant dense<0xFF800000> : vector<17xf32>
    %454 = vector.multi_reduction <maximumf>, %453, %cst_150 [1] : vector<17x17xf32> to vector<17xf32>
    %455 = vector.shape_cast %454 : vector<17xf32> to vector<17x1xf32>
    %456 = vector.broadcast %455 : vector<17x1xf32> to vector<17x17xf32>
    %457 = arith.subf %453, %456 : vector<17x17xf32>
    %458 = math.exp %457 : vector<17x17xf32>
    %cst_151 = arith.constant dense<0.000000e+00> : vector<17xf32>
    %459 = vector.multi_reduction <add>, %458, %cst_151 [1] : vector<17x17xf32> to vector<17xf32>
    %460 = vector.shape_cast %459 : vector<17xf32> to vector<17x1xf32>
    %461 = tpu.reciprocal %460 {approx = true} : vector<17x1xf32> -> vector<17x1xf32>
    %462 = vector.broadcast %461 : vector<17x1xf32> to vector<17x17xf32>
    %463 = arith.mulf %458, %462 : vector<17x17xf32>
    %cst_152 = arith.constant dense<0.000000e+00> : vector<17x4xf32>
    %464 = tpu.matmul %463, %449, %cst_152 {dimension_numbers = #tpu.dot_dimension_numbers<[1], [0], [0], [1], [0, 0, 1, 1], [], []>} : vector<17x17xf32>, vector<17x4xf32>, vector<17x4xf32> -> vector<17x4xf32>
    %465 = vector.extract_strided_slice %410 {offsets = [0, 12], sizes = [17, 4], strides = [1, 1]} : vector<17x48xf32> to vector<17x4xf32>
    %466 = vector.extract_strided_slice %410 {offsets = [0, 28], sizes = [17, 4], strides = [1, 1]} : vector<17x48xf32> to vector<17x4xf32>
    %467 = vector.extract_strided_slice %410 {offsets = [0, 44], sizes = [17, 4], strides = [1, 1]} : vector<17x48xf32> to vector<17x4xf32>
    %468 = tpu.transpose %466, [1, 0] : vector<17x4xf32> -> vector<4x17xf32>
    %cst_153 = arith.constant dense<0.000000e+00> : vector<17x17xf32>
    %469 = tpu.matmul %465, %468, %cst_153 {dimension_numbers = #tpu.dot_dimension_numbers<[1], [0], [0], [1], [0, 0, 1, 1], [], []>} : vector<17x4xf32>, vector<4x17xf32>, vector<17x17xf32> -> vector<17x17xf32>
    %cst_154 = arith.constant 5.000000e-01 : f32
    %470 = vector.broadcast %cst_154 : f32 to vector<17x17xf32>
    %471 = arith.mulf %469, %470 : vector<17x17xf32>
    %cst_155 = arith.constant dense<0xFF800000> : vector<17xf32>
    %472 = vector.multi_reduction <maximumf>, %471, %cst_155 [1] : vector<17x17xf32> to vector<17xf32>
    %473 = vector.shape_cast %472 : vector<17xf32> to vector<17x1xf32>
    %474 = vector.broadcast %473 : vector<17x1xf32> to vector<17x17xf32>
    %475 = arith.subf %471, %474 : vector<17x17xf32>
    %476 = math.exp %475 : vector<17x17xf32>
    %cst_156 = arith.constant dense<0.000000e+00> : vector<17xf32>
    %477 = vector.multi_reduction <add>, %476, %cst_156 [1] : vector<17x17xf32> to vector<17xf32>
    %478 = vector.shape_cast %477 : vector<17xf32> to vector<17x1xf32>
    %479 = tpu.reciprocal %478 {approx = true} : vector<17x1xf32> -> vector<17x1xf32>
    %480 = vector.broadcast %479 : vector<17x1xf32> to vector<17x17xf32>
    %481 = arith.mulf %476, %480 : vector<17x17xf32>
    %cst_157 = arith.constant dense<0.000000e+00> : vector<17x4xf32>
    %482 = tpu.matmul %481, %467, %cst_157 {dimension_numbers = #tpu.dot_dimension_numbers<[1], [0], [0], [1], [0, 0, 1, 1], [], []>} : vector<17x17xf32>, vector<17x4xf32>, vector<17x4xf32> -> vector<17x4xf32>
    %483 = tpu.concatenate %428, %446, %464, %482 in 1 : vector<17x4xf32>, vector<17x4xf32>, vector<17x4xf32>, vector<17x4xf32> -> vector<17x16xf32>
    %484 = vector.extract_strided_slice %374 {offsets = [0, 48], sizes = [16, 16], strides = [1, 1]} : vector<16x64xf32> to vector<16x16xf32>
    %cst_158 = arith.constant dense<0.000000e+00> : vector<17x16xf32>
    %485 = tpu.matmul %483, %484, %cst_158 {dimension_numbers = #tpu.dot_dimension_numbers<[1], [0], [0], [1], [0, 0, 1, 1], [], []>} : vector<17x16xf32>, vector<16x16xf32>, vector<17x16xf32> -> vector<17x16xf32>
    %486 = arith.addf %372, %485 : vector<17x16xf32>
    %487 = vector.broadcast %381 : vector<1x16xf32> to vector<17x16xf32>
    %488 = arith.addf %486, %487 : vector<17x16xf32>
    %cst_159 = arith.constant dense<0.000000e+00> : vector<17xf32>
    %489 = vector.multi_reduction <add>, %488, %cst_159 [1] : vector<17x16xf32> to vector<17xf32>
    %490 = vector.shape_cast %489 : vector<17xf32> to vector<17x1xf32>
    %cst_160 = arith.constant 1.600000e+01 : f32
    %491 = vector.broadcast %cst_160 : f32 to vector<17x1xf32>
    %492 = arith.divf %490, %491 : vector<17x1xf32>
    %493 = vector.broadcast %492 : vector<17x1xf32> to vector<17x16xf32>
    %494 = arith.subf %488, %493 : vector<17x16xf32>
    %495 = arith.mulf %494, %494 : vector<17x16xf32>
    %cst_161 = arith.constant dense<0.000000e+00> : vector<17xf32>
    %496 = vector.multi_reduction <add>, %495, %cst_161 [1] : vector<17x16xf32> to vector<17xf32>
    %497 = vector.shape_cast %496 : vector<17xf32> to vector<17x1xf32>
    %cst_162 = arith.constant 1.600000e+01 : f32
    %498 = vector.broadcast %cst_162 : f32 to vector<17x1xf32>
    %499 = arith.divf %497, %498 : vector<17x1xf32>
    %500 = vector.broadcast %492 : vector<17x1xf32> to vector<17x16xf32>
    %501 = arith.subf %488, %500 : vector<17x16xf32>
    %cst_163 = arith.constant 9.99999974E-6 : f32
    %502 = vector.broadcast %cst_163 : f32 to vector<17x1xf32>
    %503 = arith.addf %499, %502 : vector<17x1xf32>
    %504 = math.rsqrt %503 : vector<17x1xf32>
    %505 = vector.broadcast %504 : vector<17x1xf32> to vector<17x16xf32>
    %506 = arith.mulf %501, %505 : vector<17x16xf32>
    %507 = vector.broadcast %379 : vector<1x16xf32> to vector<17x16xf32>
    %508 = arith.mulf %506, %507 : vector<17x16xf32>
    %509 = vector.broadcast %380 : vector<1x16xf32> to vector<17x16xf32>
    %510 = arith.addf %508, %509 : vector<17x16xf32>
    %c0_164 = arith.constant 0 : index
    %c0_165 = arith.constant 0 : index
    %c0_166 = arith.constant 0 : index
    %511 = vector.load %arg12[%c0_164, %c0_165, %c0_166] : memref<1x16x64xf32, #tpu.memory_space<vmem>>, vector<1x16x64xf32>
    %512 = vector.shape_cast %511 : vector<1x16x64xf32> to vector<16x64xf32>
    %cst_167 = arith.constant dense<0.000000e+00> : vector<17x64xf32>
    %513 = tpu.matmul %510, %512, %cst_167 {dimension_numbers = #tpu.dot_dimension_numbers<[1], [0], [0], [1], [0, 0, 1, 1], [], []>} : vector<17x16xf32>, vector<16x64xf32>, vector<17x64xf32> -> vector<17x64xf32>
    %514 = vector.broadcast %384 : vector<1x64xf32> to vector<17x64xf32>
    %515 = arith.addf %513, %514 : vector<17x64xf32>
    %516 = arith.mulf %515, %515 : vector<17x64xf32>
    %517 = arith.mulf %515, %516 : vector<17x64xf32>
    %cst_168 = arith.constant 4.471500e-02 : f32
    %518 = vector.broadcast %cst_168 : f32 to vector<17x64xf32>
    %519 = arith.mulf %518, %517 : vector<17x64xf32>
    %520 = arith.addf %515, %519 : vector<17x64xf32>
    %cst_169 = arith.constant 0.797884583 : f32
    %521 = vector.broadcast %cst_169 : f32 to vector<17x64xf32>
    %522 = arith.mulf %521, %520 : vector<17x64xf32>
    %523 = math.tanh %522 : vector<17x64xf32>
    %cst_170 = arith.constant 1.000000e+00 : f32
    %524 = vector.broadcast %cst_170 : f32 to vector<17x64xf32>
    %525 = arith.addf %524, %523 : vector<17x64xf32>
    %cst_171 = arith.constant 5.000000e-01 : f32
    %526 = vector.broadcast %cst_171 : f32 to vector<17x64xf32>
    %527 = arith.mulf %526, %525 : vector<17x64xf32>
    %528 = arith.mulf %515, %527 : vector<17x64xf32>
    %c0_172 = arith.constant 0 : index
    %c0_173 = arith.constant 0 : index
    %c0_174 = arith.constant 0 : index
    %529 = vector.load %arg13[%c0_172, %c0_173, %c0_174] : memref<1x64x16xf32, #tpu.memory_space<vmem>>, vector<1x64x16xf32>
    %530 = vector.shape_cast %529 : vector<1x64x16xf32> to vector<64x16xf32>
    %cst_175 = arith.constant dense<0.000000e+00> : vector<17x16xf32>
    %531 = tpu.matmul %528, %530, %cst_175 {dimension_numbers = #tpu.dot_dimension_numbers<[1], [0], [0], [1], [0, 0, 1, 1], [], []>} : vector<17x64xf32>, vector<64x16xf32>, vector<17x16xf32> -> vector<17x16xf32>
    %532 = arith.addf %488, %531 : vector<17x16xf32>
    %533 = vector.broadcast %382 : vector<1x16xf32> to vector<17x16xf32>
    %534 = arith.addf %532, %533 : vector<17x16xf32>
    %c0_176 = arith.constant 0 : index
    %c0_177 = arith.constant 0 : index
    %535 = vector.load %arg16[%c0_176, %c0_177] : memref<3x128xf32, #tpu.memory_space<vmem>>, vector<1x16xf32>
    %c1_178 = arith.constant 1 : index
    %c0_179 = arith.constant 0 : index
    %536 = vector.load %arg16[%c1_178, %c0_179] : memref<3x128xf32, #tpu.memory_space<vmem>>, vector<1x16xf32>
    %cst_180 = arith.constant dense<0.000000e+00> : vector<17xf32>
    %537 = vector.multi_reduction <add>, %534, %cst_180 [1] : vector<17x16xf32> to vector<17xf32>
    %538 = vector.shape_cast %537 : vector<17xf32> to vector<17x1xf32>
    %cst_181 = arith.constant 1.600000e+01 : f32
    %539 = vector.broadcast %cst_181 : f32 to vector<17x1xf32>
    %540 = arith.divf %538, %539 : vector<17x1xf32>
    %541 = vector.broadcast %540 : vector<17x1xf32> to vector<17x16xf32>
    %542 = arith.subf %534, %541 : vector<17x16xf32>
    %543 = arith.mulf %542, %542 : vector<17x16xf32>
    %cst_182 = arith.constant dense<0.000000e+00> : vector<17xf32>
    %544 = vector.multi_reduction <add>, %543, %cst_182 [1] : vector<17x16xf32> to vector<17xf32>
    %545 = vector.shape_cast %544 : vector<17xf32> to vector<17x1xf32>
    %cst_183 = arith.constant 1.600000e+01 : f32
    %546 = vector.broadcast %cst_183 : f32 to vector<17x1xf32>
    %547 = arith.divf %545, %546 : vector<17x1xf32>
    %548 = vector.broadcast %540 : vector<17x1xf32> to vector<17x16xf32>
    %549 = arith.subf %534, %548 : vector<17x16xf32>
    %cst_184 = arith.constant 9.99999974E-6 : f32
    %550 = vector.broadcast %cst_184 : f32 to vector<17x1xf32>
    %551 = arith.addf %547, %550 : vector<17x1xf32>
    %552 = math.rsqrt %551 : vector<17x1xf32>
    %553 = vector.broadcast %552 : vector<17x1xf32> to vector<17x16xf32>
    %554 = arith.mulf %549, %553 : vector<17x16xf32>
    %555 = vector.broadcast %535 : vector<1x16xf32> to vector<17x16xf32>
    %556 = arith.mulf %554, %555 : vector<17x16xf32>
    %557 = vector.broadcast %536 : vector<1x16xf32> to vector<17x16xf32>
    %558 = arith.addf %556, %557 : vector<17x16xf32>
    %559 = vector.extract_strided_slice %558 {offsets = [1, 0], sizes = [16, 16], strides = [1, 1]} : vector<17x16xf32> to vector<16x16xf32>
    %c0_185 = arith.constant 0 : index
    %c0_186 = arith.constant 0 : index
    %560 = vector.load %arg15[%c0_185, %c0_186] : memref<16x128xf32, #tpu.memory_space<vmem>>, vector<16x128xf32>
    %cst_187 = arith.constant dense<0.000000e+00> : vector<16x128xf32>
    %561 = tpu.matmul %559, %560, %cst_187 {dimension_numbers = #tpu.dot_dimension_numbers<[1], [0], [0], [1], [0, 0, 1, 1], [], []>} : vector<16x16xf32>, vector<16x128xf32>, vector<16x128xf32> -> vector<16x128xf32>
    %c2_188 = arith.constant 2 : index
    %c0_189 = arith.constant 0 : index
    %562 = vector.load %arg16[%c2_188, %c0_189] : memref<3x128xf32, #tpu.memory_space<vmem>>, vector<1x128xf32>
    %563 = vector.broadcast %562 : vector<1x128xf32> to vector<16x128xf32>
    %564 = arith.addf %561, %563 : vector<16x128xf32>
    %c0_190 = arith.constant 0 : index
    %c0_191 = arith.constant 0 : index
    %c0_192 = arith.constant 0 : index
    %565 = vector.load %arg17[%c0_190, %c0_191, %c0_192] : memref<2x16x128xf32, #tpu.memory_space<vmem>>, vector<1x16x128xf32>
    %566 = vector.shape_cast %565 : vector<1x16x128xf32> to vector<16x128xf32>
    %567 = vector.shape_cast %564 : vector<16x128xf32> to vector<1x16x128xf32>
    tpu.vector_store %arg17[%c0_190, %c0_191, %c0_192], %567 {strides = array<i32>} : memref<2x16x128xf32, #tpu.memory_space<vmem>>, vector<1x16x128xf32>,
    %c1_193 = arith.constant 1 : index
    %c0_194 = arith.constant 0 : index
    %c0_195 = arith.constant 0 : index
    %568 = vector.load %arg1[%c1_193, %c0_194, %c0_195] : memref<2x16x128xf32, #tpu.memory_space<vmem>>, vector<1x16x128xf32>
    %569 = vector.shape_cast %568 : vector<1x16x128xf32> to vector<16x128xf32>
    %570 = vector.extract_strided_slice %569 {offsets = [0, 0], sizes = [16, 32], strides = [1, 1]} : vector<16x128xf32> to vector<16x32xf32>
    %571 = arith.addf %570, %0 : vector<16x32xf32>
    %c1_196 = arith.constant 1 : index
    %c0_197 = arith.constant 0 : index
    %c0_198 = arith.constant 0 : index
    %572 = vector.load %arg2[%c1_196, %c0_197, %c0_198] : memref<2x8x16xf32, #tpu.memory_space<vmem>>, vector<1x8x16xf32>
    %573 = vector.shape_cast %572 : vector<1x8x16xf32> to vector<8x16xf32>
    %cst_199 = arith.constant dense<0.000000e+00> : vector<8x32xf32>
    %574 = tpu.matmul %573, %571, %cst_199 {dimension_numbers = #tpu.dot_dimension_numbers<[1], [0], [0], [1], [0, 0, 1, 1], [], []>} : vector<8x16xf32>, vector<16x32xf32>, vector<8x32xf32> -> vector<8x32xf32>
    %575 = tpu.concatenate %1, %574 in 0 : vector<1x32xf32>, vector<8x32xf32> -> vector<9x32xf32>
    %c0_200 = arith.constant 0 : index
    %c0_201 = arith.constant 0 : index
    %c0_202 = arith.constant 0 : index
    %576 = vector.load %arg5[%c0_200, %c0_201, %c0_202] : memref<2x32x128xf32, #tpu.memory_space<vmem>>, vector<1x32x128xf32>
    %577 = vector.shape_cast %576 : vector<1x32x128xf32> to vector<32x128xf32>
    %c0_203 = arith.constant 0 : index
    %c0_204 = arith.constant 0 : index
    %c0_205 = arith.constant 0 : index
    %578 = vector.load %arg8[%c0_203, %c0_204, %c0_205] : memref<2x8x128xf32, #tpu.memory_space<vmem>>, vector<1x8x128xf32>
    %579 = vector.shape_cast %578 : vector<1x8x128xf32> to vector<8x128xf32>
    %580 = vector.extract_strided_slice %579 {offsets = [0, 0], sizes = [1, 32], strides = [1, 1]} : vector<8x128xf32> to vector<1x32xf32>
    %581 = vector.extract_strided_slice %579 {offsets = [1, 0], sizes = [1, 32], strides = [1, 1]} : vector<8x128xf32> to vector<1x32xf32>
    %582 = vector.extract_strided_slice %579 {offsets = [2, 0], sizes = [1, 32], strides = [1, 1]} : vector<8x128xf32> to vector<1x32xf32>
    %583 = vector.extract_strided_slice %579 {offsets = [3, 0], sizes = [1, 32], strides = [1, 1]} : vector<8x128xf32> to vector<1x32xf32>
    %584 = vector.extract_strided_slice %579 {offsets = [4, 0], sizes = [1, 32], strides = [1, 1]} : vector<8x128xf32> to vector<1x32xf32>
    %585 = vector.extract_strided_slice %579 {offsets = [5, 0], sizes = [1, 32], strides = [1, 1]} : vector<8x128xf32> to vector<1x32xf32>
    %586 = vector.extract_strided_slice %579 {offsets = [6, 0], sizes = [1, 96], strides = [1, 1]} : vector<8x128xf32> to vector<1x96xf32>
    %587 = vector.extract_strided_slice %579 {offsets = [7, 0], sizes = [1, 128], strides = [1, 1]} : vector<8x128xf32> to vector<1x128xf32>
    %cst_206 = arith.constant dense<0.000000e+00> : vector<9xf32>
    %588 = vector.multi_reduction <add>, %575, %cst_206 [1] : vector<9x32xf32> to vector<9xf32>
    %589 = vector.shape_cast %588 : vector<9xf32> to vector<9x1xf32>
    %cst_207 = arith.constant 3.200000e+01 : f32
    %590 = vector.broadcast %cst_207 : f32 to vector<9x1xf32>
    %591 = arith.divf %589, %590 : vector<9x1xf32>
    %592 = vector.broadcast %591 : vector<9x1xf32> to vector<9x32xf32>
    %593 = arith.subf %575, %592 : vector<9x32xf32>
    %594 = arith.mulf %593, %593 : vector<9x32xf32>
    %cst_208 = arith.constant dense<0.000000e+00> : vector<9xf32>
    %595 = vector.multi_reduction <add>, %594, %cst_208 [1] : vector<9x32xf32> to vector<9xf32>
    %596 = vector.shape_cast %595 : vector<9xf32> to vector<9x1xf32>
    %cst_209 = arith.constant 3.200000e+01 : f32
    %597 = vector.broadcast %cst_209 : f32 to vector<9x1xf32>
    %598 = arith.divf %596, %597 : vector<9x1xf32>
    %599 = vector.broadcast %591 : vector<9x1xf32> to vector<9x32xf32>
    %600 = arith.subf %575, %599 : vector<9x32xf32>
    %cst_210 = arith.constant 9.99999974E-6 : f32
    %601 = vector.broadcast %cst_210 : f32 to vector<9x1xf32>
    %602 = arith.addf %598, %601 : vector<9x1xf32>
    %603 = math.rsqrt %602 : vector<9x1xf32>
    %604 = vector.broadcast %603 : vector<9x1xf32> to vector<9x32xf32>
    %605 = arith.mulf %600, %604 : vector<9x32xf32>
    %606 = vector.broadcast %580 : vector<1x32xf32> to vector<9x32xf32>
    %607 = arith.mulf %605, %606 : vector<9x32xf32>
    %608 = vector.broadcast %581 : vector<1x32xf32> to vector<9x32xf32>
    %609 = arith.addf %607, %608 : vector<9x32xf32>
    %610 = vector.extract_strided_slice %577 {offsets = [0, 0], sizes = [32, 96], strides = [1, 1]} : vector<32x128xf32> to vector<32x96xf32>
    %cst_211 = arith.constant dense<0.000000e+00> : vector<9x96xf32>
    %611 = tpu.matmul %609, %610, %cst_211 {dimension_numbers = #tpu.dot_dimension_numbers<[1], [0], [0], [1], [0, 0, 1, 1], [], []>} : vector<9x32xf32>, vector<32x96xf32>, vector<9x96xf32> -> vector<9x96xf32>
    %612 = vector.broadcast %586 : vector<1x96xf32> to vector<9x96xf32>
    %613 = arith.addf %611, %612 : vector<9x96xf32>
    %614 = vector.extract_strided_slice %613 {offsets = [0, 0], sizes = [9, 8], strides = [1, 1]} : vector<9x96xf32> to vector<9x8xf32>
    %615 = vector.extract_strided_slice %613 {offsets = [0, 32], sizes = [9, 8], strides = [1, 1]} : vector<9x96xf32> to vector<9x8xf32>
    %616 = vector.extract_strided_slice %613 {offsets = [0, 64], sizes = [9, 8], strides = [1, 1]} : vector<9x96xf32> to vector<9x8xf32>
    %617 = tpu.transpose %615, [1, 0] : vector<9x8xf32> -> vector<8x9xf32>
    %cst_212 = arith.constant dense<0.000000e+00> : vector<9x9xf32>
    %618 = tpu.matmul %614, %617, %cst_212 {dimension_numbers = #tpu.dot_dimension_numbers<[1], [0], [0], [1], [0, 0, 1, 1], [], []>} : vector<9x8xf32>, vector<8x9xf32>, vector<9x9xf32> -> vector<9x9xf32>
    %cst_213 = arith.constant 0.353553385 : f32
    %619 = vector.broadcast %cst_213 : f32 to vector<9x9xf32>
    %620 = arith.mulf %618, %619 : vector<9x9xf32>
    %cst_214 = arith.constant dense<0xFF800000> : vector<9xf32>
    %621 = vector.multi_reduction <maximumf>, %620, %cst_214 [1] : vector<9x9xf32> to vector<9xf32>
    %622 = vector.shape_cast %621 : vector<9xf32> to vector<9x1xf32>
    %623 = vector.broadcast %622 : vector<9x1xf32> to vector<9x9xf32>
    %624 = arith.subf %620, %623 : vector<9x9xf32>
    %625 = math.exp %624 : vector<9x9xf32>
    %cst_215 = arith.constant dense<0.000000e+00> : vector<9xf32>
    %626 = vector.multi_reduction <add>, %625, %cst_215 [1] : vector<9x9xf32> to vector<9xf32>
    %627 = vector.shape_cast %626 : vector<9xf32> to vector<9x1xf32>
    %628 = tpu.reciprocal %627 {approx = true} : vector<9x1xf32> -> vector<9x1xf32>
    %629 = vector.broadcast %628 : vector<9x1xf32> to vector<9x9xf32>
    %630 = arith.mulf %625, %629 : vector<9x9xf32>
    %cst_216 = arith.constant dense<0.000000e+00> : vector<9x8xf32>
    %631 = tpu.matmul %630, %616, %cst_216 {dimension_numbers = #tpu.dot_dimension_numbers<[1], [0], [0], [1], [0, 0, 1, 1], [], []>} : vector<9x9xf32>, vector<9x8xf32>, vector<9x8xf32> -> vector<9x8xf32>
    %632 = vector.extract_strided_slice %613 {offsets = [0, 8], sizes = [9, 8], strides = [1, 1]} : vector<9x96xf32> to vector<9x8xf32>
    %633 = vector.extract_strided_slice %613 {offsets = [0, 40], sizes = [9, 8], strides = [1, 1]} : vector<9x96xf32> to vector<9x8xf32>
    %634 = vector.extract_strided_slice %613 {offsets = [0, 72], sizes = [9, 8], strides = [1, 1]} : vector<9x96xf32> to vector<9x8xf32>
    %635 = tpu.transpose %633, [1, 0] : vector<9x8xf32> -> vector<8x9xf32>
    %cst_217 = arith.constant dense<0.000000e+00> : vector<9x9xf32>
    %636 = tpu.matmul %632, %635, %cst_217 {dimension_numbers = #tpu.dot_dimension_numbers<[1], [0], [0], [1], [0, 0, 1, 1], [], []>} : vector<9x8xf32>, vector<8x9xf32>, vector<9x9xf32> -> vector<9x9xf32>
    %cst_218 = arith.constant 0.353553385 : f32
    %637 = vector.broadcast %cst_218 : f32 to vector<9x9xf32>
    %638 = arith.mulf %636, %637 : vector<9x9xf32>
    %cst_219 = arith.constant dense<0xFF800000> : vector<9xf32>
    %639 = vector.multi_reduction <maximumf>, %638, %cst_219 [1] : vector<9x9xf32> to vector<9xf32>
    %640 = vector.shape_cast %639 : vector<9xf32> to vector<9x1xf32>
    %641 = vector.broadcast %640 : vector<9x1xf32> to vector<9x9xf32>
    %642 = arith.subf %638, %641 : vector<9x9xf32>
    %643 = math.exp %642 : vector<9x9xf32>
    %cst_220 = arith.constant dense<0.000000e+00> : vector<9xf32>
    %644 = vector.multi_reduction <add>, %643, %cst_220 [1] : vector<9x9xf32> to vector<9xf32>
    %645 = vector.shape_cast %644 : vector<9xf32> to vector<9x1xf32>
    %646 = tpu.reciprocal %645 {approx = true} : vector<9x1xf32> -> vector<9x1xf32>
    %647 = vector.broadcast %646 : vector<9x1xf32> to vector<9x9xf32>
    %648 = arith.mulf %643, %647 : vector<9x9xf32>
    %cst_221 = arith.constant dense<0.000000e+00> : vector<9x8xf32>
    %649 = tpu.matmul %648, %634, %cst_221 {dimension_numbers = #tpu.dot_dimension_numbers<[1], [0], [0], [1], [0, 0, 1, 1], [], []>} : vector<9x9xf32>, vector<9x8xf32>, vector<9x8xf32> -> vector<9x8xf32>
    %650 = vector.extract_strided_slice %613 {offsets = [0, 16], sizes = [9, 8], strides = [1, 1]} : vector<9x96xf32> to vector<9x8xf32>
    %651 = vector.extract_strided_slice %613 {offsets = [0, 48], sizes = [9, 8], strides = [1, 1]} : vector<9x96xf32> to vector<9x8xf32>
    %652 = vector.extract_strided_slice %613 {offsets = [0, 80], sizes = [9, 8], strides = [1, 1]} : vector<9x96xf32> to vector<9x8xf32>
    %653 = tpu.transpose %651, [1, 0] : vector<9x8xf32> -> vector<8x9xf32>
    %cst_222 = arith.constant dense<0.000000e+00> : vector<9x9xf32>
    %654 = tpu.matmul %650, %653, %cst_222 {dimension_numbers = #tpu.dot_dimension_numbers<[1], [0], [0], [1], [0, 0, 1, 1], [], []>} : vector<9x8xf32>, vector<8x9xf32>, vector<9x9xf32> -> vector<9x9xf32>
    %cst_223 = arith.constant 0.353553385 : f32
    %655 = vector.broadcast %cst_223 : f32 to vector<9x9xf32>
    %656 = arith.mulf %654, %655 : vector<9x9xf32>
    %cst_224 = arith.constant dense<0xFF800000> : vector<9xf32>
    %657 = vector.multi_reduction <maximumf>, %656, %cst_224 [1] : vector<9x9xf32> to vector<9xf32>
    %658 = vector.shape_cast %657 : vector<9xf32> to vector<9x1xf32>
    %659 = vector.broadcast %658 : vector<9x1xf32> to vector<9x9xf32>
    %660 = arith.subf %656, %659 : vector<9x9xf32>
    %661 = math.exp %660 : vector<9x9xf32>
    %cst_225 = arith.constant dense<0.000000e+00> : vector<9xf32>
    %662 = vector.multi_reduction <add>, %661, %cst_225 [1] : vector<9x9xf32> to vector<9xf32>
    %663 = vector.shape_cast %662 : vector<9xf32> to vector<9x1xf32>
    %664 = tpu.reciprocal %663 {approx = true} : vector<9x1xf32> -> vector<9x1xf32>
    %665 = vector.broadcast %664 : vector<9x1xf32> to vector<9x9xf32>
    %666 = arith.mulf %661, %665 : vector<9x9xf32>
    %cst_226 = arith.constant dense<0.000000e+00> : vector<9x8xf32>
    %667 = tpu.matmul %666, %652, %cst_226 {dimension_numbers = #tpu.dot_dimension_numbers<[1], [0], [0], [1], [0, 0, 1, 1], [], []>} : vector<9x9xf32>, vector<9x8xf32>, vector<9x8xf32> -> vector<9x8xf32>
    %668 = vector.extract_strided_slice %613 {offsets = [0, 24], sizes = [9, 8], strides = [1, 1]} : vector<9x96xf32> to vector<9x8xf32>
    %669 = vector.extract_strided_slice %613 {offsets = [0, 56], sizes = [9, 8], strides = [1, 1]} : vector<9x96xf32> to vector<9x8xf32>
    %670 = vector.extract_strided_slice %613 {offsets = [0, 88], sizes = [9, 8], strides = [1, 1]} : vector<9x96xf32> to vector<9x8xf32>
    %671 = tpu.transpose %669, [1, 0] : vector<9x8xf32> -> vector<8x9xf32>
    %cst_227 = arith.constant dense<0.000000e+00> : vector<9x9xf32>
    %672 = tpu.matmul %668, %671, %cst_227 {dimension_numbers = #tpu.dot_dimension_numbers<[1], [0], [0], [1], [0, 0, 1, 1], [], []>} : vector<9x8xf32>, vector<8x9xf32>, vector<9x9xf32> -> vector<9x9xf32>
    %cst_228 = arith.constant 0.353553385 : f32
    %673 = vector.broadcast %cst_228 : f32 to vector<9x9xf32>
    %674 = arith.mulf %672, %673 : vector<9x9xf32>
    %cst_229 = arith.constant dense<0xFF800000> : vector<9xf32>
    %675 = vector.multi_reduction <maximumf>, %674, %cst_229 [1] : vector<9x9xf32> to vector<9xf32>
    %676 = vector.shape_cast %675 : vector<9xf32> to vector<9x1xf32>
    %677 = vector.broadcast %676 : vector<9x1xf32> to vector<9x9xf32>
    %678 = arith.subf %674, %677 : vector<9x9xf32>
    %679 = math.exp %678 : vector<9x9xf32>
    %cst_230 = arith.constant dense<0.000000e+00> : vector<9xf32>
    %680 = vector.multi_reduction <add>, %679, %cst_230 [1] : vector<9x9xf32> to vector<9xf32>
    %681 = vector.shape_cast %680 : vector<9xf32> to vector<9x1xf32>
    %682 = tpu.reciprocal %681 {approx = true} : vector<9x1xf32> -> vector<9x1xf32>
    %683 = vector.broadcast %682 : vector<9x1xf32> to vector<9x9xf32>
    %684 = arith.mulf %679, %683 : vector<9x9xf32>
    %cst_231 = arith.constant dense<0.000000e+00> : vector<9x8xf32>
    %685 = tpu.matmul %684, %670, %cst_231 {dimension_numbers = #tpu.dot_dimension_numbers<[1], [0], [0], [1], [0, 0, 1, 1], [], []>} : vector<9x9xf32>, vector<9x8xf32>, vector<9x8xf32> -> vector<9x8xf32>
    %686 = tpu.concatenate %631, %649, %667, %685 in 1 : vector<9x8xf32>, vector<9x8xf32>, vector<9x8xf32>, vector<9x8xf32> -> vector<9x32xf32>
    %687 = vector.extract_strided_slice %577 {offsets = [0, 96], sizes = [32, 32], strides = [1, 1]} : vector<32x128xf32> to vector<32x32xf32>
    %cst_232 = arith.constant dense<0.000000e+00> : vector<9x32xf32>
    %688 = tpu.matmul %686, %687, %cst_232 {dimension_numbers = #tpu.dot_dimension_numbers<[1], [0], [0], [1], [0, 0, 1, 1], [], []>} : vector<9x32xf32>, vector<32x32xf32>, vector<9x32xf32> -> vector<9x32xf32>
    %689 = arith.addf %575, %688 : vector<9x32xf32>
    %690 = vector.broadcast %584 : vector<1x32xf32> to vector<9x32xf32>
    %691 = arith.addf %689, %690 : vector<9x32xf32>
    %cst_233 = arith.constant dense<0.000000e+00> : vector<9xf32>
    %692 = vector.multi_reduction <add>, %691, %cst_233 [1] : vector<9x32xf32> to vector<9xf32>
    %693 = vector.shape_cast %692 : vector<9xf32> to vector<9x1xf32>
    %cst_234 = arith.constant 3.200000e+01 : f32
    %694 = vector.broadcast %cst_234 : f32 to vector<9x1xf32>
    %695 = arith.divf %693, %694 : vector<9x1xf32>
    %696 = vector.broadcast %695 : vector<9x1xf32> to vector<9x32xf32>
    %697 = arith.subf %691, %696 : vector<9x32xf32>
    %698 = arith.mulf %697, %697 : vector<9x32xf32>
    %cst_235 = arith.constant dense<0.000000e+00> : vector<9xf32>
    %699 = vector.multi_reduction <add>, %698, %cst_235 [1] : vector<9x32xf32> to vector<9xf32>
    %700 = vector.shape_cast %699 : vector<9xf32> to vector<9x1xf32>
    %cst_236 = arith.constant 3.200000e+01 : f32
    %701 = vector.broadcast %cst_236 : f32 to vector<9x1xf32>
    %702 = arith.divf %700, %701 : vector<9x1xf32>
    %703 = vector.broadcast %695 : vector<9x1xf32> to vector<9x32xf32>
    %704 = arith.subf %691, %703 : vector<9x32xf32>
    %cst_237 = arith.constant 9.99999974E-6 : f32
    %705 = vector.broadcast %cst_237 : f32 to vector<9x1xf32>
    %706 = arith.addf %702, %705 : vector<9x1xf32>
    %707 = math.rsqrt %706 : vector<9x1xf32>
    %708 = vector.broadcast %707 : vector<9x1xf32> to vector<9x32xf32>
    %709 = arith.mulf %704, %708 : vector<9x32xf32>
    %710 = vector.broadcast %582 : vector<1x32xf32> to vector<9x32xf32>
    %711 = arith.mulf %709, %710 : vector<9x32xf32>
    %712 = vector.broadcast %583 : vector<1x32xf32> to vector<9x32xf32>
    %713 = arith.addf %711, %712 : vector<9x32xf32>
    %c0_238 = arith.constant 0 : index
    %c0_239 = arith.constant 0 : index
    %c0_240 = arith.constant 0 : index
    %714 = vector.load %arg6[%c0_238, %c0_239, %c0_240] : memref<2x32x128xf32, #tpu.memory_space<vmem>>, vector<1x32x128xf32>
    %715 = vector.shape_cast %714 : vector<1x32x128xf32> to vector<32x128xf32>
    %cst_241 = arith.constant dense<0.000000e+00> : vector<9x128xf32>
    %716 = tpu.matmul %713, %715, %cst_241 {dimension_numbers = #tpu.dot_dimension_numbers<[1], [0], [0], [1], [0, 0, 1, 1], [], []>} : vector<9x32xf32>, vector<32x128xf32>, vector<9x128xf32> -> vector<9x128xf32>
    %717 = vector.broadcast %587 : vector<1x128xf32> to vector<9x128xf32>
    %718 = arith.addf %716, %717 : vector<9x128xf32>
    %719 = arith.mulf %718, %718 : vector<9x128xf32>
    %720 = arith.mulf %718, %719 : vector<9x128xf32>
    %cst_242 = arith.constant 4.471500e-02 : f32
    %721 = vector.broadcast %cst_242 : f32 to vector<9x128xf32>
    %722 = arith.mulf %721, %720 : vector<9x128xf32>
    %723 = arith.addf %718, %722 : vector<9x128xf32>
    %cst_243 = arith.constant 0.797884583 : f32
    %724 = vector.broadcast %cst_243 : f32 to vector<9x128xf32>
    %725 = arith.mulf %724, %723 : vector<9x128xf32>
    %726 = math.tanh %725 : vector<9x128xf32>
    %cst_244 = arith.constant 1.000000e+00 : f32
    %727 = vector.broadcast %cst_244 : f32 to vector<9x128xf32>
    %728 = arith.addf %727, %726 : vector<9x128xf32>
    %cst_245 = arith.constant 5.000000e-01 : f32
    %729 = vector.broadcast %cst_245 : f32 to vector<9x128xf32>
    %730 = arith.mulf %729, %728 : vector<9x128xf32>
    %731 = arith.mulf %718, %730 : vector<9x128xf32>
    %c0_246 = arith.constant 0 : index
    %c0_247 = arith.constant 0 : index
    %c0_248 = arith.constant 0 : index
    %732 = vector.load %arg7[%c0_246, %c0_247, %c0_248] : memref<2x128x32xf32, #tpu.memory_space<vmem>>, vector<1x128x32xf32>
    %733 = vector.shape_cast %732 : vector<1x128x32xf32> to vector<128x32xf32>
    %cst_249 = arith.constant dense<0.000000e+00> : vector<9x32xf32>
    %734 = tpu.matmul %731, %733, %cst_249 {dimension_numbers = #tpu.dot_dimension_numbers<[1], [0], [0], [1], [0, 0, 1, 1], [], []>} : vector<9x128xf32>, vector<128x32xf32>, vector<9x32xf32> -> vector<9x32xf32>
    %735 = arith.addf %691, %734 : vector<9x32xf32>
    %736 = vector.broadcast %585 : vector<1x32xf32> to vector<9x32xf32>
    %737 = arith.addf %735, %736 : vector<9x32xf32>
    %c1_250 = arith.constant 1 : index
    %c0_251 = arith.constant 0 : index
    %c0_252 = arith.constant 0 : index
    %738 = vector.load %arg5[%c1_250, %c0_251, %c0_252] : memref<2x32x128xf32, #tpu.memory_space<vmem>>, vector<1x32x128xf32>
    %739 = vector.shape_cast %738 : vector<1x32x128xf32> to vector<32x128xf32>
    %c1_253 = arith.constant 1 : index
    %c0_254 = arith.constant 0 : index
    %c0_255 = arith.constant 0 : index
    %740 = vector.load %arg8[%c1_253, %c0_254, %c0_255] : memref<2x8x128xf32, #tpu.memory_space<vmem>>, vector<1x8x128xf32>
    %741 = vector.shape_cast %740 : vector<1x8x128xf32> to vector<8x128xf32>
    %742 = vector.extract_strided_slice %741 {offsets = [0, 0], sizes = [1, 32], strides = [1, 1]} : vector<8x128xf32> to vector<1x32xf32>
    %743 = vector.extract_strided_slice %741 {offsets = [1, 0], sizes = [1, 32], strides = [1, 1]} : vector<8x128xf32> to vector<1x32xf32>
    %744 = vector.extract_strided_slice %741 {offsets = [2, 0], sizes = [1, 32], strides = [1, 1]} : vector<8x128xf32> to vector<1x32xf32>
    %745 = vector.extract_strided_slice %741 {offsets = [3, 0], sizes = [1, 32], strides = [1, 1]} : vector<8x128xf32> to vector<1x32xf32>
    %746 = vector.extract_strided_slice %741 {offsets = [4, 0], sizes = [1, 32], strides = [1, 1]} : vector<8x128xf32> to vector<1x32xf32>
    %747 = vector.extract_strided_slice %741 {offsets = [5, 0], sizes = [1, 32], strides = [1, 1]} : vector<8x128xf32> to vector<1x32xf32>
    %748 = vector.extract_strided_slice %741 {offsets = [6, 0], sizes = [1, 96], strides = [1, 1]} : vector<8x128xf32> to vector<1x96xf32>
    %749 = vector.extract_strided_slice %741 {offsets = [7, 0], sizes = [1, 128], strides = [1, 1]} : vector<8x128xf32> to vector<1x128xf32>
    %cst_256 = arith.constant dense<0.000000e+00> : vector<9xf32>
    %750 = vector.multi_reduction <add>, %737, %cst_256 [1] : vector<9x32xf32> to vector<9xf32>
    %751 = vector.shape_cast %750 : vector<9xf32> to vector<9x1xf32>
    %cst_257 = arith.constant 3.200000e+01 : f32
    %752 = vector.broadcast %cst_257 : f32 to vector<9x1xf32>
    %753 = arith.divf %751, %752 : vector<9x1xf32>
    %754 = vector.broadcast %753 : vector<9x1xf32> to vector<9x32xf32>
    %755 = arith.subf %737, %754 : vector<9x32xf32>
    %756 = arith.mulf %755, %755 : vector<9x32xf32>
    %cst_258 = arith.constant dense<0.000000e+00> : vector<9xf32>
    %757 = vector.multi_reduction <add>, %756, %cst_258 [1] : vector<9x32xf32> to vector<9xf32>
    %758 = vector.shape_cast %757 : vector<9xf32> to vector<9x1xf32>
    %cst_259 = arith.constant 3.200000e+01 : f32
    %759 = vector.broadcast %cst_259 : f32 to vector<9x1xf32>
    %760 = arith.divf %758, %759 : vector<9x1xf32>
    %761 = vector.broadcast %753 : vector<9x1xf32> to vector<9x32xf32>
    %762 = arith.subf %737, %761 : vector<9x32xf32>
    %cst_260 = arith.constant 9.99999974E-6 : f32
    %763 = vector.broadcast %cst_260 : f32 to vector<9x1xf32>
    %764 = arith.addf %760, %763 : vector<9x1xf32>
    %765 = math.rsqrt %764 : vector<9x1xf32>
    %766 = vector.broadcast %765 : vector<9x1xf32> to vector<9x32xf32>
    %767 = arith.mulf %762, %766 : vector<9x32xf32>
    %768 = vector.broadcast %742 : vector<1x32xf32> to vector<9x32xf32>
    %769 = arith.mulf %767, %768 : vector<9x32xf32>
    %770 = vector.broadcast %743 : vector<1x32xf32> to vector<9x32xf32>
    %771 = arith.addf %769, %770 : vector<9x32xf32>
    %772 = vector.extract_strided_slice %739 {offsets = [0, 0], sizes = [32, 96], strides = [1, 1]} : vector<32x128xf32> to vector<32x96xf32>
    %cst_261 = arith.constant dense<0.000000e+00> : vector<9x96xf32>
    %773 = tpu.matmul %771, %772, %cst_261 {dimension_numbers = #tpu.dot_dimension_numbers<[1], [0], [0], [1], [0, 0, 1, 1], [], []>} : vector<9x32xf32>, vector<32x96xf32>, vector<9x96xf32> -> vector<9x96xf32>
    %774 = vector.broadcast %748 : vector<1x96xf32> to vector<9x96xf32>
    %775 = arith.addf %773, %774 : vector<9x96xf32>
    %776 = vector.extract_strided_slice %775 {offsets = [0, 0], sizes = [9, 8], strides = [1, 1]} : vector<9x96xf32> to vector<9x8xf32>
    %777 = vector.extract_strided_slice %775 {offsets = [0, 32], sizes = [9, 8], strides = [1, 1]} : vector<9x96xf32> to vector<9x8xf32>
    %778 = vector.extract_strided_slice %775 {offsets = [0, 64], sizes = [9, 8], strides = [1, 1]} : vector<9x96xf32> to vector<9x8xf32>
    %779 = tpu.transpose %777, [1, 0] : vector<9x8xf32> -> vector<8x9xf32>
    %cst_262 = arith.constant dense<0.000000e+00> : vector<9x9xf32>
    %780 = tpu.matmul %776, %779, %cst_262 {dimension_numbers = #tpu.dot_dimension_numbers<[1], [0], [0], [1], [0, 0, 1, 1], [], []>} : vector<9x8xf32>, vector<8x9xf32>, vector<9x9xf32> -> vector<9x9xf32>
    %cst_263 = arith.constant 0.353553385 : f32
    %781 = vector.broadcast %cst_263 : f32 to vector<9x9xf32>
    %782 = arith.mulf %780, %781 : vector<9x9xf32>
    %cst_264 = arith.constant dense<0xFF800000> : vector<9xf32>
    %783 = vector.multi_reduction <maximumf>, %782, %cst_264 [1] : vector<9x9xf32> to vector<9xf32>
    %784 = vector.shape_cast %783 : vector<9xf32> to vector<9x1xf32>
    %785 = vector.broadcast %784 : vector<9x1xf32> to vector<9x9xf32>
    %786 = arith.subf %782, %785 : vector<9x9xf32>
    %787 = math.exp %786 : vector<9x9xf32>
    %cst_265 = arith.constant dense<0.000000e+00> : vector<9xf32>
    %788 = vector.multi_reduction <add>, %787, %cst_265 [1] : vector<9x9xf32> to vector<9xf32>
    %789 = vector.shape_cast %788 : vector<9xf32> to vector<9x1xf32>
    %790 = tpu.reciprocal %789 {approx = true} : vector<9x1xf32> -> vector<9x1xf32>
    %791 = vector.broadcast %790 : vector<9x1xf32> to vector<9x9xf32>
    %792 = arith.mulf %787, %791 : vector<9x9xf32>
    %cst_266 = arith.constant dense<0.000000e+00> : vector<9x8xf32>
    %793 = tpu.matmul %792, %778, %cst_266 {dimension_numbers = #tpu.dot_dimension_numbers<[1], [0], [0], [1], [0, 0, 1, 1], [], []>} : vector<9x9xf32>, vector<9x8xf32>, vector<9x8xf32> -> vector<9x8xf32>
    %794 = vector.extract_strided_slice %775 {offsets = [0, 8], sizes = [9, 8], strides = [1, 1]} : vector<9x96xf32> to vector<9x8xf32>
    %795 = vector.extract_strided_slice %775 {offsets = [0, 40], sizes = [9, 8], strides = [1, 1]} : vector<9x96xf32> to vector<9x8xf32>
    %796 = vector.extract_strided_slice %775 {offsets = [0, 72], sizes = [9, 8], strides = [1, 1]} : vector<9x96xf32> to vector<9x8xf32>
    %797 = tpu.transpose %795, [1, 0] : vector<9x8xf32> -> vector<8x9xf32>
    %cst_267 = arith.constant dense<0.000000e+00> : vector<9x9xf32>
    %798 = tpu.matmul %794, %797, %cst_267 {dimension_numbers = #tpu.dot_dimension_numbers<[1], [0], [0], [1], [0, 0, 1, 1], [], []>} : vector<9x8xf32>, vector<8x9xf32>, vector<9x9xf32> -> vector<9x9xf32>
    %cst_268 = arith.constant 0.353553385 : f32
    %799 = vector.broadcast %cst_268 : f32 to vector<9x9xf32>
    %800 = arith.mulf %798, %799 : vector<9x9xf32>
    %cst_269 = arith.constant dense<0xFF800000> : vector<9xf32>
    %801 = vector.multi_reduction <maximumf>, %800, %cst_269 [1] : vector<9x9xf32> to vector<9xf32>
    %802 = vector.shape_cast %801 : vector<9xf32> to vector<9x1xf32>
    %803 = vector.broadcast %802 : vector<9x1xf32> to vector<9x9xf32>
    %804 = arith.subf %800, %803 : vector<9x9xf32>
    %805 = math.exp %804 : vector<9x9xf32>
    %cst_270 = arith.constant dense<0.000000e+00> : vector<9xf32>
    %806 = vector.multi_reduction <add>, %805, %cst_270 [1] : vector<9x9xf32> to vector<9xf32>
    %807 = vector.shape_cast %806 : vector<9xf32> to vector<9x1xf32>
    %808 = tpu.reciprocal %807 {approx = true} : vector<9x1xf32> -> vector<9x1xf32>
    %809 = vector.broadcast %808 : vector<9x1xf32> to vector<9x9xf32>
    %810 = arith.mulf %805, %809 : vector<9x9xf32>
    %cst_271 = arith.constant dense<0.000000e+00> : vector<9x8xf32>
    %811 = tpu.matmul %810, %796, %cst_271 {dimension_numbers = #tpu.dot_dimension_numbers<[1], [0], [0], [1], [0, 0, 1, 1], [], []>} : vector<9x9xf32>, vector<9x8xf32>, vector<9x8xf32> -> vector<9x8xf32>
    %812 = vector.extract_strided_slice %775 {offsets = [0, 16], sizes = [9, 8], strides = [1, 1]} : vector<9x96xf32> to vector<9x8xf32>
    %813 = vector.extract_strided_slice %775 {offsets = [0, 48], sizes = [9, 8], strides = [1, 1]} : vector<9x96xf32> to vector<9x8xf32>
    %814 = vector.extract_strided_slice %775 {offsets = [0, 80], sizes = [9, 8], strides = [1, 1]} : vector<9x96xf32> to vector<9x8xf32>
    %815 = tpu.transpose %813, [1, 0] : vector<9x8xf32> -> vector<8x9xf32>
    %cst_272 = arith.constant dense<0.000000e+00> : vector<9x9xf32>
    %816 = tpu.matmul %812, %815, %cst_272 {dimension_numbers = #tpu.dot_dimension_numbers<[1], [0], [0], [1], [0, 0, 1, 1], [], []>} : vector<9x8xf32>, vector<8x9xf32>, vector<9x9xf32> -> vector<9x9xf32>
    %cst_273 = arith.constant 0.353553385 : f32
    %817 = vector.broadcast %cst_273 : f32 to vector<9x9xf32>
    %818 = arith.mulf %816, %817 : vector<9x9xf32>
    %cst_274 = arith.constant dense<0xFF800000> : vector<9xf32>
    %819 = vector.multi_reduction <maximumf>, %818, %cst_274 [1] : vector<9x9xf32> to vector<9xf32>
    %820 = vector.shape_cast %819 : vector<9xf32> to vector<9x1xf32>
    %821 = vector.broadcast %820 : vector<9x1xf32> to vector<9x9xf32>
    %822 = arith.subf %818, %821 : vector<9x9xf32>
    %823 = math.exp %822 : vector<9x9xf32>
    %cst_275 = arith.constant dense<0.000000e+00> : vector<9xf32>
    %824 = vector.multi_reduction <add>, %823, %cst_275 [1] : vector<9x9xf32> to vector<9xf32>
    %825 = vector.shape_cast %824 : vector<9xf32> to vector<9x1xf32>
    %826 = tpu.reciprocal %825 {approx = true} : vector<9x1xf32> -> vector<9x1xf32>
    %827 = vector.broadcast %826 : vector<9x1xf32> to vector<9x9xf32>
    %828 = arith.mulf %823, %827 : vector<9x9xf32>
    %cst_276 = arith.constant dense<0.000000e+00> : vector<9x8xf32>
    %829 = tpu.matmul %828, %814, %cst_276 {dimension_numbers = #tpu.dot_dimension_numbers<[1], [0], [0], [1], [0, 0, 1, 1], [], []>} : vector<9x9xf32>, vector<9x8xf32>, vector<9x8xf32> -> vector<9x8xf32>
    %830 = vector.extract_strided_slice %775 {offsets = [0, 24], sizes = [9, 8], strides = [1, 1]} : vector<9x96xf32> to vector<9x8xf32>
    %831 = vector.extract_strided_slice %775 {offsets = [0, 56], sizes = [9, 8], strides = [1, 1]} : vector<9x96xf32> to vector<9x8xf32>
    %832 = vector.extract_strided_slice %775 {offsets = [0, 88], sizes = [9, 8], strides = [1, 1]} : vector<9x96xf32> to vector<9x8xf32>
    %833 = tpu.transpose %831, [1, 0] : vector<9x8xf32> -> vector<8x9xf32>
    %cst_277 = arith.constant dense<0.000000e+00> : vector<9x9xf32>
    %834 = tpu.matmul %830, %833, %cst_277 {dimension_numbers = #tpu.dot_dimension_numbers<[1], [0], [0], [1], [0, 0, 1, 1], [], []>} : vector<9x8xf32>, vector<8x9xf32>, vector<9x9xf32> -> vector<9x9xf32>
    %cst_278 = arith.constant 0.353553385 : f32
    %835 = vector.broadcast %cst_278 : f32 to vector<9x9xf32>
    %836 = arith.mulf %834, %835 : vector<9x9xf32>
    %cst_279 = arith.constant dense<0xFF800000> : vector<9xf32>
    %837 = vector.multi_reduction <maximumf>, %836, %cst_279 [1] : vector<9x9xf32> to vector<9xf32>
    %838 = vector.shape_cast %837 : vector<9xf32> to vector<9x1xf32>
    %839 = vector.broadcast %838 : vector<9x1xf32> to vector<9x9xf32>
    %840 = arith.subf %836, %839 : vector<9x9xf32>
    %841 = math.exp %840 : vector<9x9xf32>
    %cst_280 = arith.constant dense<0.000000e+00> : vector<9xf32>
    %842 = vector.multi_reduction <add>, %841, %cst_280 [1] : vector<9x9xf32> to vector<9xf32>
    %843 = vector.shape_cast %842 : vector<9xf32> to vector<9x1xf32>
    %844 = tpu.reciprocal %843 {approx = true} : vector<9x1xf32> -> vector<9x1xf32>
    %845 = vector.broadcast %844 : vector<9x1xf32> to vector<9x9xf32>
    %846 = arith.mulf %841, %845 : vector<9x9xf32>
    %cst_281 = arith.constant dense<0.000000e+00> : vector<9x8xf32>
    %847 = tpu.matmul %846, %832, %cst_281 {dimension_numbers = #tpu.dot_dimension_numbers<[1], [0], [0], [1], [0, 0, 1, 1], [], []>} : vector<9x9xf32>, vector<9x8xf32>, vector<9x8xf32> -> vector<9x8xf32>
    %848 = tpu.concatenate %793, %811, %829, %847 in 1 : vector<9x8xf32>, vector<9x8xf32>, vector<9x8xf32>, vector<9x8xf32> -> vector<9x32xf32>
    %849 = vector.extract_strided_slice %739 {offsets = [0, 96], sizes = [32, 32], strides = [1, 1]} : vector<32x128xf32> to vector<32x32xf32>
    %cst_282 = arith.constant dense<0.000000e+00> : vector<9x32xf32>
    %850 = tpu.matmul %848, %849, %cst_282 {dimension_numbers = #tpu.dot_dimension_numbers<[1], [0], [0], [1], [0, 0, 1, 1], [], []>} : vector<9x32xf32>, vector<32x32xf32>, vector<9x32xf32> -> vector<9x32xf32>
    %851 = arith.addf %737, %850 : vector<9x32xf32>
    %852 = vector.broadcast %746 : vector<1x32xf32> to vector<9x32xf32>
    %853 = arith.addf %851, %852 : vector<9x32xf32>
    %cst_283 = arith.constant dense<0.000000e+00> : vector<9xf32>
    %854 = vector.multi_reduction <add>, %853, %cst_283 [1] : vector<9x32xf32> to vector<9xf32>
    %855 = vector.shape_cast %854 : vector<9xf32> to vector<9x1xf32>
    %cst_284 = arith.constant 3.200000e+01 : f32
    %856 = vector.broadcast %cst_284 : f32 to vector<9x1xf32>
    %857 = arith.divf %855, %856 : vector<9x1xf32>
    %858 = vector.broadcast %857 : vector<9x1xf32> to vector<9x32xf32>
    %859 = arith.subf %853, %858 : vector<9x32xf32>
    %860 = arith.mulf %859, %859 : vector<9x32xf32>
    %cst_285 = arith.constant dense<0.000000e+00> : vector<9xf32>
    %861 = vector.multi_reduction <add>, %860, %cst_285 [1] : vector<9x32xf32> to vector<9xf32>
    %862 = vector.shape_cast %861 : vector<9xf32> to vector<9x1xf32>
    %cst_286 = arith.constant 3.200000e+01 : f32
    %863 = vector.broadcast %cst_286 : f32 to vector<9x1xf32>
    %864 = arith.divf %862, %863 : vector<9x1xf32>
    %865 = vector.broadcast %857 : vector<9x1xf32> to vector<9x32xf32>
    %866 = arith.subf %853, %865 : vector<9x32xf32>
    %cst_287 = arith.constant 9.99999974E-6 : f32
    %867 = vector.broadcast %cst_287 : f32 to vector<9x1xf32>
    %868 = arith.addf %864, %867 : vector<9x1xf32>
    %869 = math.rsqrt %868 : vector<9x1xf32>
    %870 = vector.broadcast %869 : vector<9x1xf32> to vector<9x32xf32>
    %871 = arith.mulf %866, %870 : vector<9x32xf32>
    %872 = vector.broadcast %744 : vector<1x32xf32> to vector<9x32xf32>
    %873 = arith.mulf %871, %872 : vector<9x32xf32>
    %874 = vector.broadcast %745 : vector<1x32xf32> to vector<9x32xf32>
    %875 = arith.addf %873, %874 : vector<9x32xf32>
    %c1_288 = arith.constant 1 : index
    %c0_289 = arith.constant 0 : index
    %c0_290 = arith.constant 0 : index
    %876 = vector.load %arg6[%c1_288, %c0_289, %c0_290] : memref<2x32x128xf32, #tpu.memory_space<vmem>>, vector<1x32x128xf32>
    %877 = vector.shape_cast %876 : vector<1x32x128xf32> to vector<32x128xf32>
    %cst_291 = arith.constant dense<0.000000e+00> : vector<9x128xf32>
    %878 = tpu.matmul %875, %877, %cst_291 {dimension_numbers = #tpu.dot_dimension_numbers<[1], [0], [0], [1], [0, 0, 1, 1], [], []>} : vector<9x32xf32>, vector<32x128xf32>, vector<9x128xf32> -> vector<9x128xf32>
    %879 = vector.broadcast %749 : vector<1x128xf32> to vector<9x128xf32>
    %880 = arith.addf %878, %879 : vector<9x128xf32>
    %881 = arith.mulf %880, %880 : vector<9x128xf32>
    %882 = arith.mulf %880, %881 : vector<9x128xf32>
    %cst_292 = arith.constant 4.471500e-02 : f32
    %883 = vector.broadcast %cst_292 : f32 to vector<9x128xf32>
    %884 = arith.mulf %883, %882 : vector<9x128xf32>
    %885 = arith.addf %880, %884 : vector<9x128xf32>
    %cst_293 = arith.constant 0.797884583 : f32
    %886 = vector.broadcast %cst_293 : f32 to vector<9x128xf32>
    %887 = arith.mulf %886, %885 : vector<9x128xf32>
    %888 = math.tanh %887 : vector<9x128xf32>
    %cst_294 = arith.constant 1.000000e+00 : f32
    %889 = vector.broadcast %cst_294 : f32 to vector<9x128xf32>
    %890 = arith.addf %889, %888 : vector<9x128xf32>
    %cst_295 = arith.constant 5.000000e-01 : f32
    %891 = vector.broadcast %cst_295 : f32 to vector<9x128xf32>
    %892 = arith.mulf %891, %890 : vector<9x128xf32>
    %893 = arith.mulf %880, %892 : vector<9x128xf32>
    %c1_296 = arith.constant 1 : index
    %c0_297 = arith.constant 0 : index
    %c0_298 = arith.constant 0 : index
    %894 = vector.load %arg7[%c1_296, %c0_297, %c0_298] : memref<2x128x32xf32, #tpu.memory_space<vmem>>, vector<1x128x32xf32>
    %895 = vector.shape_cast %894 : vector<1x128x32xf32> to vector<128x32xf32>
    %cst_299 = arith.constant dense<0.000000e+00> : vector<9x32xf32>
    %896 = tpu.matmul %893, %895, %cst_299 {dimension_numbers = #tpu.dot_dimension_numbers<[1], [0], [0], [1], [0, 0, 1, 1], [], []>} : vector<9x128xf32>, vector<128x32xf32>, vector<9x32xf32> -> vector<9x32xf32>
    %897 = arith.addf %853, %896 : vector<9x32xf32>
    %898 = vector.broadcast %747 : vector<1x32xf32> to vector<9x32xf32>
    %899 = arith.addf %897, %898 : vector<9x32xf32>
    %c0_300 = arith.constant 0 : index
    %c0_301 = arith.constant 0 : index
    %900 = vector.load %arg10[%c0_300, %c0_301] : memref<3x32xf32, #tpu.memory_space<vmem>>, vector<1x32xf32>
    %c1_302 = arith.constant 1 : index
    %c0_303 = arith.constant 0 : index
    %901 = vector.load %arg10[%c1_302, %c0_303] : memref<3x32xf32, #tpu.memory_space<vmem>>, vector<1x32xf32>
    %cst_304 = arith.constant dense<0.000000e+00> : vector<9xf32>
    %902 = vector.multi_reduction <add>, %899, %cst_304 [1] : vector<9x32xf32> to vector<9xf32>
    %903 = vector.shape_cast %902 : vector<9xf32> to vector<9x1xf32>
    %cst_305 = arith.constant 3.200000e+01 : f32
    %904 = vector.broadcast %cst_305 : f32 to vector<9x1xf32>
    %905 = arith.divf %903, %904 : vector<9x1xf32>
    %906 = vector.broadcast %905 : vector<9x1xf32> to vector<9x32xf32>
    %907 = arith.subf %899, %906 : vector<9x32xf32>
    %908 = arith.mulf %907, %907 : vector<9x32xf32>
    %cst_306 = arith.constant dense<0.000000e+00> : vector<9xf32>
    %909 = vector.multi_reduction <add>, %908, %cst_306 [1] : vector<9x32xf32> to vector<9xf32>
    %910 = vector.shape_cast %909 : vector<9xf32> to vector<9x1xf32>
    %cst_307 = arith.constant 3.200000e+01 : f32
    %911 = vector.broadcast %cst_307 : f32 to vector<9x1xf32>
    %912 = arith.divf %910, %911 : vector<9x1xf32>
    %913 = vector.broadcast %905 : vector<9x1xf32> to vector<9x32xf32>
    %914 = arith.subf %899, %913 : vector<9x32xf32>
    %cst_308 = arith.constant 9.99999974E-6 : f32
    %915 = vector.broadcast %cst_308 : f32 to vector<9x1xf32>
    %916 = arith.addf %912, %915 : vector<9x1xf32>
    %917 = math.rsqrt %916 : vector<9x1xf32>
    %918 = vector.broadcast %917 : vector<9x1xf32> to vector<9x32xf32>
    %919 = arith.mulf %914, %918 : vector<9x32xf32>
    %920 = vector.broadcast %900 : vector<1x32xf32> to vector<9x32xf32>
    %921 = arith.mulf %919, %920 : vector<9x32xf32>
    %922 = vector.broadcast %901 : vector<1x32xf32> to vector<9x32xf32>
    %923 = arith.addf %921, %922 : vector<9x32xf32>
    %c0_309 = arith.constant 0 : index
    %c0_310 = arith.constant 0 : index
    %924 = vector.load %arg9[%c0_309, %c0_310] : memref<32x16xf32, #tpu.memory_space<vmem>>, vector<32x16xf32>
    %cst_311 = arith.constant dense<0.000000e+00> : vector<9x16xf32>
    %925 = tpu.matmul %923, %924, %cst_311 {dimension_numbers = #tpu.dot_dimension_numbers<[1], [0], [0], [1], [0, 0, 1, 1], [], []>} : vector<9x32xf32>, vector<32x16xf32>, vector<9x16xf32> -> vector<9x16xf32>
    %c2_312 = arith.constant 2 : index
    %c0_313 = arith.constant 0 : index
    %926 = vector.load %arg10[%c2_312, %c0_313] : memref<3x32xf32, #tpu.memory_space<vmem>>, vector<1x16xf32>
    %927 = vector.broadcast %926 : vector<1x16xf32> to vector<9x16xf32>
    %928 = arith.addf %925, %927 : vector<9x16xf32>
    %929 = vector.extract_strided_slice %928 {offsets = [1, 0], sizes = [8, 16], strides = [1, 1]} : vector<9x16xf32> to vector<8x16xf32>
    %930 = tpu.concatenate %929, %3 in 0 : vector<8x16xf32>, vector<1x16xf32> -> vector<9x16xf32>
    %c1_314 = arith.constant 1 : index
    %c0_315 = arith.constant 0 : index
    %c0_316 = arith.constant 0 : index
    %931 = vector.load %arg3[%c1_314, %c0_315, %c0_316] : memref<2x16x9xf32, #tpu.memory_space<vmem>>, vector<1x16x9xf32>
    %932 = vector.shape_cast %931 : vector<1x16x9xf32> to vector<16x9xf32>
    %cst_317 = arith.constant dense<0.000000e+00> : vector<16x16xf32>
    %933 = tpu.matmul %932, %930, %cst_317 {dimension_numbers = #tpu.dot_dimension_numbers<[1], [0], [0], [1], [0, 0, 1, 1], [], []>} : vector<16x9xf32>, vector<9x16xf32>, vector<16x16xf32> -> vector<16x16xf32>
    %934 = vector.extract_strided_slice %928 {offsets = [0, 0], sizes = [1, 16], strides = [1, 1]} : vector<9x16xf32> to vector<1x16xf32>
    %935 = tpu.concatenate %934, %933 in 0 : vector<1x16xf32>, vector<16x16xf32> -> vector<17x16xf32>
    %936 = arith.addf %935, %2 : vector<17x16xf32>
    %c0_318 = arith.constant 0 : index
    %c0_319 = arith.constant 0 : index
    %c0_320 = arith.constant 0 : index
    %937 = vector.load %arg11[%c0_318, %c0_319, %c0_320] : memref<1x16x64xf32, #tpu.memory_space<vmem>>, vector<1x16x64xf32>
    %938 = vector.shape_cast %937 : vector<1x16x64xf32> to vector<16x64xf32>
    %c0_321 = arith.constant 0 : index
    %c0_322 = arith.constant 0 : index
    %c0_323 = arith.constant 0 : index
    %939 = vector.load %arg14[%c0_321, %c0_322, %c0_323] : memref<1x8x64xf32, #tpu.memory_space<vmem>>, vector<1x8x64xf32>
    %940 = vector.shape_cast %939 : vector<1x8x64xf32> to vector<8x64xf32>
    %941 = vector.extract_strided_slice %940 {offsets = [0, 0], sizes = [1, 16], strides = [1, 1]} : vector<8x64xf32> to vector<1x16xf32>
    %942 = vector.extract_strided_slice %940 {offsets = [1, 0], sizes = [1, 16], strides = [1, 1]} : vector<8x64xf32> to vector<1x16xf32>
    %943 = vector.extract_strided_slice %940 {offsets = [2, 0], sizes = [1, 16], strides = [1, 1]} : vector<8x64xf32> to vector<1x16xf32>
    %944 = vector.extract_strided_slice %940 {offsets = [3, 0], sizes = [1, 16], strides = [1, 1]} : vector<8x64xf32> to vector<1x16xf32>
    %945 = vector.extract_strided_slice %940 {offsets = [4, 0], sizes = [1, 16], strides = [1, 1]} : vector<8x64xf32> to vector<1x16xf32>
    %946 = vector.extract_strided_slice %940 {offsets = [5, 0], sizes = [1, 16], strides = [1, 1]} : vector<8x64xf32> to vector<1x16xf32>
    %947 = vector.extract_strided_slice %940 {offsets = [6, 0], sizes = [1, 48], strides = [1, 1]} : vector<8x64xf32> to vector<1x48xf32>
    %948 = vector.extract_strided_slice %940 {offsets = [7, 0], sizes = [1, 64], strides = [1, 1]} : vector<8x64xf32> to vector<1x64xf32>
    %cst_324 = arith.constant dense<0.000000e+00> : vector<17xf32>
    %949 = vector.multi_reduction <add>, %936, %cst_324 [1] : vector<17x16xf32> to vector<17xf32>
    %950 = vector.shape_cast %949 : vector<17xf32> to vector<17x1xf32>
    %cst_325 = arith.constant 1.600000e+01 : f32
    %951 = vector.broadcast %cst_325 : f32 to vector<17x1xf32>
    %952 = arith.divf %950, %951 : vector<17x1xf32>
    %953 = vector.broadcast %952 : vector<17x1xf32> to vector<17x16xf32>
    %954 = arith.subf %936, %953 : vector<17x16xf32>
    %955 = arith.mulf %954, %954 : vector<17x16xf32>
    %cst_326 = arith.constant dense<0.000000e+00> : vector<17xf32>
    %956 = vector.multi_reduction <add>, %955, %cst_326 [1] : vector<17x16xf32> to vector<17xf32>
    %957 = vector.shape_cast %956 : vector<17xf32> to vector<17x1xf32>
    %cst_327 = arith.constant 1.600000e+01 : f32
    %958 = vector.broadcast %cst_327 : f32 to vector<17x1xf32>
    %959 = arith.divf %957, %958 : vector<17x1xf32>
    %960 = vector.broadcast %952 : vector<17x1xf32> to vector<17x16xf32>
    %961 = arith.subf %936, %960 : vector<17x16xf32>
    %cst_328 = arith.constant 9.99999974E-6 : f32
    %962 = vector.broadcast %cst_328 : f32 to vector<17x1xf32>
    %963 = arith.addf %959, %962 : vector<17x1xf32>
    %964 = math.rsqrt %963 : vector<17x1xf32>
    %965 = vector.broadcast %964 : vector<17x1xf32> to vector<17x16xf32>
    %966 = arith.mulf %961, %965 : vector<17x16xf32>
    %967 = vector.broadcast %941 : vector<1x16xf32> to vector<17x16xf32>
    %968 = arith.mulf %966, %967 : vector<17x16xf32>
    %969 = vector.broadcast %942 : vector<1x16xf32> to vector<17x16xf32>
    %970 = arith.addf %968, %969 : vector<17x16xf32>
    %971 = vector.extract_strided_slice %938 {offsets = [0, 0], sizes = [16, 48], strides = [1, 1]} : vector<16x64xf32> to vector<16x48xf32>
    %cst_329 = arith.constant dense<0.000000e+00> : vector<17x48xf32>
    %972 = tpu.matmul %970, %971, %cst_329 {dimension_numbers = #tpu.dot_dimension_numbers<[1], [0], [0], [1], [0, 0, 1, 1], [], []>} : vector<17x16xf32>, vector<16x48xf32>, vector<17x48xf32> -> vector<17x48xf32>
    %973 = vector.broadcast %947 : vector<1x48xf32> to vector<17x48xf32>
    %974 = arith.addf %972, %973 : vector<17x48xf32>
    %975 = vector.extract_strided_slice %974 {offsets = [0, 0], sizes = [17, 4], strides = [1, 1]} : vector<17x48xf32> to vector<17x4xf32>
    %976 = vector.extract_strided_slice %974 {offsets = [0, 16], sizes = [17, 4], strides = [1, 1]} : vector<17x48xf32> to vector<17x4xf32>
    %977 = vector.extract_strided_slice %974 {offsets = [0, 32], sizes = [17, 4], strides = [1, 1]} : vector<17x48xf32> to vector<17x4xf32>
    %978 = tpu.transpose %976, [1, 0] : vector<17x4xf32> -> vector<4x17xf32>
    %cst_330 = arith.constant dense<0.000000e+00> : vector<17x17xf32>
    %979 = tpu.matmul %975, %978, %cst_330 {dimension_numbers = #tpu.dot_dimension_numbers<[1], [0], [0], [1], [0, 0, 1, 1], [], []>} : vector<17x4xf32>, vector<4x17xf32>, vector<17x17xf32> -> vector<17x17xf32>
    %cst_331 = arith.constant 5.000000e-01 : f32
    %980 = vector.broadcast %cst_331 : f32 to vector<17x17xf32>
    %981 = arith.mulf %979, %980 : vector<17x17xf32>
    %cst_332 = arith.constant dense<0xFF800000> : vector<17xf32>
    %982 = vector.multi_reduction <maximumf>, %981, %cst_332 [1] : vector<17x17xf32> to vector<17xf32>
    %983 = vector.shape_cast %982 : vector<17xf32> to vector<17x1xf32>
    %984 = vector.broadcast %983 : vector<17x1xf32> to vector<17x17xf32>
    %985 = arith.subf %981, %984 : vector<17x17xf32>
    %986 = math.exp %985 : vector<17x17xf32>
    %cst_333 = arith.constant dense<0.000000e+00> : vector<17xf32>
    %987 = vector.multi_reduction <add>, %986, %cst_333 [1] : vector<17x17xf32> to vector<17xf32>
    %988 = vector.shape_cast %987 : vector<17xf32> to vector<17x1xf32>
    %989 = tpu.reciprocal %988 {approx = true} : vector<17x1xf32> -> vector<17x1xf32>
    %990 = vector.broadcast %989 : vector<17x1xf32> to vector<17x17xf32>
    %991 = arith.mulf %986, %990 : vector<17x17xf32>
    %cst_334 = arith.constant dense<0.000000e+00> : vector<17x4xf32>
    %992 = tpu.matmul %991, %977, %cst_334 {dimension_numbers = #tpu.dot_dimension_numbers<[1], [0], [0], [1], [0, 0, 1, 1], [], []>} : vector<17x17xf32>, vector<17x4xf32>, vector<17x4xf32> -> vector<17x4xf32>
    %993 = vector.extract_strided_slice %974 {offsets = [0, 4], sizes = [17, 4], strides = [1, 1]} : vector<17x48xf32> to vector<17x4xf32>
    %994 = vector.extract_strided_slice %974 {offsets = [0, 20], sizes = [17, 4], strides = [1, 1]} : vector<17x48xf32> to vector<17x4xf32>
    %995 = vector.extract_strided_slice %974 {offsets = [0, 36], sizes = [17, 4], strides = [1, 1]} : vector<17x48xf32> to vector<17x4xf32>
    %996 = tpu.transpose %994, [1, 0] : vector<17x4xf32> -> vector<4x17xf32>
    %cst_335 = arith.constant dense<0.000000e+00> : vector<17x17xf32>
    %997 = tpu.matmul %993, %996, %cst_335 {dimension_numbers = #tpu.dot_dimension_numbers<[1], [0], [0], [1], [0, 0, 1, 1], [], []>} : vector<17x4xf32>, vector<4x17xf32>, vector<17x17xf32> -> vector<17x17xf32>
    %cst_336 = arith.constant 5.000000e-01 : f32
    %998 = vector.broadcast %cst_336 : f32 to vector<17x17xf32>
    %999 = arith.mulf %997, %998 : vector<17x17xf32>
    %cst_337 = arith.constant dense<0xFF800000> : vector<17xf32>
    %1000 = vector.multi_reduction <maximumf>, %999, %cst_337 [1] : vector<17x17xf32> to vector<17xf32>
    %1001 = vector.shape_cast %1000 : vector<17xf32> to vector<17x1xf32>
    %1002 = vector.broadcast %1001 : vector<17x1xf32> to vector<17x17xf32>
    %1003 = arith.subf %999, %1002 : vector<17x17xf32>
    %1004 = math.exp %1003 : vector<17x17xf32>
    %cst_338 = arith.constant dense<0.000000e+00> : vector<17xf32>
    %1005 = vector.multi_reduction <add>, %1004, %cst_338 [1] : vector<17x17xf32> to vector<17xf32>
    %1006 = vector.shape_cast %1005 : vector<17xf32> to vector<17x1xf32>
    %1007 = tpu.reciprocal %1006 {approx = true} : vector<17x1xf32> -> vector<17x1xf32>
    %1008 = vector.broadcast %1007 : vector<17x1xf32> to vector<17x17xf32>
    %1009 = arith.mulf %1004, %1008 : vector<17x17xf32>
    %cst_339 = arith.constant dense<0.000000e+00> : vector<17x4xf32>
    %1010 = tpu.matmul %1009, %995, %cst_339 {dimension_numbers = #tpu.dot_dimension_numbers<[1], [0], [0], [1], [0, 0, 1, 1], [], []>} : vector<17x17xf32>, vector<17x4xf32>, vector<17x4xf32> -> vector<17x4xf32>
    %1011 = vector.extract_strided_slice %974 {offsets = [0, 8], sizes = [17, 4], strides = [1, 1]} : vector<17x48xf32> to vector<17x4xf32>
    %1012 = vector.extract_strided_slice %974 {offsets = [0, 24], sizes = [17, 4], strides = [1, 1]} : vector<17x48xf32> to vector<17x4xf32>
    %1013 = vector.extract_strided_slice %974 {offsets = [0, 40], sizes = [17, 4], strides = [1, 1]} : vector<17x48xf32> to vector<17x4xf32>
    %1014 = tpu.transpose %1012, [1, 0] : vector<17x4xf32> -> vector<4x17xf32>
    %cst_340 = arith.constant dense<0.000000e+00> : vector<17x17xf32>
    %1015 = tpu.matmul %1011, %1014, %cst_340 {dimension_numbers = #tpu.dot_dimension_numbers<[1], [0], [0], [1], [0, 0, 1, 1], [], []>} : vector<17x4xf32>, vector<4x17xf32>, vector<17x17xf32> -> vector<17x17xf32>
    %cst_341 = arith.constant 5.000000e-01 : f32
    %1016 = vector.broadcast %cst_341 : f32 to vector<17x17xf32>
    %1017 = arith.mulf %1015, %1016 : vector<17x17xf32>
    %cst_342 = arith.constant dense<0xFF800000> : vector<17xf32>
    %1018 = vector.multi_reduction <maximumf>, %1017, %cst_342 [1] : vector<17x17xf32> to vector<17xf32>
    %1019 = vector.shape_cast %1018 : vector<17xf32> to vector<17x1xf32>
    %1020 = vector.broadcast %1019 : vector<17x1xf32> to vector<17x17xf32>
    %1021 = arith.subf %1017, %1020 : vector<17x17xf32>
    %1022 = math.exp %1021 : vector<17x17xf32>
    %cst_343 = arith.constant dense<0.000000e+00> : vector<17xf32>
    %1023 = vector.multi_reduction <add>, %1022, %cst_343 [1] : vector<17x17xf32> to vector<17xf32>
    %1024 = vector.shape_cast %1023 : vector<17xf32> to vector<17x1xf32>
    %1025 = tpu.reciprocal %1024 {approx = true} : vector<17x1xf32> -> vector<17x1xf32>
    %1026 = vector.broadcast %1025 : vector<17x1xf32> to vector<17x17xf32>
    %1027 = arith.mulf %1022, %1026 : vector<17x17xf32>
    %cst_344 = arith.constant dense<0.000000e+00> : vector<17x4xf32>
    %1028 = tpu.matmul %1027, %1013, %cst_344 {dimension_numbers = #tpu.dot_dimension_numbers<[1], [0], [0], [1], [0, 0, 1, 1], [], []>} : vector<17x17xf32>, vector<17x4xf32>, vector<17x4xf32> -> vector<17x4xf32>
    %1029 = vector.extract_strided_slice %974 {offsets = [0, 12], sizes = [17, 4], strides = [1, 1]} : vector<17x48xf32> to vector<17x4xf32>
    %1030 = vector.extract_strided_slice %974 {offsets = [0, 28], sizes = [17, 4], strides = [1, 1]} : vector<17x48xf32> to vector<17x4xf32>
    %1031 = vector.extract_strided_slice %974 {offsets = [0, 44], sizes = [17, 4], strides = [1, 1]} : vector<17x48xf32> to vector<17x4xf32>
    %1032 = tpu.transpose %1030, [1, 0] : vector<17x4xf32> -> vector<4x17xf32>
    %cst_345 = arith.constant dense<0.000000e+00> : vector<17x17xf32>
    %1033 = tpu.matmul %1029, %1032, %cst_345 {dimension_numbers = #tpu.dot_dimension_numbers<[1], [0], [0], [1], [0, 0, 1, 1], [], []>} : vector<17x4xf32>, vector<4x17xf32>, vector<17x17xf32> -> vector<17x17xf32>
    %cst_346 = arith.constant 5.000000e-01 : f32
    %1034 = vector.broadcast %cst_346 : f32 to vector<17x17xf32>
    %1035 = arith.mulf %1033, %1034 : vector<17x17xf32>
    %cst_347 = arith.constant dense<0xFF800000> : vector<17xf32>
    %1036 = vector.multi_reduction <maximumf>, %1035, %cst_347 [1] : vector<17x17xf32> to vector<17xf32>
    %1037 = vector.shape_cast %1036 : vector<17xf32> to vector<17x1xf32>
    %1038 = vector.broadcast %1037 : vector<17x1xf32> to vector<17x17xf32>
    %1039 = arith.subf %1035, %1038 : vector<17x17xf32>
    %1040 = math.exp %1039 : vector<17x17xf32>
    %cst_348 = arith.constant dense<0.000000e+00> : vector<17xf32>
    %1041 = vector.multi_reduction <add>, %1040, %cst_348 [1] : vector<17x17xf32> to vector<17xf32>
    %1042 = vector.shape_cast %1041 : vector<17xf32> to vector<17x1xf32>
    %1043 = tpu.reciprocal %1042 {approx = true} : vector<17x1xf32> -> vector<17x1xf32>
    %1044 = vector.broadcast %1043 : vector<17x1xf32> to vector<17x17xf32>
    %1045 = arith.mulf %1040, %1044 : vector<17x17xf32>
    %cst_349 = arith.constant dense<0.000000e+00> : vector<17x4xf32>
    %1046 = tpu.matmul %1045, %1031, %cst_349 {dimension_numbers = #tpu.dot_dimension_numbers<[1], [0], [0], [1], [0, 0, 1, 1], [], []>} : vector<17x17xf32>, vector<17x4xf32>, vector<17x4xf32> -> vector<17x4xf32>
    %1047 = tpu.concatenate %992, %1010, %1028, %1046 in 1 : vector<17x4xf32>, vector<17x4xf32>, vector<17x4xf32>, vector<17x4xf32> -> vector<17x16xf32>
    %1048 = vector.extract_strided_slice %938 {offsets = [0, 48], sizes = [16, 16], strides = [1, 1]} : vector<16x64xf32> to vector<16x16xf32>
    %cst_350 = arith.constant dense<0.000000e+00> : vector<17x16xf32>
    %1049 = tpu.matmul %1047, %1048, %cst_350 {dimension_numbers = #tpu.dot_dimension_numbers<[1], [0], [0], [1], [0, 0, 1, 1], [], []>} : vector<17x16xf32>, vector<16x16xf32>, vector<17x16xf32> -> vector<17x16xf32>
    %1050 = arith.addf %936, %1049 : vector<17x16xf32>
    %1051 = vector.broadcast %945 : vector<1x16xf32> to vector<17x16xf32>
    %1052 = arith.addf %1050, %1051 : vector<17x16xf32>
    %cst_351 = arith.constant dense<0.000000e+00> : vector<17xf32>
    %1053 = vector.multi_reduction <add>, %1052, %cst_351 [1] : vector<17x16xf32> to vector<17xf32>
    %1054 = vector.shape_cast %1053 : vector<17xf32> to vector<17x1xf32>
    %cst_352 = arith.constant 1.600000e+01 : f32
    %1055 = vector.broadcast %cst_352 : f32 to vector<17x1xf32>
    %1056 = arith.divf %1054, %1055 : vector<17x1xf32>
    %1057 = vector.broadcast %1056 : vector<17x1xf32> to vector<17x16xf32>
    %1058 = arith.subf %1052, %1057 : vector<17x16xf32>
    %1059 = arith.mulf %1058, %1058 : vector<17x16xf32>
    %cst_353 = arith.constant dense<0.000000e+00> : vector<17xf32>
    %1060 = vector.multi_reduction <add>, %1059, %cst_353 [1] : vector<17x16xf32> to vector<17xf32>
    %1061 = vector.shape_cast %1060 : vector<17xf32> to vector<17x1xf32>
    %cst_354 = arith.constant 1.600000e+01 : f32
    %1062 = vector.broadcast %cst_354 : f32 to vector<17x1xf32>
    %1063 = arith.divf %1061, %1062 : vector<17x1xf32>
    %1064 = vector.broadcast %1056 : vector<17x1xf32> to vector<17x16xf32>
    %1065 = arith.subf %1052, %1064 : vector<17x16xf32>
    %cst_355 = arith.constant 9.99999974E-6 : f32
    %1066 = vector.broadcast %cst_355 : f32 to vector<17x1xf32>
    %1067 = arith.addf %1063, %1066 : vector<17x1xf32>
    %1068 = math.rsqrt %1067 : vector<17x1xf32>
    %1069 = vector.broadcast %1068 : vector<17x1xf32> to vector<17x16xf32>
    %1070 = arith.mulf %1065, %1069 : vector<17x16xf32>
    %1071 = vector.broadcast %943 : vector<1x16xf32> to vector<17x16xf32>
    %1072 = arith.mulf %1070, %1071 : vector<17x16xf32>
    %1073 = vector.broadcast %944 : vector<1x16xf32> to vector<17x16xf32>
    %1074 = arith.addf %1072, %1073 : vector<17x16xf32>
    %c0_356 = arith.constant 0 : index
    %c0_357 = arith.constant 0 : index
    %c0_358 = arith.constant 0 : index
    %1075 = vector.load %arg12[%c0_356, %c0_357, %c0_358] : memref<1x16x64xf32, #tpu.memory_space<vmem>>, vector<1x16x64xf32>
    %1076 = vector.shape_cast %1075 : vector<1x16x64xf32> to vector<16x64xf32>
    %cst_359 = arith.constant dense<0.000000e+00> : vector<17x64xf32>
    %1077 = tpu.matmul %1074, %1076, %cst_359 {dimension_numbers = #tpu.dot_dimension_numbers<[1], [0], [0], [1], [0, 0, 1, 1], [], []>} : vector<17x16xf32>, vector<16x64xf32>, vector<17x64xf32> -> vector<17x64xf32>
    %1078 = vector.broadcast %948 : vector<1x64xf32> to vector<17x64xf32>
    %1079 = arith.addf %1077, %1078 : vector<17x64xf32>
    %1080 = arith.mulf %1079, %1079 : vector<17x64xf32>
    %1081 = arith.mulf %1079, %1080 : vector<17x64xf32>
    %cst_360 = arith.constant 4.471500e-02 : f32
    %1082 = vector.broadcast %cst_360 : f32 to vector<17x64xf32>
    %1083 = arith.mulf %1082, %1081 : vector<17x64xf32>
    %1084 = arith.addf %1079, %1083 : vector<17x64xf32>
    %cst_361 = arith.constant 0.797884583 : f32
    %1085 = vector.broadcast %cst_361 : f32 to vector<17x64xf32>
    %1086 = arith.mulf %1085, %1084 : vector<17x64xf32>
    %1087 = math.tanh %1086 : vector<17x64xf32>
    %cst_362 = arith.constant 1.000000e+00 : f32
    %1088 = vector.broadcast %cst_362 : f32 to vector<17x64xf32>
    %1089 = arith.addf %1088, %1087 : vector<17x64xf32>
    %cst_363 = arith.constant 5.000000e-01 : f32
    %1090 = vector.broadcast %cst_363 : f32 to vector<17x64xf32>
    %1091 = arith.mulf %1090, %1089 : vector<17x64xf32>
    %1092 = arith.mulf %1079, %1091 : vector<17x64xf32>
    %c0_364 = arith.constant 0 : index
    %c0_365 = arith.constant 0 : index
    %c0_366 = arith.constant 0 : index
    %1093 = vector.load %arg13[%c0_364, %c0_365, %c0_366] : memref<1x64x16xf32, #tpu.memory_space<vmem>>, vector<1x64x16xf32>
    %1094 = vector.shape_cast %1093 : vector<1x64x16xf32> to vector<64x16xf32>
    %cst_367 = arith.constant dense<0.000000e+00> : vector<17x16xf32>
    %1095 = tpu.matmul %1092, %1094, %cst_367 {dimension_numbers = #tpu.dot_dimension_numbers<[1], [0], [0], [1], [0, 0, 1, 1], [], []>} : vector<17x64xf32>, vector<64x16xf32>, vector<17x16xf32> -> vector<17x16xf32>
    %1096 = arith.addf %1052, %1095 : vector<17x16xf32>
    %1097 = vector.broadcast %946 : vector<1x16xf32> to vector<17x16xf32>
    %1098 = arith.addf %1096, %1097 : vector<17x16xf32>
    %c0_368 = arith.constant 0 : index
    %c0_369 = arith.constant 0 : index
    %1099 = vector.load %arg16[%c0_368, %c0_369] : memref<3x128xf32, #tpu.memory_space<vmem>>, vector<1x16xf32>
    %c1_370 = arith.constant 1 : index
    %c0_371 = arith.constant 0 : index
    %1100 = vector.load %arg16[%c1_370, %c0_371] : memref<3x128xf32, #tpu.memory_space<vmem>>, vector<1x16xf32>
    %cst_372 = arith.constant dense<0.000000e+00> : vector<17xf32>
    %1101 = vector.multi_reduction <add>, %1098, %cst_372 [1] : vector<17x16xf32> to vector<17xf32>
    %1102 = vector.shape_cast %1101 : vector<17xf32> to vector<17x1xf32>
    %cst_373 = arith.constant 1.600000e+01 : f32
    %1103 = vector.broadcast %cst_373 : f32 to vector<17x1xf32>
    %1104 = arith.divf %1102, %1103 : vector<17x1xf32>
    %1105 = vector.broadcast %1104 : vector<17x1xf32> to vector<17x16xf32>
    %1106 = arith.subf %1098, %1105 : vector<17x16xf32>
    %1107 = arith.mulf %1106, %1106 : vector<17x16xf32>
    %cst_374 = arith.constant dense<0.000000e+00> : vector<17xf32>
    %1108 = vector.multi_reduction <add>, %1107, %cst_374 [1] : vector<17x16xf32> to vector<17xf32>
    %1109 = vector.shape_cast %1108 : vector<17xf32> to vector<17x1xf32>
    %cst_375 = arith.constant 1.600000e+01 : f32
    %1110 = vector.broadcast %cst_375 : f32 to vector<17x1xf32>
    %1111 = arith.divf %1109, %1110 : vector<17x1xf32>
    %1112 = vector.broadcast %1104 : vector<17x1xf32> to vector<17x16xf32>
    %1113 = arith.subf %1098, %1112 : vector<17x16xf32>
    %cst_376 = arith.constant 9.99999974E-6 : f32
    %1114 = vector.broadcast %cst_376 : f32 to vector<17x1xf32>
    %1115 = arith.addf %1111, %1114 : vector<17x1xf32>
    %1116 = math.rsqrt %1115 : vector<17x1xf32>
    %1117 = vector.broadcast %1116 : vector<17x1xf32> to vector<17x16xf32>
    %1118 = arith.mulf %1113, %1117 : vector<17x16xf32>
    %1119 = vector.broadcast %1099 : vector<1x16xf32> to vector<17x16xf32>
    %1120 = arith.mulf %1118, %1119 : vector<17x16xf32>
    %1121 = vector.broadcast %1100 : vector<1x16xf32> to vector<17x16xf32>
    %1122 = arith.addf %1120, %1121 : vector<17x16xf32>
    %1123 = vector.extract_strided_slice %1122 {offsets = [1, 0], sizes = [16, 16], strides = [1, 1]} : vector<17x16xf32> to vector<16x16xf32>
    %c0_377 = arith.constant 0 : index
    %c0_378 = arith.constant 0 : index
    %1124 = vector.load %arg15[%c0_377, %c0_378] : memref<16x128xf32, #tpu.memory_space<vmem>>, vector<16x128xf32>
    %cst_379 = arith.constant dense<0.000000e+00> : vector<16x128xf32>
    %1125 = tpu.matmul %1123, %1124, %cst_379 {dimension_numbers = #tpu.dot_dimension_numbers<[1], [0], [0], [1], [0, 0, 1, 1], [], []>} : vector<16x16xf32>, vector<16x128xf32>, vector<16x128xf32> -> vector<16x128xf32>
    %c2_380 = arith.constant 2 : index
    %c0_381 = arith.constant 0 : index
    %1126 = vector.load %arg16[%c2_380, %c0_381] : memref<3x128xf32, #tpu.memory_space<vmem>>, vector<1x128xf32>
    %1127 = vector.broadcast %1126 : vector<1x128xf32> to vector<16x128xf32>
    %1128 = arith.addf %1125, %1127 : vector<16x128xf32>
    %c1_382 = arith.constant 1 : index
    %c0_383 = arith.constant 0 : index
    %c0_384 = arith.constant 0 : index
    %1129 = vector.load %arg17[%c1_382, %c0_383, %c0_384] : memref<2x16x128xf32, #tpu.memory_space<vmem>>, vector<1x16x128xf32>
    %1130 = vector.shape_cast %1129 : vector<1x16x128xf32> to vector<16x128xf32>
    %1131 = vector.shape_cast %1128 : vector<16x128xf32> to vector<1x16x128xf32>
    tpu.vector_store %arg17[%c1_382, %c0_383, %c0_384], %1131 {strides = array<i32>} : memref<2x16x128xf32, #tpu.memory_space<vmem>>, vector<1x16x128xf32>,
    return
  }
  func.func @transform_0(%arg0: i32) -> (i32, i32, i32) {
    %c0_i32 = arith.constant 0 : i32
    %c0_i32_0 = arith.constant 0 : i32
    %c0_i32_1 = arith.constant 0 : i32
    return %arg0, %c0_i32, %c0_i32_0 : i32, i32, i32
  }
  func.func @transform_1(%arg0: i32) -> (i32, i32, i32) {
    %c0_i32 = arith.constant 0 : i32
    %c0_i32_0 = arith.constant 0 : i32
    %c0_i32_1 = arith.constant 0 : i32
    return %arg0, %c0_i32, %c0_i32_0 : i32, i32, i32
  }
  func.func @transform_2(%arg0: i32) -> (i32, i32, i32) {
    %c0_i32 = arith.constant 0 : i32
    %c0_i32_0 = arith.constant 0 : i32
    %c0_i32_1 = arith.constant 0 : i32
    return %arg0, %c0_i32, %c0_i32_0 : i32, i32, i32
  }
  func.func @transform_3(%arg0: i32) -> (i32, i32) {
    %c0_i32 = arith.constant 0 : i32
    %c0_i32_0 = arith.constant 0 : i32
    %c0_i32_1 = arith.constant 0 : i32
    return %c0_i32, %c0_i32_0 : i32, i32
  }
  func.func @transform_4(%arg0: i32) -> (i32, i32, i32) {
    %c0_i32 = arith.constant 0 : i32
    %c0_i32_0 = arith.constant 0 : i32
    %c0_i32_1 = arith.constant 0 : i32
    %c0_i32_2 = arith.constant 0 : i32
    return %c0_i32, %c0_i32_0, %c0_i32_1 : i32, i32, i32
  }
  func.func @transform_5(%arg0: i32) -> (i32, i32, i32) {
    %c0_i32 = arith.constant 0 : i32
    %c0_i32_0 = arith.constant 0 : i32
    %c0_i32_1 = arith.constant 0 : i32
    %c0_i32_2 = arith.constant 0 : i32
    return %c0_i32, %c0_i32_0, %c0_i32_1 : i32, i32, i32
  }
  func.func @transform_6(%arg0: i32) -> (i32, i32, i32) {
    %c0_i32 = arith.constant 0 : i32
    %c0_i32_0 = arith.constant 0 : i32
    %c0_i32_1 = arith.constant 0 : i32
    %c0_i32_2 = arith.constant 0 : i32
    return %c0_i32, %c0_i32_0, %c0_i32_1 : i32, i32, i32
  }
  func.func @transform_7(%arg0: i32) -> (i32, i32, i32) {
    %c0_i32 = arith.constant 0 : i32
    %c0_i32_0 = arith.constant 0 : i32
    %c0_i32_1 = arith.constant 0 : i32
    %c0_i32_2 = arith.constant 0 : i32
    return %c0_i32, %c0_i32_0, %c0_i32_1 : i32, i32, i32
  }
  func.func @transform_8(%arg0: i32) -> (i32, i32) {
    %c0_i32 = arith.constant 0 : i32
    %c0_i32_0 = arith.constant 0 : i32
    %c0_i32_1 = arith.constant 0 : i32
    return %c0_i32, %c0_i32_0 : i32, i32
  }
  func.func @transform_9(%arg0: i32) -> (i32, i32) {
    %c0_i32 = arith.constant 0 : i32
    %c0_i32_0 = arith.constant 0 : i32
    %c0_i32_1 = arith.constant 0 : i32
    return %c0_i32, %c0_i32_0 : i32, i32
  }
  func.func @transform_10(%arg0: i32) -> (i32, i32, i32) {
    %c0_i32 = arith.constant 0 : i32
    %c0_i32_0 = arith.constant 0 : i32
    %c0_i32_1 = arith.constant 0 : i32
    %c0_i32_2 = arith.constant 0 : i32
    return %c0_i32, %c0_i32_0, %c0_i32_1 : i32, i32, i32
  }
  func.func @transform_11(%arg0: i32) -> (i32, i32, i32) {
    %c0_i32 = arith.constant 0 : i32
    %c0_i32_0 = arith.constant 0 : i32
    %c0_i32_1 = arith.constant 0 : i32
    %c0_i32_2 = arith.constant 0 : i32
    return %c0_i32, %c0_i32_0, %c0_i32_1 : i32, i32, i32
  }
  func.func @transform_12(%arg0: i32) -> (i32, i32, i32) {
    %c0_i32 = arith.constant 0 : i32
    %c0_i32_0 = arith.constant 0 : i32
    %c0_i32_1 = arith.constant 0 : i32
    %c0_i32_2 = arith.constant 0 : i32
    return %c0_i32, %c0_i32_0, %c0_i32_1 : i32, i32, i32
  }
  func.func @transform_13(%arg0: i32) -> (i32, i32, i32) {
    %c0_i32 = arith.constant 0 : i32
    %c0_i32_0 = arith.constant 0 : i32
    %c0_i32_1 = arith.constant 0 : i32
    %c0_i32_2 = arith.constant 0 : i32
    return %c0_i32, %c0_i32_0, %c0_i32_1 : i32, i32, i32
  }
  func.func @transform_14(%arg0: i32) -> (i32, i32) {
    %c0_i32 = arith.constant 0 : i32
    %c0_i32_0 = arith.constant 0 : i32
    %c0_i32_1 = arith.constant 0 : i32
    return %c0_i32, %c0_i32_0 : i32, i32
  }
  func.func @transform_15(%arg0: i32) -> (i32, i32) {
    %c0_i32 = arith.constant 0 : i32
    %c0_i32_0 = arith.constant 0 : i32
    %c0_i32_1 = arith.constant 0 : i32
    return %c0_i32, %c0_i32_0 : i32, i32
  }
  func.func @transform_16(%arg0: i32) -> (i32, i32, i32) {
    %c0_i32 = arith.constant 0 : i32
    %c0_i32_0 = arith.constant 0 : i32
    %c0_i32_1 = arith.constant 0 : i32
    return %arg0, %c0_i32, %c0_i32_0 : i32, i32, i32
  }
}

</mosaic_0001>

<bundles_post_ra>
// kernel: _lambda_.2
= control target key start
LH: loop header
LB: loop body
LE: loop exit
PB: predicated region body
PF: predicated region fallthrough
CT: control target
= control target key end

     0   :  { %vm44_vm0 = vcmask 1041408   ;;  %vm33_vm1 = vcmask 1046528   ;;  %vm108_vm2 = vcmask 1045504   ;;  %vm39_vm3 = vcmask 343040   ;;  %s908_s1 = inlined_call_operand.vmem [shape: f32[5,42,128], index: 1, kind: input, shape index: {}]   ;;  %s909_s0 = inlined_call_operand.vmem [shape: f32[2,20,42], index: 0, kind: input, shape index: {}]   ;;  %s910_s2 = inlined_call_operand.vmem [shape: f32[3,128], index: 2, kind: input, shape index: {}]   ;;  %s911_s3 = inlined_call_operand.vmem [shape: f32[2,16,128], index: 3, kind: output, shape index: {}]  }
   0x1   :  { %v584_v0 = vld [vmem:[%s908_s1 + $0x58] sm:$0x3]  ;;  %v589_v1 = vld [vmem:[%s908_s1 + $0x88] sm:$0x3]  ;;  %v594_v2 = vld [vmem:[%s908_s1 + $0x50] sm:$0xff]  ;;  %vm153_vm4 = vcmask 1044480  }
   0x2   :  { %487 = vmatpush.msk.msra.mxu0 %vm44_vm0, %v584_v0  ;;  %499 = vmatpush.msk.msra.mxu2 %vm44_vm0, %v589_v1  ;;  %v22_v3 = vld [vmem:[%s908_s1 + $0x28] sm:$0x3]  ;;  %v606_v4 = vld [vmem:[%s908_s1 + $0x80] sm:$0xff]  ;;  %v611_v5 = vld [vmem:[%s908_s1 + $0xb8] sm:$0x3]  ;;  %vm198_vm5 = vcmask 1043456  }
   0x3   :  { %490 = vmatpush.msk.msra.mxu1 %vm44_vm0, %v22_v3  ;;  %508 = vmatpush.msk.msra.mxu3 %vm44_vm0, %v611_v5  ;;  %v619_v6 = vld [vmem:[%s908_s1 + $0x48] sm:$0xff]  ;;  %v21_v7 = vld [vmem:[%s908_s1 + $0x20] sm:$0xff]  ;;  %v627_v8 = vld [vmem:[%s908_s1 + $0x78] sm:$0xff] }
   0x4   :  { %59 = vmatpush.msra.mxu0 %v594_v2  ;;  %132 = vmatpush.msra.mxu2 %v606_v4  ;;  %v634_v9 = vld [vmem:[%s908_s1 + $0xb0] sm:$0xff]  ;;  %v639_v10 = vld [vmem:[%s908_s1 + $0x18] sm:$0xff]  ;;  %v645_v11 = vld [vmem:[%s908_s1 + $0x40] sm:$0xff] }
   0x5   :  { %89 = vmatpush.msra.mxu1 %v21_v7  ;;  %177 = vmatpush.msra.mxu3 %v634_v9  ;;  %v650_v12 = vld [vmem:[%s908_s1 + $0x70] sm:$0xff]  ;;  %v655_v13 = vld [vmem:[%s908_s1 + $0xa8] sm:$0xff]  ;;  %v665_v15 = vld [vmem:[%s908_s1 + $0xa0] sm:$0xff] }
   0x6   :  { %60 = vmatpush.msra.mxu0 %v619_v6  ;;  %133 = vmatpush.msra.mxu2 %v627_v8  ;;  %v19_v14 = vld [vmem:[%s908_s1 + $0x10] sm:$0xff]  ;;  %v672_v16 = vld [vmem:[%s908_s1 + $0x38] sm:$0xff]  ;;  %v677_v17 = vld [vmem:[%s908_s1 + $0x68] sm:$0xff] }
   0x7   :  { %90 = vmatpush.msra.mxu1 %v639_v10  ;;  %178 = vmatpush.msra.mxu3 %v655_v13  ;;  %v682_v18 = vld [vmem:[%s908_s1 + $0x8] sm:$0xff]  ;;  %v689_v19 = vld [vmem:[%s908_s1 + $0x98] sm:$0xff]  ;;  %v694_v20 = vld [vmem:[%s909_s0] sm:$0xff] }
   0x8   :  { %61 = vmatpush.msra.mxu0 %v645_v11  ;;  %134 = vmatpush.msra.mxu2 %v650_v12  ;;  %v699_v21 = vld [vmem:[%s909_s0 + $0x8] sm:$0xff]  ;;  %v705_v22 = vld [vmem:[%s908_s1 + $0x30] sm:$0xff]  ;;  %v710_v23 = vld [vmem:[%s908_s1 + $0x60] sm:$0xff]  ;;  %v34_v24 = vrot.slane %v694_v20, 1  ;;  %v109_v26 = vrot.slane %v694_v20, 2  ;;  %v154_v28 = vrot.slane %v694_v20, 3 }
   0x9   :  { %91 = vmatpush.msra.mxu1 %v19_v14  ;;  %179 = vmatpush.msra.mxu3 %v665_v15  ;;  %v35_v25 = vrot.slane %v699_v21, 1  ;;  %v110_v27 = vrot.slane %v699_v21, 2  ;;  %v155_v29 = vrot.slane %v699_v21, 3  ;;  %v17_v32 = vld [vmem:[%s908_s1] sm:$0xff]  ;;  %v730_v33 = vld [vmem:[%s909_s0 + $0x10] sm:$0xf] }
   0xa   :  { %62 = vmatpush.msra.mxu0 %v672_v16  ;;  %135 = vmatpush.msra.mxu2 %v677_v17  ;;  %v737_v34 = vld [vmem:[%s908_s1 + $0x90] sm:$0xff]  ;;  %v746_v36 = vld [vmem:[%s908_s1 + $0xe8] sm:$0x3]  ;;  %v37_v37 = vrot.slane %v730_v33, 1  ;;  %v112_v38 = vrot.slane %v730_v33, 2  ;;  %v757_v39 = vld [vmem:[%s908_s1 + $0xe0] sm:$0xff] }
   0xb   :  { %92 = vmatpush.msra.mxu1 %v682_v18  ;;  %180 = vmatpush.msra.mxu3 %v689_v19  ;;  %v36_v30 = vsel %vm33_vm1, %v34_v24, %v35_v25  ;;  %v111_v31 = vsel %vm108_vm2, %v109_v26, %v110_v27  ;;  %v156_v35 = vsel %vm153_vm4, %v154_v28, %v155_v29  ;;  %v157_v40 = vrot.slane %v730_v33, 3  ;;  %v774_v43 = vld [vmem:[%s908_s1 + $0xd8] sm:$0xff]  ;;  %v783_v45 = vld [vmem:[%s908_s1 + $0xd0] sm:$0xff]  ;;  %v797_v49 = vld [vmem:[%s909_s0 + $0x20] sm:$0xff] }
   0xc   :  { %63 = vmatpush.msra.mxu0 %v705_v22  ;;  %136 = vmatpush.msra.mxu2 %v710_v23  ;;  %v38_v41 = vsel %vm33_vm1, %v35_v25, %v37_v37  ;;  %v113_v42 = vsel %vm108_vm2, %v110_v27, %v112_v38  ;;  %v199_v46 = vrot.slane %v694_v20, 4  ;;  %v200_v47 = vrot.slane %v699_v21, 4  ;;  %v792_v48 = vld [vmem:[%s909_s0 + $0x18] sm:$0xff]  ;;  %v805_v50 = vld [vmem:[%s908_s1 + $0xc8] sm:$0xff]  ;;  %v814_v51 = vld [vmem:[%s908_s1 + $0xc0] sm:$0xff] }
   0xd   :  { %488 = vmatmul.msk.f32.vlgmr.msra.gmra.mxu0 %vm39_vm3, %v36_v30  ;;  %500 = vmatmul.msk.f32.vlgmr.msra.gmra.mxu2 %vm39_vm3, %v111_v31  ;;  %v158_v44 = vsel %vm153_vm4, %v155_v29, %v157_v40  ;;  %v247_v52 = vrot.slane %v792_v48, 1  ;;  %v248_v53 = vrot.slane %v797_v49, 1  ;;  %v306_v54 = vrot.slane %v792_v48, 2  ;;  %v522_v60 = vld [vmem:[%s909_s0 + $0x28] sm:$0xf] }
   0xe   :  { %526 = vmatpush.msk.msrb.mxu2 %vm44_vm0, %v22_v3  ;;  %93 = vmatpush.msra.mxu1 %v17_v32  ;;  %v307_v55 = vrot.slane %v797_v49, 2  ;;  %v201_v56 = vsel %vm198_vm5, %v199_v46, %v200_v47  ;;  %v202_v59 = vrot.slane %v730_v33, 4  ;;  %v250_v61 = vrot.slane %v522_v60, 1 }
   0xf   :  { %181 = vmatpush.msra.mxu3 %v737_v34  ;;  %491 = vmatmul.msk.f32.vlgmr.msra.gmra.mxu1 %vm39_vm3, %v694_v20  ;;  %v249_v57 = vsel %vm33_vm1, %v247_v52, %v248_v53  ;;  %v309_v62 = vrot.slane %v522_v60, 2  ;;  %v341_v3 = vrot.slane %v797_v49, 3 }
  0x10   :  { %509 = vmatmul.msk.f32.vlgmr.msra.gmra.mxu3 %vm39_vm3, %v156_v35  ;;  %294 = vmatpush.msrb.mxu2 %v21_v7  ;;  %v308_v58 = vsel %vm108_vm2, %v306_v54, %v307_v55  ;;  %v203_v63 = vsel %vm198_vm5, %v200_v47, %v202_v59  ;;  %v377_v7 = vrot.slane %v522_v60, 4 }
  0x11   :  { %529 = vmatpush.msk.msrb.mxu3 %vm44_vm0, %v589_v1  ;;  %517 = vmatpush.msk.msrb.mxu0 %vm44_vm0, %v746_v36  ;;  %v310_v1 = vsel %vm108_vm2, %v307_v55, %v309_v62 }
  0x12   :  { %523 = vmatpush.msk.msrb.mxu1 %vm44_vm0, %v584_v0  ;;  %295 = vmatpush.msrb.mxu2 %v639_v10  ;;  %v251_v0 = vsel %vm33_vm1, %v248_v53, %v250_v61 }
  0x13   :  { %326 = vmatpush.msrb.mxu3 %v606_v4  ;;  %222 = vmatpush.msrb.mxu0 %v757_v39  ;;  %v343_v4 = vrot.slane %v522_v60, 3 }
  0x14   :  { %296 = vmatpush.msrb.mxu2 %v19_v14  ;;  %267 = vmatpush.msrb.mxu1 %v594_v2  ;;  %v340_v2 = vrot.slane %v792_v48, 3 }
  0x15   :  { %489 = vmatmul.msk.f32.gmra.mxu0 %vm39_vm3, %v38_v41  ;;  %501 = vmatmul.msk.f32.gmra.mxu2 %vm39_vm3, %v113_v42 }
  0x16   :  { %327 = vmatpush.msrb.mxu3 %v627_v8  ;;  %223 = vmatpush.msrb.mxu0 %v774_v43  ;;  %v342_v8 = vsel %vm153_vm4, %v340_v2, %v341_v3 }
  0x17   :  { %492 = vmatmul.msk.f32.gmra.mxu1 %vm39_vm3, %v699_v21  ;;  %297 = vmatpush.msrb.mxu2 %v682_v18 }
  0x18   :  { %510 = vmatmul.msk.f32.gmra.mxu3 %vm39_vm3, %v158_v44  ;;  %224 = vmatpush.msrb.mxu0 %v783_v45 }
  0x19   :  { %328 = vmatpush.msrb.mxu3 %v650_v12  ;;  %268 = vmatpush.msrb.mxu1 %v619_v6  ;;  %v375_v6 = vrot.slane %v797_v49, 4 }
  0x1a   :  { %225 = vmatpush.msrb.mxu0 %v805_v50  ;;  %298 = vmatpush.msrb.mxu2 %v17_v32 }
  0x1b   :  { %269 = vmatpush.msrb.mxu1 %v645_v11  ;;  %329 = vmatpush.msrb.mxu3 %v677_v17  ;;  %v378_v11 = vsel %vm198_vm5, %v375_v6, %v377_v7 }
  0x1c   :  { %226 = vmatpush.msrb.mxu0 %v814_v51  ;;  %540 = vmatpush.msk.msra.mxu2 %vm44_vm0, %v611_v5 }
  0x1d   :  { %270 = vmatpush.msrb.mxu1 %v672_v16  ;;  %518 = vmatmul.msk.f32.vlgmr.msrb.gmra.mxu0 %vm39_vm3, %v201_v56 }
  0x1e   :  { %527 = vmatmul.msk.f32.vlgmr.msrb.gmra.mxu2 %vm39_vm3, %v792_v48  ;;  %330 = vmatpush.msrb.mxu3 %v710_v23 }
  0x1f   :  { %271 = vmatpush.msrb.mxu1 %v705_v22  ;;  %541 = vmatpush.msra.mxu2 %v634_v9 }
  0x20   :  { %546 = vmatpush.msk.msra.mxu3 %vm44_vm0, %v746_v36  ;;  %524 = vmatmul.msk.f32.vlgmr.msrb.gmra.mxu1 %vm39_vm3, %v249_v57 }
  0x21   :  { %530 = vmatmul.msk.f32.vlgmr.msrb.gmra.mxu3 %vm39_vm3, %v308_v58  ;;  %532 = vmatpush.msk.msra.mxu0 %vm44_vm0, %v611_v5  ;;  %v374_v5 = vrot.slane %v792_v48, 4 }
  0x22   :  { %547 = vmatpush.msra.mxu3 %v757_v39  ;;  %535 = vmatpush.msk.msra.mxu1 %vm44_vm0, %v746_v36 }
  0x23   :  { %542 = vmatpush.msra.mxu2 %v655_v13  ;;  %360 = vmatpush.msra.mxu0 %v634_v9  ;;  %v344_v9 = vsel %vm153_vm4, %v341_v3, %v343_v4  ;;  %v376_v10 = vsel %vm198_vm5, %v374_v5, %v375_v6 }
  0x24   :  { %548 = vmatpush.msra.mxu3 %v774_v43  ;;  %394 = vmatpush.msra.mxu1 %v757_v39 }
  0x25   :  { %519 = vmatmul.msk.f32.gmra.mxu0 %vm39_vm3, %v203_v63  ;;  %543 = vmatpush.msra.mxu2 %v665_v15 }
  0x26   :  { %528 = vmatmul.msk.f32.gmra.mxu2 %vm39_vm3, %v797_v49  ;;  %361 = vmatpush.msra.mxu0 %v655_v13 }
  0x27   :  { %549 = vmatpush.msra.mxu3 %v783_v45  ;;  %544 = vmatpush.msra.mxu2 %v689_v19 }
  0x28   :  { %525 = vmatmul.msk.f32.gmra.mxu1 %vm39_vm3, %v251_v0  ;;  %362 = vmatpush.msra.mxu0 %v665_v15 }
  0x29   :  { %531 = vmatmul.msk.f32.gmra.mxu3 %vm39_vm3, %v310_v1  ;;  %395 = vmatpush.msra.mxu1 %v774_v43  ;;  %v553_v43 = vld [vmem:[%s910_s2] ss:$0 sm:$0xff] }
  0x2a   :  { %550 = vmatpush.msra.mxu3 %v805_v50  ;;  %545 = vmatpush.msra.mxu2 %v737_v34 }
  0x2b   :  { %363 = vmatpush.msra.mxu0 %v689_v19  ;;  %396 = vmatpush.msra.mxu1 %v783_v45 }
  0x2c   :  { %551 = vmatpush.msra.mxu3 %v814_v51 }
  0x2d   :  { %364 = vmatpush.msra.mxu0 %v737_v34  ;;  %397 = vmatpush.msra.mxu1 %v805_v50  ;;  %v560_v34 = vmov 32.0  }
  0x2e   :  { %533 = vmatmul.msk.f32.vlgmr.msra.gmra.mxu0 %vm39_vm3, %v342_v8  ;;  %534 = vmatmul.msk.f32.vlgmr.msra.gmra.mxu2 %vm39_vm3, %v344_v9  ;;  %556 = vrcp.f32 %v560_v34 }
  0x2f   :  { %398 = vmatpush.msra.mxu1 %v814_v51 }
  0x30   :  { %536 = vmatmul.msk.f32.vlgmr.msra.gmra.mxu1 %vm39_vm3, %v376_v10 }
  0x31   :  { %537 = vmatmul.msk.f32.vlgmr.msra.gmra.mxu3 %vm39_vm3, %v378_v11 }
  0x34   :  { %v557_v45 = vpop.eup %556 }
  0x35   :  { %v420_v53 = vmul.f32 32.0, %v557_v45  ;;  %vm424_vm6 = vweird.f32 %v557_v45 }
  0x37   :  { %v421_v58 = vsub.f32 1.0, %v420_v53 }
  0x39   :  { %v422_v61 = vmul.f32 %v557_v45, %v421_v58 }
  0x3b   :  { %v423_v0 = vadd.f32 %v557_v45, %v422_v61 }
  0x3d   :  { %v425_v3 = vsel %vm424_vm6, %v557_v45, %v423_v0 }
  0x8a   :  { %v65_v12 = vpop.f32.mrf.mxu0 }
  0x8c   :  { %v95_v13 = vpop.f32.mrf.mxu1 }
  0x8d   :  { %v96_v26 = vadd.f32 %v95_v13, %v65_v12 }
  0x90   :  { %v138_v14 = vpop.f32.mrf.mxu2 }
  0x91   :  { %v144_v30 = vadd.f32 %v138_v14, %v96_v26 }
  0x92   :  { %v68_v15 = vpop.f32.mrf.mxu0 }
  0x93   :  { %v183_v16 = vpop.f32.mrf.mxu3 }
  0x94   :  { %v98_v17 = vpop.f32.mrf.mxu1  ;;  %v189_v37 = vadd.f32 %v183_v16, %v144_v30 }
  0x95   :  { %v99_v23 = vadd.f32 %v98_v17, %v68_v15 }
  0x98   :  { %v141_v18 = vpop.f32.mrf.mxu2 }
  0x99   :  { %v145_v28 = vadd.f32 %v141_v18, %v99_v23 }
  0x9a   :  { %v228_v19 = vpop.f32.mrf.mxu0 }
  0x9b   :  { %v186_v20 = vpop.f32.mrf.mxu3  ;;  %v234_v42 = vadd.f32 %v228_v19, %v189_v37 }
  0x9c   :  { %v190_v32 = vadd.f32 %v186_v20, %v145_v28 }
  0x9d   :  { %v273_v21 = vpop.f32.mrf.mxu1  ;;  %v238_v49 = vadd.f32 %v553_v43, %v234_v42 }
  0xa1   :  { %v300_v22 = vpop.f32.mrf.mxu2 }
  0xa2   :  { %v231_v24 = vpop.f32.mrf.mxu0  ;;  %v301_v29 = vadd.f32 %v300_v22, %v273_v21 }
  0xa3   :  { %v235_v38 = vadd.f32 %v231_v24, %v190_v32 }
  0xa4   :  { %v332_v25 = vpop.f32.mrf.mxu3 }
  0xa5   :  { %v276_v27 = vpop.f32.mrf.mxu1  ;;  %v338_v33 = vadd.f32 %v332_v25, %v301_v29  ;;  %v239_v46 = vadd.f32 %v553_v43, %v235_v38 }
  0xa7   :  { %v410_v54 = vadd.f32 %v239_v46, %v238_v49 }
  0xa9   :  { %v303_v31 = vpop.f32.mrf.mxu2 }
  0xaa   :  { %v304_v39 = vadd.f32 %v303_v31, %v276_v27  ;;  %v554_v31 = vld [vmem:[%s910_s2 + $0x1] ss:$0 sm:$0xff] }
  0xab   :  { %v366_v36 = vpop.f32.mrf.mxu0 }
  0xac   :  { %v335_v35 = vpop.f32.mrf.mxu3  ;;  %v372_v40 = vadd.f32 %v366_v36, %v338_v33  ;;  %v555_v33 = vld [vmem:[%s910_s2 + $0x2] ss:$0 sm:$0xff] }
  0xad   :  { %v400_v41 = vpop.f32.mrf.mxu1  ;;  %v339_v47 = vadd.f32 %v335_v35, %v304_v39 }
  0xae   :  { %v406_v44 = vadd.f32 %v400_v41, %v372_v40 }
  0xb0   :  { %v408_v50 = vadd.f32 %v553_v43, %v406_v44 }
  0xb1   :  { %v369_v48 = vpop.f32.mrf.mxu2 }
  0xb2   :  { %v373_v51 = vadd.f32 %v369_v48, %v339_v47  ;;  %v411_v56 = vadd.f32 %v410_v54, %v408_v50 }
  0xb4   :  { %v403_v52 = vpop.f32.mrf.mxu3 }
  0xb5   :  { %v407_v55 = vadd.f32 %v403_v52, %v373_v51 }
  0xb7   :  { %v409_v57 = vadd.f32 %v553_v43, %v407_v55 }
  0xb9   :  { %v412_v59 = vadd.f32 %v411_v56, %v409_v57 }
  0xbb   :  { %v413_v60 = vrot.slane %v412_v59, 4 }
  0xbd   :  { %v414_v62 = vadd.f32 %v413_v60, %v412_v59 }
  0xbf   :  { %v415_v63 = vrot.slane %v414_v62, 2 }
  0xc1   :  { %v416_v1 = vadd.f32 %v415_v63, %v414_v62 }
  0xc3   :  { %v417_v2 = vrot.slane %v416_v1, 1 }
  0xc5   :  { %v418_v4 = vadd.f32 %v417_v2, %v416_v1 }
  0xc7   :  { %v426_v5 = vmul.f32 %v425_v3, %v418_v4 }
  0xc9   :  { %v427_v6 = vsub.f32 %v238_v49, %v426_v5  ;;  %v428_v7 = vsub.f32 %v239_v46, %v426_v5  ;;  %v429_v8 = vsub.f32 %v408_v50, %v426_v5  ;;  %v430_v9 = vsub.f32 %v409_v57, %v426_v5 }
  0xcb   :  { %v431_v10 = vmul.f32 %v427_v6, %v427_v6  ;;  %v432_v11 = vmul.f32 %v428_v7, %v428_v7  ;;  %v433_v12 = vmul.f32 %v429_v8, %v429_v8  ;;  %v434_v14 = vmul.f32 %v430_v9, %v430_v9 }
  0xcd   :  { %v435_v13 = vadd.f32 %v432_v11, %v431_v10 }
  0xcf   :  { %v436_v15 = vadd.f32 %v435_v13, %v433_v12 }
  0xd1   :  { %v437_v16 = vadd.f32 %v436_v15, %v434_v14 }
  0xd3   :  { %v438_v17 = vrot.slane %v437_v16, 4 }
  0xd5   :  { %v439_v18 = vadd.f32 %v438_v17, %v437_v16 }
  0xd7   :  { %v440_v19 = vrot.slane %v439_v18, 2 }
  0xd9   :  { %v441_v20 = vadd.f32 %v440_v19, %v439_v18 }
  0xdb   :  { %v442_v21 = vrot.slane %v441_v20, 1 }
  0xdd   :  { %v443_v22 = vadd.f32 %v442_v21, %v441_v20 }
  0xdf   :  { %v444_v23 = vmul.f32 %v443_v22, %v425_v3 }
  0xe1   :  { %v445_v24 = vadd.f32 1e-05, %v444_v23 }
  0xe3   :  { %558 = vrsqrt.f32 %v445_v24  ;;  %vm452_vm8 = vweird.f32 %v445_v24 }
  0xe9   :  { %v559_v25 = vpop.eup %558 }
  0xea   :  { %v447_v26 = vmul.f32 %v559_v25, %v445_v24  ;;  %vm453_vm7 = vweird.f32 %v559_v25 }
  0xeb   :  { %vm454_vm9 = vmor %vm452_vm8, %vm453_vm7 }
  0xec   :  { %v448_v27 = vmul.f32 %v559_v25, %v447_v26 }
  0xee   :  { %v449_v28 = vmul.f32 0.5, %v448_v27 }
  0xf0   :  { %v450_v29 = vsub.f32 1.5, %v449_v28 }
  0xf2   :  { %v451_v30 = vmul.f32 %v559_v25, %v450_v29 }
  0xf4   :  { %v455_v32 = vsel %vm454_vm9, %v559_v25, %v451_v30 }
  0xf5   :  { %v456_v34 = vmul.f32 %v455_v32, %v427_v6  ;;  %v457_v35 = vmul.f32 %v455_v32, %v428_v7  ;;  %v458_v36 = vmul.f32 %v455_v32, %v429_v8  ;;  %v459_v37 = vmul.f32 %v455_v32, %v430_v9 }
  0xf7   :  { %v462_v38 = vmul.f32 %v554_v31, %v456_v34  ;;  %v463_v39 = vmul.f32 %v554_v31, %v457_v35  ;;  %v464_v40 = vmul.f32 %v554_v31, %v458_v36  ;;  %v465_v41 = vmul.f32 %v554_v31, %v459_v37 }
  0xf9   :  { %v468_v42 = vadd.f32 %v555_v33, %v462_v38  ;;  %v469_v43 = vadd.f32 %v555_v33, %v463_v39  ;;  %v470_v44 = vadd.f32 %v555_v33, %v464_v40  ;;  %v471_v45 = vadd.f32 %v555_v33, %v465_v41 }
  0xfb   :  { %472 = vst [vmem:[%s911_s3] sm:$0xff] %v468_v42 }
  0xfc   :  { %473 = vst [vmem:[%s911_s3 + $0x8] sm:$0xff] %v469_v43 }
  0xfd   :  { %538 = vst [vmem:[%s911_s3 + $0x10] sm:$0xff] %v470_v44 }
  0xfe   :  { %539 = vst [vmem:[%s911_s3 + $0x18] sm:$0xff] %v471_v45 }

// kernel: _lambda_.3
= control target key start
LH: loop header
LB: loop body
LE: loop exit
PB: predicated region body
PF: predicated region fallthrough
CT: control target
= control target key end

     0   :  { %vm65_vm0 = vcmask 130048   ;;  %vm92_vm1 = vcmask 1040384   ;;  %vm99_vm2 = vcmask 261120   ;;  %vm103_vm3 = vcmask 253952   ;;  %s8273_s18 = smov 88   ;;  %s8263_s19 = smov 112   ;;  %s8231_s0 = inlined_call_operand.vmem [shape: f32[2,16,128], index: 0, kind: input, shape index: {}]   ;;  %s8232_s3 = inlined_call_operand.vmem [shape: f32[35,32], index: 3, kind: input, shape index: {}]   ;;  %s8233_s1 = inlined_call_operand.vmem [shape: f32[2,8,16], index: 1, kind: input, shape index: {}]   ;;  %s8234_s4 = inlined_call_operand.vmem [shape: f32[2,32,128], index: 4, kind: input, shape index: {}]   ;;  %s8235_s7 = inlined_call_operand.vmem [shape: f32[2,8,128], index: 7, kind: input, shape index: {}]   ;;  %s8236_s5 = inlined_call_operand.vmem [shape: f32[2,32,128], index: 5, kind: input, shape index: {}]   ;;  %s8237_s6 = inlined_call_operand.vmem [shape: f32[2,128,32], index: 6, kind: input, shape index: {}]   ;;  %s8238_s9 = inlined_call_operand.vmem [shape: f32[3,32], index: 9, kind: input, shape index: {}]   ;;  %s8239_s8 = inlined_call_operand.vmem [shape: f32[32,16], index: 8, kind: input, shape index: {}]   ;;  %s8240_s2 = inlined_call_operand.vmem [shape: f32[2,16,9], index: 2, kind: input, shape index: {}]   ;;  %s8241_s10 = inlined_call_operand.vmem [shape: f32[1,16,64], index: 10, kind: input, shape index: {}]   ;;  %s8242_s13 = inlined_call_operand.vmem [shape: f32[1,8,64], index: 13, kind: input, shape index: {}]   ;;  %s8243_s11 = inlined_call_operand.vmem [shape: f32[1,16,64], index: 11, kind: input, shape index: {}]   ;;  %s8244_s12 = inlined_call_operand.vmem [shape: f32[1,64,16], index: 12, kind: input, shape index: {}]   ;;  %s8245_s14 = inlined_call_operand.vmem [shape: f32[16,128], index: 14, kind: input, shape index: {}]   ;;  %s8246_s15 = inlined_call_operand.vmem [shape: f32[3,128], index: 15, kind: input, shape index: {}]   ;;  %s8247_s16 = inlined_call_operand.vmem [shape: f32[2,16,128], index: 16, kind: output, shape index: {}]  }
   0x1   :  { %8324 = sst [smem:[#allocation2_spill]] %s8231_s0  ;;  %v54_v0 = vld [vmem:[%s8232_s3 + $0x8] sm:$0xff]  ;;  %v53_v5 = vld [vmem:[%s8232_s3] sm:$0xff]  ;;  %v55_v12 = vld [vmem:[%s8232_s3 + $0x10] sm:$0x1]  ;;  %v6114_v17 = vmov 32.0  }
   0x2   :  { %8325 = sst [smem:[#allocation3_spill]] %s8236_s5  ;;  %v64_v10 = vld [vmem:[%s8233_s1] sm:$0xff]  ;;  %5772 = vrcp.f32 %v6114_v17  ;;  %v6274_v34 = vld [vmem:[%s8234_s4 + $0x18] sm:$0xff]  ;;  %v6280_v35 = vld [vmem:[%s8234_s4 + $0x10] sm:$0xff]  ;;  %s8275_s20 = smov 96   ;;  %vm194_vm11 = vcmask 64512  }
   0x3   :  { %8326 = sst [smem:[#allocation4_spill]] %s8238_s9  ;;  %177 = vmatpush.msra.mxu1 %v6274_v34  ;;  %v6286_v36 = vld [vmem:[%s8234_s4 + $0x8] sm:$0xff]  ;;  %v6292_v37 = vld [vmem:[%s8234_s4] sm:$0xff]  ;;  %v5670_v38 = vpack.i.bf16 %v6280_v35, %v6274_v34  ;;  %s8265_s21 = smov 104   ;;  %vm228_vm12 = vcmask 72704   ;;  %vm232_vm13 = vcmask 65536  }
   0x4   :  { %8327 = sst [smem:[#allocation5_spill]] %s8240_s2  ;;  %v5675_v39 = vpack.i.bf16 %v6292_v37, %v6286_v36  ;;  %v6304_v51 = vld [vmem:[%s8235_s7] sm:$0xff]  ;;  %s8277_s22 = smov 120   ;;  %vm8285_vm14 = vcmask 195584  }
   0x5   :  { %8328 = sst [smem:[#allocation6_spill]] %s8241_s10  ;;  %178 = vmatpush.msra.mxu1 %v6280_v35  ;;  %v152_v55 = vperm.slane %v6304_v51, 0  ;;  %v155_v59 = vperm.slane %v6304_v51, 1  ;;  %s8271_s23 = smov 72  }
   0x6   :  { %8329 = sst [smem:[#allocation7_spill]] %s8242_s13  ;;  %s8267_s24 = smov 80  }
   0x7   :  { %8330 = sst [smem:[#allocation8_spill]] %s8243_s11  ;;  %179 = vmatpush.msra.mxu1 %v6286_v36  ;;  %s8261_s26 = smov 56  }
   0x8   :  { %8331 = sst [smem:[#allocation9_spill]] %s8244_s12  ;;  %v5773_v18 = vpop.eup %5772  ;;  %s8257_s27 = smov 48  }
   0x9   :  { %8332 = sst [smem:[#allocation10_spill]] %s8245_s14  ;;  %v108_v19 = vmul.f32 32.0, %v5773_v18  ;;  %vm112_vm4 = vweird.f32 %v5773_v18  ;;  %180 = vmatpush.msra.mxu1 %v6292_v37  ;;  %s8259_s28 = smov 40  }
   0xa   :  { %8333 = sst [smem:[#allocation11_spill]] %s8246_s15  ;;  %s8255_s29 = smov 32  }
   0xb   :  { %8334 = sst [smem:[#allocation12_spill]] %s8247_s16  ;;  %v109_v20 = vsub.f32 1.0, %v108_v19  ;;  %s8249_s30 = smov 16  }
   0xc   :  { %s8335_s25 = sld [smem:[#allocation2_spill]]  ;;  %s8253_s0 = smov 8  }
   0xd   :  { %v110_v21 = vmul.f32 %v5773_v18, %v109_v20  ;;  %s8251_s17 = smov 24  }
   0xf   :  { %v111_v22 = vadd.f32 %v5773_v18, %v110_v21 }
  0x11   :  { %v6263_v23 = vsel %vm112_vm4, %v5773_v18, %v111_v22 }
  0x12   :  { %v61_v1 = vld [vmem:[%s8335_s25 + $0x8] sm:$0xff]  ;;  %v5484_v2 = vld [vmem:[%s8335_s25 + $0x18] sm:$0xff]  ;;  %v60_v6 = vld [vmem:[%s8335_s25] sm:$0xff] }
  0x13   :  { %v63_v3 = vadd.f32 %v61_v1, %v54_v0  ;;  %v6233_v4 = vadd.f32 %v5484_v2, %v54_v0  ;;  %v5483_v7 = vld [vmem:[%s8335_s25 + $0x10] sm:$0xff]  ;;  %v62_v8 = vadd.f32 %v60_v6, %v53_v5  ;;  %v158_v6 = vperm.slane %v6304_v51, 6  ;;  %s8269_s25 = smov 64  }
  0x14   :  { %v6244_v9 = vadd.f32 %v5483_v7, %v53_v5 }
  0x15   :  { %83 = vmatpush.msra.mxu0 %v63_v3 }
  0x17   :  { %84 = vmatpush.msra.mxu0 %v62_v8 }
  0x18   :  { %5330 = vmatmul.msk.f32.vlgmr.msra.gmra.mxu0 %vm65_vm0, %v64_v10 }
  0x95   :  { %v86_v11 = vpop.f32.mrf.mxu0 }
  0x96   :  { %v6253_v13 = vrot.slane %v86_v11, 7 }
  0x98   :  { %v6257_v14 = vsel %vm92_vm1, %v55_v12, %v6253_v13  ;;  %v104_v16 = vsel %vm103_vm3, %v6253_v13, 0.0 }
  0x99   :  { %v100_v15 = vsel %vm99_vm2, %v6257_v14, 0.0 }
  0x9a   :  { %101 = vadd.xlane.f32.xlu0 %v100_v15 }
  0xa2   :  { %105 = vadd.xlane.f32.xlu0 %v104_v16 }
 0x10d   :  { %v102_v24 = vpop.xlane.xlu0 %101 }
 0x10e   :  { %v114_v25 = vmul.f32 %v6263_v23, %v102_v24 }
 0x110   :  { %v116_v26 = vsub.f32 %v6257_v14, %v114_v25 }
 0x112   :  { %v118_v27 = vmul.f32 %v116_v26, %v116_v26 }
 0x114   :  { %v120_v28 = vsel %vm99_vm2, %v118_v27, 0.0 }
 0x115   :  { %121 = vadd.xlane.f32.xlu1 %v120_v28  ;;  %v106_v29 = vpop.xlane.xlu0 %105 }
 0x116   :  { %v115_v30 = vmul.f32 %v6263_v23, %v106_v29 }
 0x118   :  { %v117_v31 = vsub.f32 %v6253_v13, %v115_v30 }
 0x11a   :  { %v119_v32 = vmul.f32 %v117_v31, %v117_v31 }
 0x11c   :  { %v123_v33 = vsel %vm103_vm3, %v119_v32, 0.0 }
 0x11d   :  { %124 = vadd.xlane.f32.xlu1 %v123_v33 }
 0x188   :  { %v122_v40 = vpop.xlane.xlu1 %121 }
 0x189   :  { %v126_v41 = vmul.f32 %v122_v40, %v6263_v23 }
 0x18b   :  { %v128_v42 = vadd.f32 1e-05, %v126_v41 }
 0x18d   :  { %5774 = vrsqrt.f32 %v128_v42  ;;  %vm136_vm6 = vweird.f32 %v128_v42 }
 0x190   :  { %v125_v43 = vpop.xlane.xlu1 %124 }
 0x191   :  { %v127_v44 = vmul.f32 %v125_v43, %v6263_v23 }
 0x193   :  { %v5775_v45 = vpop.eup %5774  ;;  %v129_v46 = vadd.f32 1e-05, %v127_v44 }
 0x194   :  { %v131_v47 = vmul.f32 %v5775_v45, %v128_v42  ;;  %vm137_vm5 = vweird.f32 %v5775_v45 }
 0x195   :  { %5776 = vrsqrt.f32 %v129_v46  ;;  %vm138_vm7 = vmor %vm136_vm6, %vm137_vm5  ;;  %vm146_vm9 = vweird.f32 %v129_v46 }
 0x196   :  { %v132_v48 = vmul.f32 %v5775_v45, %v131_v47 }
 0x198   :  { %v133_v49 = vmul.f32 0.5, %v132_v48 }
 0x19a   :  { %v134_v50 = vsub.f32 1.5, %v133_v49 }
 0x19b   :  { %v5777_v52 = vpop.eup %5776 }
 0x19c   :  { %v135_v53 = vmul.f32 %v5775_v45, %v134_v50  ;;  %v141_v54 = vmul.f32 %v5777_v52, %v129_v46  ;;  %vm147_vm8 = vweird.f32 %v5777_v52 }
 0x19d   :  { %vm148_vm10 = vmor %vm146_vm9, %vm147_vm8 }
 0x19e   :  { %v142_v56 = vmul.f32 %v5777_v52, %v141_v54  ;;  %v139_v57 = vsel %vm138_vm7, %v5775_v45, %v135_v53 }
 0x19f   :  { %v150_v58 = vmul.f32 %v139_v57, %v116_v26 }
 0x1a0   :  { %v143_v60 = vmul.f32 0.5, %v142_v56 }
 0x1a1   :  { %v153_v61 = vmul.f32 %v152_v55, %v150_v58 }
 0x1a2   :  { %v144_v62 = vsub.f32 1.5, %v143_v60 }
 0x1a3   :  { %v156_v63 = vadd.f32 %v155_v59, %v153_v61 }
 0x1a4   :  { %v145_v0 = vmul.f32 %v5777_v52, %v144_v62 }
 0x1a5   :  { %5331 = vmatmul.msk.f32.vlgmr.msra.gmra.mxu1 %vm99_vm2, %v156_v63 }
 0x1a6   :  { %v149_v1 = vsel %vm148_vm10, %v5777_v52, %v145_v0 }
 0x1a7   :  { %v151_v2 = vmul.f32 %v149_v1, %v117_v31 }
 0x1a9   :  { %v154_v3 = vmul.f32 %v152_v55, %v151_v2 }
 0x1ab   :  { %v157_v5 = vadd.f32 %v155_v59, %v154_v3 }
 0x1ad   :  { %5332 = vmatmul.msk.f32.gmra.mxu1 %vm99_vm2, %v157_v5 }
 0x222   :  { %v182_v7 = vpop.f32.mrf.mxu1 }
 0x223   :  { %v6311_v8 = vadd.f32 %v182_v7, %v158_v6 }
 0x225   :  { %292 = vrot.lane.b32.xlu1 %v6311_v8, %s8273_s18 }
 0x22a   :  { %v185_v10 = vpop.f32.mrf.mxu1 }
 0x22b   :  { %v6315_v11 = vadd.f32 %v185_v10, %v158_v6 }
 0x22d   :  { %389 = vrot.lane.b32.xlu1 %v6315_v11, %s8263_s19  ;;  %294 = vrot.lane.b32.xlu0 %v6315_v11, %s8273_s18 }
 0x22e   :  { %192 = vrot.lane.b32.xlu2 %v6315_v11, %s8275_s20 }
 0x235   :  { %486 = vrot.lane.b32.xlu1 %v6311_v8, %s8265_s21  ;;  %290 = vrot.lane.b32.xlu0 %v6315_v11, %s8277_s22 }
 0x236   :  { %190 = vrot.lane.b32.xlu2 %v6311_v8, %s8275_s20 }
 0x23d   :  { %492 = vrot.lane.b32.xlu0 %v6315_v11, %s8271_s23 }
 0x23e   :  { %288 = vrot.lane.b32.xlu2 %v6311_v8, %s8277_s22 }
 0x245   :  { %488 = vrot.lane.b32.xlu0 %v6315_v11, %s8265_s21  ;;  %s8338_s21 = smov 112  }
 0x246   :  { %391 = vrot.lane.b32.xlu2 %v6311_v8, %s8267_s24 }
 0x24e   :  { %393 = vrot.lane.b32.xlu2 %v6315_v11, %s8267_s24  ;;  %s8339_s24 = smov 56  }
 0x256   :  { %387 = vrot.lane.b32.xlu2 %v6311_v8, %s8263_s19  ;;  %s8342_s19 = smov 32  }
 0x25e   :  { %490 = vrot.lane.b32.xlu2 %v6311_v8, %s8271_s23 }
 0x288   :  { %v193_v12 = vpop.permute.xlu2 %192 }
 0x289   :  { %5333 = vmatpush.xpose.msk.msra.mxu2 %vm194_vm11, %v193_v12 }
 0x290   :  { %v191_v15 = vpop.permute.xlu2 %190 }
 0x291   :  { %5334 = vmatpush.xpose.msk.msra.mxu2 %vm194_vm11, %v191_v15 }
 0x294   :  { %5335 = vmatmul.msk.f32.vlgmr.msra.gmra.mxu2 %vm194_vm11, %v6311_v8 }
 0x297   :  { %v293_v19 = vpop.permute.xlu1 %292 }
 0x298   :  { %v289_v16 = vpop.permute.xlu2 %288 }
 0x29c   :  { %5336 = vmatmul.msk.f32.gmra.mxu2 %vm194_vm11, %v6315_v11 }
 0x29f   :  { %v295_v17 = vpop.permute.xlu0 %294  ;;  %v390_v25 = vpop.permute.xlu1 %389 }
 0x2a0   :  { %v392_v18 = vpop.permute.xlu2 %391  ;;  %5340 = vmatpush.xpose.msk.msrb.mxu0 %vm194_vm11, %v295_v17 }
 0x2a4   :  { %5341 = vmatpush.xpose.msk.msrb.mxu0 %vm194_vm11, %v293_v19 }
 0x2a7   :  { %v291_v20 = vpop.permute.xlu0 %290  ;;  %5342 = vmatmul.msk.f32.vlgmr.msrb.gmra.mxu0 %vm194_vm11, %v289_v16  ;;  %v487_v27 = vpop.permute.xlu1 %486 }
 0x2a8   :  { %v394_v21 = vpop.permute.xlu2 %393 }
 0x2a9   :  { %5347 = vmatpush.xpose.msk.msrb.mxu1 %vm194_vm11, %v394_v21 }
 0x2ad   :  { %5348 = vmatpush.xpose.msk.msrb.mxu1 %vm194_vm11, %v392_v18 }
 0x2af   :  { %v493_v22 = vpop.permute.xlu0 %492  ;;  %5343 = vmatmul.msk.f32.gmra.mxu0 %vm194_vm11, %v291_v20 }
 0x2b0   :  { %v388_v24 = vpop.permute.xlu2 %387  ;;  %5354 = vmatpush.xpose.msk.msra.mxu0 %vm194_vm11, %v493_v22 }
 0x2b1   :  { %5349 = vmatmul.msk.f32.vlgmr.msrb.gmra.mxu1 %vm194_vm11, %v388_v24 }
 0x2b7   :  { %v489_v28 = vpop.permute.xlu0 %488 }
 0x2b8   :  { %v491_v26 = vpop.permute.xlu2 %490 }
 0x2b9   :  { %5350 = vmatmul.msk.f32.gmra.mxu1 %vm194_vm11, %v390_v25  ;;  %5355 = vmatpush.xpose.msk.msra.mxu0 %vm194_vm11, %v491_v26 }
 0x2bc   :  { %5356 = vmatmul.msk.f32.vlgmr.msra.gmra.mxu0 %vm194_vm11, %v487_v27 }
 0x2c4   :  { %5357 = vmatmul.msk.f32.gmra.mxu0 %vm194_vm11, %v489_v28 }
 0x317   :  { %v220_v29 = vpop.f32.mrf.mxu2 }
 0x318   :  { %v226_v30 = vmul.f32 0.35355338, %v220_v29 }
 0x31a   :  { %v229_v31 = vsel %vm228_vm12, %v226_v30, -inf }
 0x31b   :  { %230 = vmax.xlane.f32.xlu2 %v229_v31 }
 0x31f   :  { %v223_v47 = vpop.f32.mrf.mxu2 }
 0x320   :  { %v227_v48 = vmul.f32 0.35355338, %v223_v47 }
 0x322   :  { %v233_v49 = vsel %vm232_vm13, %v227_v48, -inf }
 0x324   :  { %v321_v32 = vpop.f32.mrf.mxu0 }
 0x325   :  { %v327_v33 = vmul.f32 0.35355338, %v321_v32 }
 0x327   :  { %v329_v40 = vsel %vm228_vm12, %v327_v33, -inf }
 0x328   :  { %330 = vmax.xlane.f32.xlu0 %v329_v40 }
 0x32c   :  { %v324_v50 = vpop.f32.mrf.mxu0 }
 0x32d   :  { %v328_v52 = vmul.f32 0.35355338, %v324_v50 }
 0x32e   :  { %v420_v41 = vpop.f32.mrf.mxu1 }
 0x32f   :  { %v426_v42 = vmul.f32 0.35355338, %v420_v41  ;;  %v332_v53 = vsel %vm232_vm13, %v328_v52, -inf }
 0x331   :  { %v428_v43 = vsel %vm228_vm12, %v426_v42, -inf }
 0x332   :  { %429 = vmax.xlane.f32.xlu0 %v428_v43 }
 0x333   :  { %254 = vrot.lane.b32.xlu2 %v6315_v11, %s8269_s25 }
 0x336   :  { %v423_v44 = vpop.f32.mrf.mxu1 }
 0x337   :  { %v427_v45 = vmul.f32 0.35355338, %v423_v44 }
 0x339   :  { %v431_v46 = vsel %vm232_vm13, %v427_v45, -inf  ;;  %v519_v54 = vpop.f32.mrf.mxu0 }
 0x33a   :  { %432 = vmax.xlane.f32.xlu1 %v431_v46  ;;  %v525_v55 = vmul.f32 0.35355338, %v519_v54 }
 0x33c   :  { %v527_v56 = vsel %vm228_vm12, %v525_v55, -inf }
 0x341   :  { %v522_v57 = vpop.f32.mrf.mxu0 }
 0x342   :  { %234 = vmax.xlane.f32.xlu1 %v233_v49  ;;  %v6376_v58 = vmul.f32 0.35355338, %v522_v57 }
 0x344   :  { %v530_v59 = vsel %vm232_vm13, %v6376_v58, -inf }
 0x346   :  { %252 = vrot.lane.b32.xlu0 %v6311_v8, %s8269_s25 }
 0x34e   :  { %351 = vrot.lane.b32.xlu0 %v6311_v8, %s8261_s26 }
 0x35b   :  { %353 = vrot.lane.b32.xlu1 %v6315_v11, %s8261_s26  ;;  %s8343_s26 = smov 8  }
 0x35c   :  { %333 = vmax.xlane.f32.xlu2 %v332_v53 }
 0x364   :  { %528 = vmax.xlane.f32.xlu2 %v527_v56 }
 0x385   :  { %531 = vmax.xlane.f32.xlu1 %v530_v59 }
 0x38e   :  { %v231_v60 = vpop.xlane.xlu2 %230 }
 0x38f   :  { %v236_v61 = vsub.f32 %v226_v30, %v231_v60 }
 0x391   :  { %v238_v62 = vmul.f32 1.442695, %v236_v61 }
 0x393   :  { %5778 = vpow2.f32 %v238_v62 }
 0x396   :  { %v255_v63 = vpop.permute.xlu2 %254 }
 0x397   :  { %5337 = vmatpush.msk.msra.mxu3 %vm92_vm1, %v255_v63 }
 0x399   :  { %v6381_v0 = vpop.eup %5778 }
 0x39a   :  { %v242_v1 = vsel %vm228_vm12, %v6381_v0, 0.0 }
 0x39b   :  { %243 = vadd.xlane.f32.xlu0 %v242_v1  ;;  %v331_v2 = vpop.xlane.xlu0 %330 }
 0x39c   :  { %v335_v3 = vsub.f32 %v327_v33, %v331_v2 }
 0x39e   :  { %v337_v5 = vmul.f32 1.442695, %v335_v3 }
 0x3a0   :  { %5780 = vpow2.f32 %v337_v5 }
 0x3a5   :  { %v430_v6 = vpop.xlane.xlu0 %429 }
 0x3a6   :  { %v6385_v7 = vpop.eup %5780  ;;  %v434_v10 = vsub.f32 %v426_v42, %v430_v6 }
 0x3a7   :  { %v341_v12 = vsel %vm228_vm12, %v6385_v7, 0.0 }
 0x3a8   :  { %v436_v15 = vmul.f32 1.442695, %v434_v10  ;;  %342 = vadd.xlane.f32.xlu1 %v341_v12 }
 0x3aa   :  { %5782 = vpow2.f32 %v436_v15 }
 0x3ad   :  { %v433_v16 = vpop.xlane.xlu1 %432 }
 0x3ae   :  { %v435_v26 = vsub.f32 %v427_v45, %v433_v16 }
 0x3af   :  { %450 = vrot.lane.b32.xlu0 %v6311_v8, %s8257_s27 }
 0x3b0   :  { %v6391_v17 = vpop.eup %5782  ;;  %v438_v27 = vmul.f32 1.442695, %v435_v26 }
 0x3b1   :  { %v440_v18 = vsel %vm228_vm12, %v6391_v17, 0.0 }
 0x3b2   :  { %441 = vadd.xlane.f32.xlu1 %v440_v18 }
 0x3b5   :  { %v235_v19 = vpop.xlane.xlu1 %234 }
 0x3b6   :  { %v237_v20 = vsub.f32 %v227_v48, %v235_v19 }
 0x3b8   :  { %v240_v21 = vmul.f32 1.442695, %v237_v20  ;;  %v253_v22 = vpop.permute.xlu0 %252 }
 0x3b9   :  { %280 = vmatpush.msra.mxu3 %v253_v22 }
 0x3ba   :  { %5784 = vpow2.f32 %v240_v21 }
 0x3bb   :  { %5786 = vpow2.f32 %v438_v27 }
 0x3c0   :  { %v5785_v24 = vpop.eup %5784  ;;  %v352_v29 = vpop.permute.xlu0 %351 }
 0x3c1   :  { %v245_v25 = vsel %vm232_vm13, %v5785_v24, 0.0  ;;  %v5787_v33 = vpop.eup %5786 }
 0x3c2   :  { %246 = vadd.xlane.f32.xlu1 %v245_v25  ;;  %v443_v42 = vsel %vm232_vm13, %v5787_v33, 0.0 }
 0x3cd   :  { %v354_v28 = vpop.permute.xlu1 %353 }
 0x3ce   :  { %5344 = vmatpush.msk.msrb.mxu3 %vm92_vm1, %v354_v28 }
 0x3cf   :  { %v334_v30 = vpop.xlane.xlu2 %333 }
 0x3d0   :  { %v336_v31 = vsub.f32 %v328_v52, %v334_v30  ;;  %379 = vmatpush.msrb.mxu3 %v352_v29 }
 0x3d2   :  { %v339_v32 = vmul.f32 1.442695, %v336_v31 }
 0x3d4   :  { %5788 = vpow2.f32 %v339_v32 }
 0x3d7   :  { %v529_v40 = vpop.xlane.xlu2 %528 }
 0x3d8   :  { %v533_v41 = vsub.f32 %v525_v55, %v529_v40 }
 0x3d9   :  { %444 = vadd.xlane.f32.xlu0 %v443_v42 }
 0x3da   :  { %v5789_v43 = vpop.eup %5788  ;;  %v535_v44 = vmul.f32 1.442695, %v533_v41 }
 0x3db   :  { %551 = vrot.lane.b32.xlu1 %v6315_v11, %s8259_s28  ;;  %v344_v45 = vsel %vm232_vm13, %v5789_v43, 0.0 }
 0x3dc   :  { %5790 = vpow2.f32 %v535_v44  ;;  %345 = vadd.xlane.f32.xlu2 %v344_v45 }
 0x3e2   :  { %v5791_v46 = vpop.eup %5790 }
 0x3e3   :  { %v539_v47 = vsel %vm228_vm12, %v5791_v46, 0.0  ;;  %5671 = vrot.lane.b32.xlu1 %v5670_v38, %s8255_s29 }
 0x3e4   :  { %540 = vadd.xlane.f32.xlu0 %v539_v47 }
 0x3eb   :  { %5676 = vrot.lane.b32.xlu1 %v5675_v39, %s8255_s29  ;;  %s8336_s29 = smov 80  }
 0x3f4   :  { %452 = vrot.lane.b32.xlu2 %v6315_v11, %s8257_s27  ;;  %s8344_s27 = smov 24  }
 0x3f8   :  { %549 = vrot.lane.b32.xlu0 %v6311_v8, %s8259_s28  ;;  %v532_v48 = vpop.xlane.xlu1 %531  ;;  %s8345_s28 = smov 16  }
 0x3f9   :  { %v534_v49 = vsub.f32 %v6376_v58, %v532_v48 }
 0x3fb   :  { %v537_v52 = vmul.f32 1.442695, %v534_v49  ;;  %v663_v49 = vperm.slane %v6304_v51, 4 }
 0x40e   :  { %v244_v50 = vpop.xlane.xlu0 %243 }
 0x40f   :  { %5792 = vrcp.f32 %v244_v50 }
 0x410   :  { %5794 = vpow2.f32 %v537_v52 }
 0x415   :  { %v5793_v53 = vpop.eup %5792 }
 0x416   :  { %v250_v54 = vmul.f32 %v5793_v53, %v6381_v0  ;;  %v5795_v55 = vpop.eup %5794 }
 0x417   :  { %v542_v56 = vsel %vm232_vm13, %v5795_v55, 0.0 }
 0x418   :  { %5338 = vmatmul.msk.f32.vlgmr.msra.gmra.mxu3 %vm228_vm12, %v250_v54 }
 0x41b   :  { %v343_v11 = vpop.xlane.xlu1 %342 }
 0x41d   :  { %543 = vadd.xlane.f32.xlu2 %v542_v56 }
 0x421   :  { %v451_v62 = vpop.permute.xlu0 %450 }
 0x425   :  { %v442_v57 = vpop.xlane.xlu1 %441 }
 0x435   :  { %v247_v59 = vpop.xlane.xlu1 %246 }
 0x436   :  { %5796 = vrcp.f32 %v247_v59 }
 0x437   :  { %5798 = vrcp.f32 %v343_v11 }
 0x438   :  { %5800 = vrcp.f32 %v442_v57 }
 0x43c   :  { %v5797_v8 = vpop.eup %5796 }
 0x43d   :  { %v251_v58 = vmul.f32 %v5797_v8, %v5785_v24  ;;  %v5799_v60 = vpop.eup %5798 }
 0x43e   :  { %v349_v61 = vmul.f32 %v5799_v60, %v6385_v7  ;;  %v5801_v1 = vpop.eup %5800 }
 0x43f   :  { %5339 = vmatmul.msk.f32.gmra.mxu3 %vm228_vm12, %v251_v58  ;;  %v448_v6 = vmul.f32 %v5801_v1, %v6391_v17  ;;  %v719_v1 = vld [vmem:[%s8236_s5 + $0x18] sm:$0xff] }
 0x447   :  { %5345 = vmatmul.msk.f32.vlgmr.msrb.gmra.mxu3 %vm228_vm12, %v349_v61 }
 0x44c   :  { %v445_v0 = vpop.xlane.xlu0 %444 }
 0x44d   :  { %v552_v7 = vpop.permute.xlu1 %551 }
 0x44f   :  { %v346_v63 = vpop.xlane.xlu2 %345 }
 0x450   :  { %5802 = vrcp.f32 %v346_v63 }
 0x451   :  { %5804 = vrcp.f32 %v445_v0 }
 0x455   :  { %v5672_v25 = vpop.permute.xlu1 %5671 }
 0x456   :  { %v5803_v2 = vpop.eup %5802  ;;  %v5674_v26 = vunpack.i.h.bf16 %v5672_v25  ;;  %v5673_v27 = vunpack.i.l.bf16 %v5672_v25 }
 0x457   :  { %v453_v3 = vpop.permute.xlu2 %452  ;;  %v350_v5 = vmul.f32 %v5803_v2, %v5789_v43  ;;  %v5805_v10 = vpop.eup %5804  ;;  %v718_v2 = vld [vmem:[%s8236_s5 + $0x10] sm:$0xff] }
 0x458   :  { %5351 = vmatpush.msk.msrb.mxu2 %vm92_vm1, %v453_v3  ;;  %5643 = vmatpush.msk.msra.mxu3 %vm92_vm1, %v453_v3  ;;  %v541_v12 = vpop.xlane.xlu0 %540  ;;  %v449_v15 = vmul.f32 %v5805_v10, %v5787_v33  ;;  %v717_v3 = vld [vmem:[%s8236_s5 + $0x8] sm:$0xff] }
 0x459   :  { %5346 = vmatmul.msk.f32.gmra.mxu3 %vm228_vm12, %v350_v5  ;;  %5806 = vrcp.f32 %v541_v12  ;;  %650 = vmatpush.msra.mxu1 %v5673_v27  ;;  %v716_v5 = vld [vmem:[%s8236_s5] sm:$0xff] }
 0x45a   :  { %478 = vmatpush.msrb.mxu2 %v451_v62  ;;  %5644 = vmatpush.msra.mxu3 %v451_v62 }
 0x45b   :  { %5352 = vmatmul.msk.f32.vlgmr.msrb.gmra.mxu2 %vm228_vm12, %v448_v6  ;;  %651 = vmatpush.msra.mxu1 %v5674_v26 }
 0x45c   :  { %5358 = vmatpush.msk.msrb.mxu3 %vm92_vm1, %v552_v7  ;;  %739 = vmatpush.msra.mxu2 %v719_v1 }
 0x45d   :  { %v5677_v28 = vpop.permute.xlu1 %5676 }
 0x45e   :  { %v5679_v29 = vunpack.i.h.bf16 %v5677_v28  ;;  %v5678_v30 = vunpack.i.l.bf16 %v5677_v28  ;;  %740 = vmatpush.msra.mxu2 %v718_v2 }
 0x45f   :  { %v5807_v16 = vpop.eup %5806 }
 0x460   :  { %v547_v17 = vmul.f32 %v5807_v16, %v5791_v46  ;;  %652 = vmatpush.msra.mxu1 %v5678_v30  ;;  %741 = vmatpush.msra.mxu2 %v717_v3 }
 0x461   :  { %5353 = vmatmul.msk.f32.vlgmr.msra.gmra.mxu3 %vm228_vm12, %v449_v15 }
 0x462   :  { %653 = vmatpush.msra.mxu1 %v5679_v29  ;;  %742 = vmatpush.msra.mxu2 %v716_v5 }
 0x46a   :  { %v550_v18 = vpop.permute.xlu0 %549 }
 0x46b   :  { %577 = vmatpush.msrb.mxu3 %v550_v18 }
 0x46c   :  { %5359 = vmatmul.msk.f32.vlgmr.msrb.gmra.mxu3 %vm228_vm12, %v547_v17 }
 0x490   :  { %v544_v19 = vpop.xlane.xlu2 %543 }
 0x491   :  { %5808 = vrcp.f32 %v544_v19 }
 0x497   :  { %v5809_v20 = vpop.eup %5808 }
 0x498   :  { %v548_v21 = vmul.f32 %v5809_v20, %v5795_v55  ;;  %v710_v20 = vperm.slane %v6304_v51, 2 }
 0x49a   :  { %5360 = vmatmul.msk.f32.gmra.mxu3 %vm228_vm12, %v548_v21 }
 0x49b   :  { %v282_v34 = vpop.f32.mrf.mxu3 }
 0x4c2   :  { %v285_v35 = vpop.f32.mrf.mxu3 }
 0x4ca   :  { %v381_v38 = vpop.f32.mrf.mxu3 }
 0x4dc   :  { %v384_v22 = vpop.f32.mrf.mxu3 }
 0x4de   :  { %v480_v24 = vpop.f32.mrf.mxu2 }
 0x4df   :  { %595 = vrot.lane.b32.xlu0 %v480_v24, %s8249_s30  ;;  %v783_v24 = vld [vmem:[%s8237_s6 + $0x78] sm:$0xff] }
 0x4e0   :  { %784 = vmatpush.msrb.mxu0 %v783_v24 }
 0x4e4   :  { %v483_v36 = vpop.f32.mrf.mxu3 }
 0x4e5   :  { %597 = vrot.lane.b32.xlu2 %v483_v36, %s8249_s30  ;;  %v782_v36 = vld [vmem:[%s8237_s6 + $0x70] sm:$0xff]  ;;  %s8337_s30 = smov 104  }
 0x4e6   :  { %785 = vmatpush.msrb.mxu0 %v782_v36 }
 0x4e7   :  { %587 = vrot.lane.b32.xlu0 %v381_v38, %s8253_s0 }
 0x4ef   :  { %589 = vrot.lane.b32.xlu0 %v384_v22, %s8253_s0  ;;  %v579_v37 = vpop.f32.mrf.mxu3  ;;  %s8340_s0 = smov 40  }
 0x4f0   :  { %603 = vrot.lane.b32.xlu1 %v579_v37, %s8251_s17  ;;  %v781_v37 = vld [vmem:[%s8237_s6 + $0x68] sm:$0xff] }
 0x4f1   :  { %786 = vmatpush.msrb.mxu0 %v781_v37 }
 0x51d   :  { %v582_v39 = vpop.f32.mrf.mxu3 }
 0x51e   :  { %605 = vrot.lane.b32.xlu1 %v582_v39, %s8251_s17  ;;  %s8341_s17 = smov 48  }
 0x53f   :  { %v598_v45 = vpop.permute.xlu2 %597 }
 0x551   :  { %v596_v31 = vpop.permute.xlu0 %595 }
 0x559   :  { %v588_v32 = vpop.permute.xlu0 %587 }
 0x55a   :  { %v609_v33 = vsel %vm194_vm11, %v282_v34, %v588_v32 }
 0x55b   :  { %v611_v40 = vsel %vm65_vm0, %v609_v33, %v596_v31 }
 0x561   :  { %v590_v43 = vpop.permute.xlu0 %589 }
 0x562   :  { %v604_v41 = vpop.permute.xlu1 %603  ;;  %v610_v44 = vsel %vm194_vm11, %v285_v35, %v590_v43  ;;  %v713_v35 = vperm.slane %v6304_v51, 3  ;;  %v780_v43 = vld [vmem:[%s8237_s6 + $0x60] sm:$0xff] }
 0x563   :  { %v614_v42 = vsel %vm8285_vm14, %v611_v40, %v604_v41  ;;  %v612_v47 = vsel %vm65_vm0, %v610_v44, %v598_v45  ;;  %787 = vmatpush.msrb.mxu0 %v780_v43  ;;  %v779_v44 = vld [vmem:[%s8237_s6 + $0x58] sm:$0xff]  ;;  %v778_v45 = vld [vmem:[%s8237_s6 + $0x50] sm:$0xff] }
 0x564   :  { %5361 = vmatmul.msk.f32.vlgmr.msra.gmra.mxu1 %vm99_vm2, %v614_v42 }
 0x565   :  { %788 = vmatpush.msrb.mxu0 %v779_v44 }
 0x567   :  { %789 = vmatpush.msrb.mxu0 %v778_v45 }
 0x590   :  { %v606_v46 = vpop.permute.xlu1 %605 }
 0x591   :  { %v615_v48 = vsel %vm8285_vm14, %v612_v47, %v606_v46  ;;  %v777_v46 = vld [vmem:[%s8237_s6 + $0x48] sm:$0xff]  ;;  %v776_v47 = vld [vmem:[%s8237_s6 + $0x40] sm:$0xff] }
 0x592   :  { %5362 = vmatmul.msk.f32.gmra.mxu1 %vm99_vm2, %v615_v48  ;;  %790 = vmatpush.msrb.mxu0 %v777_v46  ;;  %v775_v48 = vld [vmem:[%s8237_s6 + $0x38] sm:$0xff] }
 0x594   :  { %791 = vmatpush.msrb.mxu0 %v776_v47 }
 0x596   :  { %792 = vmatpush.msrb.mxu0 %v775_v48 }
 0x5e1   :  { %v655_v50 = vpop.f32.mrf.mxu1 }
 0x5e2   :  { %v661_v52 = vadd.f32 %v655_v50, %v6257_v14  ;;  %v773_v50 = vld [vmem:[%s8237_s6 + $0x28] sm:$0xff] }
 0x5e4   :  { %v6446_v53 = vadd.f32 %v663_v49, %v661_v52  ;;  %v772_v52 = vld [vmem:[%s8237_s6 + $0x20] sm:$0xff] }
 0x5e6   :  { %v666_v54 = vsel %vm99_vm2, %v6446_v53, 0.0 }
 0x5e7   :  { %667 = vadd.xlane.f32.xlu0 %v666_v54  ;;  %v771_v54 = vld [vmem:[%s8237_s6 + $0x18] sm:$0xff] }
 0x60f   :  { %v658_v55 = vpop.f32.mrf.mxu1 }
 0x610   :  { %v662_v56 = vadd.f32 %v658_v55, %v6253_v13  ;;  %v770_v55 = vld [vmem:[%s8237_s6 + $0x10] sm:$0xff] }
 0x612   :  { %v6451_v11 = vadd.f32 %v663_v49, %v662_v56  ;;  %v774_v49 = vld [vmem:[%s8237_s6 + $0x30] sm:$0xff]  ;;  %v769_v56 = vld [vmem:[%s8237_s6 + $0x8] sm:$0xff] }
 0x613   :  { %793 = vmatpush.msrb.mxu0 %v774_v49 }
 0x614   :  { %v669_v57 = vsel %vm103_vm3, %v6451_v11, 0.0 }
 0x615   :  { %670 = vadd.xlane.f32.xlu1 %v669_v57  ;;  %794 = vmatpush.msrb.mxu0 %v773_v50  ;;  %v768_v57 = vld [vmem:[%s8237_s6] sm:$0xff]  ;;  %v6577_v50 = vld [vmem:[%s8235_s7 + $0x8] sm:$0xff] }
 0x617   :  { %795 = vmatpush.msrb.mxu0 %v772_v52 }
 0x619   :  { %796 = vmatpush.msrb.mxu0 %v771_v54 }
 0x61b   :  { %797 = vmatpush.msrb.mxu0 %v770_v55  ;;  %v863_v55 = vperm.slane %v6577_v50, 0 }
 0x61d   :  { %798 = vmatpush.msrb.mxu0 %v769_v56 }
 0x61f   :  { %799 = vmatpush.msrb.mxu0 %v768_v57 }
 0x65a   :  { %v668_v59 = vpop.xlane.xlu0 %667 }
 0x65b   :  { %v672_v8 = vmul.f32 %v668_v59, %v6263_v23  ;;  %v720_v59 = vperm.slane %v6304_v51, 7 }
 0x65d   :  { %v674_v14 = vsub.f32 %v6446_v53, %v672_v8 }
 0x65f   :  { %v676_v58 = vmul.f32 %v674_v14, %v674_v14 }
 0x661   :  { %v678_v60 = vsel %vm99_vm2, %v676_v58, 0.0 }
 0x662   :  { %679 = vadd.xlane.f32.xlu2 %v678_v60 }
 0x688   :  { %v671_v61 = vpop.xlane.xlu1 %670 }
 0x689   :  { %v673_v62 = vmul.f32 %v671_v61, %v6263_v23 }
 0x68b   :  { %v675_v13 = vsub.f32 %v6451_v11, %v673_v62 }
 0x68d   :  { %v677_v63 = vmul.f32 %v675_v13, %v675_v13 }
 0x68f   :  { %v681_v0 = vsel %vm103_vm3, %v677_v63, 0.0 }
 0x690   :  { %682 = vadd.xlane.f32.xlu0 %v681_v0 }
 0x6d5   :  { %v680_v6 = vpop.xlane.xlu2 %679 }
 0x6d6   :  { %v684_v7 = vmul.f32 %v680_v6, %v6263_v23 }
 0x6d8   :  { %v686_v10 = vadd.f32 1e-05, %v684_v7 }
 0x6da   :  { %5810 = vrsqrt.f32 %v686_v10  ;;  %vm694_vm4 = vweird.f32 %v686_v10 }
 0x6e0   :  { %v5811_v12 = vpop.eup %5810 }
 0x6e1   :  { %v689_v15 = vmul.f32 %v5811_v12, %v686_v10  ;;  %vm695_vm15 = vweird.f32 %v5811_v12 }
 0x6e2   :  { %vm696_vm5 = vmor %vm694_vm4, %vm695_vm15 }
 0x6e3   :  { %v690_v16 = vmul.f32 %v5811_v12, %v689_v15 }
 0x6e5   :  { %v691_v17 = vmul.f32 0.5, %v690_v16 }
 0x6e7   :  { %v692_v18 = vsub.f32 1.5, %v691_v17 }
 0x6e9   :  { %v693_v19 = vmul.f32 %v5811_v12, %v692_v18 }
 0x6eb   :  { %v697_v21 = vsel %vm696_vm5, %v5811_v12, %v693_v19 }
 0x6ec   :  { %v708_v34 = vmul.f32 %v697_v21, %v674_v14 }
 0x6ee   :  { %v711_v38 = vmul.f32 %v710_v20, %v708_v34 }
 0x6f0   :  { %v714_v22 = vadd.f32 %v713_v35, %v711_v38 }
 0x6f2   :  { %5363 = vmatmul.msk.f32.vlgmr.msra.gmra.mxu2 %vm99_vm2, %v714_v22 }
 0x703   :  { %v683_v39 = vpop.xlane.xlu0 %682 }
 0x704   :  { %v685_v25 = vmul.f32 %v683_v39, %v6263_v23 }
 0x706   :  { %v687_v26 = vadd.f32 1e-05, %v685_v25 }
 0x708   :  { %5812 = vrsqrt.f32 %v687_v26  ;;  %vm704_vm7 = vweird.f32 %v687_v26 }
 0x70e   :  { %v5813_v27 = vpop.eup %5812 }
 0x70f   :  { %v699_v28 = vmul.f32 %v5813_v27, %v687_v26  ;;  %vm705_vm6 = vweird.f32 %v5813_v27 }
 0x710   :  { %vm706_vm8 = vmor %vm704_vm7, %vm705_vm6 }
 0x711   :  { %v700_v29 = vmul.f32 %v5813_v27, %v699_v28 }
 0x713   :  { %v701_v30 = vmul.f32 0.5, %v700_v29 }
 0x715   :  { %v702_v31 = vsub.f32 1.5, %v701_v30 }
 0x717   :  { %v703_v32 = vmul.f32 %v5813_v27, %v702_v31  ;;  %v6548_v31 = vld [vmem:[%s8234_s4 + $0x38] sm:$0xff] }
 0x718   :  { %888 = vmatpush.msra.mxu3 %v6548_v31 }
 0x719   :  { %v707_v33 = vsel %vm706_vm8, %v5813_v27, %v703_v32  ;;  %v6554_v32 = vld [vmem:[%s8234_s4 + $0x30] sm:$0xff] }
 0x71a   :  { %v709_v40 = vmul.f32 %v707_v33, %v675_v13  ;;  %889 = vmatpush.msra.mxu3 %v6554_v32  ;;  %v5680_v33 = vpack.i.bf16 %v6554_v32, %v6548_v31 }
 0x71c   :  { %v712_v41 = vmul.f32 %v710_v20, %v709_v40  ;;  %v809_v20 = vperm.slane %v6304_v51, 5  ;;  %v6562_v40 = vld [vmem:[%s8234_s4 + $0x28] sm:$0xff] }
 0x71d   :  { %890 = vmatpush.msra.mxu3 %v6562_v40 }
 0x71e   :  { %v715_v42 = vadd.f32 %v713_v35, %v712_v41  ;;  %v6567_v41 = vld [vmem:[%s8234_s4 + $0x20] sm:$0xff] }
 0x71f   :  { %891 = vmatpush.msra.mxu3 %v6567_v41 }
 0x720   :  { %5364 = vmatmul.msk.f32.gmra.mxu2 %vm99_vm2, %v715_v42  ;;  %v5685_v42 = vpack.i.bf16 %v6567_v41, %v6562_v40 }
 0x775   :  { %v744_v8 = vpop.f32.mrf.mxu2 }
 0x776   :  { %v745_v14 = vadd.f32 %v744_v8, %v720_v59 }
 0x778   :  { %v750_v58 = vmul.f32 %v745_v14, %v745_v14 }
 0x77a   :  { %v752_v60 = vmul.f32 %v750_v58, %v745_v14 }
 0x77c   :  { %v754_v61 = vmul.f32 0.044715, %v752_v60 }
 0x77e   :  { %v756_v62 = vadd.f32 %v754_v61, %v745_v14 }
 0x780   :  { %v758_v13 = vmul.f32 0.7978846, %v756_v62 }
 0x782   :  { %5814 = vtanh.f32 %v758_v13 }
 0x788   :  { %v5815_v63 = vpop.eup %5814 }
 0x789   :  { %v762_v0 = vadd.f32 1.0, %v5815_v63 }
 0x78b   :  { %v764_v1 = vmul.f32 0.5, %v762_v0 }
 0x78d   :  { %v766_v2 = vmul.f32 %v764_v1, %v745_v14 }
 0x78f   :  { %800 = vmatmul.f32.vlgmr.msrb.gmra.mxu0 %v766_v2 }
 0x7a3   :  { %v747_v3 = vpop.f32.mrf.mxu2 }
 0x7a4   :  { %v748_v5 = vadd.f32 %v747_v3, %v720_v59  ;;  %v866_v59 = vperm.slane %v6577_v50, 1 }
 0x7a6   :  { %v751_v6 = vmul.f32 %v748_v5, %v748_v5 }
 0x7a8   :  { %v753_v7 = vmul.f32 %v751_v6, %v748_v5 }
 0x7aa   :  { %v755_v10 = vmul.f32 0.044715, %v753_v7 }
 0x7ac   :  { %v757_v12 = vadd.f32 %v755_v10, %v748_v5  ;;  %v869_v10 = vperm.slane %v6577_v50, 6 }
 0x7ae   :  { %v759_v15 = vmul.f32 0.7978846, %v757_v12 }
 0x7b0   :  { %5816 = vtanh.f32 %v759_v15 }
 0x7b6   :  { %v5817_v16 = vpop.eup %5816 }
 0x7b7   :  { %v763_v17 = vadd.f32 1.0, %v5817_v16 }
 0x7b9   :  { %v765_v18 = vmul.f32 0.5, %v763_v17 }
 0x7bb   :  { %v767_v19 = vmul.f32 %v765_v18, %v748_v5 }
 0x7bd   :  { %803 = vmatmul.f32.gmra.mxu0 %v767_v19 }
 0x80c   :  { %v801_v21 = vpop.f32.mrf.mxu0 }
 0x80d   :  { %v807_v34 = vadd.f32 %v801_v21, %v6446_v53 }
 0x80f   :  { %v6530_v35 = vadd.f32 %v809_v20, %v807_v34 }
 0x811   :  { %v819_v38 = vsel %vm99_vm2, %v6530_v35, 0.0 }
 0x812   :  { %820 = vadd.xlane.f32.xlu1 %v819_v38 }
 0x83a   :  { %v804_v22 = vpop.f32.mrf.mxu0 }
 0x83b   :  { %v808_v24 = vadd.f32 %v804_v22, %v6451_v11 }
 0x83d   :  { %v6535_v36 = vadd.f32 %v809_v20, %v808_v24 }
 0x83f   :  { %v822_v37 = vsel %vm103_vm3, %v6535_v36, 0.0 }
 0x840   :  { %823 = vadd.xlane.f32.xlu0 %v822_v37 }
 0x885   :  { %v821_v39 = vpop.xlane.xlu1 %820 }
 0x886   :  { %v825_v51 = vmul.f32 %v821_v39, %v6263_v23 }
 0x888   :  { %v827_v53 = vsub.f32 %v6530_v35, %v825_v51 }
 0x88a   :  { %v829_v25 = vmul.f32 %v827_v53, %v827_v53 }
 0x88c   :  { %v831_v26 = vsel %vm99_vm2, %v829_v25, 0.0 }
 0x88d   :  { %832 = vadd.xlane.f32.xlu1 %v831_v26 }
 0x8b3   :  { %v824_v27 = vpop.xlane.xlu0 %823 }
 0x8b4   :  { %v826_v28 = vmul.f32 %v824_v27, %v6263_v23 }
 0x8b6   :  { %v828_v11 = vsub.f32 %v6535_v36, %v826_v28 }
 0x8b8   :  { %v830_v29 = vmul.f32 %v828_v11, %v828_v11 }
 0x8ba   :  { %v834_v30 = vsel %vm103_vm3, %v830_v29, 0.0 }
 0x8bb   :  { %835 = vadd.xlane.f32.xlu0 %v834_v30 }
 0x900   :  { %v833_v43 = vpop.xlane.xlu1 %832 }
 0x901   :  { %v837_v44 = vmul.f32 %v833_v43, %v6263_v23 }
 0x903   :  { %v839_v45 = vadd.f32 1e-05, %v837_v44 }
 0x905   :  { %5818 = vrsqrt.f32 %v839_v45  ;;  %vm847_vm10 = vweird.f32 %v839_v45 }
 0x90b   :  { %v5819_v46 = vpop.eup %5818 }
 0x90c   :  { %v842_v47 = vmul.f32 %v5819_v46, %v839_v45  ;;  %vm848_vm9 = vweird.f32 %v5819_v46 }
 0x90d   :  { %vm849_vm15 = vmor %vm847_vm10, %vm848_vm9 }
 0x90e   :  { %v843_v48 = vmul.f32 %v5819_v46, %v842_v47 }
 0x910   :  { %v844_v49 = vmul.f32 0.5, %v843_v48 }
 0x912   :  { %v845_v52 = vsub.f32 1.5, %v844_v49 }
 0x914   :  { %v846_v54 = vmul.f32 %v5819_v46, %v845_v52 }
 0x916   :  { %v850_v56 = vsel %vm849_vm15, %v5819_v46, %v846_v54 }
 0x917   :  { %v861_v57 = vmul.f32 %v850_v56, %v827_v53 }
 0x919   :  { %v864_v8 = vmul.f32 %v863_v55, %v861_v57 }
 0x91b   :  { %v867_v14 = vadd.f32 %v866_v59, %v864_v8 }
 0x91d   :  { %5370 = vmatmul.msk.f32.vlgmr.msra.gmra.mxu3 %vm99_vm2, %v867_v14 }
 0x92e   :  { %v836_v58 = vpop.xlane.xlu0 %835 }
 0x92f   :  { %v838_v60 = vmul.f32 %v836_v58, %v6263_v23 }
 0x931   :  { %v840_v61 = vadd.f32 1e-05, %v838_v60 }
 0x933   :  { %5820 = vrsqrt.f32 %v840_v61  ;;  %vm857_vm5 = vweird.f32 %v840_v61 }
 0x939   :  { %v5821_v62 = vpop.eup %5820 }
 0x93a   :  { %v852_v13 = vmul.f32 %v5821_v62, %v840_v61  ;;  %vm858_vm4 = vweird.f32 %v5821_v62 }
 0x93b   :  { %vm859_vm6 = vmor %vm857_vm5, %vm858_vm4 }
 0x93c   :  { %v853_v63 = vmul.f32 %v5821_v62, %v852_v13 }
 0x93e   :  { %v854_v0 = vmul.f32 0.5, %v853_v63 }
 0x940   :  { %v855_v1 = vsub.f32 1.5, %v854_v0 }
 0x942   :  { %v856_v2 = vmul.f32 %v5821_v62, %v855_v1 }
 0x944   :  { %v860_v3 = vsel %vm859_vm6, %v5821_v62, %v856_v2 }
 0x945   :  { %v862_v5 = vmul.f32 %v860_v3, %v828_v11 }
 0x947   :  { %v865_v6 = vmul.f32 %v863_v55, %v862_v5 }
 0x949   :  { %v868_v7 = vadd.f32 %v866_v59, %v865_v6 }
 0x94b   :  { %5371 = vmatmul.msk.f32.gmra.mxu3 %vm99_vm2, %v868_v7 }
 0x9a0   :  { %v893_v12 = vpop.f32.mrf.mxu3 }
 0x9a1   :  { %v6585_v15 = vadd.f32 %v893_v12, %v869_v10 }
 0x9a3   :  { %901 = vrot.lane.b32.xlu1 %v6585_v15, %s8275_s20 }
 0x9ce   :  { %v896_v16 = vpop.f32.mrf.mxu3 }
 0x9cf   :  { %v6589_v17 = vadd.f32 %v896_v16, %v869_v10 }
 0x9d1   :  { %962 = vrot.lane.b32.xlu0 %v6589_v17, %s8269_s25  ;;  %903 = vrot.lane.b32.xlu2 %v6589_v17, %s8275_s20  ;;  %s8292_s20 = smov 92  }
 0x9d9   :  { %998 = vrot.lane.b32.xlu0 %v6589_v17, %s8277_s22  ;;  %1000 = vrot.lane.b32.xlu2 %v6585_v15, %s8273_s18 }
 0x9e1   :  { %1200 = vrot.lane.b32.xlu0 %v6589_v17, %s8271_s23  ;;  %960 = vrot.lane.b32.xlu2 %v6585_v15, %s8269_s25  ;;  %s8286_s25 = smov 84  }
 0x9e9   :  { %996 = vrot.lane.b32.xlu2 %v6585_v15, %s8277_s22  ;;  %s8347_s22 = smov 96  }
 0x9f1   :  { %1002 = vrot.lane.b32.xlu2 %v6589_v17, %s8273_s18  ;;  %s8297_s18 = smov 116  }
 0x9f9   :  { %1099 = vrot.lane.b32.xlu2 %v6585_v15, %s8336_s29 }
 0xa01   :  { %1101 = vrot.lane.b32.xlu2 %v6589_v17, %s8336_s29 }
 0xa09   :  { %1194 = vrot.lane.b32.xlu2 %v6585_v15, %s8337_s30 }
 0xa11   :  { %1196 = vrot.lane.b32.xlu2 %v6589_v17, %s8337_s30 }
 0xa15   :  { %v902_v19 = vpop.permute.xlu1 %901 }
 0xa2b   :  { %v904_v18 = vpop.permute.xlu2 %903 }
 0xa2c   :  { %5372 = vmatpush.xpose.msk.msrb.mxu1 %vm194_vm11, %v904_v18 }
 0xa30   :  { %5373 = vmatpush.xpose.msk.msrb.mxu1 %vm194_vm11, %v902_v19 }
 0xa33   :  { %v1001_v20 = vpop.permute.xlu2 %1000  ;;  %5374 = vmatmul.msk.f32.vlgmr.msrb.gmra.mxu1 %vm194_vm11, %v6585_v15 }
 0xa3b   :  { %v961_v21 = vpop.permute.xlu2 %960  ;;  %5375 = vmatmul.msk.f32.gmra.mxu1 %vm194_vm11, %v6589_v17 }
 0xa43   :  { %v963_v34 = vpop.permute.xlu0 %962  ;;  %v997_v38 = vpop.permute.xlu2 %996 }
 0xa44   :  { %5376 = vmatpush.msk.msrb.mxu2 %vm92_vm1, %v963_v34 }
 0xa46   :  { %988 = vmatpush.msrb.mxu2 %v961_v21 }
 0xa4b   :  { %v999_v22 = vpop.permute.xlu0 %998  ;;  %v1003_v24 = vpop.permute.xlu2 %1002 }
 0xa4c   :  { %5379 = vmatpush.xpose.msk.msrb.mxu3 %vm194_vm11, %v1003_v24 }
 0xa50   :  { %5380 = vmatpush.xpose.msk.msrb.mxu3 %vm194_vm11, %v1001_v20 }
 0xa53   :  { %v1201_v37 = vpop.permute.xlu0 %1200  ;;  %5381 = vmatmul.msk.f32.vlgmr.msrb.gmra.mxu3 %vm194_vm11, %v997_v38  ;;  %v1100_v39 = vpop.permute.xlu2 %1099 }
 0xa54   :  { %5393 = vmatpush.xpose.msk.msra.mxu3 %vm194_vm11, %v1201_v37 }
 0xa5b   :  { %5382 = vmatmul.msk.f32.gmra.mxu3 %vm194_vm11, %v999_v22  ;;  %v1102_v51 = vpop.permute.xlu2 %1101 }
 0xa5c   :  { %5386 = vmatpush.xpose.msk.msra.mxu2 %vm194_vm11, %v1102_v51 }
 0xa60   :  { %5387 = vmatpush.xpose.msk.msra.mxu2 %vm194_vm11, %v1100_v39 }
 0xa63   :  { %v1195_v8 = vpop.permute.xlu2 %1194 }
 0xa6b   :  { %v1197_v14 = vpop.permute.xlu2 %1196 }
 0xab0   :  { %v930_v53 = vpop.f32.mrf.mxu1 }
 0xab1   :  { %v936_v25 = vmul.f32 0.35355338, %v930_v53 }
 0xab3   :  { %v938_v26 = vsel %vm228_vm12, %v936_v25, -inf }
 0xab4   :  { %939 = vmax.xlane.f32.xlu0 %v938_v26 }
 0xab8   :  { %v933_v27 = vpop.f32.mrf.mxu1 }
 0xab9   :  { %v937_v28 = vmul.f32 0.35355338, %v933_v27 }
 0xabb   :  { %v941_v11 = vsel %vm232_vm13, %v937_v28, -inf }
 0xabc   :  { %942 = vmax.xlane.f32.xlu0 %v941_v11 }
 0xad0   :  { %1198 = vrot.lane.b32.xlu0 %v6585_v15, %s8271_s23  ;;  %s8348_s23 = smov 88  }
 0xad6   :  { %v1029_v29 = vpop.f32.mrf.mxu3 }
 0xad7   :  { %v1035_v58 = vmul.f32 0.35355338, %v1029_v29 }
 0xad9   :  { %v1037_v60 = vsel %vm228_vm12, %v1035_v58, -inf }
 0xade   :  { %v1032_v30 = vpop.f32.mrf.mxu3 }
 0xadf   :  { %v1036_v43 = vmul.f32 0.35355338, %v1032_v30 }
 0xae1   :  { %v1040_v44 = vsel %vm232_vm13, %v1036_v43, -inf }
 0xae2   :  { %1041 = vmax.xlane.f32.xlu2 %v1040_v44 }
 0xb27   :  { %v940_v45 = vpop.xlane.xlu0 %939 }
 0xb28   :  { %v944_v46 = vsub.f32 %v936_v25, %v940_v45 }
 0xb2a   :  { %v946_v47 = vmul.f32 1.442695, %v944_v46 }
 0xb2c   :  { %5822 = vpow2.f32 %v946_v47 }
 0xb2f   :  { %v943_v48 = vpop.xlane.xlu0 %942 }
 0xb30   :  { %v945_v49 = vsub.f32 %v937_v28, %v943_v48 }
 0xb32   :  { %v5823_v52 = vpop.eup %5822  ;;  %v948_v54 = vmul.f32 1.442695, %v945_v49 }
 0xb33   :  { %v950_v55 = vsel %vm228_vm12, %v5823_v52, 0.0 }
 0xb34   :  { %5824 = vpow2.f32 %v948_v54  ;;  %951 = vadd.xlane.f32.xlu0 %v950_v55 }
 0xb3a   :  { %v5825_v56 = vpop.eup %5824 }
 0xb3b   :  { %v953_v57 = vsel %vm232_vm13, %v5825_v56, 0.0 }
 0xb3c   :  { %954 = vadd.xlane.f32.xlu1 %v953_v57 }
 0xb42   :  { %v1199_v59 = vpop.permute.xlu0 %1198 }
 0xb43   :  { %5394 = vmatpush.xpose.msk.msra.mxu3 %vm194_vm11, %v1199_v59 }
 0xb46   :  { %5395 = vmatmul.msk.f32.vlgmr.msra.gmra.mxu3 %vm194_vm11, %v1195_v8 }
 0xb48   :  { %1097 = vrot.lane.b32.xlu0 %v6589_v17, %s8338_s21 }
 0xb4e   :  { %5396 = vmatmul.msk.f32.gmra.mxu3 %vm194_vm11, %v1197_v14 }
 0xb55   :  { %1095 = vrot.lane.b32.xlu1 %v6585_v15, %s8338_s21  ;;  %v1042_v3 = vpop.xlane.xlu2 %1041 }
 0xb56   :  { %v1044_v7 = vsub.f32 %v1036_v43, %v1042_v3 }
 0xb58   :  { %v1047_v12 = vmul.f32 1.442695, %v1044_v7 }
 0xb72   :  { %1038 = vmax.xlane.f32.xlu0 %v1037_v60 }
 0xba7   :  { %v952_v61 = vpop.xlane.xlu0 %951 }
 0xba8   :  { %5826 = vrcp.f32 %v952_v61 }
 0xbae   :  { %v5827_v62 = vpop.eup %5826 }
 0xbaf   :  { %v958_v13 = vmul.f32 %v5827_v62, %v5823_v52  ;;  %v955_v63 = vpop.xlane.xlu1 %954 }
 0xbb0   :  { %5828 = vrcp.f32 %v955_v63 }
 0xbb1   :  { %5377 = vmatmul.msk.f32.vlgmr.msrb.gmra.mxu2 %vm228_vm12, %v958_v13  ;;  %5830 = vpow2.f32 %v1047_v12 }
 0xbb6   :  { %v5829_v0 = vpop.eup %5828 }
 0xbb7   :  { %v959_v1 = vmul.f32 %v5829_v0, %v5825_v56  ;;  %v6653_v21 = vpop.eup %5830 }
 0xbb8   :  { %v1052_v34 = vsel %vm232_vm13, %v6653_v21, 0.0 }
 0xbb9   :  { %5378 = vmatmul.msk.f32.gmra.mxu2 %vm228_vm12, %v959_v1 }
 0xbba   :  { %v1098_v16 = vpop.permute.xlu0 %1097 }
 0xbc7   :  { %v1096_v2 = vpop.permute.xlu1 %1095 }
 0xbc8   :  { %5388 = vmatmul.msk.f32.vlgmr.msra.gmra.mxu2 %vm194_vm11, %v1096_v2 }
 0xbc9   :  { %v1227_v5 = vpop.f32.mrf.mxu3 }
 0xbca   :  { %v1233_v6 = vmul.f32 0.35355338, %v1227_v5 }
 0xbcc   :  { %v1235_v10 = vsel %vm228_vm12, %v1233_v6, -inf }
 0xbcd   :  { %1236 = vmax.xlane.f32.xlu0 %v1235_v10 }
 0xbd0   :  { %5389 = vmatmul.msk.f32.gmra.mxu2 %vm194_vm11, %v1098_v16 }
 0xbd1   :  { %v1230_v18 = vpop.f32.mrf.mxu3 }
 0xbd2   :  { %v6649_v19 = vmul.f32 0.35355338, %v1230_v18 }
 0xbd4   :  { %v1238_v20 = vsel %vm232_vm13, %v6649_v19, -inf }
 0xbd5   :  { %1239 = vmax.xlane.f32.xlu0 %v1238_v20 }
 0xbdd   :  { %1053 = vadd.xlane.f32.xlu0 %v1052_v34 }
 0xbe5   :  { %v1039_v38 = vpop.xlane.xlu0 %1038 }
 0xbe6   :  { %v1043_v22 = vsub.f32 %v1035_v58, %v1039_v38 }
 0xbe8   :  { %v1045_v24 = vmul.f32 1.442695, %v1043_v22 }
 0xbea   :  { %5832 = vpow2.f32 %v1045_v24 }
 0xbf0   :  { %v5833_v37 = vpop.eup %5832 }
 0xbf1   :  { %v1049_v39 = vsel %vm228_vm12, %v5833_v37, 0.0 }
 0xbf2   :  { %1050 = vadd.xlane.f32.xlu2 %v1049_v39 }
 0xc0a   :  { %1059 = vrot.lane.b32.xlu2 %v6585_v15, %s8339_s24 }
 0xc34   :  { %v6660_v51 = vpop.f32.mrf.mxu2 }
 0xc3c   :  { %v6662_v26 = vpop.f32.mrf.mxu2 }
 0xc40   :  { %v1237_v53 = vpop.xlane.xlu0 %1236 }
 0xc41   :  { %v1241_v25 = vsub.f32 %v1233_v6, %v1237_v53 }
 0xc43   :  { %v1243_v27 = vmul.f32 1.442695, %v1241_v25 }
 0xc45   :  { %5834 = vpow2.f32 %v1243_v27 }
 0xc48   :  { %v1240_v8 = vpop.xlane.xlu0 %1239 }
 0xc49   :  { %v1242_v5 = vsub.f32 %v6649_v19, %v1240_v8 }
 0xc4b   :  { %v5835_v28 = vpop.eup %5834  ;;  %v1128_v11 = vpop.f32.mrf.mxu2  ;;  %v1245_v6 = vmul.f32 1.442695, %v1242_v5  ;;  %v5402_v5 = vld [vmem:[%s8236_s5 + $0x20] sm:$0xff] }
 0xc4c   :  { %v1134_v29 = vmul.f32 0.35355338, %v1128_v11  ;;  %v1247_v30 = vsel %vm228_vm12, %v5835_v28, 0.0 }
 0xc4d   :  { %1248 = vadd.xlane.f32.xlu0 %v1247_v30 }
 0xc4e   :  { %v1136_v43 = vsel %vm228_vm12, %v1134_v29, -inf }
 0xc4f   :  { %1137 = vmax.xlane.f32.xlu1 %v1136_v43 }
 0xc50   :  { %v1054_v32 = vpop.xlane.xlu0 %1053 }
 0xc53   :  { %v1131_v44 = vpop.f32.mrf.mxu2 }
 0xc54   :  { %v1135_v45 = vmul.f32 0.35355338, %v1131_v44 }
 0xc56   :  { %v1139_v46 = vsel %vm232_vm13, %v1135_v45, -inf }
 0xc57   :  { %1140 = vmax.xlane.f32.xlu2 %v1139_v46 }
 0xc65   :  { %v1051_v47 = vpop.xlane.xlu2 %1050 }
 0xc68   :  { %1061 = vrot.lane.b32.xlu1 %v6589_v17, %s8339_s24 }
 0xc6d   :  { %v1060_v48 = vpop.permute.xlu2 %1059 }
 0xc6f   :  { %1259 = vrot.lane.b32.xlu2 %v6589_v17, %s8340_s0 }
 0xc77   :  { %1158 = vrot.lane.b32.xlu2 %v6585_v15, %s8341_s17 }
 0xc7f   :  { %1257 = vrot.lane.b32.xlu2 %v6585_v15, %s8340_s0 }
 0xc87   :  { %5681 = vrot.lane.b32.xlu2 %v5680_v33, %s8342_s19 }
 0xcc0   :  { %v1249_v13 = vpop.xlane.xlu0 %1248 }
 0xcc2   :  { %v1138_v49 = vpop.xlane.xlu1 %1137 }
 0xcc3   :  { %v1142_v52 = vsub.f32 %v1134_v29, %v1138_v49 }
 0xcc5   :  { %v1144_v54 = vmul.f32 1.442695, %v1142_v52 }
 0xcc7   :  { %5836 = vpow2.f32 %v1144_v54 }
 0xcca   :  { %v1141_v55 = vpop.xlane.xlu2 %1140 }
 0xccb   :  { %v1143_v56 = vsub.f32 %v1135_v45, %v1141_v55 }
 0xccd   :  { %v5837_v57 = vpop.eup %5836  ;;  %v1146_v59 = vmul.f32 1.442695, %v1143_v56 }
 0xcce   :  { %v1148_v14 = vsel %vm228_vm12, %v5837_v57, 0.0 }
 0xccf   :  { %5838 = vpow2.f32 %v1146_v59  ;;  %1149 = vadd.xlane.f32.xlu0 %v1148_v14 }
 0xcd0   :  { %5840 = vrcp.f32 %v1051_v47 }
 0xcd1   :  { %5842 = vrcp.f32 %v1054_v32 }
 0xcd2   :  { %v1260_v15 = vpop.permute.xlu2 %1259  ;;  %5844 = vrcp.f32 %v1249_v13 }
 0xcd3   :  { %5846 = vpow2.f32 %v1245_v6 }
 0xcd5   :  { %v5839_v58 = vpop.eup %5838 }
 0xcd6   :  { %v1151_v31 = vsel %vm232_vm13, %v5839_v58, 0.0  ;;  %v5841_v33 = vpop.eup %5840 }
 0xcd7   :  { %1152 = vadd.xlane.f32.xlu1 %v1151_v31  ;;  %v1057_v62 = vmul.f32 %v5841_v33, %v5833_v37  ;;  %v5843_v63 = vpop.eup %5842 }
 0xcd8   :  { %v1058_v1 = vmul.f32 %v5843_v63, %v6653_v21  ;;  %v5845_v2 = vpop.eup %5844 }
 0xcd9   :  { %v1255_v3 = vmul.f32 %v5845_v2, %v5835_v28  ;;  %v5847_v7 = vpop.eup %5846  ;;  %v5404_v2 = vld [vmem:[%s8236_s5 + $0x30] sm:$0xff] }
 0xcda   :  { %v1062_v60 = vpop.permute.xlu1 %1061  ;;  %v1159_v61 = vpop.permute.xlu2 %1158 }
 0xcdb   :  { %5383 = vmatpush.msk.msra.mxu1 %vm92_vm1, %v1062_v60 }
 0xcdd   :  { %1087 = vmatpush.msra.mxu1 %v1060_v48 }
 0xcde   :  { %5384 = vmatmul.msk.f32.vlgmr.msra.gmra.mxu1 %vm228_vm12, %v1057_v62 }
 0xcdf   :  { %5397 = vmatpush.msk.msrb.mxu1 %vm92_vm1, %v1260_v15 }
 0xce2   :  { %v1258_v0 = vpop.permute.xlu2 %1257 }
 0xce3   :  { %1285 = vmatpush.msrb.mxu1 %v1258_v0  ;;  %1160 = vrot.lane.b32.xlu0 %v6589_v17, %s8341_s17  ;;  %v1250_v17 = vsel %vm232_vm13, %v5847_v7, 0.0  ;;  %s8301_s17 = smov 124  }
 0xce6   :  { %5385 = vmatmul.msk.f32.gmra.mxu1 %vm228_vm12, %v1058_v1  ;;  %v5405_v1 = vld [vmem:[%s8236_s5 + $0x38] sm:$0xff] }
 0xcea   :  { %v5682_v21 = vpop.permute.xlu2 %5681 }
 0xceb   :  { %v5684_v38 = vunpack.i.h.bf16 %v5682_v21  ;;  %v5683_v22 = vunpack.i.l.bf16 %v5682_v21  ;;  %v1420_v21 = vperm.slane %v6577_v50, 3 }
 0xced   :  { %1357 = vmatpush.msrb.mxu2 %v5683_v22  ;;  %v5423_v22 = vld [vmem:[%s8237_s6 + $0xf8] sm:$0xff] }
 0xcee   :  { %5398 = vmatmul.msk.f32.vlgmr.msrb.gmra.mxu1 %vm228_vm12, %v1255_v3  ;;  %v5403_v3 = vld [vmem:[%s8236_s5 + $0x28] sm:$0xff]  ;;  %1493 = vmatpush.msrb.mxu3 %v5423_v22  ;;  %s8303_s5 = smov 108  }
 0xcef   :  { %1358 = vmatpush.msrb.mxu2 %v5684_v38 }
 0xcf0   :  { %5686 = vrot.lane.b32.xlu1 %v5685_v42, %s8342_s19  ;;  %s8290_s19 = smov 4  }
 0xd0d   :  { %1251 = vadd.xlane.f32.xlu0 %v1250_v17 }
 0xd42   :  { %v1150_v10 = vpop.xlane.xlu0 %1149 }
 0xd43   :  { %5848 = vrcp.f32 %v1150_v10 }
 0xd49   :  { %v5849_v16 = vpop.eup %5848 }
 0xd4a   :  { %v1153_v12 = vpop.xlane.xlu1 %1152  ;;  %v1156_v20 = vmul.f32 %v5849_v16, %v5837_v57 }
 0xd4b   :  { %5850 = vrcp.f32 %v1153_v12 }
 0xd51   :  { %v5851_v41 = vpop.eup %5850 }
 0xd52   :  { %v1157_v42 = vmul.f32 %v5851_v41, %v5839_v58  ;;  %v1417_v41 = vperm.slane %v6577_v50, 2 }
 0xd55   :  { %v1161_v18 = vpop.permute.xlu0 %1160 }
 0xd56   :  { %5390 = vmatpush.msk.msra.mxu0 %vm92_vm1, %v1161_v18 }
 0xd58   :  { %1186 = vmatpush.msra.mxu0 %v1159_v61 }
 0xd59   :  { %5391 = vmatmul.msk.f32.vlgmr.msra.gmra.mxu0 %vm228_vm12, %v1156_v20 }
 0xd5a   :  { %1447 = vmatpush.msrb.mxu0 %v5405_v1 }
 0xd5b   :  { %v1089_v40 = vpop.f32.mrf.mxu1 }
 0xd5c   :  { %1295 = vrot.lane.b32.xlu2 %v1089_v40, %s8343_s26  ;;  %1448 = vmatpush.msrb.mxu0 %v5404_v2 }
 0xd5e   :  { %1449 = vmatpush.msrb.mxu0 %v5403_v3 }
 0xd60   :  { %1450 = vmatpush.msrb.mxu0 %v5402_v5 }
 0xd61   :  { %5392 = vmatmul.msk.f32.gmra.mxu0 %vm228_vm12, %v1157_v42 }
 0xd62   :  { %v5687_v27 = vpop.permute.xlu1 %5686 }
 0xd63   :  { %v1092_v19 = vpop.f32.mrf.mxu1  ;;  %v5689_v28 = vunpack.i.h.bf16 %v5687_v27  ;;  %v5688_v11 = vunpack.i.l.bf16 %v5687_v27 }
 0xd65   :  { %1359 = vmatpush.msrb.mxu2 %v5688_v11 }
 0xd67   :  { %1360 = vmatpush.msrb.mxu2 %v5689_v28 }
 0xd6b   :  { %v1287_v34 = vpop.f32.mrf.mxu1 }
 0xd6c   :  { %1311 = vrot.lane.b32.xlu2 %v1287_v34, %s8344_s27 }
 0xd80   :  { %v1252_v24 = vpop.xlane.xlu0 %1251 }
 0xd81   :  { %5852 = vrcp.f32 %v1252_v24  ;;  %v5422_v24 = vld [vmem:[%s8237_s6 + $0xf0] sm:$0xff] }
 0xd82   :  { %1494 = vmatpush.msrb.mxu3 %v5422_v24 }
 0xd87   :  { %v5853_v37 = vpop.eup %5852 }
 0xd88   :  { %v1256_v39 = vmul.f32 %v5853_v37, %v5847_v7  ;;  %v5421_v37 = vld [vmem:[%s8237_s6 + $0xe8] sm:$0xff] }
 0xd89   :  { %1495 = vmatpush.msrb.mxu3 %v5421_v37 }
 0xd8a   :  { %5399 = vmatmul.msk.f32.gmra.mxu1 %vm228_vm12, %v1256_v39 }
 0xdb6   :  { %v1296_v30 = vpop.permute.xlu2 %1295 }
 0xdb7   :  { %v1317_v44 = vsel %vm194_vm11, %v6660_v51, %v1296_v30  ;;  %v1370_v51 = vperm.slane %v6577_v50, 4 }
 0xdc6   :  { %v1312_v43 = vpop.permute.xlu2 %1311 }
 0xdd6   :  { %v1188_v53 = vpop.f32.mrf.mxu0 }
 0xdd7   :  { %1303 = vrot.lane.b32.xlu2 %v1188_v53, %s8345_s28 }
 0xdde   :  { %v1191_v25 = vpop.f32.mrf.mxu0 }
 0xddf   :  { %1297 = vrot.lane.b32.xlu2 %v1092_v19, %s8343_s26  ;;  %1305 = vrot.lane.b32.xlu0 %v1191_v25, %s8345_s28  ;;  %s8346_s28 = smov 120  }
 0xe07   :  { %v1290_v29 = vpop.f32.mrf.mxu1 }
 0xe08   :  { %1313 = vrot.lane.b32.xlu1 %v1290_v29, %s8344_s27  ;;  %s8299_s27 = smov 100  }
 0xe31   :  { %v1304_v45 = vpop.permute.xlu2 %1303 }
 0xe32   :  { %v1319_v46 = vsel %vm65_vm0, %v1317_v44, %v1304_v45 }
 0xe33   :  { %v1321_v47 = vsel %vm8285_vm14, %v1319_v46, %v1312_v43 }
 0xe34   :  { %5400 = vmatmul.msk.f32.vlgmr.msrb.gmra.mxu2 %vm99_vm2, %v1321_v47 }
 0xe39   :  { %v1298_v48 = vpop.permute.xlu2 %1297 }
 0xe3a   :  { %v1318_v52 = vsel %vm194_vm11, %v6662_v26, %v1298_v48  ;;  %v5420_v48 = vld [vmem:[%s8237_s6 + $0xe0] sm:$0xff] }
 0xe3b   :  { %1496 = vmatpush.msrb.mxu3 %v5420_v48 }
 0xe51   :  { %v1306_v49 = vpop.permute.xlu0 %1305 }
 0xe52   :  { %v1320_v54 = vsel %vm65_vm0, %v1318_v52, %v1306_v49  ;;  %v5419_v49 = vld [vmem:[%s8237_s6 + $0xd8] sm:$0xff]  ;;  %v5418_v52 = vld [vmem:[%s8237_s6 + $0xd0] sm:$0xff] }
 0xe53   :  { %1497 = vmatpush.msrb.mxu3 %v5419_v49 }
 0xe55   :  { %1498 = vmatpush.msrb.mxu3 %v5418_v52 }
 0xe7a   :  { %v1314_v55 = vpop.permute.xlu1 %1313 }
 0xe7b   :  { %v1322_v56 = vsel %vm8285_vm14, %v1320_v54, %v1314_v55  ;;  %v5417_v54 = vld [vmem:[%s8237_s6 + $0xc8] sm:$0xff]  ;;  %v5416_v55 = vld [vmem:[%s8237_s6 + $0xc0] sm:$0xff] }
 0xe7c   :  { %5401 = vmatmul.msk.f32.gmra.mxu2 %vm99_vm2, %v1322_v56  ;;  %1499 = vmatpush.msrb.mxu3 %v5417_v54  ;;  %v5415_v56 = vld [vmem:[%s8237_s6 + $0xb8] sm:$0xff] }
 0xe7e   :  { %1500 = vmatpush.msrb.mxu3 %v5416_v55 }
 0xe80   :  { %1501 = vmatpush.msrb.mxu3 %v5415_v56 }
 0xeb7   :  { %v1362_v57 = vpop.f32.mrf.mxu2 }
 0xeb8   :  { %v1368_v59 = vadd.f32 %v1362_v57, %v6530_v35  ;;  %v5413_v57 = vld [vmem:[%s8237_s6 + $0xa8] sm:$0xff] }
 0xeba   :  { %v6717_v8 = vadd.f32 %v1370_v51, %v1368_v59  ;;  %v5412_v59 = vld [vmem:[%s8237_s6 + $0xa0] sm:$0xff] }
 0xebc   :  { %v1373_v14 = vsel %vm99_vm2, %v6717_v8, 0.0 }
 0xebd   :  { %1374 = vadd.xlane.f32.xlu2 %v1373_v14  ;;  %v5411_v14 = vld [vmem:[%s8237_s6 + $0x98] sm:$0xff] }
 0xeff   :  { %v1365_v15 = vpop.f32.mrf.mxu2 }
 0xf00   :  { %v1369_v26 = vadd.f32 %v1365_v15, %v6535_v36  ;;  %v5410_v15 = vld [vmem:[%s8237_s6 + $0x90] sm:$0xff] }
 0xf02   :  { %v6722_v58 = vadd.f32 %v1370_v51, %v1369_v26  ;;  %v5414_v51 = vld [vmem:[%s8237_s6 + $0xb0] sm:$0xff]  ;;  %v5409_v26 = vld [vmem:[%s8237_s6 + $0x88] sm:$0xff] }
 0xf03   :  { %1502 = vmatpush.msrb.mxu3 %v5414_v51 }
 0xf04   :  { %v1376_v31 = vsel %vm103_vm3, %v6722_v58, 0.0 }
 0xf05   :  { %1377 = vadd.xlane.f32.xlu1 %v1376_v31  ;;  %1503 = vmatpush.msrb.mxu3 %v5413_v57  ;;  %v5408_v31 = vld [vmem:[%s8237_s6 + $0x80] sm:$0xff] }
 0xf06   :  { %v5760_v57 = vld [vmem:[%s8238_s9] ss:$0 sm:$0xff] }
 0xf07   :  { %1504 = vmatpush.msrb.mxu3 %v5412_v59 }
 0xf09   :  { %1505 = vmatpush.msrb.mxu3 %v5411_v14 }
 0xf0b   :  { %1506 = vmatpush.msrb.mxu3 %v5410_v15  ;;  %v5761_v15 = vld [vmem:[%s8238_s9 + $0x1] ss:$0 sm:$0xff] }
 0xf0d   :  { %1507 = vmatpush.msrb.mxu3 %v5409_v26 }
 0xf0f   :  { %1508 = vmatpush.msrb.mxu3 %v5408_v31 }
 0xf30   :  { %v1375_v32 = vpop.xlane.xlu2 %1374 }
 0xf31   :  { %v1379_v33 = vmul.f32 %v1375_v32, %v6263_v23  ;;  %v1428_v32 = vperm.slane %v6577_v50, 7 }
 0xf33   :  { %v1381_v35 = vsub.f32 %v6717_v8, %v1379_v33 }
 0xf35   :  { %v1383_v60 = vmul.f32 %v1381_v35, %v1381_v35 }
 0xf37   :  { %v1385_v61 = vsel %vm99_vm2, %v1383_v60, 0.0 }
 0xf38   :  { %1386 = vadd.xlane.f32.xlu0 %v1385_v61 }
 0xf78   :  { %v1378_v62 = vpop.xlane.xlu1 %1377 }
 0xf79   :  { %v1380_v13 = vmul.f32 %v1378_v62, %v6263_v23 }
 0xf7b   :  { %v1382_v36 = vsub.f32 %v6722_v58, %v1380_v13 }
 0xf7d   :  { %v1384_v63 = vmul.f32 %v1382_v36, %v1382_v36 }
 0xf7f   :  { %v1388_v0 = vsel %vm103_vm3, %v1384_v63, 0.0 }
 0xf80   :  { %1389 = vadd.xlane.f32.xlu2 %v1388_v0 }
 0xfab   :  { %v1387_v6 = vpop.xlane.xlu0 %1386 }
 0xfac   :  { %v1391_v7 = vmul.f32 %v1387_v6, %v6263_v23 }
 0xfae   :  { %v1393_v17 = vadd.f32 1e-05, %v1391_v7 }
 0xfb0   :  { %5854 = vrsqrt.f32 %v1393_v17  ;;  %vm1401_vm8 = vweird.f32 %v1393_v17 }
 0xfb6   :  { %v5855_v10 = vpop.eup %5854 }
 0xfb7   :  { %v1396_v12 = vmul.f32 %v5855_v10, %v1393_v17  ;;  %vm1402_vm7 = vweird.f32 %v5855_v10 }
 0xfb8   :  { %vm1403_vm9 = vmor %vm1401_vm8, %vm1402_vm7 }
 0xfb9   :  { %v1397_v16 = vmul.f32 %v5855_v10, %v1396_v12 }
 0xfbb   :  { %v1398_v18 = vmul.f32 0.5, %v1397_v16 }
 0xfbd   :  { %v1399_v20 = vsub.f32 1.5, %v1398_v18 }
 0xfbf   :  { %v1400_v40 = vmul.f32 %v5855_v10, %v1399_v20 }
 0xfc1   :  { %v1404_v42 = vsel %vm1403_vm9, %v5855_v10, %v1400_v40 }
 0xfc2   :  { %v1415_v19 = vmul.f32 %v1404_v42, %v1381_v35 }
 0xfc4   :  { %v1418_v34 = vmul.f32 %v1417_v41, %v1415_v19 }
 0xfc6   :  { %v1421_v38 = vadd.f32 %v1420_v21, %v1418_v34 }
 0xfc8   :  { %5406 = vmatmul.msk.f32.vlgmr.msrb.gmra.mxu0 %vm99_vm2, %v1421_v38 }
 0xff3   :  { %v1390_v39 = vpop.xlane.xlu2 %1389 }
 0xff4   :  { %v1392_v53 = vmul.f32 %v1390_v39, %v6263_v23 }
 0xff6   :  { %v1394_v25 = vadd.f32 1e-05, %v1392_v53 }
 0xff8   :  { %5856 = vrsqrt.f32 %v1394_v25  ;;  %vm1411_vm15 = vweird.f32 %v1394_v25 }
 0xffe   :  { %v5857_v27 = vpop.eup %5856 }
 0xfff   :  { %v1406_v28 = vmul.f32 %v5857_v27, %v1394_v25  ;;  %vm1412_vm10 = vweird.f32 %v5857_v27 }
0x1000   :  { %vm1413_vm4 = vmor %vm1411_vm15, %vm1412_vm10  ;;  %vm1610_vm15 = vcmask 1046528  }
0x1001   :  { %v1407_v11 = vmul.f32 %v5857_v27, %v1406_v28 }
0x1003   :  { %v1408_v29 = vmul.f32 0.5, %v1407_v11 }
0x1005   :  { %v1409_v30 = vsub.f32 1.5, %v1408_v29 }
0x1007   :  { %v1410_v43 = vmul.f32 %v5857_v27, %v1409_v30 }
0x1009   :  { %v1414_v44 = vsel %vm1413_vm4, %v5857_v27, %v1410_v43  ;;  %v1575_v43 = vld [vmem:[%s8239_s8 + $0x10] sm:$0xff]  ;;  %vm1670_vm4 = vcmask 122880  }
0x100a   :  { %v1416_v45 = vmul.f32 %v1414_v44, %v1382_v36  ;;  %v1574_v44 = vld [vmem:[%s8239_s8 + $0x8] sm:$0xff] }
0x100c   :  { %v1419_v46 = vmul.f32 %v1417_v41, %v1416_v45  ;;  %v1518_v41 = vperm.slane %v6577_v50, 5  ;;  %v1573_v45 = vld [vmem:[%s8239_s8] sm:$0xff] }
0x100e   :  { %v1422_v47 = vadd.f32 %v1420_v21, %v1419_v46 }
0x1010   :  { %5407 = vmatmul.msk.f32.gmra.mxu0 %vm99_vm2, %v1422_v47 }
0x1045   :  { %v1452_v33 = vpop.f32.mrf.mxu0 }
0x1046   :  { %v1453_v35 = vadd.f32 %v1452_v33, %v1428_v32 }
0x1048   :  { %v1458_v60 = vmul.f32 %v1453_v35, %v1453_v35 }
0x104a   :  { %v1460_v61 = vmul.f32 %v1458_v60, %v1453_v35 }
0x104c   :  { %v1462_v62 = vmul.f32 0.044715, %v1460_v61 }
0x104e   :  { %v1464_v13 = vadd.f32 %v1462_v62, %v1453_v35 }
0x1050   :  { %v1466_v36 = vmul.f32 0.7978846, %v1464_v13 }
0x1052   :  { %5858 = vtanh.f32 %v1466_v36 }
0x1058   :  { %v5859_v63 = vpop.eup %5858 }
0x1059   :  { %v1470_v0 = vadd.f32 1.0, %v5859_v63 }
0x105b   :  { %v1472_v1 = vmul.f32 0.5, %v1470_v0 }
0x105d   :  { %v1474_v2 = vmul.f32 %v1472_v1, %v1453_v35 }
0x105f   :  { %1509 = vmatmul.f32.vlgmr.msrb.gmra.mxu3 %v1474_v2 }
0x108d   :  { %v1455_v3 = vpop.f32.mrf.mxu0 }
0x108e   :  { %v1456_v5 = vadd.f32 %v1455_v3, %v1428_v32 }
0x1090   :  { %v1459_v6 = vmul.f32 %v1456_v5, %v1456_v5 }
0x1092   :  { %v1461_v7 = vmul.f32 %v1459_v6, %v1456_v5 }
0x1094   :  { %v1463_v17 = vmul.f32 0.044715, %v1461_v7  ;;  %v5762_v7 = vld [vmem:[%s8238_s9 + $0x2] ss:$0 sm:$0xff]  ;;  %s8367_s9 = smov 116  }
0x1096   :  { %v1465_v10 = vadd.f32 %v1463_v17, %v1456_v5 }
0x1098   :  { %v1467_v12 = vmul.f32 0.7978846, %v1465_v10 }
0x109a   :  { %5860 = vtanh.f32 %v1467_v12 }
0x10a0   :  { %v5861_v16 = vpop.eup %5860 }
0x10a1   :  { %v1471_v18 = vadd.f32 1.0, %v5861_v16 }
0x10a3   :  { %v1473_v20 = vmul.f32 0.5, %v1471_v18 }
0x10a5   :  { %v1475_v40 = vmul.f32 %v1473_v20, %v1456_v5  ;;  %v59_v5 = vld [vmem:[%s8232_s3 + $0x22] sm:$0x1] }
0x10a6   :  { %5426 = vmatpush.msk.msra.mxu2 %vm92_vm1, %v59_v5  ;;  %v1615_v20 = vld [vmem:[%s8240_s2] sm:$0xff] }
0x10a7   :  { %1512 = vmatmul.f32.gmra.mxu3 %v1475_v40 }
0x10e2   :  { %v1510_v42 = vpop.f32.mrf.mxu3 }
0x10e3   :  { %v1516_v19 = vadd.f32 %v1510_v42, %v6717_v8 }
0x10e5   :  { %v1519_v21 = vadd.f32 %v1518_v41, %v1516_v19 }
0x10e7   :  { %v1523_v34 = vsel %vm99_vm2, %v1519_v21, 0.0 }
0x10e8   :  { %1524 = vadd.xlane.f32.xlu1 %v1523_v34 }
0x112a   :  { %v1513_v38 = vpop.f32.mrf.mxu3 }
0x112b   :  { %v1517_v22 = vadd.f32 %v1513_v38, %v6722_v58  ;;  %v1576_v58 = vld [vmem:[%s8239_s8 + $0x18] sm:$0xff] }
0x112c   :  { %1597 = vmatpush.msra.mxu1 %v1576_v58 }
0x112d   :  { %v1520_v24 = vadd.f32 %v1518_v41, %v1517_v22  ;;  %v1616_v41 = vld [vmem:[%s8240_s2 + $0x8] sm:$0xff]  ;;  %s8366_s2 = smov 100  }
0x112e   :  { %1598 = vmatpush.msra.mxu1 %v1575_v43 }
0x112f   :  { %v1526_v37 = vsel %vm103_vm3, %v1520_v24, 0.0 }
0x1130   :  { %1527 = vadd.xlane.f32.xlu2 %v1526_v37  ;;  %1599 = vmatpush.msra.mxu1 %v1574_v44 }
0x1132   :  { %1600 = vmatpush.msra.mxu1 %v1573_v45 }
0x115b   :  { %v1525_v39 = vpop.xlane.xlu1 %1524 }
0x115c   :  { %v1529_v53 = vmul.f32 %v1525_v39, %v6263_v23 }
0x115e   :  { %v1531_v25 = vsub.f32 %v1519_v21, %v1529_v53  ;;  %v56_v21 = vld [vmem:[%s8232_s3 + $0x11] sm:$0xff]  ;;  %v57_v53 = vld [vmem:[%s8232_s3 + $0x19] sm:$0xff] }
0x1160   :  { %v1533_v27 = vmul.f32 %v1531_v25, %v1531_v25 }
0x1162   :  { %v1535_v50 = vsel %vm99_vm2, %v1533_v27, 0.0 }
0x1163   :  { %1536 = vadd.xlane.f32.xlu0 %v1535_v50 }
0x11a3   :  { %v1528_v8 = vpop.xlane.xlu2 %1527 }
0x11a4   :  { %v1530_v28 = vmul.f32 %v1528_v8, %v6263_v23 }
0x11a6   :  { %v1532_v11 = vsub.f32 %v1520_v24, %v1530_v28  ;;  %v58_v24 = vld [vmem:[%s8232_s3 + $0x21] sm:$0x1] }
0x11a8   :  { %v1534_v29 = vmul.f32 %v1532_v11, %v1532_v11 }
0x11aa   :  { %v1538_v30 = vsel %vm103_vm3, %v1534_v29, 0.0 }
0x11ab   :  { %1539 = vadd.xlane.f32.xlu1 %v1538_v30 }
0x11d6   :  { %v1537_v46 = vpop.xlane.xlu0 %1536 }
0x11d7   :  { %v1541_v47 = vmul.f32 %v1537_v46, %v6263_v23 }
0x11d9   :  { %v1543_v48 = vadd.f32 1e-05, %v1541_v47 }
0x11db   :  { %5862 = vrsqrt.f32 %v1543_v48  ;;  %vm1551_vm6 = vweird.f32 %v1543_v48 }
0x11e1   :  { %v5863_v49 = vpop.eup %5862 }
0x11e2   :  { %v1546_v52 = vmul.f32 %v5863_v49, %v1543_v48  ;;  %vm1552_vm5 = vweird.f32 %v5863_v49 }
0x11e3   :  { %vm1553_vm7 = vmor %vm1551_vm6, %vm1552_vm5 }
0x11e4   :  { %v1547_v54 = vmul.f32 %v5863_v49, %v1546_v52 }
0x11e6   :  { %v1548_v55 = vmul.f32 0.5, %v1547_v54 }
0x11e8   :  { %v1549_v56 = vsub.f32 1.5, %v1548_v55 }
0x11ea   :  { %v1550_v51 = vmul.f32 %v5863_v49, %v1549_v56 }
0x11ec   :  { %v1554_v59 = vsel %vm1553_vm7, %v5863_v49, %v1550_v51 }
0x11ed   :  { %v1565_v14 = vmul.f32 %v1554_v59, %v1531_v25 }
0x11ef   :  { %v1568_v26 = vmul.f32 %v5760_v57, %v1565_v14 }
0x11f1   :  { %v1571_v31 = vadd.f32 %v5761_v15, %v1568_v26 }
0x11f3   :  { %5424 = vmatmul.msk.f32.vlgmr.msra.gmra.mxu1 %vm99_vm2, %v1571_v31 }
0x121e   :  { %v1540_v32 = vpop.xlane.xlu1 %1539 }
0x121f   :  { %v1542_v33 = vmul.f32 %v1540_v32, %v6263_v23  ;;  %v6887_v32 = vld [vmem:[%s8241_s10 + $0x8] sm:$0xff] }
0x1220   :  { %1770 = vmatpush.msra.mxu0 %v6887_v32 }
0x1221   :  { %v1544_v35 = vadd.f32 1e-05, %v1542_v33  ;;  %v6893_v33 = vld [vmem:[%s8241_s10] sm:$0xff]  ;;  %s8365_s10 = smov 124  }
0x1222   :  { %1771 = vmatpush.msra.mxu0 %v6893_v33 }
0x1223   :  { %5864 = vrsqrt.f32 %v1544_v35  ;;  %vm1561_vm9 = vweird.f32 %v1544_v35 }
0x1229   :  { %v5865_v60 = vpop.eup %5864 }
0x122a   :  { %v1556_v61 = vmul.f32 %v5865_v60, %v1544_v35  ;;  %vm1562_vm8 = vweird.f32 %v5865_v60  ;;  %v5710_v35 = vpack.i.bf16 %v6893_v33, %v6887_v32 }
0x122b   :  { %vm1563_vm10 = vmor %vm1561_vm9, %vm1562_vm8 }
0x122c   :  { %v1557_v62 = vmul.f32 %v5865_v60, %v1556_v61 }
0x122e   :  { %v1558_v13 = vmul.f32 0.5, %v1557_v62 }
0x1230   :  { %v1559_v36 = vsub.f32 1.5, %v1558_v13 }
0x1232   :  { %v1560_v63 = vmul.f32 %v5865_v60, %v1559_v36 }
0x1234   :  { %v1564_v0 = vsel %vm1563_vm10, %v5865_v60, %v1560_v63 }
0x1235   :  { %v1566_v1 = vmul.f32 %v1564_v0, %v1532_v11  ;;  %v6130_v11 = vmov 16.0  }
0x1236   :  { %5866 = vrcp.f32 %v6130_v11 }
0x1237   :  { %v1569_v2 = vmul.f32 %v5760_v57, %v1566_v1 }
0x1239   :  { %v1572_v3 = vadd.f32 %v5761_v15, %v1569_v2 }
0x123b   :  { %5425 = vmatmul.msk.f32.gmra.mxu1 %vm99_vm2, %v1572_v3 }
0x123c   :  { %v5867_v29 = vpop.eup %5866 }
0x123d   :  { %v1675_v30 = vmul.f32 16.0, %v5867_v29  ;;  %vm1679_vm5 = vweird.f32 %v5867_v29 }
0x123f   :  { %v1676_v58 = vsub.f32 1.0, %v1675_v30 }
0x1241   :  { %v1677_v43 = vmul.f32 %v5867_v29, %v1676_v58 }
0x1243   :  { %v1678_v44 = vadd.f32 %v5867_v29, %v1677_v43 }
0x1245   :  { %v6869_v45 = vsel %vm1679_vm5, %v5867_v29, %v1678_v44 }
0x1270   :  { %v1602_v6 = vpop.f32.mrf.mxu1 }
0x1271   :  { %v1603_v17 = vadd.f32 %v5762_v7, %v1602_v6 }
0x1273   :  { %v1611_v16 = vrot.slane %v1603_v17, 1 }
0x12b8   :  { %v1605_v10 = vpop.f32.mrf.mxu1 }
0x12b9   :  { %v1606_v12 = vadd.f32 %v5762_v7, %v1605_v10  ;;  %v6904_v10 = vld [vmem:[%s8242_s13] sm:$0xff] }
0x12bb   :  { %v1612_v18 = vrot.slane %v1606_v12, 1 }
0x12bd   :  { %v1613_v40 = vsel %vm1610_vm15, %v1611_v16, %v1612_v18 }
0x12be   :  { %1641 = vmatpush.msra.mxu2 %v1613_v40 }
0x12bf   :  { %5427 = vmatmul.msk.f32.vlgmr.msra.gmra.mxu2 %vm228_vm12, %v1615_v20 }
0x12c7   :  { %5428 = vmatmul.msk.f32.gmra.mxu2 %vm228_vm12, %v1616_v41  ;;  %v1738_v41 = vperm.slane %v6904_v10, 0 }
0x1342   :  { %v1643_v42 = vpop.f32.mrf.mxu2 }
0x1343   :  { %v1651_v19 = vrot.slane %v1643_v42, 7 }
0x1345   :  { %v1657_v34 = vsel %vm92_vm1, %v1603_v17, %v1651_v19 }
0x1346   :  { %v6850_v38 = vadd.f32 %v1657_v34, %v56_v21 }
0x1348   :  { %v1664_v22 = vsel %vm65_vm0, %v6850_v38, 0.0 }
0x1349   :  { %1665 = vadd.xlane.f32.xlu2 %v1664_v22 }
0x134a   :  { %v1646_v37 = vpop.f32.mrf.mxu2 }
0x134b   :  { %v1652_v39 = vrot.slane %v1646_v37, 7 }
0x134d   :  { %v6860_v25 = vadd.f32 %v1652_v39, %v58_v24  ;;  %v1653_v27 = vsel %vm92_vm1, %v1651_v19, %v1652_v39  ;;  %v1742_v24 = vperm.slane %v6904_v10, 1 }
0x134e   :  { %v6863_v50 = vadd.f32 %v1653_v27, %v57_v53 }
0x134f   :  { %v1671_v8 = vsel %vm1670_vm4, %v6860_v25, 0.0 }
0x1350   :  { %1672 = vadd.xlane.f32.xlu1 %v1671_v8  ;;  %v1667_v28 = vsel %vm65_vm0, %v6863_v50, 0.0 }
0x1351   :  { %1668 = vadd.xlane.f32.xlu0 %v1667_v28 }
0x13bc   :  { %v1666_v46 = vpop.xlane.xlu2 %1665 }
0x13bd   :  { %v1681_v47 = vmul.f32 %v6869_v45, %v1666_v46 }
0x13bf   :  { %v1684_v48 = vsub.f32 %v6850_v38, %v1681_v47 }
0x13c1   :  { %v1687_v49 = vmul.f32 %v1684_v48, %v1684_v48 }
0x13c3   :  { %v1673_v52 = vpop.xlane.xlu1 %1672  ;;  %v1690_v54 = vsel %vm65_vm0, %v1687_v49, 0.0 }
0x13c4   :  { %v1683_v55 = vmul.f32 %v6869_v45, %v1673_v52  ;;  %1691 = vadd.xlane.f32.xlu2 %v1690_v54  ;;  %v1669_v56 = vpop.xlane.xlu0 %1668  ;;  %v1746_v52 = vperm.slane %v6904_v10, 6 }
0x13c5   :  { %v1682_v51 = vmul.f32 %v6869_v45, %v1669_v56 }
0x13c6   :  { %v6877_v57 = vsub.f32 %v6860_v25, %v1683_v55 }
0x13c7   :  { %v1685_v59 = vsub.f32 %v6863_v50, %v1682_v51 }
0x13c8   :  { %v1689_v14 = vmul.f32 %v6877_v57, %v6877_v57 }
0x13c9   :  { %v1688_v15 = vmul.f32 %v1685_v59, %v1685_v59 }
0x13ca   :  { %v1696_v26 = vsel %vm1670_vm4, %v1689_v14, 0.0 }
0x13cb   :  { %1697 = vadd.xlane.f32.xlu1 %v1696_v26  ;;  %v1693_v31 = vsel %vm65_vm0, %v1688_v15, 0.0 }
0x13cc   :  { %1694 = vadd.xlane.f32.xlu0 %v1693_v31 }
0x1437   :  { %v1692_v60 = vpop.xlane.xlu2 %1691 }
0x1438   :  { %v1699_v61 = vmul.f32 %v1692_v60, %v6869_v45 }
0x143a   :  { %v1702_v62 = vadd.f32 1e-05, %v1699_v61 }
0x143c   :  { %5868 = vrsqrt.f32 %v1702_v62  ;;  %vm1711_vm7 = vweird.f32 %v1702_v62 }
0x143e   :  { %v1698_v13 = vpop.xlane.xlu1 %1697 }
0x143f   :  { %v1701_v36 = vmul.f32 %v1698_v13, %v6869_v45  ;;  %v1695_v63 = vpop.xlane.xlu0 %1694 }
0x1440   :  { %v1700_v0 = vmul.f32 %v1695_v63, %v6869_v45 }
0x1441   :  { %v1704_v1 = vadd.f32 1e-05, %v1701_v36 }
0x1442   :  { %v5869_v2 = vpop.eup %5868  ;;  %v1703_v3 = vadd.f32 1e-05, %v1700_v0 }
0x1443   :  { %v1706_v5 = vmul.f32 %v5869_v2, %v1702_v62  ;;  %5870 = vrsqrt.f32 %v1704_v1  ;;  %vm1712_vm6 = vweird.f32 %v5869_v2 }
0x1444   :  { %5872 = vrsqrt.f32 %v1703_v3  ;;  %vm1713_vm8 = vmor %vm1711_vm7, %vm1712_vm6  ;;  %vm1721_vm5 = vweird.f32 %v1703_v3  ;;  %vm1731_vm6 = vweird.f32 %v1704_v1 }
0x1445   :  { %v1707_v6 = vmul.f32 %v5869_v2, %v1706_v5 }
0x1447   :  { %v1708_v7 = vmul.f32 0.5, %v1707_v6 }
0x1449   :  { %v5871_v17 = vpop.eup %5870  ;;  %v1709_v12 = vsub.f32 1.5, %v1708_v7 }
0x144a   :  { %v5873_v16 = vpop.eup %5872  ;;  %v1726_v18 = vmul.f32 %v5871_v17, %v1704_v1  ;;  %vm1732_vm10 = vweird.f32 %v5871_v17 }
0x144b   :  { %v1710_v20 = vmul.f32 %v5869_v2, %v1709_v12  ;;  %v1716_v40 = vmul.f32 %v5873_v16, %v1703_v3  ;;  %vm1722_vm9 = vweird.f32 %v5873_v16  ;;  %vm1733_vm7 = vmor %vm1731_vm6, %vm1732_vm10  ;;  %vm8294_vm10 = vcmask 97280  }
0x144c   :  { %v1727_v42 = vmul.f32 %v5871_v17, %v1726_v18  ;;  %vm1723_vm14 = vmor %vm1721_vm5, %vm1722_vm9  ;;  %vm8295_vm9 = vcmask 131072  }
0x144d   :  { %v1714_v19 = vsel %vm1713_vm8, %v5869_v2, %v1710_v20  ;;  %v1717_v21 = vmul.f32 %v5873_v16, %v1716_v40  ;;  %vm8296_vm8 = vcmask 138240  }
0x144e   :  { %v1735_v34 = vmul.f32 %v1714_v19, %v1684_v48  ;;  %v1728_v22 = vmul.f32 0.5, %v1727_v42 }
0x144f   :  { %v1718_v37 = vmul.f32 0.5, %v1717_v21 }
0x1450   :  { %v1739_v39 = vmul.f32 %v1738_v41, %v1735_v34  ;;  %v1729_v53 = vsub.f32 1.5, %v1728_v22 }
0x1451   :  { %v1719_v27 = vsub.f32 1.5, %v1718_v37 }
0x1452   :  { %v1743_v8 = vadd.f32 %v1742_v24, %v1739_v39  ;;  %v1730_v28 = vmul.f32 %v5871_v17, %v1729_v53 }
0x1453   :  { %v1720_v11 = vmul.f32 %v5873_v16, %v1719_v27 }
0x1454   :  { %5429 = vmatmul.msk.f32.vlgmr.msra.gmra.mxu0 %vm65_vm0, %v1743_v8  ;;  %v1734_v58 = vsel %vm1733_vm7, %v5871_v17, %v1730_v28 }
0x1455   :  { %v1724_v29 = vsel %vm1723_vm14, %v5873_v16, %v1720_v11  ;;  %v1737_v46 = vmul.f32 %v1734_v58, %v6877_v57  ;;  %vm1791_vm14 = vcmask 31744  }
0x1456   :  { %v1736_v30 = vmul.f32 %v1724_v29, %v1685_v59 }
0x1457   :  { %v1741_v47 = vmul.f32 %v1738_v41, %v1737_v46 }
0x1458   :  { %v1740_v43 = vmul.f32 %v1738_v41, %v1736_v30 }
0x1459   :  { %v1745_v48 = vadd.f32 %v1742_v24, %v1741_v47 }
0x145a   :  { %v1744_v44 = vadd.f32 %v1742_v24, %v1740_v43 }
0x145c   :  { %5430 = vmatmul.msk.f32.gmra.mxu0 %vm65_vm0, %v1744_v44 }
0x1464   :  { %5431 = vmatmul.msk.f32.gmra.mxu0 %vm65_vm0, %v1745_v48 }
0x14d1   :  { %v1773_v49 = vpop.f32.mrf.mxu0 }
0x14d2   :  { %v1774_v59 = vadd.f32 %v1773_v49, %v1746_v52 }
0x14d9   :  { %v1776_v54 = vpop.f32.mrf.mxu0 }
0x14da   :  { %v1777_v55 = vadd.f32 %v1776_v54, %v1746_v52 }
0x14dc   :  { %1787 = vrot.lane.b32.xlu1 %v1777_v55, %s8338_s21  ;;  %v6945_v57 = vpack.i.bf16 %v1774_v59, %v1777_v55 }
0x14e1   :  { %v1779_v56 = vpop.f32.mrf.mxu0 }
0x14e2   :  { %v6914_v51 = vadd.f32 %v1779_v56, %v1746_v52 }
0x14e4   :  { %1923 = vrot.lane.b32.xlu0 %v6914_v51, %s8303_s5  ;;  %1789 = vrot.lane.b32.xlu2 %v6914_v51, %s8338_s21 }
0x14e5   :  { %1919 = vrot.lane.b32.xlu1 %v1774_v59, %s8303_s5 }
0x14ec   :  { %1785 = vrot.lane.b32.xlu0 %v1774_v59, %s8338_s21  ;;  %1921 = vrot.lane.b32.xlu2 %v1777_v55, %s8303_s5  ;;  %s8349_s5 = smov 72  }
0x14ed   :  { %2054 = vrot.lane.b32.xlu1 %v6914_v51, %s8337_s30 }
0x14f4   :  { %1915 = vrot.lane.b32.xlu0 %v1777_v55, %s8301_s17  ;;  %1913 = vrot.lane.b32.xlu2 %v1774_v59, %s8301_s17 }
0x14f5   :  { %2052 = vrot.lane.b32.xlu1 %v1777_v55, %s8337_s30 }
0x14fc   :  { %2050 = vrot.lane.b32.xlu0 %v1774_v59, %s8337_s30  ;;  %2185 = vrot.lane.b32.xlu2 %v6914_v51, %s8299_s27 }
0x14fd   :  { %2181 = vrot.lane.b32.xlu1 %v1774_v59, %s8299_s27 }
0x1504   :  { %1917 = vrot.lane.b32.xlu0 %v6914_v51, %s8301_s17  ;;  %2183 = vrot.lane.b32.xlu2 %v1777_v55, %s8299_s27  ;;  %s8352_s27 = smov 32   ;;  %s8354_s17 = smov 24  }
0x1505   :  { %2046 = vrot.lane.b32.xlu1 %v1777_v55, %s8346_s28 }
0x150c   :  { %2175 = vrot.lane.b32.xlu0 %v1774_v59, %s8297_s18  ;;  %2044 = vrot.lane.b32.xlu2 %v1774_v59, %s8346_s28 }
0x150d   :  { %2179 = vrot.lane.b32.xlu1 %v6914_v51, %s8297_s18 }
0x1514   :  { %2048 = vrot.lane.b32.xlu0 %v6914_v51, %s8346_s28  ;;  %2177 = vrot.lane.b32.xlu2 %v1777_v55, %s8297_s18  ;;  %s8353_s18 = smov 16  }
0x1515   :  { %2003 = vrot.lane.b32.xlu1 %v6914_v51, %s8292_s20 }
0x151c   :  { %5691 = vrot.lane.b32.xlu0 %v6945_v57, %s8347_s22  ;;  %5696 = vrot.lane.b32.xlu2 %v6945_v57, %s8292_s20  ;;  %s8361_s20 = sld [smem:[#allocation5_spill]] }
0x1524   :  { %1872 = vrot.lane.b32.xlu2 %v6914_v51, %s8347_s22 }
0x153e   :  { %v1790_v14 = vpop.permute.xlu2 %1789 }
0x153f   :  { %5432 = vmatpush.xpose.msk.msrb.mxu1 %vm1791_vm14, %v1790_v14 }
0x1546   :  { %v1922_v15 = vpop.permute.xlu2 %1921 }
0x154e   :  { %v1914_v26 = vpop.permute.xlu2 %1913  ;;  %v1788_v31 = vpop.permute.xlu1 %1787 }
0x154f   :  { %5433 = vmatpush.xpose.msk.msrb.mxu1 %vm1791_vm14, %v1788_v31 }
0x1556   :  { %v1924_v60 = vpop.permute.xlu0 %1923  ;;  %v2186_v61 = vpop.permute.xlu2 %2185 }
0x1557   :  { %v1920_v62 = vpop.permute.xlu1 %1919  ;;  %5442 = vmatpush.xpose.msk.msrb.mxu0 %vm1791_vm14, %v1924_v60 }
0x155b   :  { %5443 = vmatpush.xpose.msk.msrb.mxu0 %vm1791_vm14, %v1922_v15 }
0x155e   :  { %v1786_v13 = vpop.permute.xlu0 %1785  ;;  %v2184_v36 = vpop.permute.xlu2 %2183 }
0x155f   :  { %v2055_v63 = vpop.permute.xlu1 %2054  ;;  %5434 = vmatpush.xpose.msk.msrb.mxu1 %vm1791_vm14, %v1786_v13  ;;  %5444 = vmatpush.xpose.msk.msrb.mxu0 %vm1791_vm14, %v1920_v62 }
0x1562   :  { %5435 = vmatmul.msk.f32.vlgmr.msrb.gmra.mxu1 %vm1791_vm14, %v1774_v59  ;;  %5445 = vmatmul.msk.f32.vlgmr.msrb.gmra.mxu0 %vm1791_vm14, %v1914_v26 }
0x1563   :  { %5452 = vmatpush.xpose.msk.msra.mxu1 %vm1791_vm14, %v2055_v63  ;;  %5462 = vmatpush.xpose.msk.msra.mxu0 %vm1791_vm14, %v2186_v61 }
0x1566   :  { %v1916_v0 = vpop.permute.xlu0 %1915  ;;  %v2045_v1 = vpop.permute.xlu2 %2044 }
0x1567   :  { %5463 = vmatpush.xpose.msk.msra.mxu0 %vm1791_vm14, %v2184_v36  ;;  %v2053_v2 = vpop.permute.xlu1 %2052 }
0x1568   :  { %5453 = vmatpush.xpose.msk.msra.mxu1 %vm1791_vm14, %v2053_v2 }
0x156a   :  { %5436 = vmatmul.msk.f32.gmra.mxu1 %vm1791_vm14, %v1777_v55  ;;  %5446 = vmatmul.msk.f32.gmra.mxu0 %vm1791_vm14, %v1916_v0 }
0x156e   :  { %v2051_v3 = vpop.permute.xlu0 %2050  ;;  %v2178_v5 = vpop.permute.xlu2 %2177 }
0x156f   :  { %v2182_v6 = vpop.permute.xlu1 %2181  ;;  %5454 = vmatpush.xpose.msk.msra.mxu1 %vm1791_vm14, %v2051_v3 }
0x1570   :  { %5464 = vmatpush.xpose.msk.msra.mxu0 %vm1791_vm14, %v2182_v6 }
0x1572   :  { %5437 = vmatmul.msk.f32.gmra.mxu1 %vm1791_vm14, %v6914_v51 }
0x1576   :  { %v1918_v7 = vpop.permute.xlu0 %1917  ;;  %v5697_v17 = vpop.permute.xlu2 %5696 }
0x1577   :  { %v2047_v12 = vpop.permute.xlu1 %2046  ;;  %5447 = vmatmul.msk.f32.gmra.mxu0 %vm1791_vm14, %v1918_v7  ;;  %v5698_v42 = vunpack.i.l.bf16 %v5697_v17  ;;  %v5699_v19 = vunpack.i.h.bf16 %v5697_v17 }
0x157a   :  { %5455 = vmatmul.msk.f32.vlgmr.msra.gmra.mxu1 %vm1791_vm14, %v2045_v1 }
0x157e   :  { %v2176_v16 = vpop.permute.xlu0 %2175  ;;  %v1873_v18 = vpop.permute.xlu2 %1872 }
0x157f   :  { %v2180_v20 = vpop.permute.xlu1 %2179  ;;  %5438 = vmatpush.msk.msrb.mxu2 %vm92_vm1, %v1873_v18  ;;  %5465 = vmatmul.msk.f32.vlgmr.msra.gmra.mxu0 %vm1791_vm14, %v2176_v16 }
0x1582   :  { %5456 = vmatmul.msk.f32.gmra.mxu1 %vm1791_vm14, %v2047_v12 }
0x1586   :  { %v2049_v40 = vpop.permute.xlu0 %2048 }
0x1587   :  { %v2004_v41 = vpop.permute.xlu1 %2003  ;;  %5466 = vmatmul.msk.f32.gmra.mxu0 %vm1791_vm14, %v2178_v5 }
0x1588   :  { %5448 = vmatpush.msk.msra.mxu3 %vm92_vm1, %v2004_v41 }
0x158a   :  { %2032 = vmatpush.msra.mxu3 %v5698_v42  ;;  %5457 = vmatmul.msk.f32.gmra.mxu1 %vm1791_vm14, %v2049_v40 }
0x158c   :  { %2033 = vmatpush.msra.mxu3 %v5699_v19 }
0x158e   :  { %v5692_v21 = vpop.permute.xlu0 %5691 }
0x158f   :  { %v5693_v34 = vunpack.i.l.bf16 %v5692_v21  ;;  %5467 = vmatmul.msk.f32.gmra.mxu0 %vm1791_vm14, %v2180_v20  ;;  %v5694_v22 = vunpack.i.h.bf16 %v5692_v21 }
0x1591   :  { %1901 = vmatpush.msrb.mxu2 %v5693_v34 }
0x1593   :  { %1902 = vmatpush.msrb.mxu2 %v5694_v22 }
0x15df   :  { %v1821_v24 = vpop.f32.mrf.mxu1  ;;  %v1954_v37 = vpop.f32.mrf.mxu0 }
0x15e0   :  { %v1830_v39 = vmul.f32 0.5, %v1821_v24  ;;  %v1963_v53 = vmul.f32 0.5, %v1954_v37 }
0x15e2   :  { %v1834_v27 = vsel %vm8296_vm8, %v1830_v39, -inf  ;;  %v1966_v8 = vsel %vm8296_vm8, %v1963_v53, -inf }
0x15e3   :  { %1835 = vmax.xlane.f32.xlu2 %v1834_v27  ;;  %1967 = vmax.xlane.f32.xlu0 %v1966_v8 }
0x15e7   :  { %v1824_v28 = vpop.f32.mrf.mxu1  ;;  %v1957_v11 = vpop.f32.mrf.mxu0 }
0x15e8   :  { %v1831_v29 = vmul.f32 0.5, %v1824_v28  ;;  %v1964_v30 = vmul.f32 0.5, %v1957_v11 }
0x15ea   :  { %v1837_v58 = vsel %vm8296_vm8, %v1831_v29, -inf  ;;  %v1969_v43 = vsel %vm8296_vm8, %v1964_v30, -inf }
0x15eb   :  { %1838 = vmax.xlane.f32.xlu1 %v1837_v58  ;;  %1970 = vmax.xlane.f32.xlu2 %v1969_v43 }
0x15ef   :  { %v1827_v44 = vpop.f32.mrf.mxu1 }
0x15f0   :  { %v1832_v46 = vmul.f32 0.5, %v1827_v44 }
0x15f2   :  { %v1841_v47 = vsel %vm8295_vm9, %v1832_v46, -inf }
0x15f3   :  { %1842 = vmax.xlane.f32.xlu0 %v1841_v47 }
0x15f4   :  { %v1960_v48 = vpop.f32.mrf.mxu0 }
0x15f5   :  { %v1965_v49 = vmul.f32 0.5, %v1960_v48 }
0x15f7   :  { %v2085_v52 = vpop.f32.mrf.mxu1  ;;  %v1972_v54 = vsel %vm8295_vm9, %v1965_v49, -inf }
0x15f8   :  { %v6986_v55 = vmul.f32 0.5, %v2085_v52  ;;  %1973 = vmax.xlane.f32.xlu2 %v1972_v54 }
0x15fa   :  { %v2097_v56 = vsel %vm8296_vm8, %v6986_v55, -inf }
0x15fb   :  { %2098 = vmax.xlane.f32.xlu1 %v2097_v56 }
0x15fc   :  { %v2216_v59 = vpop.f32.mrf.mxu0 }
0x15fd   :  { %v6990_v14 = vmul.f32 0.5, %v2216_v59 }
0x15ff   :  { %v2088_v15 = vpop.f32.mrf.mxu1  ;;  %v2228_v26 = vsel %vm8296_vm8, %v6990_v14, -inf }
0x1600   :  { %v6994_v31 = vmul.f32 0.5, %v2088_v15  ;;  %2229 = vmax.xlane.f32.xlu0 %v2228_v26 }
0x1602   :  { %v2100_v60 = vsel %vm8296_vm8, %v6994_v31, -inf }
0x1603   :  { %2101 = vmax.xlane.f32.xlu2 %v2100_v60 }
0x1604   :  { %v2219_v61 = vpop.f32.mrf.mxu0 }
0x1605   :  { %v6998_v62 = vmul.f32 0.5, %v2219_v61 }
0x1607   :  { %v2091_v13 = vpop.f32.mrf.mxu1  ;;  %v2231_v36 = vsel %vm8296_vm8, %v6998_v62, -inf }
0x1608   :  { %v7002_v63 = vmul.f32 0.5, %v2091_v13  ;;  %2232 = vmax.xlane.f32.xlu1 %v2231_v36 }
0x160a   :  { %v2103_v0 = vsel %vm8295_vm9, %v7002_v63, -inf }
0x160b   :  { %2104 = vmax.xlane.f32.xlu0 %v2103_v0 }
0x160c   :  { %v2222_v1 = vpop.f32.mrf.mxu0 }
0x160d   :  { %v7006_v2 = vmul.f32 0.5, %v2222_v1 }
0x160f   :  { %v2234_v3 = vsel %vm8295_vm9, %v7006_v2, -inf }
0x1610   :  { %2235 = vmax.xlane.f32.xlu2 %v2234_v3 }
0x1656   :  { %v1836_v5 = vpop.xlane.xlu2 %1835  ;;  %v1968_v6 = vpop.xlane.xlu0 %1967 }
0x1657   :  { %v1844_v7 = vsub.f32 %v1830_v39, %v1836_v5  ;;  %v1975_v17 = vsub.f32 %v1963_v53, %v1968_v6 }
0x1659   :  { %v1847_v12 = vmul.f32 1.442695, %v1844_v7  ;;  %v1978_v16 = vmul.f32 1.442695, %v1975_v17 }
0x165b   :  { %5874 = vpow2.f32 %v1847_v12 }
0x165c   :  { %5876 = vpow2.f32 %v1978_v16 }
0x165e   :  { %v1971_v18 = vpop.xlane.xlu2 %1970  ;;  %v1839_v20 = vpop.xlane.xlu1 %1838 }
0x165f   :  { %v1976_v40 = vsub.f32 %v1964_v30, %v1971_v18  ;;  %v1845_v41 = vsub.f32 %v1831_v29, %v1839_v20 }
0x1661   :  { %v7010_v42 = vpop.eup %5874  ;;  %v1980_v19 = vmul.f32 1.442695, %v1976_v40  ;;  %v1849_v21 = vmul.f32 1.442695, %v1845_v41 }
0x1662   :  { %v7012_v34 = vpop.eup %5876  ;;  %v1853_v22 = vsel %vm8296_vm8, %v7010_v42, 0.0 }
0x1663   :  { %5878 = vpow2.f32 %v1980_v19  ;;  %1854 = vadd.xlane.f32.xlu1 %v1853_v22  ;;  %v1984_v24 = vsel %vm8296_vm8, %v7012_v34, 0.0 }
0x1664   :  { %5880 = vpow2.f32 %v1849_v21  ;;  %1985 = vadd.xlane.f32.xlu0 %v1984_v24 }
0x1666   :  { %v1843_v37 = vpop.xlane.xlu0 %1842 }
0x1667   :  { %v1846_v39 = vsub.f32 %v1832_v46, %v1843_v37 }
0x1669   :  { %v7018_v53 = vpop.eup %5878  ;;  %v1851_v27 = vmul.f32 1.442695, %v1846_v39 }
0x166a   :  { %v7020_v8 = vpop.eup %5880  ;;  %v1987_v28 = vsel %vm8296_vm8, %v7018_v53, 0.0 }
0x166b   :  { %5882 = vpow2.f32 %v1851_v27  ;;  %v1974_v11 = vpop.xlane.xlu2 %1973  ;;  %1988 = vadd.xlane.f32.xlu1 %v1987_v28  ;;  %v1856_v29 = vsel %vm8296_vm8, %v7020_v8, 0.0 }
0x166c   :  { %v1977_v30 = vsub.f32 %v1965_v49, %v1974_v11  ;;  %1857 = vadd.xlane.f32.xlu0 %v1856_v29 }
0x166e   :  { %v1982_v58 = vmul.f32 1.442695, %v1977_v30  ;;  %v2099_v43 = vpop.xlane.xlu1 %2098 }
0x166f   :  { %v2106_v44 = vsub.f32 %v6986_v55, %v2099_v43 }
0x1670   :  { %5884 = vpow2.f32 %v1982_v58 }
0x1671   :  { %v7027_v46 = vpop.eup %5882  ;;  %v2109_v47 = vmul.f32 1.442695, %v2106_v44 }
0x1672   :  { %v1859_v48 = vsel %vm8295_vm9, %v7027_v46, 0.0 }
0x1673   :  { %5886 = vpow2.f32 %v2109_v47  ;;  %1860 = vadd.xlane.f32.xlu2 %v1859_v48  ;;  %v2230_v59 = vpop.xlane.xlu0 %2229 }
0x1674   :  { %v2237_v26 = vsub.f32 %v6990_v14, %v2230_v59 }
0x1676   :  { %v7031_v52 = vpop.eup %5884  ;;  %v2102_v56 = vpop.xlane.xlu2 %2101  ;;  %v2240_v13 = vmul.f32 1.442695, %v2237_v26 }
0x1677   :  { %v1990_v54 = vsel %vm8295_vm9, %v7031_v52, 0.0  ;;  %v2107_v15 = vsub.f32 %v6994_v31, %v2102_v56 }
0x1678   :  { %1991 = vadd.xlane.f32.xlu0 %v1990_v54 }
0x1679   :  { %v7035_v49 = vpop.eup %5886  ;;  %v2111_v60 = vmul.f32 1.442695, %v2107_v15 }
0x167a   :  { %v2115_v55 = vsel %vm8296_vm8, %v7035_v49, 0.0 }
0x167b   :  { %2116 = vadd.xlane.f32.xlu1 %v2115_v55  ;;  %v2233_v36 = vpop.xlane.xlu1 %2232  ;;  %5888 = vpow2.f32 %v2111_v60 }
0x167c   :  { %5890 = vpow2.f32 %v2240_v13  ;;  %v2238_v1 = vsub.f32 %v6998_v62, %v2233_v36 }
0x167e   :  { %v2105_v12 = vpop.xlane.xlu0 %2104 }
0x167f   :  { %v2108_v32 = vsub.f32 %v7002_v63, %v2105_v12 }
0x1681   :  { %v7049_v5 = vpop.eup %5888 }
0x1682   :  { %v7051_v6 = vpop.eup %5890  ;;  %v2118_v14 = vsel %vm8296_vm8, %v7049_v5, 0.0 }
0x1683   :  { %v2236_v61 = vpop.xlane.xlu2 %2235  ;;  %v2246_v31 = vsel %vm8296_vm8, %v7051_v6, 0.0 }
0x1684   :  { %v2239_v0 = vsub.f32 %v7006_v2, %v2236_v61 }
0x1686   :  { %v2244_v3 = vmul.f32 1.442695, %v2239_v0 }
0x1688   :  { %5892 = vpow2.f32 %v2244_v3 }
0x168b   :  { %2134 = vrot.lane.b32.xlu2 %v6914_v51, %s8348_s23 }
0x168c   :  { %5701 = vrot.lane.b32.xlu0 %v6945_v57, %s8348_s23 }
0x168e   :  { %v7057_v2 = vpop.eup %5892 }
0x168f   :  { %v2252_v62 = vsel %vm8295_vm9, %v7057_v2, 0.0 }
0x1694   :  { %2265 = vrot.lane.b32.xlu1 %v6914_v51, %s8286_s25  ;;  %v2242_v51 = vmul.f32 1.442695, %v2238_v1 }
0x1696   :  { %5894 = vpow2.f32 %v2242_v51 }
0x169c   :  { %v7059_v7 = vpop.eup %5894 }
0x169d   :  { %v2249_v17 = vsel %vm8296_vm8, %v7059_v7, 0.0 }
0x16b4   :  { %2119 = vadd.xlane.f32.xlu2 %v2118_v14 }
0x16b6   :  { %2247 = vadd.xlane.f32.xlu0 %v2246_v31 }
0x16bc   :  { %2253 = vadd.xlane.f32.xlu2 %v2252_v62 }
0x16be   :  { %2250 = vadd.xlane.f32.xlu1 %v2249_v17 }
0x16ca   :  { %5706 = vrot.lane.b32.xlu0 %v6945_v57, %s8286_s25  ;;  %v2113_v57 = vmul.f32 1.442695, %v2108_v32  ;;  %s8288_s25 = smov 12  }
0x16d4   :  { %5711 = vrot.lane.b32.xlu2 %v5710_v35, %s8336_s29 }
0x16d6   :  { %v1855_v16 = vpop.xlane.xlu1 %1854 }
0x16d7   :  { %v1986_v18 = vpop.xlane.xlu0 %1985  ;;  %5896 = vrcp.f32 %v1855_v16 }
0x16d8   :  { %5898 = vrcp.f32 %v1986_v18 }
0x16dd   :  { %v5897_v20 = vpop.eup %5896 }
0x16de   :  { %v5899_v40 = vpop.eup %5898  ;;  %v1865_v41 = vmul.f32 %v5897_v20, %v7010_v42  ;;  %v1989_v19 = vpop.xlane.xlu1 %1988 }
0x16df   :  { %v1996_v21 = vmul.f32 %v5899_v40, %v7012_v34  ;;  %v1858_v22 = vpop.xlane.xlu0 %1857  ;;  %5900 = vrcp.f32 %v1989_v19 }
0x16e0   :  { %5902 = vrcp.f32 %v1858_v22  ;;  %5439 = vmatmul.msk.f32.vlgmr.msrb.gmra.mxu2 %vm8296_vm8, %v1865_v41 }
0x16e1   :  { %5449 = vmatmul.msk.f32.vlgmr.msra.gmra.mxu3 %vm8296_vm8, %v1996_v21 }
0x16e5   :  { %v5901_v33 = vpop.eup %5900 }
0x16e6   :  { %v5903_v35 = vpop.eup %5902  ;;  %v1861_v24 = vpop.xlane.xlu2 %1860  ;;  %v1997_v37 = vmul.f32 %v5901_v33, %v7018_v53 }
0x16e7   :  { %5904 = vrcp.f32 %v1861_v24  ;;  %v1866_v42 = vmul.f32 %v5903_v35, %v7020_v8 }
0x16e8   :  { %5906 = vpow2.f32 %v2113_v57 }
0x16e9   :  { %5440 = vmatmul.msk.f32.gmra.mxu2 %vm8296_vm8, %v1866_v42  ;;  %5450 = vmatmul.msk.f32.gmra.mxu3 %vm8296_vm8, %v1997_v37 }
0x16eb   :  { %v1992_v34 = vpop.xlane.xlu0 %1991 }
0x16ec   :  { %5908 = vrcp.f32 %v1992_v34 }
0x16ed   :  { %v5905_v39 = vpop.eup %5904 }
0x16ee   :  { %v2135_v27 = vpop.permute.xlu2 %2134  ;;  %v1867_v63 = vmul.f32 %v5905_v39, %v7027_v46  ;;  %v5907_v28 = vpop.eup %5906 }
0x16ef   :  { %5458 = vmatpush.msk.msra.mxu2 %vm92_vm1, %v2135_v27  ;;  %v2121_v11 = vsel %vm8295_vm9, %v5907_v28, 0.0  ;;  %v2117_v29 = vpop.xlane.xlu1 %2116 }
0x16f0   :  { %5910 = vrcp.f32 %v2117_v29  ;;  %v5485_v29 = vld [vmem:[%s8233_s1 + $0x8] sm:$0xff]  ;;  %s8350_s1 = smov 64  }
0x16f1   :  { %5441 = vmatmul.msk.f32.gmra.mxu2 %vm8296_vm8, %v1867_v63 }
0x16f2   :  { %v5909_v53 = vpop.eup %5908 }
0x16f3   :  { %v1998_v8 = vmul.f32 %v5909_v53, %v7031_v52 }
0x16f4   :  { %2122 = vadd.xlane.f32.xlu0 %v2121_v11 }
0x16f5   :  { %5451 = vmatmul.msk.f32.gmra.mxu3 %vm8296_vm8, %v1998_v8 }
0x16f6   :  { %v5911_v58 = vpop.eup %5910 }
0x16f7   :  { %v2127_v46 = vmul.f32 %v5911_v58, %v7035_v49 }
0x16fe   :  { %v5702_v30 = vpop.permute.xlu0 %5701 }
0x16ff   :  { %v5703_v43 = vunpack.i.l.bf16 %v5702_v30  ;;  %v5704_v44 = vunpack.i.h.bf16 %v5702_v30  ;;  %v2398_v30 = vperm.slane %v6904_v10, 4 }
0x1701   :  { %2163 = vmatpush.msra.mxu2 %v5703_v43 }
0x1703   :  { %2164 = vmatpush.msra.mxu2 %v5704_v44 }
0x1704   :  { %5459 = vmatmul.msk.f32.vlgmr.msra.gmra.mxu2 %vm8296_vm8, %v2127_v46 }
0x1706   :  { %v2266_v47 = vpop.permute.xlu1 %2265 }
0x1707   :  { %5468 = vmatpush.msk.msrb.mxu3 %vm92_vm1, %v2266_v47 }
0x1727   :  { %v2120_v48 = vpop.xlane.xlu2 %2119 }
0x1728   :  { %5912 = vrcp.f32 %v2120_v48 }
0x1729   :  { %v2248_v55 = vpop.xlane.xlu0 %2247 }
0x172a   :  { %5914 = vrcp.f32 %v2248_v55 }
0x172e   :  { %v5913_v52 = vpop.eup %5912 }
0x172f   :  { %v2128_v54 = vmul.f32 %v5913_v52, %v7049_v5  ;;  %v2254_v61 = vpop.xlane.xlu2 %2253 }
0x1730   :  { %v5915_v15 = vpop.eup %5914 }
0x1731   :  { %5460 = vmatmul.msk.f32.gmra.mxu2 %vm8296_vm8, %v2128_v54  ;;  %v2251_v56 = vpop.xlane.xlu1 %2250  ;;  %v2258_v60 = vmul.f32 %v5915_v15, %v7051_v6 }
0x1732   :  { %5916 = vrcp.f32 %v2251_v56 }
0x1733   :  { %5918 = vrcp.f32 %v2254_v61 }
0x1737   :  { %v5712_v12 = vpop.permute.xlu2 %5711 }
0x1738   :  { %v5917_v13 = vpop.eup %5916  ;;  %v5714_v16 = vunpack.i.h.bf16 %v5712_v12  ;;  %v5713_v18 = vunpack.i.l.bf16 %v5712_v12  ;;  %v2477_v12 = vld [vmem:[%s8243_s11 + $0x8] sm:$0xff] }
0x1739   :  { %v2259_v36 = vmul.f32 %v5917_v13, %v7059_v7  ;;  %v5919_v0 = vpop.eup %5918  ;;  %2502 = vmatpush.msrb.mxu2 %v2477_v12  ;;  %v7224_v12 = vld [vmem:[%s8234_s4] sm:$0xff] }
0x173a   :  { %v2260_v1 = vmul.f32 %v5919_v0, %v7057_v2  ;;  %2383 = vmatpush.msrb.mxu1 %v5713_v18  ;;  %v6104_v0 = vld [vmem:[%s8232_s3 + $0x10] sm:$0x1] }
0x173c   :  { %v5707_v59 = vpop.permute.xlu0 %5706  ;;  %2384 = vmatpush.msrb.mxu1 %v5714_v16  ;;  %v2476_v16 = vld [vmem:[%s8243_s11] sm:$0xff] }
0x173d   :  { %v5708_v26 = vunpack.i.l.bf16 %v5707_v59  ;;  %v5709_v49 = vunpack.i.h.bf16 %v5707_v59  ;;  %2503 = vmatpush.msrb.mxu2 %v2476_v16 }
0x173e   :  { %2733 = vmatpush.msra.mxu1 %v6233_v4 }
0x173f   :  { %2294 = vmatpush.msrb.mxu3 %v5708_v26 }
0x1740   :  { %2734 = vmatpush.msra.mxu1 %v6244_v9 }
0x1741   :  { %2295 = vmatpush.msrb.mxu3 %v5709_v49 }
0x1742   :  { %5469 = vmatmul.msk.f32.vlgmr.msrb.gmra.mxu3 %vm8296_vm8, %v2258_v60 }
0x174a   :  { %5470 = vmatmul.msk.f32.gmra.mxu3 %vm8296_vm8, %v2259_v36 }
0x1752   :  { %5471 = vmatmul.msk.f32.gmra.mxu3 %vm8296_vm8, %v2260_v1 }
0x1763   :  { %v1904_v51 = vpop.f32.mrf.mxu2 }
0x1764   :  { %v2035_v3 = vpop.f32.mrf.mxu3 }
0x1765   :  { %2309 = vrot.lane.b32.xlu1 %v2035_v3, %s8290_s19 }
0x1767   :  { %v2123_v5 = vpop.xlane.xlu0 %2122 }
0x1768   :  { %5920 = vrcp.f32 %v2123_v5 }
0x176c   :  { %v2038_v6 = vpop.f32.mrf.mxu3  ;;  %v1907_v7 = vpop.f32.mrf.mxu2 }
0x176d   :  { %2311 = vrot.lane.b32.xlu2 %v2038_v6, %s8290_s19 }
0x176e   :  { %v5921_v14 = vpop.eup %5920 }
0x176f   :  { %v2129_v31 = vmul.f32 %v5921_v14, %v5907_v28 }
0x1771   :  { %5461 = vmatmul.msk.f32.gmra.mxu2 %vm8296_vm8, %v2129_v31 }
0x1774   :  { %v1910_v2 = vpop.f32.mrf.mxu2 }
0x1778   :  { %v2041_v62 = vpop.f32.mrf.mxu3 }
0x1779   :  { %2313 = vrot.lane.b32.xlu2 %v2041_v62, %s8290_s19  ;;  %s8351_s19 = smov 48  }
0x1787   :  { %v2166_v17 = vpop.f32.mrf.mxu2 }
0x1788   :  { %2321 = vrot.lane.b32.xlu0 %v2166_v17, %s8343_s26 }
0x17b4   :  { %v2169_v20 = vpop.f32.mrf.mxu2 }
0x17b5   :  { %2323 = vrot.lane.b32.xlu0 %v2169_v20, %s8343_s26 }
0x17c5   :  { %v2297_v40 = vpop.f32.mrf.mxu3 }
0x17c6   :  { %2333 = vrot.lane.b32.xlu1 %v2297_v40, %s8288_s25 }
0x17c7   :  { %v2312_v57 = vpop.permute.xlu2 %2311 }
0x17c8   :  { %v2343_v37 = vsel %vm1791_vm14, %v1907_v7, %v2312_v57 }
0x17cd   :  { %v2300_v41 = vpop.f32.mrf.mxu3 }
0x17ce   :  { %2335 = vrot.lane.b32.xlu1 %v2300_v41, %s8288_s25 }
0x17d3   :  { %v2314_v27 = vpop.permute.xlu2 %2313 }
0x17d4   :  { %v2344_v63 = vsel %vm1791_vm14, %v1910_v2, %v2314_v27 }
0x17d5   :  { %v2303_v19 = vpop.f32.mrf.mxu3 }
0x17d6   :  { %2337 = vrot.lane.b32.xlu1 %v2303_v19, %s8288_s25 }
0x17d7   :  { %v2310_v22 = vpop.permute.xlu1 %2309 }
0x17d8   :  { %v2342_v9 = vsel %vm1791_vm14, %v1904_v51, %v2310_v22 }
0x17f4   :  { %v2172_v21 = vpop.f32.mrf.mxu2 }
0x17f5   :  { %2325 = vrot.lane.b32.xlu0 %v2172_v21, %s8343_s26 }
0x17fa   :  { %v2322_v4 = vpop.permute.xlu0 %2321 }
0x17fb   :  { %v2345_v32 = vsel %vm194_vm11, %v2342_v9, %v2322_v4 }
0x1827   :  { %v2324_v24 = vpop.permute.xlu0 %2323 }
0x1828   :  { %v2346_v42 = vsel %vm194_vm11, %v2343_v37, %v2324_v24 }
0x1838   :  { %v2334_v33 = vpop.permute.xlu1 %2333 }
0x1839   :  { %v2349_v35 = vsel %vm8294_vm10, %v2345_v32, %v2334_v33 }
0x183a   :  { %5472 = vmatmul.msk.f32.vlgmr.msrb.gmra.mxu1 %vm65_vm0, %v2349_v35 }
0x1840   :  { %v2336_v34 = vpop.permute.xlu1 %2335 }
0x1841   :  { %v2350_v39 = vsel %vm8294_vm10, %v2346_v42, %v2336_v34 }
0x1842   :  { %5473 = vmatmul.msk.f32.gmra.mxu1 %vm65_vm0, %v2350_v39 }
0x1848   :  { %v2338_v53 = vpop.permute.xlu1 %2337 }
0x1867   :  { %v2326_v28 = vpop.permute.xlu0 %2325 }
0x1868   :  { %v2347_v11 = vsel %vm194_vm11, %v2344_v63, %v2326_v28 }
0x1869   :  { %v2351_v8 = vsel %vm8294_vm10, %v2347_v11, %v2338_v53  ;;  %v2468_v11 = vperm.slane %v6904_v10, 2 }
0x186a   :  { %5474 = vmatmul.msk.f32.gmra.mxu1 %vm65_vm0, %v2351_v8 }
0x1872   :  { %5486 = vmatmul.msk.f32.vlgmr.msra.gmra.mxu1 %vm65_vm0, %v5485_v29 }
0x18b7   :  { %v2386_v58 = vpop.f32.mrf.mxu1 }
0x18b8   :  { %v2395_v43 = vadd.f32 %v2386_v58, %v6850_v38 }
0x18ba   :  { %v7127_v44 = vadd.f32 %v2398_v30, %v2395_v43 }
0x18bc   :  { %v2402_v46 = vsel %vm65_vm0, %v7127_v44, 0.0 }
0x18bd   :  { %2403 = vadd.xlane.f32.xlu2 %v2402_v46  ;;  %v2472_v46 = vperm.slane %v6904_v10, 3 }
0x18bf   :  { %v2389_v47 = vpop.f32.mrf.mxu1 }
0x18c0   :  { %v2396_v48 = vadd.f32 %v2389_v47, %v6863_v50 }
0x18c2   :  { %v7132_v52 = vadd.f32 %v2398_v30, %v2396_v48 }
0x18c4   :  { %v2405_v54 = vsel %vm65_vm0, %v7132_v52, 0.0 }
0x18c5   :  { %2406 = vadd.xlane.f32.xlu0 %v2405_v54 }
0x18e7   :  { %v2392_v55 = vpop.f32.mrf.mxu1 }
0x18e8   :  { %v2397_v56 = vadd.f32 %v2392_v55, %v6860_v25 }
0x18ea   :  { %v7137_v59 = vadd.f32 %v2398_v30, %v2397_v56 }
0x18ec   :  { %v2408_v38 = vsel %vm1670_vm4, %v7137_v59, 0.0 }
0x18ed   :  { %2409 = vadd.xlane.f32.xlu1 %v2408_v38 }
0x18ef   :  { %v2736_v49 = vpop.f32.mrf.mxu1 }
0x18f0   :  { %v7143_v61 = vrot.slane %v2736_v49, 7 }
0x18f2   :  { %v7152_v1 = vsel %vm92_vm1, %v6104_v0, %v7143_v61  ;;  %v2751_v14 = vsel %vm103_vm3, %v7143_v61, 0.0 }
0x18f3   :  { %v2748_v51 = vsel %vm99_vm2, %v7152_v1, 0.0 }
0x1930   :  { %v2404_v15 = vpop.xlane.xlu2 %2403 }
0x1931   :  { %v2411_v26 = vmul.f32 %v2404_v15, %v6869_v45 }
0x1933   :  { %v2414_v50 = vsub.f32 %v7127_v44, %v2411_v26 }
0x1935   :  { %v2417_v60 = vmul.f32 %v2414_v50, %v2414_v50 }
0x1937   :  { %v2420_v13 = vsel %vm65_vm0, %v2417_v60, 0.0 }
0x1938   :  { %2421 = vadd.xlane.f32.xlu2 %v2420_v13  ;;  %v2407_v36 = vpop.xlane.xlu0 %2406 }
0x1939   :  { %v2412_v25 = vmul.f32 %v2407_v36, %v6869_v45 }
0x193b   :  { %v7155_v3 = vsub.f32 %v7132_v52, %v2412_v25 }
0x193d   :  { %v2418_v5 = vmul.f32 %v7155_v3, %v7155_v3 }
0x193f   :  { %v2423_v6 = vsel %vm65_vm0, %v2418_v5, 0.0 }
0x1940   :  { %2424 = vadd.xlane.f32.xlu0 %v2423_v6  ;;  %2749 = vadd.xlane.f32.xlu2 %v2748_v51 }
0x1948   :  { %2752 = vadd.xlane.f32.xlu0 %v2751_v14 }
0x1960   :  { %v2410_v31 = vpop.xlane.xlu1 %2409 }
0x1961   :  { %v2413_v7 = vmul.f32 %v2410_v31, %v6869_v45 }
0x1963   :  { %v7166_v62 = vsub.f32 %v7137_v59, %v2413_v7  ;;  %v7204_v7 = vld [vmem:[%s8234_s4 + $0x18] sm:$0xff] }
0x1964   :  { %2817 = vmatpush.msra.mxu2 %v7204_v7 }
0x1965   :  { %v2419_v2 = vmul.f32 %v7166_v62, %v7166_v62 }
0x1967   :  { %v2426_v17 = vsel %vm1670_vm4, %v2419_v2, 0.0  ;;  %v7210_v2 = vld [vmem:[%s8234_s4 + $0x10] sm:$0xff] }
0x1968   :  { %2427 = vadd.xlane.f32.xlu1 %v2426_v17  ;;  %2818 = vmatpush.msra.mxu2 %v7210_v2  ;;  %v5715_v17 = vpack.i.bf16 %v7210_v2, %v7204_v7 }
0x19ab   :  { %v2422_v18 = vpop.xlane.xlu2 %2421 }
0x19ac   :  { %v2429_v20 = vmul.f32 %v2422_v18, %v6869_v45 }
0x19ae   :  { %v2432_v40 = vadd.f32 1e-05, %v2429_v20 }
0x19b0   :  { %5922 = vrsqrt.f32 %v2432_v40  ;;  %vm2441_vm6 = vweird.f32 %v2432_v40 }
0x19b3   :  { %v2425_v41 = vpop.xlane.xlu0 %2424  ;;  %v2750_v19 = vpop.xlane.xlu2 %2749 }
0x19b4   :  { %v2430_v21 = vmul.f32 %v2425_v41, %v6869_v45  ;;  %v2754_v22 = vmul.f32 %v2750_v19, %v6263_v23  ;;  %v2548_v19 = vld [vmem:[%s8244_s12 + $0x38] sm:$0xff] }
0x19b5   :  { %2567 = vmatpush.msrb.mxu0 %v2548_v19 }
0x19b6   :  { %v5923_v4 = vpop.eup %5922  ;;  %v2433_v9 = vadd.f32 1e-05, %v2430_v21  ;;  %v7181_v32 = vsub.f32 %v7152_v1, %v2754_v22  ;;  %v2547_v22 = vld [vmem:[%s8244_s12 + $0x30] sm:$0xff] }
0x19b7   :  { %v2436_v33 = vmul.f32 %v5923_v4, %v2432_v40  ;;  %vm2442_vm5 = vweird.f32 %v5923_v4  ;;  %2568 = vmatpush.msrb.mxu0 %v2547_v22 }
0x19b8   :  { %5924 = vrsqrt.f32 %v2433_v9  ;;  %v2758_v35 = vmul.f32 %v7181_v32, %v7181_v32  ;;  %vm2443_vm7 = vmor %vm2441_vm6, %vm2442_vm5  ;;  %vm2451_vm9 = vweird.f32 %v2433_v9 }
0x19b9   :  { %v2437_v57 = vmul.f32 %v5923_v4, %v2436_v33 }
0x19ba   :  { %v2760_v24 = vsel %vm99_vm2, %v2758_v35, 0.0  ;;  %v2546_v35 = vld [vmem:[%s8244_s12 + $0x28] sm:$0xff] }
0x19bb   :  { %v2438_v37 = vmul.f32 0.5, %v2437_v57  ;;  %v2753_v42 = vpop.xlane.xlu0 %2752  ;;  %2761 = vadd.xlane.f32.xlu1 %v2760_v24  ;;  %2569 = vmatpush.msrb.mxu0 %v2546_v35  ;;  %v2545_v24 = vld [vmem:[%s8244_s12 + $0x20] sm:$0xff] }
0x19bc   :  { %v2755_v34 = vmul.f32 %v2753_v42, %v6263_v23  ;;  %v2544_v42 = vld [vmem:[%s8244_s12 + $0x18] sm:$0xff] }
0x19bd   :  { %v2439_v39 = vsub.f32 1.5, %v2438_v37  ;;  %2570 = vmatpush.msrb.mxu0 %v2545_v24 }
0x19be   :  { %v5925_v27 = vpop.eup %5924  ;;  %v7188_v63 = vsub.f32 %v7143_v61, %v2755_v34 }
0x19bf   :  { %v2440_v28 = vmul.f32 %v5923_v4, %v2439_v39  ;;  %v2446_v53 = vmul.f32 %v5925_v27, %v2433_v9  ;;  %vm2452_vm10 = vweird.f32 %v5925_v27  ;;  %2571 = vmatpush.msrb.mxu0 %v2544_v42  ;;  %v2543_v39 = vld [vmem:[%s8244_s12 + $0x10] sm:$0xff] }
0x19c0   :  { %v2759_v8 = vmul.f32 %v7188_v63, %v7188_v63  ;;  %vm2453_vm8 = vmor %vm2451_vm9, %vm2452_vm10 }
0x19c1   :  { %v2444_v29 = vsel %vm2443_vm7, %v5923_v4, %v2440_v28  ;;  %v2447_v30 = vmul.f32 %v5925_v27, %v2446_v53  ;;  %2572 = vmatpush.msrb.mxu0 %v2543_v39 }
0x19c2   :  { %v2465_v58 = vmul.f32 %v2444_v29, %v2414_v50  ;;  %v2763_v43 = vsel %vm103_vm3, %v2759_v8, 0.0  ;;  %v7255_v8 = vld [vmem:[%s8235_s7] sm:$0xff] }
0x19c3   :  { %v2448_v47 = vmul.f32 0.5, %v2447_v30  ;;  %2764 = vadd.xlane.f32.xlu2 %v2763_v43  ;;  %v2792_v29 = vperm.slane %v7255_v8, 0  ;;  %v2541_v30 = vld [vmem:[%s8244_s12] sm:$0xff] }
0x19c4   :  { %v2469_v48 = vmul.f32 %v2468_v11, %v2465_v58 }
0x19c5   :  { %v2449_v54 = vsub.f32 1.5, %v2448_v47  ;;  %v2795_v47 = vperm.slane %v7255_v8, 1 }
0x19c6   :  { %v2473_v55 = vadd.f32 %v2472_v46, %v2469_v48 }
0x19c7   :  { %v2450_v56 = vmul.f32 %v5925_v27, %v2449_v54 }
0x19c8   :  { %5475 = vmatmul.msk.f32.vlgmr.msrb.gmra.mxu2 %vm65_vm0, %v2473_v55 }
0x19c9   :  { %v2454_v38 = vsel %vm2453_vm8, %v5925_v27, %v2450_v56  ;;  %v6106_v56 = vld [vmem:[%s8242_s13] sm:$0xff] }
0x19ca   :  { %v2466_v15 = vmul.f32 %v2454_v38, %v7155_v3  ;;  %v2478_v38 = vperm.slane %v6106_v56, 7 }
0x19cc   :  { %v2470_v26 = vmul.f32 %v2468_v11, %v2466_v15 }
0x19ce   :  { %v2474_v50 = vadd.f32 %v2472_v46, %v2470_v26 }
0x19d0   :  { %5476 = vmatmul.msk.f32.gmra.mxu2 %vm65_vm0, %v2474_v50 }
0x19db   :  { %v2428_v49 = vpop.xlane.xlu1 %2427 }
0x19dc   :  { %v2431_v10 = vmul.f32 %v2428_v49, %v6869_v45 }
0x19de   :  { %v2434_v60 = vadd.f32 1e-05, %v2431_v10 }
0x19e0   :  { %5926 = vrsqrt.f32 %v2434_v60  ;;  %vm2461_vm10 = vweird.f32 %v2434_v60 }
0x19e6   :  { %v5927_v13 = vpop.eup %5926 }
0x19e7   :  { %v2456_v36 = vmul.f32 %v5927_v13, %v2434_v60  ;;  %vm2462_vm9 = vweird.f32 %v5927_v13 }
0x19e8   :  { %vm2463_vm8 = vmor %vm2461_vm10, %vm2462_vm9 }
0x19e9   :  { %v2457_v25 = vmul.f32 %v5927_v13, %v2456_v36 }
0x19eb   :  { %v2458_v0 = vmul.f32 0.5, %v2457_v25 }
0x19ed   :  { %v2459_v5 = vsub.f32 1.5, %v2458_v0 }
0x19ef   :  { %v2460_v51 = vmul.f32 %v5927_v13, %v2459_v5 }
0x19f1   :  { %v2464_v6 = vsel %vm2463_vm8, %v5927_v13, %v2460_v51 }
0x19f2   :  { %v2467_v3 = vmul.f32 %v2464_v6, %v7166_v62  ;;  %v7216_v62 = vld [vmem:[%s8234_s4 + $0x8] sm:$0xff] }
0x19f3   :  { %2819 = vmatpush.msra.mxu2 %v7216_v62  ;;  %v5720_v16 = vpack.i.bf16 %v7224_v12, %v7216_v62 }
0x19f4   :  { %v2471_v14 = vmul.f32 %v2468_v11, %v2467_v3  ;;  %v2542_v11 = vld [vmem:[%s8244_s12 + $0x8] sm:$0xff] }
0x19f5   :  { %2820 = vmatpush.msra.mxu2 %v7224_v12  ;;  %2573 = vmatpush.msrb.mxu0 %v2542_v11 }
0x19f6   :  { %v2475_v31 = vadd.f32 %v2472_v46, %v2471_v14 }
0x19f7   :  { %2574 = vmatpush.msrb.mxu0 %v2541_v30 }
0x19f8   :  { %5477 = vmatmul.msk.f32.gmra.mxu2 %vm65_vm0, %v2475_v31 }
0x1a2e   :  { %v2762_v18 = vpop.xlane.xlu1 %2761 }
0x1a2f   :  { %v2766_v20 = vmul.f32 %v2762_v18, %v6263_v23 }
0x1a31   :  { %v2768_v40 = vadd.f32 1e-05, %v2766_v20 }
0x1a33   :  { %5928 = vrsqrt.f32 %v2768_v40  ;;  %vm2776_vm6 = vweird.f32 %v2768_v40 }
0x1a36   :  { %v2765_v41 = vpop.xlane.xlu2 %2764 }
0x1a37   :  { %v2767_v21 = vmul.f32 %v2765_v41, %v6263_v23 }
0x1a39   :  { %v5929_v4 = vpop.eup %5928  ;;  %v2769_v9 = vadd.f32 1e-05, %v2767_v21 }
0x1a3a   :  { %v2771_v33 = vmul.f32 %v5929_v4, %v2768_v40  ;;  %vm2777_vm5 = vweird.f32 %v5929_v4 }
0x1a3b   :  { %5930 = vrsqrt.f32 %v2769_v9  ;;  %vm2778_vm7 = vmor %vm2776_vm6, %vm2777_vm5  ;;  %vm2786_vm10 = vweird.f32 %v2769_v9  ;;  %vm8305_vm5 = vcmask 523264  }
0x1a3c   :  { %v2772_v57 = vmul.f32 %v5929_v4, %v2771_v33 }
0x1a3e   :  { %v2773_v37 = vmul.f32 0.5, %v2772_v57 }
0x1a40   :  { %v2774_v34 = vsub.f32 1.5, %v2773_v37 }
0x1a41   :  { %v5931_v27 = vpop.eup %5930 }
0x1a42   :  { %v2775_v28 = vmul.f32 %v5929_v4, %v2774_v34  ;;  %v2781_v53 = vmul.f32 %v5931_v27, %v2769_v9  ;;  %vm2787_vm9 = vweird.f32 %v5931_v27 }
0x1a43   :  { %vm2788_vm8 = vmor %vm2786_vm10, %vm2787_vm9 }
0x1a44   :  { %v2779_v58 = vsel %vm2778_vm7, %v5929_v4, %v2775_v28  ;;  %v2782_v43 = vmul.f32 %v5931_v27, %v2781_v53 }
0x1a45   :  { %v2790_v46 = vmul.f32 %v2779_v58, %v7181_v32 }
0x1a46   :  { %v2783_v48 = vmul.f32 0.5, %v2782_v43  ;;  %v2588_v43 = vperm.slane %v6106_v56, 5 }
0x1a47   :  { %v2793_v54 = vmul.f32 %v2792_v29, %v2790_v46 }
0x1a48   :  { %v2784_v55 = vsub.f32 1.5, %v2783_v48 }
0x1a49   :  { %v2796_v15 = vadd.f32 %v2795_v47, %v2793_v54 }
0x1a4a   :  { %v2785_v26 = vmul.f32 %v5931_v27, %v2784_v55 }
0x1a4b   :  { %v2505_v50 = vpop.f32.mrf.mxu2  ;;  %5487 = vmatmul.msk.f32.vlgmr.msra.gmra.mxu2 %vm99_vm2, %v2796_v15 }
0x1a4c   :  { %v2506_v32 = vadd.f32 %v2505_v50, %v2478_v38  ;;  %v2789_v49 = vsel %vm2788_vm8, %v5931_v27, %v2785_v26 }
0x1a4d   :  { %v2791_v10 = vmul.f32 %v2789_v49, %v7188_v63 }
0x1a4e   :  { %v2514_v60 = vmul.f32 %v2506_v32, %v2506_v32 }
0x1a4f   :  { %v2794_v13 = vmul.f32 %v2792_v29, %v2791_v10  ;;  %v2798_v29 = vperm.slane %v7255_v8, 6 }
0x1a50   :  { %v2517_v36 = vmul.f32 %v2514_v60, %v2506_v32  ;;  %v2668_v60 = vld [vmem:[%s8245_s14] sm:$0xff] }
0x1a51   :  { %v2797_v25 = vadd.f32 %v2795_v47, %v2794_v13 }
0x1a52   :  { %v2520_v0 = vmul.f32 0.044715, %v2517_v36 }
0x1a53   :  { %v2508_v5 = vpop.f32.mrf.mxu2  ;;  %5488 = vmatmul.msk.f32.gmra.mxu2 %vm99_vm2, %v2797_v25 }
0x1a54   :  { %v2523_v51 = vadd.f32 %v2520_v0, %v2506_v32  ;;  %v2509_v6 = vadd.f32 %v2508_v5, %v2478_v38 }
0x1a56   :  { %v2526_v3 = vmul.f32 0.7978846, %v2523_v51  ;;  %v2515_v14 = vmul.f32 %v2509_v6, %v2509_v6 }
0x1a58   :  { %5932 = vtanh.f32 %v2526_v3  ;;  %v2518_v31 = vmul.f32 %v2515_v14, %v2509_v6 }
0x1a5a   :  { %v2521_v18 = vmul.f32 0.044715, %v2518_v31 }
0x1a5c   :  { %v2524_v20 = vadd.f32 %v2521_v18, %v2509_v6 }
0x1a5e   :  { %v5933_v40 = vpop.eup %5932  ;;  %v2527_v41 = vmul.f32 0.7978846, %v2524_v20 }
0x1a5f   :  { %v2532_v19 = vadd.f32 1.0, %v5933_v40 }
0x1a60   :  { %5934 = vtanh.f32 %v2527_v41 }
0x1a61   :  { %v2535_v63 = vmul.f32 0.5, %v2532_v19 }
0x1a63   :  { %v2538_v21 = vmul.f32 %v2535_v63, %v2506_v32 }
0x1a65   :  { %5478 = vmatmul.msk.f32.vlgmr.msrb.gmra.mxu0 %vm8305_vm5, %v2538_v21 }
0x1a66   :  { %v5935_v22 = vpop.eup %5934 }
0x1a67   :  { %v2533_v4 = vadd.f32 1.0, %v5935_v22 }
0x1a69   :  { %v2536_v9 = vmul.f32 0.5, %v2533_v4 }
0x1a6b   :  { %v2539_v33 = vmul.f32 %v2536_v9, %v2509_v6 }
0x1a6d   :  { %5479 = vmatmul.msk.f32.gmra.mxu0 %vm8305_vm5, %v2539_v33 }
0x1a7b   :  { %v2511_v35 = vpop.f32.mrf.mxu2 }
0x1a7c   :  { %v2512_v57 = vadd.f32 %v2511_v35, %v2478_v38 }
0x1a7e   :  { %v2516_v24 = vmul.f32 %v2512_v57, %v2512_v57 }
0x1a80   :  { %v2519_v37 = vmul.f32 %v2516_v24, %v2512_v57 }
0x1a82   :  { %v2522_v42 = vmul.f32 0.044715, %v2519_v37 }
0x1a84   :  { %v2525_v34 = vadd.f32 %v2522_v42, %v2512_v57 }
0x1a86   :  { %v2528_v39 = vmul.f32 0.7978846, %v2525_v34 }
0x1a88   :  { %5936 = vtanh.f32 %v2528_v39 }
0x1a8e   :  { %v5937_v27 = vpop.eup %5936 }
0x1a8f   :  { %v2534_v28 = vadd.f32 1.0, %v5937_v27 }
0x1a91   :  { %v2537_v53 = vmul.f32 0.5, %v2534_v28 }
0x1a93   :  { %v2540_v11 = vmul.f32 %v2537_v53, %v2512_v57 }
0x1a95   :  { %5480 = vmatmul.msk.f32.gmra.mxu0 %vm8305_vm5, %v2540_v11 }
0x1ace   :  { %v2822_v30 = vpop.f32.mrf.mxu2 }
0x1acf   :  { %v7273_v58 = vadd.f32 %v2822_v30, %v2798_v29 }
0x1ad6   :  { %v2825_v50 = vpop.f32.mrf.mxu2 }
0x1ad7   :  { %v7279_v32 = vadd.f32 %v2825_v50, %v2798_v29 }
0x1ae2   :  { %v2576_v46 = vpop.f32.mrf.mxu0 }
0x1ae3   :  { %v2585_v47 = vadd.f32 %v2576_v46, %v7127_v44 }
0x1ae5   :  { %v2589_v48 = vadd.f32 %v2588_v43, %v2585_v47 }
0x1ae7   :  { %v2594_v54 = vsel %vm65_vm0, %v2589_v48, 0.0 }
0x1ae8   :  { %2595 = vadd.xlane.f32.xlu0 %v2594_v54 }
0x1aea   :  { %v2579_v55 = vpop.f32.mrf.mxu0 }
0x1aeb   :  { %v2586_v38 = vadd.f32 %v2579_v55, %v7132_v52  ;;  %v2669_v52 = vld [vmem:[%s8245_s14 + $0x8] sm:$0xff]  ;;  %v5764_v55 = vld [vmem:[%s8246_s15 + $0x1] ss:$0 sm:$0xff] }
0x1aec   :  { %2698 = vmatpush.msra.mxu3 %v2669_v52 }
0x1aed   :  { %v2590_v15 = vadd.f32 %v2588_v43, %v2586_v38 }
0x1aee   :  { %2699 = vmatpush.msra.mxu3 %v2668_v60 }
0x1aef   :  { %v2597_v26 = vsel %vm65_vm0, %v2590_v15, 0.0 }
0x1af0   :  { %2598 = vadd.xlane.f32.xlu1 %v2597_v26 }
0x1afc   :  { %2832 = vrot.lane.b32.xlu0 %v7279_v32, %s8347_s22 }
0x1b12   :  { %v2582_v56 = vpop.f32.mrf.mxu0 }
0x1b13   :  { %v2587_v44 = vadd.f32 %v2582_v56, %v7137_v59 }
0x1b15   :  { %v2591_v49 = vadd.f32 %v2588_v43, %v2587_v44  ;;  %v5763_v43 = vld [vmem:[%s8246_s15] ss:$0 sm:$0xff] }
0x1b17   :  { %v2600_v10 = vsel %vm1670_vm4, %v2591_v49, 0.0 }
0x1b18   :  { %2601 = vadd.xlane.f32.xlu2 %v2600_v10 }
0x1b5b   :  { %v2596_v13 = vpop.xlane.xlu0 %2595 }
0x1b5c   :  { %v2603_v36 = vmul.f32 %v2596_v13, %v6869_v45 }
0x1b5e   :  { %v2606_v25 = vsub.f32 %v2589_v48, %v2603_v36 }
0x1b60   :  { %v2609_v0 = vmul.f32 %v2606_v25, %v2606_v25 }
0x1b62   :  { %v2612_v59 = vsel %vm65_vm0, %v2609_v0, 0.0 }
0x1b63   :  { %2613 = vadd.xlane.f32.xlu0 %v2612_v59  ;;  %v2599_v5 = vpop.xlane.xlu1 %2598 }
0x1b64   :  { %v2604_v51 = vmul.f32 %v2599_v5, %v6869_v45 }
0x1b66   :  { %v2607_v6 = vsub.f32 %v2590_v15, %v2604_v51 }
0x1b68   :  { %v2610_v3 = vmul.f32 %v2607_v6, %v2607_v6 }
0x1b6a   :  { %v2615_v14 = vsel %vm65_vm0, %v2610_v3, 0.0 }
0x1b6b   :  { %2616 = vadd.xlane.f32.xlu1 %v2615_v14 }
0x1b6e   :  { %v2833_v31 = vpop.permute.xlu0 %2832 }
0x1b6f   :  { %5489 = vmatpush.xpose.msk.msrb.mxu3 %vm194_vm11, %v2833_v31 }
0x1b77   :  { %2929 = vrot.lane.b32.xlu0 %v7273_v58, %s8348_s23 }
0x1b7f   :  { %2925 = vrot.lane.b32.xlu0 %v7273_v58, %s8346_s28 }
0x1b84   :  { %2931 = vrot.lane.b32.xlu1 %v7279_v32, %s8348_s23 }
0x1b87   :  { %3129 = vrot.lane.b32.xlu0 %v7279_v32, %s8349_s5 }
0x1b8b   :  { %v2602_v18 = vpop.xlane.xlu2 %2601 }
0x1b8c   :  { %v2605_v20 = vmul.f32 %v2602_v18, %v6869_v45  ;;  %2927 = vrot.lane.b32.xlu1 %v7279_v32, %s8346_s28 }
0x1b8e   :  { %v7307_v40 = vsub.f32 %v2591_v49, %v2605_v20 }
0x1b8f   :  { %3024 = vrot.lane.b32.xlu0 %v7273_v58, %s8338_s21 }
0x1b90   :  { %v2611_v41 = vmul.f32 %v7307_v40, %v7307_v40 }
0x1b92   :  { %v2618_v19 = vsel %vm1670_vm4, %v2611_v41, 0.0 }
0x1b93   :  { %2619 = vadd.xlane.f32.xlu2 %v2618_v19 }
0x1b94   :  { %3028 = vrot.lane.b32.xlu1 %v7273_v58, %s8336_s29 }
0x1b97   :  { %3125 = vrot.lane.b32.xlu0 %v7279_v32, %s8337_s30 }
0x1b9c   :  { %3123 = vrot.lane.b32.xlu1 %v7273_v58, %s8337_s30 }
0x1bab   :  { %2830 = vrot.lane.b32.xlu2 %v7273_v58, %s8347_s22 }
0x1bb3   :  { %3030 = vrot.lane.b32.xlu2 %v7279_v32, %s8336_s29 }
0x1bbb   :  { %3127 = vrot.lane.b32.xlu2 %v7273_v58, %s8349_s5 }
0x1bc3   :  { %3026 = vrot.lane.b32.xlu2 %v7279_v32, %s8338_s21 }
0x1bcb   :  { %2988 = vrot.lane.b32.xlu2 %v7273_v58, %s8339_s24 }
0x1bd6   :  { %v2614_v63 = vpop.xlane.xlu0 %2613 }
0x1bd7   :  { %v2621_v21 = vmul.f32 %v2614_v63, %v6869_v45 }
0x1bd9   :  { %v2624_v22 = vadd.f32 1e-05, %v2621_v21 }
0x1bdb   :  { %5938 = vrsqrt.f32 %v2624_v22  ;;  %vm2633_vm7 = vweird.f32 %v2624_v22 }
0x1bde   :  { %v2617_v4 = vpop.xlane.xlu1 %2616 }
0x1bdf   :  { %v2622_v9 = vmul.f32 %v2617_v4, %v6869_v45 }
0x1be1   :  { %v5939_v33 = vpop.eup %5938  ;;  %v2625_v35 = vadd.f32 1e-05, %v2622_v9 }
0x1be2   :  { %v2628_v57 = vmul.f32 %v5939_v33, %v2624_v22  ;;  %vm2634_vm6 = vweird.f32 %v5939_v33 }
0x1be3   :  { %5940 = vrsqrt.f32 %v2625_v35  ;;  %vm2635_vm9 = vmor %vm2633_vm7, %vm2634_vm6  ;;  %vm2643_vm8 = vweird.f32 %v2625_v35 }
0x1be4   :  { %v2629_v24 = vmul.f32 %v5939_v33, %v2628_v57 }
0x1be6   :  { %v2630_v37 = vmul.f32 0.5, %v2629_v24 }
0x1be8   :  { %v2631_v42 = vsub.f32 1.5, %v2630_v37 }
0x1be9   :  { %v5941_v34 = vpop.eup %5940  ;;  %v2930_v39 = vpop.permute.xlu0 %2929 }
0x1bea   :  { %v2632_v27 = vmul.f32 %v5939_v33, %v2631_v42  ;;  %v2638_v28 = vmul.f32 %v5941_v34, %v2625_v35  ;;  %vm2644_vm10 = vweird.f32 %v5941_v34 }
0x1beb   :  { %vm2645_vm5 = vmor %vm2643_vm8, %vm2644_vm10 }
0x1bec   :  { %v2636_v53 = vsel %vm2635_vm9, %v5939_v33, %v2632_v27  ;;  %v2639_v11 = vmul.f32 %v5941_v34, %v2638_v28  ;;  %vm8355_vm9 = vcmask 195584  }
0x1bed   :  { %v2657_v30 = vmul.f32 %v2636_v53, %v2606_v25  ;;  %vm8356_vm10 = vmmov %vm8355_vm9 }
0x1bee   :  { %v2640_v29 = vmul.f32 0.5, %v2639_v11 }
0x1bef   :  { %v2661_v54 = vmul.f32 %v5763_v43, %v2657_v30 }
0x1bf0   :  { %v2641_v46 = vsub.f32 1.5, %v2640_v29 }
0x1bf1   :  { %v2926_v47 = vpop.permute.xlu0 %2925  ;;  %v2665_v56 = vadd.f32 %v5764_v55, %v2661_v54 }
0x1bf2   :  { %v2642_v48 = vmul.f32 %v5941_v34, %v2641_v46 }
0x1bf3   :  { %v2675_v10 = vrot.slane %v2665_v56, 1 }
0x1bf4   :  { %v2646_v38 = vsel %vm2645_vm5, %v5941_v34, %v2642_v48  ;;  %v5765_v34 = vld [vmem:[%s8246_s15 + $0x2] ss:$0 sm:$0xff] }
0x1bf5   :  { %v2658_v15 = vmul.f32 %v2646_v38, %v2607_v6 }
0x1bf6   :  { %v2932_v26 = vpop.permute.xlu1 %2931 }
0x1bf7   :  { %5496 = vmatpush.xpose.msk.msra.mxu0 %vm194_vm11, %v2932_v26  ;;  %v2662_v50 = vmul.f32 %v5763_v43, %v2658_v15 }
0x1bf9   :  { %v2666_v44 = vadd.f32 %v5764_v55, %v2662_v50  ;;  %v3130_v49 = vpop.permute.xlu0 %3129 }
0x1bfb   :  { %5497 = vmatpush.xpose.msk.msra.mxu0 %vm194_vm11, %v2930_v39  ;;  %v2676_v52 = vrot.slane %v2666_v44, 1 }
0x1bfd   :  { %v2677_v60 = vsel %vm1610_vm15, %v2675_v10, %v2676_v52 }
0x1bfe   :  { %5481 = vmatmul.msk.f32.vlgmr.msra.gmra.mxu3 %vm65_vm0, %v2677_v60  ;;  %5498 = vmatmul.msk.f32.vlgmr.msra.gmra.mxu0 %vm194_vm11, %v2926_v47  ;;  %v2928_v13 = vpop.permute.xlu1 %2927 }
0x1bff   :  { %5510 = vmatpush.xpose.msk.msrb.mxu0 %vm194_vm11, %v3130_v49 }
0x1c01   :  { %v3025_v21 = vpop.permute.xlu0 %3024 }
0x1c06   :  { %v2620_v36 = vpop.xlane.xlu2 %2619  ;;  %5499 = vmatmul.msk.f32.gmra.mxu0 %vm194_vm11, %v2928_v13  ;;  %v3029_v31 = vpop.permute.xlu1 %3028 }
0x1c07   :  { %v2623_v25 = vmul.f32 %v2620_v36, %v6869_v45 }
0x1c09   :  { %v2626_v0 = vadd.f32 1e-05, %v2623_v25  ;;  %v3126_v57 = vpop.permute.xlu0 %3125 }
0x1c0b   :  { %5942 = vrsqrt.f32 %v2626_v0  ;;  %vm2653_vm6 = vweird.f32 %v2626_v0 }
0x1c0e   :  { %v2831_v59 = vpop.permute.xlu2 %2830  ;;  %v3124_v4 = vpop.permute.xlu1 %3123 }
0x1c0f   :  { %5490 = vmatpush.xpose.msk.msrb.mxu3 %vm194_vm11, %v2831_v59 }
0x1c11   :  { %v5943_v5 = vpop.eup %5942 }
0x1c12   :  { %v2648_v51 = vmul.f32 %v5943_v5, %v2626_v0  ;;  %vm2654_vm5 = vweird.f32 %v5943_v5 }
0x1c13   :  { %vm2655_vm7 = vmor %vm2653_vm6, %vm2654_vm5 }
0x1c14   :  { %v2649_v6 = vmul.f32 %v5943_v5, %v2648_v51 }
0x1c16   :  { %v2650_v3 = vmul.f32 0.5, %v2649_v6  ;;  %v3031_v14 = vpop.permute.xlu2 %3030 }
0x1c17   :  { %5503 = vmatpush.xpose.msk.msra.mxu3 %vm194_vm11, %v3031_v14 }
0x1c18   :  { %v2651_v18 = vsub.f32 1.5, %v2650_v3 }
0x1c1a   :  { %v2652_v20 = vmul.f32 %v5943_v5, %v2651_v18 }
0x1c1b   :  { %5504 = vmatpush.xpose.msk.msra.mxu3 %vm194_vm11, %v3029_v31 }
0x1c1c   :  { %v2656_v41 = vsel %vm2655_vm7, %v5943_v5, %v2652_v20 }
0x1c1d   :  { %v2659_v19 = vmul.f32 %v2656_v41, %v7307_v40 }
0x1c1e   :  { %v3128_v63 = vpop.permute.xlu2 %3127 }
0x1c1f   :  { %5511 = vmatpush.xpose.msk.msrb.mxu0 %vm194_vm11, %v3128_v63  ;;  %v2663_v22 = vmul.f32 %v5763_v43, %v2659_v19 }
0x1c21   :  { %v2667_v9 = vadd.f32 %v5764_v55, %v2663_v22 }
0x1c22   :  { %5512 = vmatmul.msk.f32.vlgmr.msrb.gmra.mxu0 %vm194_vm11, %v3124_v4 }
0x1c23   :  { %v2678_v33 = vrot.slane %v2667_v9, 1 }
0x1c25   :  { %v2679_v35 = vsel %vm1610_vm15, %v2676_v52, %v2678_v33 }
0x1c26   :  { %5482 = vmatmul.msk.f32.gmra.mxu3 %vm65_vm0, %v2679_v35  ;;  %v3027_v40 = vpop.permute.xlu2 %3026 }
0x1c2a   :  { %5513 = vmatmul.msk.f32.gmra.mxu0 %vm194_vm11, %v3126_v57 }
0x1c2e   :  { %5491 = vmatmul.msk.f32.vlgmr.msrb.gmra.mxu3 %vm194_vm11, %v7273_v58  ;;  %v2989_v20 = vpop.permute.xlu2 %2988 }
0x1c36   :  { %5492 = vmatmul.msk.f32.gmra.mxu3 %vm194_vm11, %v7279_v32 }
0x1c3e   :  { %5505 = vmatmul.msk.f32.vlgmr.msra.gmra.mxu3 %vm194_vm11, %v3025_v21 }
0x1c46   :  { %5506 = vmatmul.msk.f32.gmra.mxu3 %vm194_vm11, %v3027_v40 }
0x1c7b   :  { %v2958_v24 = vpop.f32.mrf.mxu0 }
0x1c7c   :  { %v2964_v37 = vmul.f32 0.35355338, %v2958_v24 }
0x1c7e   :  { %v2966_v42 = vsel %vm228_vm12, %v2964_v37, -inf }
0x1c7f   :  { %2967 = vmax.xlane.f32.xlu1 %v2966_v42 }
0x1c81   :  { %v2701_v39 = vpop.f32.mrf.mxu3 }
0x1c82   :  { %v2702_v27 = vadd.f32 %v5765_v34, %v2701_v39 }
0x1c83   :  { %v2961_v28 = vpop.f32.mrf.mxu0 }
0x1c84   :  { %2707 = vst [vmem:[%s8247_s16] sm:$0xff] %v2702_v27  ;;  %v2965_v53 = vmul.f32 0.35355338, %v2961_v28 }
0x1c86   :  { %v2969_v11 = vsel %vm232_vm13, %v2965_v53, -inf }
0x1c87   :  { %2970 = vmax.xlane.f32.xlu0 %v2969_v11 }
0x1c98   :  { %2990 = vrot.lane.b32.xlu1 %v7279_v32, %s8339_s24 }
0x1c9b   :  { %2891 = vrot.lane.b32.xlu0 %v7279_v32, %s8350_s1 }
0x1c9f   :  { %v3156_v29 = vpop.f32.mrf.mxu0 }
0x1ca0   :  { %v3162_v56 = vmul.f32 0.35355338, %v3156_v29 }
0x1ca2   :  { %v3164_v49 = vsel %vm228_vm12, %v3162_v56, -inf }
0x1ca7   :  { %v3159_v30 = vpop.f32.mrf.mxu0 }
0x1ca8   :  { %v7373_v43 = vmul.f32 0.35355338, %v3159_v30 }
0x1ca9   :  { %v2704_v46 = vpop.f32.mrf.mxu3 }
0x1caa   :  { %v2705_v47 = vadd.f32 %v5765_v34, %v2704_v46  ;;  %v3167_v48 = vsel %vm232_vm13, %v7373_v43, -inf }
0x1cab   :  { %3168 = vmax.xlane.f32.xlu2 %v3167_v48 }
0x1cac   :  { %2708 = vst [vmem:[%s8247_s16 + $0x8] sm:$0xff] %v2705_v47  ;;  %s8357_s16 = sld [smem:[#allocation3_spill]] }
0x1cb1   :  { %v2859_v54 = vpop.f32.mrf.mxu3 }
0x1cb2   :  { %v2865_v55 = vmul.f32 0.35355338, %v2859_v54 }
0x1cb4   :  { %v2867_v38 = vsel %vm228_vm12, %v2865_v55, -inf }
0x1cb5   :  { %2868 = vmax.xlane.f32.xlu2 %v2867_v38 }
0x1cb9   :  { %v2862_v15 = vpop.f32.mrf.mxu3 }
0x1cba   :  { %v2866_v26 = vmul.f32 0.35355338, %v2862_v15 }
0x1cbc   :  { %v2870_v50 = vsel %vm232_vm13, %v2866_v26, -inf }
0x1cbd   :  { %2871 = vmax.xlane.f32.xlu2 %v2870_v50 }
0x1cc1   :  { %v3057_v44 = vpop.f32.mrf.mxu3 }
0x1cc2   :  { %3165 = vmax.xlane.f32.xlu1 %v3164_v49  ;;  %v3063_v31 = vmul.f32 0.35355338, %v3057_v44 }
0x1cc4   :  { %v3065_v19 = vsel %vm228_vm12, %v3063_v31, -inf }
0x1cc9   :  { %v3060_v10 = vpop.f32.mrf.mxu3 }
0x1cca   :  { %v3064_v52 = vmul.f32 0.35355338, %v3060_v10 }
0x1ccc   :  { %v3068_v60 = vsel %vm232_vm13, %v3064_v52, -inf }
0x1ccd   :  { %3069 = vmax.xlane.f32.xlu1 %v3068_v60 }
0x1cd5   :  { %2889 = vrot.lane.b32.xlu2 %v7273_v58, %s8350_s1 }
0x1cf2   :  { %v2968_v13 = vpop.xlane.xlu1 %2967 }
0x1cf3   :  { %v2972_v36 = vsub.f32 %v2964_v37, %v2968_v13 }
0x1cf5   :  { %v2974_v25 = vmul.f32 1.442695, %v2972_v36 }
0x1cf7   :  { %5944 = vpow2.f32 %v2974_v25 }
0x1cfa   :  { %v2971_v0 = vpop.xlane.xlu0 %2970 }
0x1cfb   :  { %v2973_v59 = vsub.f32 %v2965_v53, %v2971_v0 }
0x1cfd   :  { %v5945_v5 = vpop.eup %5944  ;;  %v2976_v51 = vmul.f32 1.442695, %v2973_v59 }
0x1cfe   :  { %v2978_v6 = vsel %vm228_vm12, %v5945_v5, 0.0 }
0x1cff   :  { %5946 = vpow2.f32 %v2976_v51  ;;  %2979 = vadd.xlane.f32.xlu0 %v2978_v6 }
0x1d05   :  { %v5947_v3 = vpop.eup %5946 }
0x1d06   :  { %v2981_v14 = vsel %vm232_vm13, %v5947_v3, 0.0 }
0x1d07   :  { %2982 = vadd.xlane.f32.xlu0 %v2981_v14 }
0x1d0a   :  { %v2991_v18 = vpop.permute.xlu1 %2990 }
0x1d0b   :  { %5500 = vmatpush.msk.msrb.mxu2 %vm92_vm1, %v2991_v18 }
0x1d0d   :  { %v2892_v41 = vpop.permute.xlu0 %2891  ;;  %3016 = vmatpush.msrb.mxu2 %v2989_v20 }
0x1d0e   :  { %5493 = vmatpush.msk.msrb.mxu1 %vm92_vm1, %v2892_v41 }
0x1d0f   :  { %3066 = vmax.xlane.f32.xlu0 %v3065_v19 }
0x1d1e   :  { %v3169_v63 = vpop.xlane.xlu2 %3168 }
0x1d1f   :  { %v3171_v42 = vsub.f32 %v7373_v43, %v3169_v63 }
0x1d21   :  { %v3174_v28 = vmul.f32 1.442695, %v3171_v42 }
0x1d28   :  { %v2869_v21 = vpop.xlane.xlu2 %2868 }
0x1d29   :  { %v2873_v22 = vsub.f32 %v2865_v55, %v2869_v21 }
0x1d2b   :  { %v2875_v4 = vmul.f32 1.442695, %v2873_v22 }
0x1d2d   :  { %5948 = vpow2.f32 %v2875_v4 }
0x1d30   :  { %v2872_v9 = vpop.xlane.xlu2 %2871 }
0x1d31   :  { %v2874_v33 = vsub.f32 %v2866_v26, %v2872_v9 }
0x1d33   :  { %v5949_v35 = vpop.eup %5948  ;;  %v2877_v57 = vmul.f32 1.442695, %v2874_v33 }
0x1d34   :  { %v2879_v40 = vsel %vm228_vm12, %v5949_v35, 0.0 }
0x1d35   :  { %5950 = vpow2.f32 %v2877_v57  ;;  %2880 = vadd.xlane.f32.xlu2 %v2879_v40  ;;  %v3166_v24 = vpop.xlane.xlu1 %3165 }
0x1d36   :  { %v3170_v37 = vsub.f32 %v3162_v56, %v3166_v24 }
0x1d38   :  { %v3172_v34 = vmul.f32 1.442695, %v3170_v37  ;;  %v2890_v39 = vpop.permute.xlu2 %2889 }
0x1d39   :  { %2917 = vmatpush.msrb.mxu1 %v2890_v39 }
0x1d3a   :  { %5952 = vpow2.f32 %v3172_v34 }
0x1d3b   :  { %v5951_v27 = vpop.eup %5950  ;;  %5954 = vpow2.f32 %v3174_v28 }
0x1d3c   :  { %v2882_v53 = vsel %vm232_vm13, %v5951_v27, 0.0 }
0x1d3d   :  { %2883 = vadd.xlane.f32.xlu1 %v2882_v53 }
0x1d40   :  { %v7394_v11 = vpop.eup %5952  ;;  %v3070_v46 = vpop.xlane.xlu1 %3069 }
0x1d41   :  { %v3176_v29 = vsel %vm228_vm12, %v7394_v11, 0.0  ;;  %v7398_v30 = vpop.eup %5954  ;;  %v3072_v47 = vsub.f32 %v3064_v52, %v3070_v46 }
0x1d42   :  { %3177 = vadd.xlane.f32.xlu0 %v3176_v29  ;;  %v3179_v43 = vsel %vm232_vm13, %v7398_v30, 0.0 }
0x1d43   :  { %v3075_v48 = vmul.f32 1.442695, %v3072_v47 }
0x1d4a   :  { %3180 = vadd.xlane.f32.xlu0 %v3179_v43 }
0x1d56   :  { %3188 = vrot.lane.b32.xlu1 %v7279_v32, %s8340_s0 }
0x1d5e   :  { %3089 = vrot.lane.b32.xlu0 %v7279_v32, %s8351_s19 }
0x1d66   :  { %3087 = vrot.lane.b32.xlu0 %v7273_v58, %s8351_s19 }
0x1d72   :  { %v2980_v54 = vpop.xlane.xlu0 %2979 }
0x1d73   :  { %5956 = vrcp.f32 %v2980_v54 }
0x1d74   :  { %5958 = vpow2.f32 %v3075_v48 }
0x1d79   :  { %v5957_v55 = vpop.eup %5956 }
0x1d7a   :  { %v2986_v38 = vmul.f32 %v5957_v55, %v5945_v5  ;;  %v2983_v15 = vpop.xlane.xlu0 %2982  ;;  %v5959_v26 = vpop.eup %5958 }
0x1d7b   :  { %5960 = vrcp.f32 %v2983_v15  ;;  %v3080_v50 = vsel %vm232_vm13, %v5959_v26, 0.0 }
0x1d7c   :  { %5501 = vmatmul.msk.f32.vlgmr.msrb.gmra.mxu2 %vm228_vm12, %v2986_v38  ;;  %v3299_v38 = vperm.slane %v7255_v8, 4 }
0x1d80   :  { %3081 = vadd.xlane.f32.xlu1 %v3080_v50 }
0x1d81   :  { %v5961_v32 = vpop.eup %5960 }
0x1d82   :  { %v3067_v56 = vpop.xlane.xlu0 %3066  ;;  %v2987_v44 = vmul.f32 %v5961_v32, %v5947_v3 }
0x1d83   :  { %v3071_v49 = vsub.f32 %v3063_v31, %v3067_v56 }
0x1d84   :  { %5502 = vmatmul.msk.f32.gmra.mxu2 %vm228_vm12, %v2987_v44 }
0x1d85   :  { %v3073_v10 = vmul.f32 1.442695, %v3071_v49 }
0x1d87   :  { %5962 = vpow2.f32 %v3073_v10 }
0x1d8d   :  { %v5963_v52 = vpop.eup %5962 }
0x1d8e   :  { %v3077_v60 = vsel %vm228_vm12, %v5963_v52, 0.0 }
0x1d8f   :  { %3078 = vadd.xlane.f32.xlu2 %v3077_v60 }
0x1da7   :  { %3186 = vrot.lane.b32.xlu2 %v7273_v58, %s8340_s0 }
0x1da8   :  { %v2881_v13 = vpop.xlane.xlu2 %2880 }
0x1da9   :  { %5964 = vrcp.f32 %v2881_v13 }
0x1daf   :  { %v5965_v36 = vpop.eup %5964  ;;  %5716 = vrot.lane.b32.xlu2 %v5715_v17, %s8352_s27 }
0x1db0   :  { %v2887_v25 = vmul.f32 %v5965_v36, %v5949_v35  ;;  %v2884_v0 = vpop.xlane.xlu1 %2883 }
0x1db1   :  { %5966 = vrcp.f32 %v2884_v0 }
0x1db2   :  { %5494 = vmatmul.msk.f32.vlgmr.msrb.gmra.mxu1 %vm228_vm12, %v2887_v25 }
0x1db5   :  { %v3178_v5 = vpop.xlane.xlu0 %3177 }
0x1db6   :  { %5968 = vrcp.f32 %v3178_v5  ;;  %v3355_v5 = vld [vmem:[%s8357_s16 + $0x18] sm:$0xff] }
0x1db7   :  { %v5967_v59 = vpop.eup %5966  ;;  %5721 = vrot.lane.b32.xlu2 %v5720_v16, %s8352_s27 }
0x1db8   :  { %v2888_v58 = vmul.f32 %v5967_v59, %v5951_v27 }
0x1dba   :  { %5495 = vmatmul.msk.f32.gmra.mxu1 %vm228_vm12, %v2888_v58 }
0x1dbc   :  { %v5969_v12 = vpop.eup %5968 }
0x1dbd   :  { %v3181_v51 = vpop.xlane.xlu0 %3180  ;;  %v3184_v14 = vmul.f32 %v5969_v12, %v7394_v11  ;;  %v3418_v12 = vld [vmem:[%s8237_s6 + $0x70] sm:$0xff] }
0x1dc8   :  { %v3189_v6 = vpop.permute.xlu1 %3188 }
0x1dc9   :  { %5514 = vmatpush.msk.msra.mxu2 %vm92_vm1, %v3189_v6  ;;  %v3353_v6 = vld [vmem:[%s8357_s16 + $0x8] sm:$0xff] }
0x1dd0   :  { %v3090_v7 = vpop.permute.xlu0 %3089 }
0x1dd1   :  { %5507 = vmatpush.msk.msra.mxu1 %vm92_vm1, %v3090_v7  ;;  %v3352_v7 = vld [vmem:[%s8357_s16] sm:$0xff] }
0x1dd8   :  { %v3088_v2 = vpop.permute.xlu0 %3087 }
0x1dd9   :  { %3115 = vmatpush.msra.mxu1 %v3088_v2 }
0x1ddb   :  { %3375 = vmatpush.msrb.mxu1 %v3355_v5 }
0x1df3   :  { %v3082_v62 = vpop.xlane.xlu1 %3081 }
0x1dff   :  { %v3018_v17 = vpop.f32.mrf.mxu2 }
0x1e00   :  { %3224 = vrot.lane.b32.xlu0 %v3018_v17, %s8343_s26 }
0x1e02   :  { %v3079_v3 = vpop.xlane.xlu2 %3078 }
0x1e03   :  { %5970 = vrcp.f32 %v3079_v3 }
0x1e04   :  { %5972 = vrcp.f32 %v3181_v51  ;;  %v3354_v51 = vld [vmem:[%s8357_s16 + $0x10] sm:$0xff] }
0x1e05   :  { %5974 = vrcp.f32 %v3082_v62  ;;  %3376 = vmatpush.msrb.mxu1 %v3354_v51  ;;  %v3419_v62 = vld [vmem:[%s8237_s6 + $0x78] sm:$0xff] }
0x1e06   :  { %3420 = vmatpush.msra.mxu0 %v3419_v62 }
0x1e07   :  { %v3021_v24 = vpop.f32.mrf.mxu2  ;;  %3377 = vmatpush.msrb.mxu1 %v3353_v6 }
0x1e08   :  { %3421 = vmatpush.msra.mxu0 %v3418_v12 }
0x1e09   :  { %v5971_v16 = vpop.eup %5970  ;;  %3378 = vmatpush.msrb.mxu1 %v3352_v7 }
0x1e0a   :  { %v3085_v31 = vmul.f32 %v5971_v16, %v5963_v52  ;;  %v3187_v18 = vpop.permute.xlu2 %3186  ;;  %v5973_v20 = vpop.eup %5972 }
0x1e0b   :  { %3214 = vmatpush.msra.mxu2 %v3187_v18  ;;  %v5975_v41 = vpop.eup %5974  ;;  %v3185_v63 = vmul.f32 %v5973_v20, %v7398_v30 }
0x1e0c   :  { %5508 = vmatmul.msk.f32.vlgmr.msra.gmra.mxu1 %vm228_vm12, %v3085_v31  ;;  %5515 = vmatmul.msk.f32.vlgmr.msra.gmra.mxu2 %vm228_vm12, %v3184_v14  ;;  %v3086_v19 = vmul.f32 %v5975_v41, %v5959_v26  ;;  %v3417_v31 = vld [vmem:[%s8237_s6 + $0x68] sm:$0xff] }
0x1e0d   :  { %3422 = vmatpush.msra.mxu0 %v3417_v31 }
0x1e12   :  { %v5717_v22 = vpop.permute.xlu2 %5716 }
0x1e13   :  { %v5719_v4 = vunpack.i.h.bf16 %v5717_v22  ;;  %v5718_v9 = vunpack.i.l.bf16 %v5717_v22 }
0x1e14   :  { %5509 = vmatmul.msk.f32.gmra.mxu1 %vm228_vm12, %v3086_v19  ;;  %5516 = vmatmul.msk.f32.gmra.mxu2 %vm228_vm12, %v3185_v63 }
0x1e15   :  { %3286 = vmatpush.msrb.mxu3 %v5718_v9 }
0x1e17   :  { %3287 = vmatpush.msrb.mxu3 %v5719_v4  ;;  %v3346_v4 = vperm.slane %v7255_v8, 2 }
0x1e1a   :  { %v5722_v33 = vpop.permute.xlu2 %5721 }
0x1e1b   :  { %v5724_v57 = vunpack.i.h.bf16 %v5722_v33  ;;  %v5723_v40 = vunpack.i.l.bf16 %v5722_v33  ;;  %v3349_v33 = vperm.slane %v7255_v8, 3  ;;  %v3416_v8 = vld [vmem:[%s8237_s6 + $0x60] sm:$0xff] }
0x1e1c   :  { %3423 = vmatpush.msra.mxu0 %v3416_v8 }
0x1e1d   :  { %3288 = vmatpush.msrb.mxu3 %v5723_v40 }
0x1e1f   :  { %3289 = vmatpush.msrb.mxu3 %v5724_v57 }
0x1e2f   :  { %v2919_v21 = vpop.f32.mrf.mxu1 }
0x1e37   :  { %v2922_v35 = vpop.f32.mrf.mxu1 }
0x1e72   :  { %v3225_v27 = vpop.permute.xlu0 %3224 }
0x1e73   :  { %v3246_v28 = vsel %vm194_vm11, %v2919_v21, %v3225_v27 }
0x1e89   :  { %v3117_v37 = vpop.f32.mrf.mxu1 }
0x1e8a   :  { %3232 = vrot.lane.b32.xlu0 %v3117_v37, %s8353_s18 }
0x1e8f   :  { %v3216_v42 = vpop.f32.mrf.mxu2 }
0x1e90   :  { %3240 = vrot.lane.b32.xlu2 %v3216_v42, %s8354_s17 }
0x1e91   :  { %v3120_v34 = vpop.f32.mrf.mxu1 }
0x1e92   :  { %3226 = vrot.lane.b32.xlu0 %v3021_v24, %s8343_s26 }
0x1e97   :  { %v3219_v39 = vpop.f32.mrf.mxu2 }
0x1e98   :  { %3242 = vrot.lane.b32.xlu1 %v3219_v39, %s8354_s17  ;;  %3234 = vrot.lane.b32.xlu2 %v3120_v34, %s8353_s18 }
0x1eea   :  { %v3241_v11 = vpop.permute.xlu2 %3240 }
0x1ef2   :  { %v3235_v47 = vpop.permute.xlu2 %3234 }
0x1efc   :  { %v3233_v53 = vpop.permute.xlu0 %3232 }
0x1efd   :  { %v3248_v29 = vsel %vm65_vm0, %v3246_v28, %v3233_v53 }
0x1efe   :  { %v3250_v30 = vsel %vm8355_vm9, %v3248_v29, %v3241_v11 }
0x1eff   :  { %5517 = vmatmul.msk.f32.vlgmr.msrb.gmra.mxu3 %vm99_vm2, %v3250_v30  ;;  %v3415_v30 = vld [vmem:[%s8237_s6 + $0x58] sm:$0xff] }
0x1f00   :  { %3424 = vmatpush.msra.mxu0 %v3415_v30 }
0x1f04   :  { %v3227_v43 = vpop.permute.xlu0 %3226 }
0x1f05   :  { %v3247_v46 = vsel %vm194_vm11, %v2922_v35, %v3227_v43  ;;  %v3414_v43 = vld [vmem:[%s8237_s6 + $0x50] sm:$0xff] }
0x1f06   :  { %v3249_v48 = vsel %vm65_vm0, %v3247_v46, %v3235_v47  ;;  %3425 = vmatpush.msra.mxu0 %v3414_v43  ;;  %v3413_v46 = vld [vmem:[%s8237_s6 + $0x48] sm:$0xff]  ;;  %v3412_v47 = vld [vmem:[%s8237_s6 + $0x40] sm:$0xff] }
0x1f08   :  { %3426 = vmatpush.msra.mxu0 %v3413_v46 }
0x1f0a   :  { %v3243_v54 = vpop.permute.xlu1 %3242  ;;  %3427 = vmatpush.msra.mxu0 %v3412_v47 }
0x1f0b   :  { %v3251_v55 = vsel %vm8356_vm10, %v3249_v48, %v3243_v54  ;;  %v3411_v48 = vld [vmem:[%s8237_s6 + $0x38] sm:$0xff]  ;;  %v3410_v54 = vld [vmem:[%s8237_s6 + $0x30] sm:$0xff] }
0x1f0c   :  { %5518 = vmatmul.msk.f32.gmra.mxu3 %vm99_vm2, %v3251_v55  ;;  %3428 = vmatpush.msra.mxu0 %v3411_v48  ;;  %v3409_v55 = vld [vmem:[%s8237_s6 + $0x28] sm:$0xff] }
0x1f0e   :  { %3429 = vmatpush.msra.mxu0 %v3410_v54 }
0x1f10   :  { %3430 = vmatpush.msra.mxu0 %v3409_v55 }
0x1f82   :  { %v3291_v15 = vpop.f32.mrf.mxu3 }
0x1f83   :  { %v3297_v26 = vadd.f32 %v3291_v15, %v7152_v1  ;;  %v3407_v15 = vld [vmem:[%s8237_s6 + $0x18] sm:$0xff] }
0x1f85   :  { %v7448_v50 = vadd.f32 %v3299_v38, %v3297_v26  ;;  %v3406_v26 = vld [vmem:[%s8237_s6 + $0x10] sm:$0xff] }
0x1f87   :  { %v3302_v32 = vsel %vm99_vm2, %v7448_v50, 0.0 }
0x1f88   :  { %3303 = vadd.xlane.f32.xlu0 %v3302_v32  ;;  %v3405_v32 = vld [vmem:[%s8237_s6 + $0x8] sm:$0xff] }
0x1f8f   :  { %v3294_v56 = vpop.f32.mrf.mxu3 }
0x1f90   :  { %v3298_v44 = vadd.f32 %v3294_v56, %v7143_v61  ;;  %v3404_v56 = vld [vmem:[%s8237_s6] sm:$0xff] }
0x1f92   :  { %v7453_v49 = vadd.f32 %v3299_v38, %v3298_v44  ;;  %v3408_v38 = vld [vmem:[%s8237_s6 + $0x20] sm:$0xff] }
0x1f93   :  { %3431 = vmatpush.msra.mxu0 %v3408_v38  ;;  %v6107_v44 = vld [vmem:[%s8235_s7] sm:$0xff] }
0x1f94   :  { %v3305_v10 = vsel %vm103_vm3, %v7453_v49, 0.0 }
0x1f95   :  { %3306 = vadd.xlane.f32.xlu2 %v3305_v10  ;;  %3432 = vmatpush.msra.mxu0 %v3407_v15  ;;  %v3356_v10 = vperm.slane %v6107_v44, 7 }
0x1f97   :  { %3433 = vmatpush.msra.mxu0 %v3406_v26 }
0x1f99   :  { %3434 = vmatpush.msra.mxu0 %v3405_v32 }
0x1f9b   :  { %3435 = vmatpush.msra.mxu0 %v3404_v56  ;;  %v7581_v56 = vld [vmem:[%s8235_s7 + $0x8] sm:$0xff] }
0x1ffb   :  { %v3304_v52 = vpop.xlane.xlu0 %3303 }
0x1ffc   :  { %v3308_v60 = vmul.f32 %v3304_v52, %v6263_v23 }
0x1ffe   :  { %v3310_v1 = vsub.f32 %v7448_v50, %v3308_v60 }
0x2000   :  { %v3312_v13 = vmul.f32 %v3310_v1, %v3310_v1 }
0x2002   :  { %v3314_v36 = vsel %vm99_vm2, %v3312_v13, 0.0 }
0x2003   :  { %3315 = vadd.xlane.f32.xlu1 %v3314_v36 }
0x2008   :  { %v3307_v25 = vpop.xlane.xlu2 %3306 }
0x2009   :  { %v3309_v0 = vmul.f32 %v3307_v25, %v6263_v23 }
0x200b   :  { %v3311_v61 = vsub.f32 %v7453_v49, %v3309_v0 }
0x200d   :  { %v3313_v59 = vmul.f32 %v3311_v61, %v3311_v61 }
0x200f   :  { %v3317_v58 = vsel %vm103_vm3, %v3313_v59, 0.0 }
0x2010   :  { %3318 = vadd.xlane.f32.xlu2 %v3317_v58 }
0x2076   :  { %v3316_v2 = vpop.xlane.xlu1 %3315 }
0x2077   :  { %v3320_v17 = vmul.f32 %v3316_v2, %v6263_v23 }
0x2079   :  { %v3322_v3 = vadd.f32 1e-05, %v3320_v17 }
0x207b   :  { %5976 = vrsqrt.f32 %v3322_v3  ;;  %vm3330_vm5 = vweird.f32 %v3322_v3 }
0x2081   :  { %v5977_v16 = vpop.eup %5976 }
0x2082   :  { %v3325_v14 = vmul.f32 %v5977_v16, %v3322_v3  ;;  %vm3331_vm8 = vweird.f32 %v5977_v16 }
0x2083   :  { %v3319_v18 = vpop.xlane.xlu2 %3318  ;;  %vm3332_vm6 = vmor %vm3330_vm5, %vm3331_vm8 }
0x2084   :  { %v3326_v20 = vmul.f32 %v5977_v16, %v3325_v14  ;;  %v3321_v41 = vmul.f32 %v3319_v18, %v6263_v23  ;;  %v3445_v18 = vperm.slane %v6107_v44, 5  ;;  %v3497_v44 = vperm.slane %v7581_v56, 0 }
0x2086   :  { %v3327_v19 = vmul.f32 0.5, %v3326_v20  ;;  %v3323_v63 = vadd.f32 1e-05, %v3321_v41 }
0x2088   :  { %v3328_v21 = vsub.f32 1.5, %v3327_v19  ;;  %5978 = vrsqrt.f32 %v3323_v63  ;;  %vm3340_vm9 = vweird.f32 %v3323_v63 }
0x208a   :  { %v3329_v22 = vmul.f32 %v5977_v16, %v3328_v21 }
0x208c   :  { %v3333_v9 = vsel %vm3332_vm6, %v5977_v16, %v3329_v22 }
0x208d   :  { %v3344_v35 = vmul.f32 %v3333_v9, %v3310_v1 }
0x208e   :  { %v5979_v57 = vpop.eup %5978 }
0x208f   :  { %v3347_v40 = vmul.f32 %v3346_v4, %v3344_v35  ;;  %v3335_v24 = vmul.f32 %v5979_v57, %v3323_v63  ;;  %vm3341_vm7 = vweird.f32 %v5979_v57 }
0x2090   :  { %vm3342_vm10 = vmor %vm3340_vm9, %vm3341_vm7 }
0x2091   :  { %v3350_v37 = vadd.f32 %v3349_v33, %v3347_v40  ;;  %v3336_v42 = vmul.f32 %v5979_v57, %v3335_v24 }
0x2093   :  { %v3337_v34 = vmul.f32 0.5, %v3336_v42  ;;  %5519 = vmatmul.msk.f32.vlgmr.msrb.gmra.mxu1 %vm99_vm2, %v3350_v37 }
0x2095   :  { %v3338_v39 = vsub.f32 1.5, %v3337_v34 }
0x2097   :  { %v3339_v27 = vmul.f32 %v5979_v57, %v3338_v39  ;;  %v7551_v39 = vld [vmem:[%s8234_s4 + $0x38] sm:$0xff] }
0x2098   :  { %3522 = vmatpush.msrb.mxu2 %v7551_v39 }
0x2099   :  { %v3343_v28 = vsel %vm3342_vm10, %v5979_v57, %v3339_v27  ;;  %v7557_v27 = vld [vmem:[%s8234_s4 + $0x30] sm:$0xff] }
0x209a   :  { %v3345_v53 = vmul.f32 %v3343_v28, %v3311_v61  ;;  %3523 = vmatpush.msrb.mxu2 %v7557_v27  ;;  %v7563_v28 = vld [vmem:[%s8234_s4 + $0x28] sm:$0xff]  ;;  %v5725_v30 = vpack.i.bf16 %v7557_v27, %v7551_v39 }
0x209c   :  { %v3348_v11 = vmul.f32 %v3346_v4, %v3345_v53  ;;  %3524 = vmatpush.msrb.mxu2 %v7563_v28  ;;  %v7569_v53 = vld [vmem:[%s8234_s4 + $0x20] sm:$0xff] }
0x209d   :  { %v5730_v43 = vpack.i.bf16 %v7569_v53, %v7563_v28 }
0x209e   :  { %v3351_v29 = vadd.f32 %v3349_v33, %v3348_v11  ;;  %3525 = vmatpush.msrb.mxu2 %v7569_v53 }
0x20a0   :  { %5520 = vmatmul.msk.f32.gmra.mxu1 %vm99_vm2, %v3351_v29 }
0x2110   :  { %v3380_v52 = vpop.f32.mrf.mxu1 }
0x2111   :  { %v3381_v60 = vadd.f32 %v3380_v52, %v3356_v10  ;;  %v3500_v52 = vperm.slane %v7581_v56, 1 }
0x2113   :  { %v3386_v1 = vmul.f32 %v3381_v60, %v3381_v60 }
0x2115   :  { %v3388_v13 = vmul.f32 %v3386_v1, %v3381_v60 }
0x2117   :  { %v3390_v36 = vmul.f32 0.044715, %v3388_v13 }
0x2119   :  { %v3392_v25 = vadd.f32 %v3390_v36, %v3381_v60 }
0x211b   :  { %v3394_v0 = vmul.f32 0.7978846, %v3392_v25 }
0x211d   :  { %5980 = vtanh.f32 %v3394_v0  ;;  %v3383_v61 = vpop.f32.mrf.mxu1 }
0x211e   :  { %v3384_v59 = vadd.f32 %v3383_v61, %v3356_v10 }
0x2120   :  { %v3387_v58 = vmul.f32 %v3384_v59, %v3384_v59 }
0x2122   :  { %v3389_v5 = vmul.f32 %v3387_v58, %v3384_v59 }
0x2123   :  { %v5981_v51 = vpop.eup %5980 }
0x2124   :  { %v3398_v6 = vadd.f32 1.0, %v5981_v51  ;;  %v3391_v7 = vmul.f32 0.044715, %v3389_v5 }
0x2126   :  { %v3400_v2 = vmul.f32 0.5, %v3398_v6  ;;  %v3393_v17 = vadd.f32 %v3391_v7, %v3384_v59 }
0x2128   :  { %v3402_v3 = vmul.f32 %v3400_v2, %v3381_v60  ;;  %v3395_v62 = vmul.f32 0.7978846, %v3393_v17  ;;  %v3503_v2 = vperm.slane %v7581_v56, 6 }
0x212a   :  { %3436 = vmatmul.f32.vlgmr.msra.gmra.mxu0 %v3402_v3  ;;  %5982 = vtanh.f32 %v3395_v62 }
0x2130   :  { %v5983_v12 = vpop.eup %5982 }
0x2131   :  { %v3399_v16 = vadd.f32 1.0, %v5983_v12 }
0x2133   :  { %v3401_v14 = vmul.f32 0.5, %v3399_v16 }
0x2135   :  { %v3403_v31 = vmul.f32 %v3401_v14, %v3384_v59 }
0x2137   :  { %3439 = vmatmul.f32.gmra.mxu0 %v3403_v31 }
0x21a7   :  { %v3437_v20 = vpop.f32.mrf.mxu0 }
0x21a8   :  { %v3443_v41 = vadd.f32 %v3437_v20, %v7448_v50 }
0x21aa   :  { %v7533_v19 = vadd.f32 %v3445_v18, %v3443_v41 }
0x21ac   :  { %v3453_v63 = vsel %vm99_vm2, %v7533_v19, 0.0 }
0x21ad   :  { %3454 = vadd.xlane.f32.xlu0 %v3453_v63 }
0x21b4   :  { %v3440_v21 = vpop.f32.mrf.mxu0 }
0x21b5   :  { %v3444_v22 = vadd.f32 %v3440_v21, %v7453_v49 }
0x21b7   :  { %v7538_v4 = vadd.f32 %v3445_v18, %v3444_v22 }
0x21b9   :  { %v3456_v9 = vsel %vm103_vm3, %v7538_v4, 0.0 }
0x21ba   :  { %3457 = vadd.xlane.f32.xlu2 %v3456_v9 }
0x2220   :  { %v3455_v33 = vpop.xlane.xlu0 %3454 }
0x2221   :  { %v3459_v35 = vmul.f32 %v3455_v33, %v6263_v23 }
0x2223   :  { %v3461_v50 = vsub.f32 %v7533_v19, %v3459_v35 }
0x2225   :  { %v3463_v57 = vmul.f32 %v3461_v50, %v3461_v50 }
0x2227   :  { %v3465_v40 = vsel %vm99_vm2, %v3463_v57, 0.0 }
0x2228   :  { %3466 = vadd.xlane.f32.xlu0 %v3465_v40 }
0x222d   :  { %v3458_v24 = vpop.xlane.xlu2 %3457 }
0x222e   :  { %v3460_v37 = vmul.f32 %v3458_v24, %v6263_v23 }
0x2230   :  { %v3462_v49 = vsub.f32 %v7538_v4, %v3460_v37 }
0x2232   :  { %v3464_v42 = vmul.f32 %v3462_v49, %v3462_v49 }
0x2234   :  { %v3468_v34 = vsel %vm103_vm3, %v3464_v42, 0.0 }
0x2235   :  { %3469 = vadd.xlane.f32.xlu2 %v3468_v34 }
0x229b   :  { %v3467_v11 = vpop.xlane.xlu0 %3466 }
0x229c   :  { %v3471_v29 = vmul.f32 %v3467_v11, %v6263_v23 }
0x229e   :  { %v3473_v8 = vadd.f32 1e-05, %v3471_v29 }
0x22a0   :  { %5984 = vrsqrt.f32 %v3473_v8  ;;  %vm3481_vm5 = vweird.f32 %v3473_v8 }
0x22a6   :  { %v5985_v46 = vpop.eup %5984 }
0x22a7   :  { %v3476_v47 = vmul.f32 %v5985_v46, %v3473_v8  ;;  %vm3482_vm8 = vweird.f32 %v5985_v46 }
0x22a8   :  { %v3470_v48 = vpop.xlane.xlu2 %3469  ;;  %vm3483_vm6 = vmor %vm3481_vm5, %vm3482_vm8 }
0x22a9   :  { %v3477_v54 = vmul.f32 %v5985_v46, %v3476_v47  ;;  %v3472_v55 = vmul.f32 %v3470_v48, %v6263_v23 }
0x22ab   :  { %v3478_v38 = vmul.f32 0.5, %v3477_v54  ;;  %v3474_v15 = vadd.f32 1e-05, %v3472_v55 }
0x22ad   :  { %v3479_v26 = vsub.f32 1.5, %v3478_v38  ;;  %5986 = vrsqrt.f32 %v3474_v15  ;;  %vm3491_vm9 = vweird.f32 %v3474_v15 }
0x22af   :  { %v3480_v32 = vmul.f32 %v5985_v46, %v3479_v26 }
0x22b1   :  { %v3484_v10 = vsel %vm3483_vm6, %v5985_v46, %v3480_v32 }
0x22b2   :  { %v3495_v60 = vmul.f32 %v3484_v10, %v3461_v50 }
0x22b3   :  { %v5987_v1 = vpop.eup %5986 }
0x22b4   :  { %v3498_v13 = vmul.f32 %v3497_v44, %v3495_v60  ;;  %v3486_v36 = vmul.f32 %v5987_v1, %v3474_v15  ;;  %vm3492_vm7 = vweird.f32 %v5987_v1 }
0x22b5   :  { %vm3493_vm10 = vmor %vm3491_vm9, %vm3492_vm7 }
0x22b6   :  { %v3501_v25 = vadd.f32 %v3500_v52, %v3498_v13  ;;  %v3487_v0 = vmul.f32 %v5987_v1, %v3486_v36 }
0x22b8   :  { %v3488_v61 = vmul.f32 0.5, %v3487_v0  ;;  %5526 = vmatmul.msk.f32.vlgmr.msrb.gmra.mxu2 %vm99_vm2, %v3501_v25 }
0x22ba   :  { %v3489_v59 = vsub.f32 1.5, %v3488_v61 }
0x22bc   :  { %v3490_v58 = vmul.f32 %v5987_v1, %v3489_v59 }
0x22be   :  { %v3494_v5 = vsel %vm3493_vm10, %v5987_v1, %v3490_v58 }
0x22bf   :  { %v3496_v51 = vmul.f32 %v3494_v5, %v3462_v49 }
0x22c1   :  { %v3499_v6 = vmul.f32 %v3497_v44, %v3496_v51 }
0x22c3   :  { %v3502_v7 = vadd.f32 %v3500_v52, %v3499_v6 }
0x22c5   :  { %5527 = vmatmul.msk.f32.gmra.mxu2 %vm99_vm2, %v3502_v7 }
0x233b   :  { %v3527_v17 = vpop.f32.mrf.mxu2 }
0x233c   :  { %v7588_v3 = vadd.f32 %v3527_v17, %v3503_v2 }
0x233e   :  { %3535 = vrot.lane.b32.xlu1 %v7588_v3, %s8347_s22 }
0x2346   :  { %3828 = vrot.lane.b32.xlu1 %v7588_v3, %s8337_s30 }
0x2348   :  { %v3530_v62 = vpop.f32.mrf.mxu2 }
0x2349   :  { %v7594_v12 = vadd.f32 %v3530_v62, %v3503_v2 }
0x234b   :  { %3537 = vrot.lane.b32.xlu0 %v7594_v12, %s8347_s22 }
0x2353   :  { %3636 = vrot.lane.b32.xlu0 %v7594_v12, %s8348_s23 }
0x235b   :  { %3630 = vrot.lane.b32.xlu0 %v7588_v3, %s8346_s28 }
0x2363   :  { %3596 = vrot.lane.b32.xlu0 %v7594_v12, %s8350_s1 }
0x236b   :  { %3632 = vrot.lane.b32.xlu0 %v7594_v12, %s8346_s28 }
0x2373   :  { %3834 = vrot.lane.b32.xlu0 %v7594_v12, %s8349_s5 }
0x237b   :  { %3594 = vrot.lane.b32.xlu0 %v7588_v3, %s8350_s1 }
0x2383   :  { %3832 = vrot.lane.b32.xlu0 %v7588_v3, %s8349_s5  ;;  %s8362_s5 = sld [smem:[#allocation6_spill]] }
0x238b   :  { %3735 = vrot.lane.b32.xlu0 %v7594_v12, %s8336_s29 }
0x2393   :  { %3733 = vrot.lane.b32.xlu0 %v7588_v3, %s8336_s29 }
0x239b   :  { %3729 = vrot.lane.b32.xlu0 %v7588_v3, %s8338_s21 }
0x23b0   :  { %v3536_v14 = vpop.permute.xlu1 %3535 }
0x23b8   :  { %v3829_v38 = vpop.permute.xlu1 %3828 }
0x23bd   :  { %v3538_v16 = vpop.permute.xlu0 %3537 }
0x23be   :  { %5528 = vmatpush.xpose.msk.msra.mxu3 %vm194_vm11, %v3538_v16 }
0x23c2   :  { %5529 = vmatpush.xpose.msk.msra.mxu3 %vm194_vm11, %v3536_v14 }
0x23c5   :  { %5530 = vmatmul.msk.f32.vlgmr.msra.gmra.mxu3 %vm194_vm11, %v7588_v3  ;;  %v3637_v31 = vpop.permute.xlu0 %3636 }
0x23c6   :  { %5535 = vmatpush.xpose.msk.msra.mxu2 %vm194_vm11, %v3637_v31 }
0x23cd   :  { %5531 = vmatmul.msk.f32.gmra.mxu3 %vm194_vm11, %v7594_v12  ;;  %v3631_v18 = vpop.permute.xlu0 %3630 }
0x23d5   :  { %v3597_v20 = vpop.permute.xlu0 %3596 }
0x23d6   :  { %5532 = vmatpush.msk.msra.mxu1 %vm92_vm1, %v3597_v20 }
0x23dd   :  { %v3633_v41 = vpop.permute.xlu0 %3632 }
0x23e5   :  { %v3835_v63 = vpop.permute.xlu0 %3834 }
0x23ed   :  { %v3595_v21 = vpop.permute.xlu0 %3594 }
0x23ee   :  { %3622 = vmatpush.msra.mxu1 %v3595_v21 }
0x23f5   :  { %v3833_v22 = vpop.permute.xlu0 %3832 }
0x23fd   :  { %v3736_v9 = vpop.permute.xlu0 %3735 }
0x23fe   :  { %5542 = vmatpush.xpose.msk.msrb.mxu1 %vm194_vm11, %v3736_v9 }
0x2405   :  { %v3734_v33 = vpop.permute.xlu0 %3733 }
0x2406   :  { %5543 = vmatpush.xpose.msk.msrb.mxu1 %vm194_vm11, %v3734_v33 }
0x240d   :  { %v3730_v36 = vpop.permute.xlu0 %3729 }
0x2448   :  { %v3564_v35 = vpop.f32.mrf.mxu3 }
0x2449   :  { %v3570_v50 = vmul.f32 0.35355338, %v3564_v35 }
0x244b   :  { %v3572_v57 = vsel %vm228_vm12, %v3570_v50, -inf }
0x244c   :  { %3573 = vmax.xlane.f32.xlu2 %v3572_v57 }
0x2450   :  { %v3567_v40 = vpop.f32.mrf.mxu3 }
0x2451   :  { %v3571_v24 = vmul.f32 0.35355338, %v3567_v40 }
0x2453   :  { %v3575_v37 = vsel %vm232_vm13, %v3571_v24, -inf }
0x2454   :  { %3576 = vmax.xlane.f32.xlu2 %v3575_v37 }
0x246c   :  { %3634 = vrot.lane.b32.xlu2 %v7588_v3, %s8348_s23 }
0x24bf   :  { %v3574_v49 = vpop.xlane.xlu2 %3573 }
0x24c0   :  { %v3578_v42 = vsub.f32 %v3570_v50, %v3574_v49 }
0x24c2   :  { %v3580_v34 = vmul.f32 1.442695, %v3578_v42 }
0x24c4   :  { %5988 = vpow2.f32 %v3580_v34 }
0x24c7   :  { %v3577_v11 = vpop.xlane.xlu2 %3576 }
0x24c8   :  { %v3579_v29 = vsub.f32 %v3571_v24, %v3577_v11 }
0x24ca   :  { %v5989_v8 = vpop.eup %5988  ;;  %v3582_v46 = vmul.f32 1.442695, %v3579_v29 }
0x24cb   :  { %v3584_v47 = vsel %vm228_vm12, %v5989_v8, 0.0 }
0x24cc   :  { %5990 = vpow2.f32 %v3582_v46  ;;  %3585 = vadd.xlane.f32.xlu1 %v3584_v47 }
0x24cf   :  { %v3635_v48 = vpop.permute.xlu2 %3634 }
0x24d0   :  { %5536 = vmatpush.xpose.msk.msra.mxu2 %vm194_vm11, %v3635_v48 }
0x24d2   :  { %v5991_v54 = vpop.eup %5990 }
0x24d3   :  { %5537 = vmatmul.msk.f32.vlgmr.msra.gmra.mxu2 %vm194_vm11, %v3631_v18  ;;  %v3587_v55 = vsel %vm232_vm13, %v5991_v54, 0.0 }
0x24d4   :  { %5549 = vmatpush.xpose.msk.msrb.mxu2 %vm194_vm11, %v3835_v63  ;;  %3588 = vadd.xlane.f32.xlu2 %v3587_v55 }
0x24d8   :  { %5550 = vmatpush.xpose.msk.msrb.mxu2 %vm194_vm11, %v3833_v22 }
0x24db   :  { %5538 = vmatmul.msk.f32.gmra.mxu2 %vm194_vm11, %v3633_v41 }
0x24e3   :  { %5551 = vmatmul.msk.f32.vlgmr.msrb.gmra.mxu2 %vm194_vm11, %v3829_v38 }
0x24e5   :  { %3731 = vrot.lane.b32.xlu1 %v7594_v12, %s8338_s21 }
0x24ec   :  { %3830 = vrot.lane.b32.xlu2 %v7594_v12, %s8337_s30 }
0x253f   :  { %v3586_v15 = vpop.xlane.xlu1 %3585 }
0x2540   :  { %5992 = vrcp.f32 %v3586_v15 }
0x2546   :  { %v5993_v26 = vpop.eup %5992 }
0x2547   :  { %v3592_v32 = vmul.f32 %v5993_v26, %v5989_v8  ;;  %v3589_v44 = vpop.xlane.xlu2 %3588 }
0x2548   :  { %5994 = vrcp.f32 %v3589_v44 }
0x2549   :  { %5533 = vmatmul.msk.f32.vlgmr.msra.gmra.mxu1 %vm228_vm12, %v3592_v32 }
0x254e   :  { %v5995_v10 = vpop.eup %5994 }
0x254f   :  { %v3831_v52 = vpop.permute.xlu2 %3830  ;;  %v3593_v60 = vmul.f32 %v5995_v10, %v5991_v54 }
0x2550   :  { %5552 = vmatmul.msk.f32.gmra.mxu2 %vm194_vm11, %v3831_v52 }
0x2551   :  { %5534 = vmatmul.msk.f32.gmra.mxu1 %vm228_vm12, %v3593_v60 }
0x2556   :  { %v3663_v1 = vpop.f32.mrf.mxu2 }
0x2557   :  { %v3669_v13 = vmul.f32 0.35355338, %v3663_v1  ;;  %v3732_v59 = vpop.permute.xlu1 %3731 }
0x2559   :  { %5544 = vmatmul.msk.f32.vlgmr.msrb.gmra.mxu1 %vm194_vm11, %v3730_v36  ;;  %v3671_v25 = vsel %vm228_vm12, %v3669_v13, -inf }
0x255a   :  { %3672 = vmax.xlane.f32.xlu0 %v3671_v25 }
0x255e   :  { %v3666_v0 = vpop.f32.mrf.mxu2 }
0x255f   :  { %v3670_v61 = vmul.f32 0.35355338, %v3666_v0 }
0x2561   :  { %5545 = vmatmul.msk.f32.gmra.mxu1 %vm194_vm11, %v3732_v59  ;;  %v3674_v58 = vsel %vm232_vm13, %v3670_v61, -inf }
0x2562   :  { %3675 = vmax.xlane.f32.xlu1 %v3674_v58 }
0x2566   :  { %v3861_v5 = vpop.f32.mrf.mxu2 }
0x2567   :  { %v3867_v51 = vmul.f32 0.35355338, %v3861_v5 }
0x2569   :  { %v3869_v6 = vsel %vm228_vm12, %v3867_v51, -inf }
0x256a   :  { %3870 = vmax.xlane.f32.xlu2 %v3869_v6 }
0x25c6   :  { %v7652_v16 = vpop.f32.mrf.mxu1 }
0x25cd   :  { %v3673_v7 = vpop.xlane.xlu0 %3672 }
0x25ce   :  { %v3677_v2 = vsub.f32 %v3669_v13, %v3673_v7  ;;  %v7656_v9 = vpop.f32.mrf.mxu1 }
0x25d0   :  { %v3679_v17 = vmul.f32 1.442695, %v3677_v2 }
0x25d2   :  { %5996 = vpow2.f32 %v3679_v17 }
0x25d3   :  { %v3864_v62 = vpop.f32.mrf.mxu2 }
0x25d4   :  { %v3868_v14 = vmul.f32 0.35355338, %v3864_v62 }
0x25d5   :  { %v3676_v31 = vpop.xlane.xlu1 %3675 }
0x25d6   :  { %v3678_v18 = vsub.f32 %v3670_v61, %v3676_v31  ;;  %v3872_v20 = vsel %vm232_vm13, %v3868_v14, -inf  ;;  %v3762_v24 = vpop.f32.mrf.mxu1 }
0x25d7   :  { %3873 = vmax.xlane.f32.xlu1 %v3872_v20  ;;  %v3768_v49 = vmul.f32 0.35355338, %v3762_v24 }
0x25d8   :  { %v5997_v41 = vpop.eup %5996  ;;  %v3681_v63 = vmul.f32 1.442695, %v3678_v18 }
0x25d9   :  { %v3683_v21 = vsel %vm228_vm12, %v5997_v41, 0.0  ;;  %v3770_v42 = vsel %vm228_vm12, %v3768_v49, -inf }
0x25da   :  { %5998 = vpow2.f32 %v3681_v63  ;;  %3684 = vadd.xlane.f32.xlu2 %v3683_v21 }
0x25dd   :  { %v3871_v22 = vpop.xlane.xlu2 %3870 }
0x25de   :  { %v3875_v33 = vsub.f32 %v3867_v51, %v3871_v22  ;;  %v3765_v34 = vpop.f32.mrf.mxu1 }
0x25df   :  { %v3769_v11 = vmul.f32 0.35355338, %v3765_v34 }
0x25e0   :  { %v5999_v35 = vpop.eup %5998  ;;  %v3877_v50 = vmul.f32 1.442695, %v3875_v33 }
0x25e1   :  { %v3686_v57 = vsel %vm232_vm13, %v5999_v35, 0.0  ;;  %v3773_v29 = vsel %vm232_vm13, %v3769_v11, -inf }
0x25e2   :  { %6000 = vpow2.f32 %v3877_v50  ;;  %3687 = vadd.xlane.f32.xlu0 %v3686_v57 }
0x25e8   :  { %v6001_v40 = vpop.eup %6000 }
0x25e9   :  { %v3881_v37 = vsel %vm228_vm12, %v6001_v40, 0.0 }
0x25ea   :  { %3882 = vadd.xlane.f32.xlu0 %v3881_v37 }
0x25f0   :  { %3695 = vrot.lane.b32.xlu1 %v7594_v12, %s8339_s24 }
0x25f2   :  { %3771 = vmax.xlane.f32.xlu0 %v3770_v42  ;;  %3693 = vrot.lane.b32.xlu2 %v7588_v3, %s8339_s24 }
0x25fa   :  { %3774 = vmax.xlane.f32.xlu0 %v3773_v29  ;;  %3891 = vrot.lane.b32.xlu2 %v7588_v3, %s8340_s0 }
0x2602   :  { %3794 = vrot.lane.b32.xlu2 %v7594_v12, %s8351_s19 }
0x260e   :  { %3893 = vrot.lane.b32.xlu0 %v7594_v12, %s8340_s0 }
0x264a   :  { %v3874_v8 = vpop.xlane.xlu1 %3873 }
0x264b   :  { %v3876_v46 = vsub.f32 %v3868_v14, %v3874_v8 }
0x264d   :  { %v3879_v47 = vmul.f32 1.442695, %v3876_v46  ;;  %v3685_v48 = vpop.xlane.xlu2 %3684 }
0x264f   :  { %6002 = vpow2.f32 %v3879_v47 }
0x2650   :  { %6004 = vrcp.f32 %v3685_v48 }
0x2655   :  { %v6003_v54 = vpop.eup %6002  ;;  %v3694_v55 = vpop.permute.xlu2 %3693 }
0x2656   :  { %v3688_v38 = vpop.xlane.xlu0 %3687  ;;  %v3884_v15 = vsel %vm232_vm13, %v6003_v54, 0.0  ;;  %v6005_v44 = vpop.eup %6004 }
0x2657   :  { %3885 = vadd.xlane.f32.xlu1 %v3884_v15  ;;  %6006 = vrcp.f32 %v3688_v38  ;;  %v3691_v12 = vmul.f32 %v6005_v44, %v5997_v41 }
0x265d   :  { %v3892_v26 = vpop.permute.xlu2 %3891  ;;  %v6007_v36 = vpop.eup %6006 }
0x265e   :  { %v3883_v32 = vpop.xlane.xlu0 %3882  ;;  %v3692_v25 = vmul.f32 %v6007_v36, %v5999_v35 }
0x2662   :  { %v3696_v10 = vpop.permute.xlu1 %3695 }
0x2663   :  { %5539 = vmatpush.msk.msrb.mxu3 %vm92_vm1, %v3696_v10 }
0x2665   :  { %3721 = vmatpush.msrb.mxu3 %v3694_v55  ;;  %v3795_v52 = vpop.permute.xlu2 %3794 }
0x2666   :  { %v3772_v60 = vpop.xlane.xlu0 %3771  ;;  %5540 = vmatmul.msk.f32.vlgmr.msrb.gmra.mxu3 %vm228_vm12, %v3691_v12  ;;  %5546 = vmatpush.msk.msrb.mxu0 %vm92_vm1, %v3795_v52 }
0x2667   :  { %v3776_v1 = vsub.f32 %v3768_v49, %v3772_v60 }
0x2669   :  { %v3778_v13 = vmul.f32 1.442695, %v3776_v1 }
0x266b   :  { %6008 = vpow2.f32 %v3778_v13 }
0x266e   :  { %v3775_v0 = vpop.xlane.xlu0 %3774  ;;  %5541 = vmatmul.msk.f32.gmra.mxu3 %vm228_vm12, %v3692_v25 }
0x266f   :  { %v3777_v61 = vsub.f32 %v3769_v11, %v3775_v0 }
0x2670   :  { %5731 = vrot.lane.b32.xlu1 %v5730_v43, %s8352_s27 }
0x2671   :  { %v6009_v59 = vpop.eup %6008  ;;  %v3780_v58 = vmul.f32 1.442695, %v3777_v61 }
0x2672   :  { %v3782_v5 = vsel %vm228_vm12, %v6009_v59, 0.0 }
0x2673   :  { %6010 = vpow2.f32 %v3780_v58  ;;  %3783 = vadd.xlane.f32.xlu0 %v3782_v5  ;;  %v5561_v58 = vld [vmem:[%s8357_s16 + $0x38] sm:$0xff]  ;;  %v5560_v5 = vld [vmem:[%s8357_s16 + $0x30] sm:$0xff] }
0x2674   :  { %6012 = vrcp.f32 %v3883_v32 }
0x2679   :  { %v6011_v51 = vpop.eup %6010 }
0x267a   :  { %v3785_v6 = vsel %vm232_vm13, %v6011_v51, 0.0  ;;  %v6013_v7 = vpop.eup %6012  ;;  %vm8358_vm13 = vcmask 195584  }
0x267b   :  { %3786 = vadd.xlane.f32.xlu2 %v3785_v6  ;;  %v3889_v17 = vmul.f32 %v6013_v7, %v6001_v40  ;;  %v6109_v40 = vld [vmem:[%s8232_s3 + $0x22] sm:$0x1]  ;;  %vm8359_vm8 = vmmov %vm8358_vm13 }
0x267c   :  { %v5558_v6 = vld [vmem:[%s8357_s16 + $0x20] sm:$0xff] }
0x2680   :  { %v3894_v2 = vpop.permute.xlu0 %3893 }
0x2681   :  { %5553 = vmatpush.msk.msra.mxu3 %vm92_vm1, %v3894_v2 }
0x2683   :  { %3919 = vmatpush.msra.mxu3 %v3892_v26 }
0x2684   :  { %5554 = vmatmul.msk.f32.vlgmr.msra.gmra.mxu3 %vm228_vm12, %v3889_v17 }
0x2687   :  { %3792 = vrot.lane.b32.xlu0 %v7588_v3, %s8351_s19 }
0x268f   :  { %5726 = vrot.lane.b32.xlu0 %v5725_v30, %s8352_s27 }
0x26ca   :  { %v3886_v28 = vpop.xlane.xlu1 %3885 }
0x26cb   :  { %6014 = vrcp.f32 %v3886_v28  ;;  %v5579_v28 = vld [vmem:[%s8237_s6 + $0xf8] sm:$0xff] }
0x26cc   :  { %4125 = vmatpush.msra.mxu2 %v5579_v28 }
0x26d1   :  { %v6015_v53 = vpop.eup %6014 }
0x26d2   :  { %v3890_v43 = vmul.f32 %v6015_v53, %v6003_v54  ;;  %v5578_v53 = vld [vmem:[%s8237_s6 + $0xf0] sm:$0xff] }
0x26d3   :  { %4126 = vmatpush.msra.mxu2 %v5578_v53 }
0x26d4   :  { %5555 = vmatmul.msk.f32.gmra.mxu3 %vm228_vm12, %v3890_v43  ;;  %v5577_v43 = vld [vmem:[%s8237_s6 + $0xe8] sm:$0xff] }
0x26d5   :  { %4127 = vmatpush.msra.mxu2 %v5577_v43 }
0x26e2   :  { %v5732_v35 = vpop.permute.xlu1 %5731 }
0x26e3   :  { %v5734_v50 = vunpack.i.h.bf16 %v5732_v35  ;;  %v5733_v57 = vunpack.i.l.bf16 %v5732_v35 }
0x26e6   :  { %v3784_v14 = vpop.xlane.xlu0 %3783 }
0x26e7   :  { %6016 = vrcp.f32 %v3784_v14 }
0x26e9   :  { %v3723_v62 = vpop.f32.mrf.mxu3 }
0x26ea   :  { %3929 = vrot.lane.b32.xlu0 %v3723_v62, %s8343_s26 }
0x26ed   :  { %v6017_v18 = vpop.eup %6016 }
0x26ee   :  { %v3787_v31 = vpop.xlane.xlu2 %3786  ;;  %v3790_v3 = vmul.f32 %v6017_v18, %v6009_v59 }
0x26ef   :  { %6018 = vrcp.f32 %v3787_v31 }
0x26f1   :  { %v3726_v27 = vpop.f32.mrf.mxu3 }
0x26f5   :  { %v6019_v39 = vpop.eup %6018 }
0x26f6   :  { %v3791_v30 = vmul.f32 %v6019_v39, %v6011_v51  ;;  %v5559_v51 = vld [vmem:[%s8357_s16 + $0x28] sm:$0xff]  ;;  %s8410_s16 = sld [smem:[#allocation9_spill]] }
0x26f9   :  { %v3793_v20 = vpop.permute.xlu0 %3792 }
0x26fa   :  { %3820 = vmatpush.msrb.mxu0 %v3793_v20 }
0x26fb   :  { %5547 = vmatmul.msk.f32.vlgmr.msrb.gmra.mxu0 %vm228_vm12, %v3790_v3 }
0x26fc   :  { %4080 = vmatpush.msra.mxu0 %v5561_v58 }
0x26fe   :  { %4081 = vmatpush.msra.mxu0 %v5560_v5 }
0x2700   :  { %4082 = vmatpush.msra.mxu0 %v5559_v51 }
0x2701   :  { %v5727_v41 = vpop.permute.xlu0 %5726 }
0x2702   :  { %v5729_v63 = vunpack.i.h.bf16 %v5727_v41  ;;  %v5728_v21 = vunpack.i.l.bf16 %v5727_v41  ;;  %4083 = vmatpush.msra.mxu0 %v5558_v6 }
0x2703   :  { %5548 = vmatmul.msk.f32.gmra.mxu0 %vm228_vm12, %v3791_v30 }
0x2704   :  { %3991 = vmatpush.msra.mxu1 %v5728_v21 }
0x2706   :  { %3992 = vmatpush.msra.mxu1 %v5729_v63  ;;  %v4051_v63 = vperm.slane %v7581_v56, 2 }
0x2707   :  { %v3921_v22 = vpop.f32.mrf.mxu3 }
0x2708   :  { %3945 = vrot.lane.b32.xlu0 %v3921_v22, %s8354_s17  ;;  %3993 = vmatpush.msra.mxu1 %v5733_v57 }
0x270a   :  { %3994 = vmatpush.msra.mxu1 %v5734_v50 }
0x270c   :  { %5584 = vmatpush.msk.msrb.mxu1 %vm92_vm1, %v6109_v40 }
0x2757   :  { %v3924_v33 = vpop.f32.mrf.mxu3 }
0x2758   :  { %3947 = vrot.lane.b32.xlu1 %v3924_v33, %s8354_s17  ;;  %v4054_v33 = vperm.slane %v7581_v56, 3  ;;  %s8360_s17 = sld [smem:[#allocation4_spill]] }
0x275c   :  { %v3930_v49 = vpop.permute.xlu0 %3929 }
0x275d   :  { %v3951_v34 = vsel %vm194_vm11, %v7652_v16, %v3930_v49  ;;  %v4004_v16 = vperm.slane %v7581_v56, 4 }
0x2778   :  { %v3822_v24 = vpop.f32.mrf.mxu0 }
0x2779   :  { %3937 = vrot.lane.b32.xlu0 %v3822_v24, %s8353_s18 }
0x277a   :  { %v3946_v42 = vpop.permute.xlu0 %3945 }
0x2780   :  { %v3825_v37 = vpop.f32.mrf.mxu0 }
0x2781   :  { %3931 = vrot.lane.b32.xlu0 %v3726_v27, %s8343_s26  ;;  %3939 = vrot.lane.b32.xlu2 %v3825_v37, %s8353_s18  ;;  %s8363_s18 = sld [smem:[#allocation7_spill]] }
0x27ca   :  { %v3948_v54 = vpop.permute.xlu1 %3947 }
0x27db   :  { %v3940_v47 = vpop.permute.xlu2 %3939 }
0x27eb   :  { %v3938_v11 = vpop.permute.xlu0 %3937 }
0x27ec   :  { %v3953_v29 = vsel %vm65_vm0, %v3951_v34, %v3938_v11 }
0x27ed   :  { %v3955_v8 = vsel %vm8358_vm13, %v3953_v29, %v3946_v42 }
0x27ee   :  { %5556 = vmatmul.msk.f32.vlgmr.msra.gmra.mxu1 %vm99_vm2, %v3955_v8  ;;  %v5576_v8 = vld [vmem:[%s8237_s6 + $0xe0] sm:$0xff] }
0x27ef   :  { %4128 = vmatpush.msra.mxu2 %v5576_v8 }
0x27f3   :  { %v3932_v46 = vpop.permute.xlu0 %3931 }
0x27f4   :  { %v3952_v48 = vsel %vm194_vm11, %v7656_v9, %v3932_v46  ;;  %v5575_v46 = vld [vmem:[%s8237_s6 + $0xd8] sm:$0xff] }
0x27f5   :  { %v3954_v55 = vsel %vm65_vm0, %v3952_v48, %v3940_v47  ;;  %4129 = vmatpush.msra.mxu2 %v5575_v46  ;;  %v5574_v47 = vld [vmem:[%s8237_s6 + $0xd0] sm:$0xff]  ;;  %v5573_v48 = vld [vmem:[%s8237_s6 + $0xc8] sm:$0xff] }
0x27f6   :  { %v3956_v38 = vsel %vm8359_vm8, %v3954_v55, %v3948_v54  ;;  %v5572_v54 = vld [vmem:[%s8237_s6 + $0xc0] sm:$0xff]  ;;  %v5571_v55 = vld [vmem:[%s8237_s6 + $0xb8] sm:$0xff] }
0x27f7   :  { %5557 = vmatmul.msk.f32.gmra.mxu1 %vm99_vm2, %v3956_v38  ;;  %4130 = vmatpush.msra.mxu2 %v5574_v47  ;;  %v5570_v38 = vld [vmem:[%s8237_s6 + $0xb0] sm:$0xff] }
0x27f9   :  { %4131 = vmatpush.msra.mxu2 %v5573_v48 }
0x27fb   :  { %4132 = vmatpush.msra.mxu2 %v5572_v54 }
0x27fd   :  { %4133 = vmatpush.msra.mxu2 %v5571_v55 }
0x27ff   :  { %4134 = vmatpush.msra.mxu2 %v5570_v38 }
0x286b   :  { %v3996_v15 = vpop.f32.mrf.mxu1 }
0x286c   :  { %v4002_v26 = vadd.f32 %v3996_v15, %v7533_v19  ;;  %v5568_v15 = vld [vmem:[%s8237_s6 + $0xa0] sm:$0xff] }
0x286e   :  { %v7716_v32 = vadd.f32 %v4004_v16, %v4002_v26  ;;  %v5567_v26 = vld [vmem:[%s8237_s6 + $0x98] sm:$0xff] }
0x2870   :  { %v4007_v44 = vsel %vm99_vm2, %v7716_v32, 0.0 }
0x2871   :  { %4008 = vadd.xlane.f32.xlu0 %v4007_v44  ;;  %v5566_v44 = vld [vmem:[%s8237_s6 + $0x90] sm:$0xff] }
0x2874   :  { %v3999_v10 = vpop.f32.mrf.mxu1 }
0x2875   :  { %v4003_v9 = vadd.f32 %v3999_v10, %v7538_v4  ;;  %v5565_v10 = vld [vmem:[%s8237_s6 + $0x88] sm:$0xff] }
0x2877   :  { %v7721_v12 = vadd.f32 %v4004_v16, %v4003_v9  ;;  %v5569_v16 = vld [vmem:[%s8237_s6 + $0xa8] sm:$0xff]  ;;  %v5564_v9 = vld [vmem:[%s8237_s6 + $0x80] sm:$0xff] }
0x2878   :  { %4135 = vmatpush.msra.mxu2 %v5569_v16 }
0x2879   :  { %v4010_v52 = vsel %vm103_vm3, %v7721_v12, 0.0 }
0x287a   :  { %4011 = vadd.xlane.f32.xlu1 %v4010_v52  ;;  %4136 = vmatpush.msra.mxu2 %v5568_v15  ;;  %v4061_v52 = vperm.slane %v7581_v56, 7 }
0x287c   :  { %4137 = vmatpush.msra.mxu2 %v5567_v26 }
0x287e   :  { %4138 = vmatpush.msra.mxu2 %v5566_v44  ;;  %v5766_v44 = vld [vmem:[%s8360_s17] ss:$0 sm:$0xff] }
0x2880   :  { %4139 = vmatpush.msra.mxu2 %v5565_v10 }
0x2882   :  { %4140 = vmatpush.msra.mxu2 %v5564_v9 }
0x28e4   :  { %v4009_v60 = vpop.xlane.xlu0 %4008 }
0x28e5   :  { %v4013_v1 = vmul.f32 %v4009_v60, %v6263_v23 }
0x28e7   :  { %v4015_v19 = vsub.f32 %v7716_v32, %v4013_v1 }
0x28e9   :  { %v4017_v13 = vmul.f32 %v4015_v19, %v4015_v19 }
0x28eb   :  { %v4019_v36 = vsel %vm99_vm2, %v4017_v13, 0.0 }
0x28ec   :  { %4020 = vadd.xlane.f32.xlu2 %v4019_v36 }
0x28ed   :  { %v4012_v25 = vpop.xlane.xlu1 %4011 }
0x28ee   :  { %v4014_v0 = vmul.f32 %v4012_v25, %v6263_v23 }
0x28f0   :  { %v4016_v4 = vsub.f32 %v7721_v12, %v4014_v0 }
0x28f2   :  { %v4018_v61 = vmul.f32 %v4016_v4, %v4016_v4 }
0x28f4   :  { %v4022_v59 = vsel %vm103_vm3, %v4018_v61, 0.0 }
0x28f5   :  { %4023 = vadd.xlane.f32.xlu0 %v4022_v59 }
0x295f   :  { %v4021_v7 = vpop.xlane.xlu2 %4020 }
0x2960   :  { %v4025_v2 = vmul.f32 %v4021_v7, %v6263_v23 }
0x2962   :  { %v4027_v17 = vadd.f32 1e-05, %v4025_v2 }
0x2964   :  { %6020 = vrsqrt.f32 %v4027_v17  ;;  %vm4035_vm6 = vweird.f32 %v4027_v17 }
0x2968   :  { %v4024_v62 = vpop.xlane.xlu0 %4023 }
0x2969   :  { %v4026_v14 = vmul.f32 %v4024_v62, %v6263_v23 }
0x296a   :  { %v6021_v31 = vpop.eup %6020 }
0x296b   :  { %v4030_v18 = vmul.f32 %v6021_v31, %v4027_v17  ;;  %v4028_v3 = vadd.f32 1e-05, %v4026_v14  ;;  %vm4036_vm5 = vweird.f32 %v6021_v31 }
0x296c   :  { %vm4037_vm7 = vmor %vm4035_vm6, %vm4036_vm5 }
0x296d   :  { %v4031_v20 = vmul.f32 %v6021_v31, %v4030_v18  ;;  %6022 = vrsqrt.f32 %v4028_v3  ;;  %vm4045_vm10 = vweird.f32 %v4028_v3 }
0x296f   :  { %v4032_v39 = vmul.f32 0.5, %v4031_v20 }
0x2971   :  { %v4033_v27 = vsub.f32 1.5, %v4032_v39 }
0x2973   :  { %v6023_v30 = vpop.eup %6022  ;;  %v4034_v41 = vmul.f32 %v6021_v31, %v4033_v27 }
0x2974   :  { %v4040_v21 = vmul.f32 %v6023_v30, %v4028_v3  ;;  %vm4046_vm9 = vweird.f32 %v6023_v30 }
0x2975   :  { %v4038_v22 = vsel %vm4037_vm7, %v6021_v31, %v4034_v41  ;;  %vm4047_vm13 = vmor %vm4045_vm10, %vm4046_vm9  ;;  %v4150_v31 = vperm.slane %v7581_v56, 5 }
0x2976   :  { %v4049_v35 = vmul.f32 %v4038_v22, %v4015_v19  ;;  %v4041_v50 = vmul.f32 %v6023_v30, %v4040_v21 }
0x2978   :  { %v4052_v57 = vmul.f32 %v4051_v63, %v4049_v35  ;;  %v4042_v40 = vmul.f32 0.5, %v4041_v50 }
0x297a   :  { %v4055_v24 = vadd.f32 %v4054_v33, %v4052_v57  ;;  %v4043_v37 = vsub.f32 1.5, %v4042_v40 }
0x297c   :  { %v4044_v49 = vmul.f32 %v6023_v30, %v4043_v37  ;;  %5562 = vmatmul.msk.f32.vlgmr.msra.gmra.mxu0 %vm99_vm2, %v4055_v24  ;;  %v4207_v37 = vld [vmem:[%s8239_s8 + $0x10] sm:$0xff] }
0x297e   :  { %v4048_v42 = vsel %vm4047_vm13, %v6023_v30, %v4044_v49  ;;  %v4206_v49 = vld [vmem:[%s8239_s8 + $0x8] sm:$0xff] }
0x297f   :  { %v4050_v34 = vmul.f32 %v4048_v42, %v4016_v4  ;;  %v4205_v42 = vld [vmem:[%s8239_s8] sm:$0xff] }
0x2981   :  { %v4053_v11 = vmul.f32 %v4051_v63, %v4050_v34 }
0x2983   :  { %v4056_v29 = vadd.f32 %v4054_v33, %v4053_v11 }
0x2985   :  { %5563 = vmatmul.msk.f32.gmra.mxu0 %vm99_vm2, %v4056_v29 }
0x29f9   :  { %v4085_v60 = vpop.f32.mrf.mxu0 }
0x29fa   :  { %v4086_v1 = vadd.f32 %v4085_v60, %v4061_v52 }
0x29fc   :  { %v4091_v19 = vmul.f32 %v4086_v1, %v4086_v1 }
0x29fe   :  { %v4093_v13 = vmul.f32 %v4091_v19, %v4086_v1 }
0x2a00   :  { %v4095_v36 = vmul.f32 0.044715, %v4093_v13 }
0x2a02   :  { %v4097_v25 = vadd.f32 %v4095_v36, %v4086_v1  ;;  %v4088_v0 = vpop.f32.mrf.mxu0 }
0x2a03   :  { %v4089_v4 = vadd.f32 %v4088_v0, %v4061_v52 }
0x2a04   :  { %v4099_v61 = vmul.f32 0.7978846, %v4097_v25 }
0x2a05   :  { %v4092_v59 = vmul.f32 %v4089_v4, %v4089_v4 }
0x2a06   :  { %6024 = vtanh.f32 %v4099_v61 }
0x2a07   :  { %v4094_v58 = vmul.f32 %v4092_v59, %v4089_v4 }
0x2a09   :  { %v4096_v5 = vmul.f32 0.044715, %v4094_v58 }
0x2a0b   :  { %v4098_v51 = vadd.f32 %v4096_v5, %v4089_v4  ;;  %v5768_v5 = vld [vmem:[%s8360_s17 + $0x2] ss:$0 sm:$0xff] }
0x2a0c   :  { %v6025_v6 = vpop.eup %6024 }
0x2a0d   :  { %v4103_v7 = vadd.f32 1.0, %v6025_v6  ;;  %v4100_v2 = vmul.f32 0.7978846, %v4098_v51 }
0x2a0f   :  { %v4105_v17 = vmul.f32 0.5, %v4103_v7  ;;  %6026 = vtanh.f32 %v4100_v2 }
0x2a11   :  { %v4107_v28 = vmul.f32 %v4105_v17, %v4086_v1 }
0x2a13   :  { %4141 = vmatmul.f32.vlgmr.msra.gmra.mxu2 %v4107_v28  ;;  %v5582_v28 = vld [vmem:[%s8361_s20 + $0x10] sm:$0xff] }
0x2a15   :  { %v6027_v53 = vpop.eup %6026 }
0x2a16   :  { %v4104_v43 = vadd.f32 1.0, %v6027_v53 }
0x2a18   :  { %v4106_v62 = vmul.f32 0.5, %v4104_v43  ;;  %v5583_v43 = vld [vmem:[%s8361_s20 + $0x18] sm:$0xff] }
0x2a1a   :  { %v4108_v14 = vmul.f32 %v4106_v62, %v4089_v4 }
0x2a1c   :  { %4144 = vmatmul.f32.gmra.mxu2 %v4108_v14 }
0x2a96   :  { %v4142_v18 = vpop.f32.mrf.mxu2 }
0x2a97   :  { %v4148_v3 = vadd.f32 %v4142_v18, %v7716_v32  ;;  %v6110_v18 = vld [vmem:[%s8232_s3 + $0x11] sm:$0xff] }
0x2a99   :  { %v4151_v20 = vadd.f32 %v4150_v31, %v4148_v3 }
0x2a9b   :  { %v4155_v39 = vsel %vm99_vm2, %v4151_v20, 0.0 }
0x2a9c   :  { %4156 = vadd.xlane.f32.xlu1 %v4155_v39 }
0x2a9f   :  { %v4145_v27 = vpop.f32.mrf.mxu2 }
0x2aa0   :  { %v4149_v30 = vadd.f32 %v4145_v27, %v7721_v12  ;;  %v4208_v12 = vld [vmem:[%s8239_s8 + $0x18] sm:$0xff] }
0x2aa1   :  { %4229 = vmatpush.msrb.mxu3 %v4208_v12 }
0x2aa2   :  { %v4152_v41 = vadd.f32 %v4150_v31, %v4149_v30 }
0x2aa3   :  { %4230 = vmatpush.msrb.mxu3 %v4207_v37 }
0x2aa4   :  { %v4158_v63 = vsel %vm103_vm3, %v4152_v41, 0.0 }
0x2aa5   :  { %4159 = vadd.xlane.f32.xlu0 %v4158_v63  ;;  %4231 = vmatpush.msrb.mxu3 %v4206_v49 }
0x2aa7   :  { %4232 = vmatpush.msrb.mxu3 %v4205_v42 }
0x2b0f   :  { %v4157_v21 = vpop.xlane.xlu1 %4156 }
0x2b10   :  { %v4161_v22 = vmul.f32 %v4157_v21, %v6263_v23  ;;  %v6112_v21 = vld [vmem:[%s8232_s3 + $0x19] sm:$0xff] }
0x2b12   :  { %v4163_v33 = vsub.f32 %v4151_v20, %v4161_v22 }
0x2b14   :  { %v4165_v35 = vmul.f32 %v4163_v33, %v4163_v33 }
0x2b16   :  { %v4167_v56 = vsel %vm99_vm2, %v4165_v35, 0.0 }
0x2b17   :  { %4168 = vadd.xlane.f32.xlu1 %v4167_v56 }
0x2b18   :  { %v4160_v32 = vpop.xlane.xlu0 %4159 }
0x2b19   :  { %v4162_v50 = vmul.f32 %v4160_v32, %v6263_v23 }
0x2b1b   :  { %v4164_v57 = vsub.f32 %v4152_v41, %v4162_v50  ;;  %v6111_v41 = vld [vmem:[%s8232_s3 + $0x21] sm:$0x1] }
0x2b1d   :  { %v4166_v40 = vmul.f32 %v4164_v57, %v4164_v57 }
0x2b1f   :  { %v4170_v24 = vsel %vm103_vm3, %v4166_v40, 0.0 }
0x2b20   :  { %4171 = vadd.xlane.f32.xlu2 %v4170_v24 }
0x2b8a   :  { %v4169_v34 = vpop.xlane.xlu1 %4168 }
0x2b8b   :  { %v4173_v11 = vmul.f32 %v4169_v34, %v6263_v23 }
0x2b8d   :  { %v4175_v29 = vadd.f32 1e-05, %v4173_v11 }
0x2b8f   :  { %6028 = vrsqrt.f32 %v4175_v29  ;;  %vm4183_vm8 = vweird.f32 %v4175_v29 }
0x2b93   :  { %v4172_v8 = vpop.xlane.xlu2 %4171 }
0x2b94   :  { %v4174_v46 = vmul.f32 %v4172_v8, %v6263_v23  ;;  %v5767_v23 = vld [vmem:[%s8360_s17 + $0x1] ss:$0 sm:$0xff]  ;;  %s8364_s17 = smov 108  }
0x2b95   :  { %v6029_v47 = vpop.eup %6028 }
0x2b96   :  { %v4178_v48 = vmul.f32 %v6029_v47, %v4175_v29  ;;  %v4176_v54 = vadd.f32 1e-05, %v4174_v46  ;;  %vm4184_vm3 = vweird.f32 %v6029_v47 }
0x2b97   :  { %vm4185_vm5 = vmor %vm4183_vm8, %vm4184_vm3 }
0x2b98   :  { %v4179_v55 = vmul.f32 %v6029_v47, %v4178_v48  ;;  %6030 = vrsqrt.f32 %v4176_v54  ;;  %vm4193_vm7 = vweird.f32 %v4176_v54  ;;  %v7886_v48 = vld [vmem:[%s8362_s5] sm:$0xff] }
0x2b9a   :  { %v4180_v38 = vmul.f32 0.5, %v4179_v55 }
0x2b9c   :  { %v4181_v16 = vsub.f32 1.5, %v4180_v38 }
0x2b9e   :  { %v6031_v15 = vpop.eup %6030  ;;  %v4182_v26 = vmul.f32 %v6029_v47, %v4181_v16 }
0x2b9f   :  { %v4188_v10 = vmul.f32 %v6031_v15, %v4176_v54  ;;  %vm4194_vm6 = vweird.f32 %v6031_v15 }
0x2ba0   :  { %v4186_v9 = vsel %vm4185_vm5, %v6029_v47, %v4182_v26  ;;  %vm4195_vm9 = vmor %vm4193_vm7, %vm4194_vm6  ;;  %v7880_v47 = vld [vmem:[%s8362_s5 + $0x8] sm:$0xff] }
0x2ba1   :  { %v4197_v52 = vmul.f32 %v4186_v9, %v4163_v33  ;;  %v4189_v60 = vmul.f32 %v6031_v15, %v4188_v10  ;;  %4391 = vmatpush.msrb.mxu0 %v7880_v47  ;;  %v5755_v54 = vpack.i.bf16 %v7886_v48, %v7880_v47 }
0x2ba3   :  { %v4200_v1 = vmul.f32 %v5766_v44, %v4197_v52  ;;  %v4190_v19 = vmul.f32 0.5, %v4189_v60  ;;  %4392 = vmatpush.msrb.mxu0 %v7886_v48 }
0x2ba5   :  { %v4203_v13 = vadd.f32 %v5767_v23, %v4200_v1  ;;  %v4191_v36 = vsub.f32 1.5, %v4190_v19 }
0x2ba7   :  { %v4192_v25 = vmul.f32 %v6031_v15, %v4191_v36  ;;  %5580 = vmatmul.msk.f32.vlgmr.msrb.gmra.mxu3 %vm99_vm2, %v4203_v13  ;;  %v7897_v36 = vld [vmem:[%s8363_s18] sm:$0xff] }
0x2ba9   :  { %v4196_v0 = vsel %vm4195_vm9, %v6031_v15, %v4192_v25  ;;  %vm8369_vm9 = vcmask 138240  }
0x2baa   :  { %v4198_v4 = vmul.f32 %v4196_v0, %v4164_v57 }
0x2bac   :  { %v4201_v61 = vmul.f32 %v5766_v44, %v4198_v4 }
0x2bae   :  { %v4204_v59 = vadd.f32 %v5767_v23, %v4201_v61 }
0x2bb0   :  { %5581 = vmatmul.msk.f32.gmra.mxu3 %vm99_vm2, %v4204_v59 }
0x2c2a   :  { %v4234_v58 = vpop.f32.mrf.mxu3 }
0x2c2b   :  { %v4235_v51 = vadd.f32 %v5768_v5, %v4234_v58  ;;  %v4359_v58 = vperm.slane %v7897_v36, 0 }
0x2c2d   :  { %v4242_v2 = vrot.slane %v4235_v51, 1 }
0x2c33   :  { %v4237_v6 = vpop.f32.mrf.mxu3 }
0x2c34   :  { %v4238_v7 = vadd.f32 %v5768_v5, %v4237_v6 }
0x2c36   :  { %v4243_v17 = vrot.slane %v4238_v7, 1  ;;  %v4363_v7 = vperm.slane %v7897_v36, 1 }
0x2c38   :  { %v4244_v53 = vsel %vm1610_vm15, %v4242_v2, %v4243_v17 }
0x2c39   :  { %4270 = vmatpush.msrb.mxu1 %v4244_v53 }
0x2c3a   :  { %5585 = vmatmul.msk.f32.vlgmr.msrb.gmra.mxu1 %vm228_vm12, %v5582_v28 }
0x2c42   :  { %5586 = vmatmul.msk.f32.gmra.mxu1 %vm228_vm12, %v5583_v43 }
0x2cb7   :  { %v4272_v62 = vpop.f32.mrf.mxu1 }
0x2cb8   :  { %v4280_v14 = vrot.slane %v4272_v62, 7 }
0x2cba   :  { %v4286_v31 = vsel %vm92_vm1, %v4235_v51, %v4280_v14 }
0x2cbb   :  { %v7845_v3 = vadd.f32 %v6110_v18, %v4286_v31 }
0x2cbd   :  { %v4293_v20 = vsel %vm65_vm0, %v7845_v3, 0.0 }
0x2cbe   :  { %4294 = vadd.xlane.f32.xlu0 %v4293_v20 }
0x2cbf   :  { %v4275_v39 = vpop.f32.mrf.mxu1 }
0x2cc0   :  { %v4281_v27 = vrot.slane %v4275_v39, 7 }
0x2cc2   :  { %v4282_v30 = vsel %vm92_vm1, %v4280_v14, %v4281_v27  ;;  %v7853_v63 = vadd.f32 %v6111_v41, %v4281_v27 }
0x2cc3   :  { %v7858_v22 = vadd.f32 %v6112_v21, %v4282_v30 }
0x2cc4   :  { %v4299_v33 = vsel %vm1670_vm4, %v7853_v63, 0.0 }
0x2cc5   :  { %4300 = vadd.xlane.f32.xlu2 %v4299_v33  ;;  %v4296_v35 = vsel %vm65_vm0, %v7858_v22, 0.0 }
0x2cc6   :  { %4297 = vadd.xlane.f32.xlu1 %v4296_v35 }
0x2d31   :  { %v4295_v56 = vpop.xlane.xlu0 %4294 }
0x2d32   :  { %v4302_v32 = vmul.f32 %v4295_v56, %v6869_v45 }
0x2d34   :  { %v4305_v50 = vsub.f32 %v7845_v3, %v4302_v32  ;;  %v4367_v32 = vperm.slane %v7897_v36, 6 }
0x2d36   :  { %v4308_v57 = vmul.f32 %v4305_v50, %v4305_v50 }
0x2d38   :  { %v4301_v40 = vpop.xlane.xlu2 %4300  ;;  %v4311_v24 = vsel %vm65_vm0, %v4308_v57, 0.0 }
0x2d39   :  { %v4304_v12 = vmul.f32 %v4301_v40, %v6869_v45  ;;  %4312 = vadd.xlane.f32.xlu0 %v4311_v24  ;;  %v4298_v37 = vpop.xlane.xlu1 %4297 }
0x2d3a   :  { %v4303_v49 = vmul.f32 %v4298_v37, %v6869_v45 }
0x2d3b   :  { %v7870_v42 = vsub.f32 %v7853_v63, %v4304_v12 }
0x2d3c   :  { %v4306_v34 = vsub.f32 %v7858_v22, %v4303_v49 }
0x2d3d   :  { %v4310_v11 = vmul.f32 %v7870_v42, %v7870_v42 }
0x2d3e   :  { %v4309_v29 = vmul.f32 %v4306_v34, %v4306_v34 }
0x2d3f   :  { %v4317_v8 = vsel %vm1670_vm4, %v4310_v11, 0.0 }
0x2d40   :  { %4318 = vadd.xlane.f32.xlu2 %v4317_v8  ;;  %v4314_v46 = vsel %vm65_vm0, %v4309_v29, 0.0 }
0x2d41   :  { %4315 = vadd.xlane.f32.xlu1 %v4314_v46 }
0x2dac   :  { %v4313_v55 = vpop.xlane.xlu0 %4312 }
0x2dad   :  { %v4320_v38 = vmul.f32 %v4313_v55, %v6869_v45 }
0x2daf   :  { %v4323_v16 = vadd.f32 1e-05, %v4320_v38 }
0x2db1   :  { %6032 = vrsqrt.f32 %v4323_v16  ;;  %vm4332_vm12 = vweird.f32 %v4323_v16 }
0x2db3   :  { %v4319_v15 = vpop.xlane.xlu2 %4318 }
0x2db4   :  { %v4322_v26 = vmul.f32 %v4319_v15, %v6869_v45  ;;  %v4316_v44 = vpop.xlane.xlu1 %4315 }
0x2db5   :  { %v4321_v10 = vmul.f32 %v4316_v44, %v6869_v45 }
0x2db6   :  { %v4325_v9 = vadd.f32 1e-05, %v4322_v26 }
0x2db7   :  { %v6033_v23 = vpop.eup %6032  ;;  %v4324_v52 = vadd.f32 1e-05, %v4321_v10 }
0x2db8   :  { %v4327_v60 = vmul.f32 %v6033_v23, %v4323_v16  ;;  %6034 = vrsqrt.f32 %v4325_v9  ;;  %vm4333_vm2 = vweird.f32 %v6033_v23  ;;  %vm4352_vm6 = vweird.f32 %v4325_v9 }
0x2db9   :  { %6036 = vrsqrt.f32 %v4324_v52  ;;  %vm4334_vm10 = vmor %vm4332_vm12, %vm4333_vm2  ;;  %vm4342_vm8 = vweird.f32 %v4324_v52 }
0x2dba   :  { %v4328_v1 = vmul.f32 %v6033_v23, %v4327_v60  ;;  %vm8370_vm2 = vmmov %vm8369_vm9 }
0x2dbb   :  { %vm8371_vm12 = vmmov %vm8370_vm2 }
0x2dbc   :  { %v4329_v19 = vmul.f32 0.5, %v4328_v1 }
0x2dbe   :  { %v6035_v13 = vpop.eup %6034  ;;  %v4330_v25 = vsub.f32 1.5, %v4329_v19 }
0x2dbf   :  { %v6037_v0 = vpop.eup %6036  ;;  %v4347_v4 = vmul.f32 %v6035_v13, %v4325_v9  ;;  %vm4353_vm3 = vweird.f32 %v6035_v13 }
0x2dc0   :  { %v4331_v61 = vmul.f32 %v6033_v23, %v4330_v25  ;;  %v4337_v59 = vmul.f32 %v6037_v0, %v4324_v52  ;;  %vm4343_vm13 = vweird.f32 %v6037_v0  ;;  %vm4354_vm7 = vmor %vm4352_vm6, %vm4353_vm3 }
0x2dc1   :  { %v4348_v5 = vmul.f32 %v6035_v13, %v4347_v4  ;;  %vm4344_vm5 = vmor %vm4342_vm8, %vm4343_vm13  ;;  %vm8373_vm13 = vcmask 131072  }
0x2dc2   :  { %v4335_v51 = vsel %vm4334_vm10, %v6033_v23, %v4331_v61  ;;  %v4338_v6 = vmul.f32 %v6037_v0, %v4337_v59  ;;  %vm8372_vm10 = vmmov %vm8370_vm2 }
0x2dc3   :  { %v4356_v2 = vmul.f32 %v4335_v51, %v4305_v50  ;;  %v4349_v17 = vmul.f32 0.5, %v4348_v5  ;;  %vm8374_vm3 = vmmov %vm8373_vm13 }
0x2dc4   :  { %v4339_v28 = vmul.f32 0.5, %v4338_v6  ;;  %vm8375_vm8 = vmmov %vm8370_vm2 }
0x2dc5   :  { %v4360_v53 = vmul.f32 %v4359_v58, %v4356_v2  ;;  %v4350_v43 = vsub.f32 1.5, %v4349_v17  ;;  %vm8377_vm6 = vmmov %vm8370_vm2 }
0x2dc6   :  { %v4340_v62 = vsub.f32 1.5, %v4339_v28 }
0x2dc7   :  { %v4364_v14 = vadd.f32 %v4363_v7, %v4360_v53  ;;  %v4351_v31 = vmul.f32 %v6035_v13, %v4350_v43 }
0x2dc8   :  { %v4341_v18 = vmul.f32 %v6037_v0, %v4340_v62 }
0x2dc9   :  { %5587 = vmatmul.msk.f32.vlgmr.msrb.gmra.mxu0 %vm65_vm0, %v4364_v14  ;;  %v4355_v27 = vsel %vm4354_vm7, %v6035_v13, %v4351_v31  ;;  %vm8378_vm7 = vmmov %vm8370_vm2 }
0x2dca   :  { %v4345_v20 = vsel %vm4344_vm5, %v6037_v0, %v4341_v18  ;;  %v4358_v41 = vmul.f32 %v4355_v27, %v7870_v42  ;;  %vm8376_vm5 = vmmov %vm8370_vm2 }
0x2dcb   :  { %v4357_v39 = vmul.f32 %v4345_v20, %v4306_v34 }
0x2dcc   :  { %v4362_v33 = vmul.f32 %v4359_v58, %v4358_v41 }
0x2dcd   :  { %v4361_v30 = vmul.f32 %v4359_v58, %v4357_v39 }
0x2dce   :  { %v4366_v35 = vadd.f32 %v4363_v7, %v4362_v33 }
0x2dcf   :  { %v4365_v21 = vadd.f32 %v4363_v7, %v4361_v30 }
0x2dd1   :  { %5588 = vmatmul.msk.f32.gmra.mxu0 %vm65_vm0, %v4365_v21 }
0x2dd9   :  { %5589 = vmatmul.msk.f32.gmra.mxu0 %vm65_vm0, %v4366_v35 }
0x2e46   :  { %v4394_v56 = vpop.f32.mrf.mxu0 }
0x2e47   :  { %v4395_v12 = vadd.f32 %v4394_v56, %v4367_v32 }
0x2e4e   :  { %v4397_v50 = vpop.f32.mrf.mxu0 }
0x2e4f   :  { %v4398_v57 = vadd.f32 %v4397_v50, %v4367_v32 }
0x2e51   :  { %4408 = vrot.lane.b32.xlu2 %v4398_v57, %s8338_s21  ;;  %v7940_v37 = vpack.i.bf16 %v4395_v12, %v4398_v57 }
0x2e56   :  { %v4400_v40 = vpop.f32.mrf.mxu0 }
0x2e57   :  { %v7907_v24 = vadd.f32 %v4400_v40, %v4367_v32 }
0x2e59   :  { %4541 = vrot.lane.b32.xlu1 %v7907_v24, %s8364_s17  ;;  %4410 = vrot.lane.b32.xlu0 %v7907_v24, %s8338_s21 }
0x2e5a   :  { %4537 = vrot.lane.b32.xlu2 %v4395_v12, %s8364_s17 }
0x2e61   :  { %4531 = vrot.lane.b32.xlu1 %v4395_v12, %s8365_s10  ;;  %4539 = vrot.lane.b32.xlu0 %v4398_v57, %s8364_s17 }
0x2e62   :  { %4672 = vrot.lane.b32.xlu2 %v7907_v24, %s8337_s30 }
0x2e69   :  { %4803 = vrot.lane.b32.xlu1 %v7907_v24, %s8366_s2  ;;  %4406 = vrot.lane.b32.xlu0 %v4395_v12, %s8338_s21  ;;  %s8368_s21 = smov 92  }
0x2e6a   :  { %4670 = vrot.lane.b32.xlu2 %v4398_v57, %s8337_s30 }
0x2e71   :  { %4801 = vrot.lane.b32.xlu1 %v4398_v57, %s8366_s2  ;;  %4533 = vrot.lane.b32.xlu0 %v4398_v57, %s8365_s10 }
0x2e72   :  { %4799 = vrot.lane.b32.xlu2 %v4395_v12, %s8366_s2 }
0x2e79   :  { %4662 = vrot.lane.b32.xlu1 %v4395_v12, %s8346_s28  ;;  %4668 = vrot.lane.b32.xlu0 %v4395_v12, %s8337_s30  ;;  %s8386_s30 = smov 84  }
0x2e7a   :  { %4664 = vrot.lane.b32.xlu2 %v4398_v57, %s8346_s28 }
0x2e81   :  { %4795 = vrot.lane.b32.xlu1 %v4398_v57, %s8367_s9  ;;  %4535 = vrot.lane.b32.xlu0 %v7907_v24, %s8365_s10 }
0x2e82   :  { %4797 = vrot.lane.b32.xlu2 %v7907_v24, %s8367_s9 }
0x2e89   :  { %4621 = vrot.lane.b32.xlu1 %v7907_v24, %s8368_s21  ;;  %4793 = vrot.lane.b32.xlu0 %v4395_v12, %s8367_s9  ;;  %s8414_s9 = sld [smem:[#allocation10_spill]] }
0x2e8a   :  { %4490 = vrot.lane.b32.xlu2 %v7907_v24, %s8347_s22 }
0x2e91   :  { %4666 = vrot.lane.b32.xlu0 %v7907_v24, %s8346_s28  ;;  %s8405_s28 = smov 12  }
0x2e99   :  { %5736 = vrot.lane.b32.xlu0 %v7940_v37, %s8347_s22 }
0x2ea1   :  { %5741 = vrot.lane.b32.xlu0 %v7940_v37, %s8368_s21 }
0x2eab   :  { %v4409_v49 = vpop.permute.xlu2 %4408 }
0x2eb4   :  { %v4538_v42 = vpop.permute.xlu2 %4537 }
0x2ebc   :  { %v4673_v34 = vpop.permute.xlu2 %4672 }
0x2ec4   :  { %v4671_v11 = vpop.permute.xlu2 %4670 }
0x2ecb   :  { %v4542_v29 = vpop.permute.xlu1 %4541  ;;  %v4411_v8 = vpop.permute.xlu0 %4410 }
0x2ecc   :  { %v4800_v46 = vpop.permute.xlu2 %4799  ;;  %5590 = vmatpush.xpose.msk.msra.mxu3 %vm1791_vm14, %v4411_v8  ;;  %5600 = vmatpush.xpose.msk.msrb.mxu2 %vm1791_vm14, %v4542_v29 }
0x2ed0   :  { %5591 = vmatpush.xpose.msk.msra.mxu3 %vm1791_vm14, %v4409_v49 }
0x2ed3   :  { %v4532_v55 = vpop.permute.xlu1 %4531  ;;  %v4540_v38 = vpop.permute.xlu0 %4539 }
0x2ed4   :  { %v4665_v16 = vpop.permute.xlu2 %4664  ;;  %5601 = vmatpush.xpose.msk.msrb.mxu2 %vm1791_vm14, %v4540_v38 }
0x2ed8   :  { %5602 = vmatpush.xpose.msk.msrb.mxu2 %vm1791_vm14, %v4538_v42 }
0x2edb   :  { %v4804_v15 = vpop.permute.xlu1 %4803  ;;  %v4407_v26 = vpop.permute.xlu0 %4406  ;;  %5603 = vmatmul.msk.f32.vlgmr.msrb.gmra.mxu2 %vm1791_vm14, %v4532_v55 }
0x2edc   :  { %v4798_v44 = vpop.permute.xlu2 %4797  ;;  %5592 = vmatpush.xpose.msk.msra.mxu3 %vm1791_vm14, %v4407_v26  ;;  %5620 = vmatpush.xpose.msk.msra.mxu2 %vm1791_vm14, %v4804_v15 }
0x2edf   :  { %5593 = vmatmul.msk.f32.vlgmr.msra.gmra.mxu3 %vm1791_vm14, %v4395_v12 }
0x2ee0   :  { %5610 = vmatpush.xpose.msk.msrb.mxu3 %vm1791_vm14, %v4673_v34 }
0x2ee3   :  { %v4802_v10 = vpop.permute.xlu1 %4801  ;;  %v4534_v9 = vpop.permute.xlu0 %4533 }
0x2ee4   :  { %5611 = vmatpush.xpose.msk.msrb.mxu3 %vm1791_vm14, %v4671_v11  ;;  %v4491_v23 = vpop.permute.xlu2 %4490  ;;  %5604 = vmatmul.msk.f32.gmra.mxu2 %vm1791_vm14, %v4534_v9 }
0x2ee5   :  { %5596 = vmatpush.msk.msra.mxu1 %vm92_vm1, %v4491_v23  ;;  %5621 = vmatpush.xpose.msk.msra.mxu2 %vm1791_vm14, %v4802_v10 }
0x2ee7   :  { %5594 = vmatmul.msk.f32.gmra.mxu3 %vm1791_vm14, %v4398_v57 }
0x2ee9   :  { %5622 = vmatpush.xpose.msk.msra.mxu2 %vm1791_vm14, %v4800_v46 }
0x2eeb   :  { %v4663_v52 = vpop.permute.xlu1 %4662  ;;  %v4669_v60 = vpop.permute.xlu0 %4668 }
0x2eec   :  { %5612 = vmatpush.xpose.msk.msrb.mxu3 %vm1791_vm14, %v4669_v60 }
0x2eef   :  { %5595 = vmatmul.msk.f32.gmra.mxu3 %vm1791_vm14, %v7907_v24 }
0x2ef3   :  { %v4796_v1 = vpop.permute.xlu1 %4795  ;;  %v4536_v19 = vpop.permute.xlu0 %4535 }
0x2ef4   :  { %5605 = vmatmul.msk.f32.gmra.mxu2 %vm1791_vm14, %v4536_v19 }
0x2ef7   :  { %5613 = vmatmul.msk.f32.vlgmr.msrb.gmra.mxu3 %vm1791_vm14, %v4663_v52 }
0x2efb   :  { %v4622_v13 = vpop.permute.xlu1 %4621  ;;  %v4794_v25 = vpop.permute.xlu0 %4793 }
0x2efc   :  { %5606 = vmatpush.msk.msra.mxu0 %vm92_vm1, %v4622_v13  ;;  %5623 = vmatmul.msk.f32.vlgmr.msra.gmra.mxu2 %vm1791_vm14, %v4794_v25 }
0x2eff   :  { %5614 = vmatmul.msk.f32.gmra.mxu3 %vm1791_vm14, %v4665_v16 }
0x2f03   :  { %v4667_v0 = vpop.permute.xlu0 %4666 }
0x2f04   :  { %5624 = vmatmul.msk.f32.gmra.mxu2 %vm1791_vm14, %v4796_v1 }
0x2f07   :  { %5615 = vmatmul.msk.f32.gmra.mxu3 %vm1791_vm14, %v4667_v0 }
0x2f0b   :  { %v5737_v4 = vpop.permute.xlu0 %5736 }
0x2f0c   :  { %v5738_v61 = vunpack.i.l.bf16 %v5737_v4  ;;  %5625 = vmatmul.msk.f32.gmra.mxu2 %vm1791_vm14, %v4798_v44  ;;  %v5739_v59 = vunpack.i.h.bf16 %v5737_v4 }
0x2f0e   :  { %4519 = vmatpush.msra.mxu1 %v5738_v61 }
0x2f10   :  { %4520 = vmatpush.msra.mxu1 %v5739_v59 }
0x2f13   :  { %v5742_v58 = vpop.permute.xlu0 %5741 }
0x2f14   :  { %v5743_v5 = vunpack.i.l.bf16 %v5742_v58  ;;  %v5744_v51 = vunpack.i.h.bf16 %v5742_v58 }
0x2f16   :  { %4650 = vmatpush.msra.mxu0 %v5743_v5 }
0x2f18   :  { %4651 = vmatpush.msra.mxu0 %v5744_v51 }
0x2f5e   :  { %v4572_v6 = vpop.f32.mrf.mxu2 }
0x2f5f   :  { %v4581_v7 = vmul.f32 0.5, %v4572_v6 }
0x2f61   :  { %v4584_v2 = vsel %vm8369_vm9, %v4581_v7, -inf  ;;  %vm8379_vm9 = vmmov %vm8374_vm3 }
0x2f62   :  { %v4441_v17 = vpop.f32.mrf.mxu3  ;;  %4585 = vmax.xlane.f32.xlu0 %v4584_v2 }
0x2f63   :  { %v4450_v28 = vmul.f32 0.5, %v4441_v17 }
0x2f65   :  { %v4453_v53 = vsel %vm8370_vm2, %v4450_v28, -inf  ;;  %vm8380_vm2 = vmmov %vm8374_vm3 }
0x2f66   :  { %4454 = vmax.xlane.f32.xlu1 %v4453_v53 }
0x2f67   :  { %v4575_v43 = vpop.f32.mrf.mxu2 }
0x2f68   :  { %v4582_v62 = vmul.f32 0.5, %v4575_v43 }
0x2f6a   :  { %v4444_v14 = vpop.f32.mrf.mxu3  ;;  %v4587_v20 = vsel %vm8372_vm10, %v4582_v62, -inf  ;;  %vm8382_vm10 = vmmov %vm8376_vm5 }
0x2f6b   :  { %v4451_v31 = vmul.f32 0.5, %v4444_v14 }
0x2f6d   :  { %v4456_v18 = vsel %vm8371_vm12, %v4451_v31, -inf  ;;  %vm8381_vm12 = vmmov %vm8376_vm5 }
0x2f6e   :  { %4457 = vmax.xlane.f32.xlu2 %v4456_v18  ;;  %4588 = vmax.xlane.f32.xlu1 %v4587_v20 }
0x2f72   :  { %v4447_v39 = vpop.f32.mrf.mxu3 }
0x2f73   :  { %v4452_v27 = vmul.f32 0.5, %v4447_v39 }
0x2f75   :  { %v4459_v30 = vsel %vm8373_vm13, %v4452_v27, -inf  ;;  %vm8383_vm13 = vmmov %vm8376_vm5 }
0x2f76   :  { %4460 = vmax.xlane.f32.xlu0 %v4459_v30 }
0x2f77   :  { %v4578_v41 = vpop.f32.mrf.mxu2 }
0x2f78   :  { %v7978_v21 = vmul.f32 0.5, %v4578_v41 }
0x2f7a   :  { %v4703_v33 = vpop.f32.mrf.mxu3  ;;  %v4590_v35 = vsel %vm8374_vm3, %v7978_v21, -inf  ;;  %vm8384_vm3 = vmmov %vm8376_vm5 }
0x2f7b   :  { %v7982_v56 = vmul.f32 0.5, %v4703_v33  ;;  %4591 = vmax.xlane.f32.xlu2 %v4590_v35 }
0x2f7d   :  { %v4715_v32 = vsel %vm8375_vm8, %v7982_v56, -inf  ;;  %vm8385_vm8 = vmmov %vm8380_vm2 }
0x2f7e   :  { %4716 = vmax.xlane.f32.xlu1 %v4715_v32 }
0x2f7f   :  { %v4834_v50 = vpop.f32.mrf.mxu2 }
0x2f80   :  { %v7986_v57 = vmul.f32 0.5, %v4834_v50 }
0x2f82   :  { %v4706_v40 = vpop.f32.mrf.mxu3  ;;  %v4846_v12 = vsel %vm8376_vm5, %v7986_v57, -inf  ;;  %vm8387_vm5 = vmmov %vm8380_vm2 }
0x2f83   :  { %v7990_v49 = vmul.f32 0.5, %v4706_v40  ;;  %4847 = vmax.xlane.f32.xlu0 %v4846_v12 }
0x2f85   :  { %v4718_v42 = vsel %vm8377_vm6, %v7990_v49, -inf  ;;  %vm8388_vm6 = vmmov %vm8384_vm3 }
0x2f86   :  { %4719 = vmax.xlane.f32.xlu2 %v4718_v42 }
0x2f87   :  { %v4837_v34 = vpop.f32.mrf.mxu2 }
0x2f88   :  { %v7994_v11 = vmul.f32 0.5, %v4837_v34 }
0x2f8a   :  { %v4709_v29 = vpop.f32.mrf.mxu3  ;;  %v4849_v8 = vsel %vm8378_vm7, %v7994_v11, -inf  ;;  %vm8389_vm7 = vmmov %vm8384_vm3 }
0x2f8b   :  { %v7998_v46 = vmul.f32 0.5, %v4709_v29  ;;  %4850 = vmax.xlane.f32.xlu1 %v4849_v8 }
0x2f8d   :  { %v4721_v55 = vsel %vm8379_vm9, %v7998_v46, -inf  ;;  %vm8390_vm9 = vmmov %vm8384_vm3 }
0x2f8e   :  { %4722 = vmax.xlane.f32.xlu0 %v4721_v55 }
0x2f8f   :  { %v4840_v38 = vpop.f32.mrf.mxu2 }
0x2f90   :  { %v8002_v16 = vmul.f32 0.5, %v4840_v38 }
0x2f92   :  { %v4852_v15 = vsel %vm8380_vm2, %v8002_v16, -inf }
0x2f93   :  { %4853 = vmax.xlane.f32.xlu2 %v4852_v15 }
0x2fd5   :  { %v4586_v26 = vpop.xlane.xlu0 %4585 }
0x2fd6   :  { %v4593_v44 = vsub.f32 %v4581_v7, %v4586_v26 }
0x2fd8   :  { %v4596_v10 = vmul.f32 1.442695, %v4593_v44 }
0x2fd9   :  { %v4455_v9 = vpop.xlane.xlu1 %4454 }
0x2fda   :  { %6038 = vpow2.f32 %v4596_v10  ;;  %v4462_v23 = vsub.f32 %v4450_v28, %v4455_v9 }
0x2fdc   :  { %v4465_v52 = vmul.f32 1.442695, %v4462_v23 }
0x2fde   :  { %6040 = vpow2.f32 %v4465_v52 }
0x2fe0   :  { %v8006_v60 = vpop.eup %6038 }
0x2fe1   :  { %v4589_v1 = vpop.xlane.xlu1 %4588  ;;  %v4458_v19 = vpop.xlane.xlu2 %4457  ;;  %v4602_v13 = vsel %vm8381_vm12, %v8006_v60, 0.0  ;;  %vm8391_vm12 = vmmov %vm8384_vm3 }
0x2fe2   :  { %v4594_v25 = vsub.f32 %v4582_v62, %v4589_v1  ;;  %v4463_v0 = vsub.f32 %v4451_v31, %v4458_v19  ;;  %4603 = vadd.xlane.f32.xlu0 %v4602_v13 }
0x2fe4   :  { %v8010_v4 = vpop.eup %6040  ;;  %v4598_v61 = vmul.f32 1.442695, %v4594_v25  ;;  %v4467_v59 = vmul.f32 1.442695, %v4463_v0 }
0x2fe5   :  { %v4471_v58 = vsel %vm8382_vm10, %v8010_v4, 0.0  ;;  %vm8392_vm10 = vmmov %vm8384_vm3 }
0x2fe6   :  { %6042 = vpow2.f32 %v4598_v61  ;;  %4472 = vadd.xlane.f32.xlu1 %v4471_v58 }
0x2fe7   :  { %6044 = vpow2.f32 %v4467_v59 }
0x2fe9   :  { %v4461_v5 = vpop.xlane.xlu0 %4460 }
0x2fea   :  { %v4464_v51 = vsub.f32 %v4452_v27, %v4461_v5 }
0x2fec   :  { %v8014_v6 = vpop.eup %6042  ;;  %v4469_v7 = vmul.f32 1.442695, %v4464_v51 }
0x2fed   :  { %v8016_v2 = vpop.eup %6044  ;;  %v4605_v17 = vsel %vm8383_vm13, %v8014_v6, 0.0  ;;  %vm8393_vm13 = vmmov %vm8384_vm3 }
0x2fee   :  { %6046 = vpow2.f32 %v4469_v7  ;;  %4606 = vadd.xlane.f32.xlu1 %v4605_v17  ;;  %v4474_v28 = vsel %vm8384_vm3, %v8016_v2, 0.0  ;;  %v4592_v62 = vpop.xlane.xlu2 %4591 }
0x2fef   :  { %4475 = vadd.xlane.f32.xlu2 %v4474_v28  ;;  %v4595_v31 = vsub.f32 %v7978_v21, %v4592_v62 }
0x2ff1   :  { %v4717_v14 = vpop.xlane.xlu1 %4716  ;;  %v4600_v39 = vmul.f32 1.442695, %v4595_v31 }
0x2ff2   :  { %v4724_v18 = vsub.f32 %v7982_v56, %v4717_v14 }
0x2ff3   :  { %6048 = vpow2.f32 %v4600_v39 }
0x2ff4   :  { %v8022_v53 = vpop.eup %6046  ;;  %v4727_v30 = vmul.f32 1.442695, %v4724_v18 }
0x2ff5   :  { %v4477_v43 = vsel %vm8385_vm8, %v8022_v53, 0.0  ;;  %vm8394_vm8 = vmmov %vm8384_vm3 }
0x2ff6   :  { %4478 = vadd.xlane.f32.xlu0 %v4477_v43  ;;  %v4848_v41 = vpop.xlane.xlu0 %4847  ;;  %6050 = vpow2.f32 %v4727_v30 }
0x2ff7   :  { %v4855_v33 = vsub.f32 %v7986_v57, %v4848_v41 }
0x2ff9   :  { %v4720_v20 = vpop.xlane.xlu2 %4719  ;;  %v4858_v50 = vmul.f32 1.442695, %v4855_v33  ;;  %v8037_v21 = vpop.eup %6048 }
0x2ffa   :  { %v4725_v27 = vsub.f32 %v7990_v49, %v4720_v20  ;;  %v4608_v42 = vsel %vm8387_vm5, %v8037_v21, 0.0  ;;  %vm8395_vm5 = vmmov %vm8380_vm2 }
0x2ffc   :  { %v4729_v35 = vmul.f32 1.442695, %v4725_v27  ;;  %v8039_v56 = vpop.eup %6050 }
0x2ffd   :  { %v4733_v34 = vsel %vm8388_vm6, %v8039_v56, 0.0  ;;  %vm8396_vm6 = vmmov %vm8384_vm3 }
0x2ffe   :  { %6052 = vpow2.f32 %v4729_v35  ;;  %v4851_v40 = vpop.xlane.xlu1 %4850 }
0x2fff   :  { %6054 = vpow2.f32 %v4858_v50  ;;  %v4856_v12 = vsub.f32 %v7994_v11, %v4851_v40 }
0x3001   :  { %v4860_v29 = vmul.f32 1.442695, %v4856_v12  ;;  %v4723_v44 = vpop.xlane.xlu0 %4722 }
0x3002   :  { %v4726_v19 = vsub.f32 %v7998_v46, %v4723_v44 }
0x3004   :  { %v8044_v57 = vpop.eup %6052  ;;  %v4731_v47 = vmul.f32 1.442695, %v4726_v19 }
0x3005   :  { %v4736_v8 = vsel %vm8389_vm7, %v8044_v57, 0.0  ;;  %v8050_v55 = vpop.eup %6054  ;;  %vm8397_vm7 = vmmov %vm8384_vm3 }
0x3006   :  { %v4854_v32 = vpop.xlane.xlu2 %4853  ;;  %v4864_v11 = vsel %vm8390_vm9, %v8050_v55, 0.0  ;;  %vm8398_vm9 = vmmov %vm8384_vm3 }
0x3007   :  { %5746 = vrot.lane.b32.xlu2 %v7940_v37, %s8348_s23  ;;  %4883 = vrot.lane.b32.xlu1 %v7907_v24, %s8386_s30 }
0x300a   :  { %4752 = vrot.lane.b32.xlu0 %v7907_v24, %s8348_s23  ;;  %v4857_v24 = vsub.f32 %v8002_v16, %v4854_v32  ;;  %s8409_s23 = sld [smem:[#allocation8_spill]] }
0x300c   :  { %v4862_v49 = vmul.f32 1.442695, %v4857_v24 }
0x300e   :  { %6056 = vpow2.f32 %v4862_v49 }
0x300f   :  { %6058 = vpow2.f32 %v4860_v29 }
0x3014   :  { %v8054_v38 = vpop.eup %6056 }
0x3015   :  { %v4870_v16 = vsel %vm8380_vm2, %v8054_v38, 0.0  ;;  %v8058_v15 = vpop.eup %6058 }
0x3016   :  { %v4867_v26 = vsel %vm8391_vm12, %v8058_v15, 0.0 }
0x3030   :  { %4609 = vadd.xlane.f32.xlu2 %v4608_v42 }
0x3031   :  { %4734 = vadd.xlane.f32.xlu1 %v4733_v34 }
0x3034   :  { %4737 = vadd.xlane.f32.xlu0 %v4736_v8 }
0x3038   :  { %4865 = vadd.xlane.f32.xlu2 %v4864_v11 }
0x303c   :  { %4871 = vadd.xlane.f32.xlu0 %v4870_v16 }
0x3040   :  { %4868 = vadd.xlane.f32.xlu2 %v4867_v26 }
0x304a   :  { %5751 = vrot.lane.b32.xlu1 %v7940_v37, %s8386_s30 }
0x3055   :  { %v4604_v10 = vpop.xlane.xlu0 %4603 }
0x3056   :  { %6060 = vrcp.f32 %v4604_v10 }
0x3058   :  { %5756 = vrot.lane.b32.xlu2 %v5755_v54, %s8336_s29  ;;  %s8403_s29 = smov 4  }
0x3059   :  { %v4473_v9 = vpop.xlane.xlu1 %4472 }
0x305a   :  { %6062 = vrcp.f32 %v4473_v9 }
0x305c   :  { %v6061_v23 = vpop.eup %6060 }
0x305d   :  { %v4614_v52 = vmul.f32 %v6061_v23, %v8006_v60 }
0x305f   :  { %5607 = vmatmul.msk.f32.vlgmr.msra.gmra.mxu0 %vm8392_vm10, %v4614_v52 }
0x3060   :  { %v6063_v1 = vpop.eup %6062 }
0x3061   :  { %v4483_v37 = vmul.f32 %v6063_v1, %v8010_v4  ;;  %v4607_v13 = vpop.xlane.xlu1 %4606 }
0x3062   :  { %6064 = vrcp.f32 %v4607_v13  ;;  %v4476_v25 = vpop.xlane.xlu2 %4475 }
0x3063   :  { %6066 = vrcp.f32 %v4476_v25  ;;  %5597 = vmatmul.msk.f32.vlgmr.msra.gmra.mxu1 %vm8393_vm13, %v4483_v37 }
0x3064   :  { %6068 = vpow2.f32 %v4731_v47 }
0x3068   :  { %v6065_v48 = vpop.eup %6064 }
0x3069   :  { %v6067_v54 = vpop.eup %6066  ;;  %v4479_v0 = vpop.xlane.xlu0 %4478  ;;  %v4615_v60 = vmul.f32 %v6065_v48, %v8014_v6 }
0x306a   :  { %6070 = vrcp.f32 %v4479_v0  ;;  %v4484_v61 = vmul.f32 %v6067_v54, %v8016_v2  ;;  %v6069_v46 = vpop.eup %6068  ;;  %v5747_v51 = vpop.permute.xlu2 %5746 }
0x306b   :  { %5608 = vmatmul.msk.f32.gmra.mxu0 %vm8384_vm3, %v4615_v60  ;;  %v4739_v58 = vsel %vm8395_vm5, %v6069_v46, 0.0  ;;  %v5748_v7 = vunpack.i.l.bf16 %v5747_v51  ;;  %v5749_v2 = vunpack.i.h.bf16 %v5747_v51 }
0x306c   :  { %5598 = vmatmul.msk.f32.gmra.mxu1 %vm8394_vm8, %v4484_v61 }
0x3070   :  { %v6071_v4 = vpop.eup %6070 }
0x3071   :  { %v4485_v59 = vmul.f32 %v6071_v4, %v8022_v53 }
0x3074   :  { %5599 = vmatmul.msk.f32.gmra.mxu1 %vm8396_vm6, %v4485_v59  ;;  %4740 = vadd.xlane.f32.xlu1 %v4739_v58 }
0x3079   :  { %v4884_v5 = vpop.permute.xlu1 %4883 }
0x307a   :  { %5626 = vmatpush.msk.msrb.mxu0 %vm92_vm1, %v4884_v5 }
0x307c   :  { %v4753_v6 = vpop.permute.xlu0 %4752 }
0x307d   :  { %5616 = vmatpush.msk.msrb.mxu1 %vm92_vm1, %v4753_v6  ;;  %vm8399_vm1 = vmmov %vm8384_vm3  ;;  %vm8406_vm3 = vcmask 97280  }
0x307e   :  { %vm8400_vm2 = vmmov %vm8399_vm1 }
0x307f   :  { %4781 = vmatpush.msrb.mxu1 %v5748_v7  ;;  %vm8401_vm12 = vmmov %vm8399_vm1  ;;  %v5015_v7 = vperm.slane %v7897_v36, 4 }
0x3080   :  { %vm8402_vm10 = vmmov %vm8399_vm1 }
0x3081   :  { %4782 = vmatpush.msrb.mxu1 %v5749_v2  ;;  %vm8404_vm13 = vmmov %vm8399_vm1 }
0x3082   :  { %vm8407_vm8 = vmmov %vm8406_vm3 }
0x3083   :  { %vm8408_vm5 = vmmov %vm8406_vm3 }
0x30a3   :  { %v4610_v17 = vpop.xlane.xlu2 %4609 }
0x30a4   :  { %6072 = vrcp.f32 %v4610_v17  ;;  %v4735_v28 = vpop.xlane.xlu1 %4734 }
0x30a5   :  { %6074 = vrcp.f32 %v4735_v28 }
0x30a7   :  { %v4738_v53 = vpop.xlane.xlu0 %4737 }
0x30a8   :  { %6076 = vrcp.f32 %v4738_v53 }
0x30aa   :  { %v6073_v43 = vpop.eup %6072 }
0x30ab   :  { %v6075_v62 = vpop.eup %6074  ;;  %v4616_v14 = vmul.f32 %v6073_v43, %v8037_v21  ;;  %v4866_v20 = vpop.xlane.xlu2 %4865 }
0x30ac   :  { %v4745_v31 = vmul.f32 %v6075_v62, %v8039_v56  ;;  %6078 = vrcp.f32 %v4866_v20 }
0x30ad   :  { %5609 = vmatmul.msk.f32.gmra.mxu0 %vm8397_vm7, %v4616_v14 }
0x30ae   :  { %5617 = vmatmul.msk.f32.vlgmr.msrb.gmra.mxu1 %vm8398_vm9, %v4745_v31  ;;  %v6077_v18 = vpop.eup %6076 }
0x30af   :  { %v4746_v39 = vmul.f32 %v6077_v18, %v8044_v57  ;;  %v4872_v50 = vpop.xlane.xlu0 %4871 }
0x30b2   :  { %v6079_v41 = vpop.eup %6078 }
0x30b3   :  { %v4869_v27 = vpop.xlane.xlu2 %4868  ;;  %v4876_v32 = vmul.f32 %v6079_v41, %v8050_v55 }
0x30b4   :  { %6080 = vrcp.f32 %v4869_v27 }
0x30b5   :  { %6082 = vrcp.f32 %v4872_v50 }
0x30b6   :  { %5618 = vmatmul.msk.f32.gmra.mxu1 %vm8399_vm1, %v4746_v39 }
0x30ba   :  { %v6081_v24 = vpop.eup %6080 }
0x30bb   :  { %v4877_v40 = vmul.f32 %v6081_v24, %v8058_v15  ;;  %v6083_v21 = vpop.eup %6082  ;;  %v5757_v8 = vpop.permute.xlu2 %5756 }
0x30bc   :  { %v5752_v30 = vpop.permute.xlu1 %5751  ;;  %v4878_v56 = vmul.f32 %v6083_v21, %v8054_v38  ;;  %v5759_v55 = vunpack.i.h.bf16 %v5757_v8  ;;  %v5758_v11 = vunpack.i.l.bf16 %v5757_v8 }
0x30bd   :  { %v5753_v33 = vunpack.i.l.bf16 %v5752_v30  ;;  %v5754_v35 = vunpack.i.h.bf16 %v5752_v30 }
0x30be   :  { %5000 = vmatpush.msra.mxu3 %v5758_v11 }
0x30bf   :  { %4912 = vmatpush.msrb.mxu0 %v5753_v33 }
0x30c0   :  { %5001 = vmatpush.msra.mxu3 %v5759_v55 }
0x30c1   :  { %4913 = vmatpush.msrb.mxu0 %v5754_v35 }
0x30c2   :  { %5627 = vmatmul.msk.f32.vlgmr.msrb.gmra.mxu0 %vm8400_vm2, %v4876_v32 }
0x30ca   :  { %5628 = vmatmul.msk.f32.gmra.mxu0 %vm8401_vm12, %v4877_v40 }
0x30d2   :  { %5629 = vmatmul.msk.f32.gmra.mxu0 %vm8402_vm10, %v4878_v56 }
0x30dc   :  { %v4653_v12 = vpop.f32.mrf.mxu0 }
0x30dd   :  { %4927 = vrot.lane.b32.xlu0 %v4653_v12, %s8403_s29 }
0x30e0   :  { %v4522_v29 = vpop.f32.mrf.mxu1 }
0x30e7   :  { %v4741_v49 = vpop.xlane.xlu1 %4740 }
0x30e8   :  { %6084 = vrcp.f32 %v4741_v49  ;;  %v4656_v42 = vpop.f32.mrf.mxu0 }
0x30e9   :  { %4929 = vrot.lane.b32.xlu2 %v4656_v42, %s8403_s29  ;;  %v4525_v38 = vpop.f32.mrf.mxu1  ;;  %v5094_v42 = vld [vmem:[%s8409_s23 + $0x8] sm:$0xff] }
0x30ea   :  { %5119 = vmatpush.msra.mxu1 %v5094_v42 }
0x30ee   :  { %v6085_v57 = vpop.eup %6084 }
0x30ef   :  { %v4747_v34 = vmul.f32 %v6085_v57, %v6069_v46  ;;  %v5093_v57 = vld [vmem:[%s8409_s23] sm:$0xff] }
0x30f0   :  { %5120 = vmatpush.msra.mxu1 %v5093_v57 }
0x30f1   :  { %5619 = vmatmul.msk.f32.gmra.mxu1 %vm8404_vm13, %v4747_v34  ;;  %v4528_v16 = vpop.f32.mrf.mxu1  ;;  %vm8411_vm13 = vcmask 523264  }
0x312a   :  { %v4659_v15 = vpop.f32.mrf.mxu0 }
0x312b   :  { %4931 = vrot.lane.b32.xlu2 %v4659_v15, %s8403_s29  ;;  %v4784_v26 = vpop.f32.mrf.mxu1 }
0x312c   :  { %4939 = vrot.lane.b32.xlu1 %v4784_v26, %s8343_s26 }
0x3133   :  { %v4787_v10 = vpop.f32.mrf.mxu1 }
0x313f   :  { %v4915_v44 = vpop.f32.mrf.mxu0 }
0x3140   :  { %4951 = vrot.lane.b32.xlu0 %v4915_v44, %s8405_s28 }
0x3143   :  { %v4930_v48 = vpop.permute.xlu2 %4929 }
0x3144   :  { %v4961_v54 = vsel %vm1791_vm14, %v4525_v38, %v4930_v48 }
0x3147   :  { %v4918_v9 = vpop.f32.mrf.mxu0 }
0x3148   :  { %4953 = vrot.lane.b32.xlu1 %v4918_v9, %s8405_s28  ;;  %4941 = vrot.lane.b32.xlu0 %v4787_v10, %s8343_s26 }
0x314f   :  { %v4921_v23 = vpop.f32.mrf.mxu0  ;;  %v4928_v1 = vpop.permute.xlu0 %4927 }
0x3150   :  { %4955 = vrot.lane.b32.xlu1 %v4921_v23, %s8405_s28  ;;  %v4960_v37 = vsel %vm1791_vm14, %v4522_v29, %v4928_v1 }
0x316e   :  { %v4790_v52 = vpop.f32.mrf.mxu1 }
0x316f   :  { %4943 = vrot.lane.b32.xlu0 %v4790_v52, %s8343_s26  ;;  %v5085_v52 = vperm.slane %v7897_v36, 2  ;;  %s8415_s26 = sld [smem:[#allocation11_spill]] }
0x3185   :  { %v4932_v4 = vpop.permute.xlu2 %4931 }
0x3186   :  { %v4962_v59 = vsel %vm1791_vm14, %v4528_v16, %v4932_v4 }
0x319e   :  { %v4940_v19 = vpop.permute.xlu1 %4939 }
0x319f   :  { %v4963_v13 = vsel %vm194_vm11, %v4960_v37, %v4940_v19  ;;  %v5089_v37 = vperm.slane %v7897_v36, 3 }
0x31b2   :  { %v4952_v25 = vpop.permute.xlu0 %4951 }
0x31b3   :  { %v4966_v47 = vsel %vm8406_vm3, %v4963_v13, %v4952_v25  ;;  %vm8412_vm3 = vmmov %vm8411_vm13 }
0x31b4   :  { %5630 = vmatmul.msk.f32.vlgmr.msra.gmra.mxu3 %vm65_vm0, %v4966_v47 }
0x31ba   :  { %v4954_v0 = vpop.permute.xlu1 %4953  ;;  %v4942_v60 = vpop.permute.xlu0 %4941 }
0x31bb   :  { %v4964_v61 = vsel %vm194_vm11, %v4961_v54, %v4942_v60 }
0x31bc   :  { %v4967_v46 = vsel %vm8407_vm8, %v4964_v61, %v4954_v0  ;;  %vm8413_vm8 = vmmov %vm8412_vm3 }
0x31bd   :  { %5631 = vmatmul.msk.f32.gmra.mxu3 %vm65_vm0, %v4967_v46 }
0x31c2   :  { %v4956_v5 = vpop.permute.xlu1 %4955 }
0x31e1   :  { %v4944_v58 = vpop.permute.xlu0 %4943 }
0x31e2   :  { %v4965_v51 = vsel %vm194_vm11, %v4962_v59, %v4944_v58 }
0x31e3   :  { %v4968_v6 = vsel %vm8408_vm5, %v4965_v51, %v4956_v5 }
0x31e4   :  { %5632 = vmatmul.msk.f32.gmra.mxu3 %vm65_vm0, %v4968_v6 }
0x3237   :  { %v5003_v2 = vpop.f32.mrf.mxu3 }
0x3238   :  { %v5012_v17 = vadd.f32 %v5003_v2, %v7845_v3 }
0x323a   :  { %v8118_v28 = vadd.f32 %v5015_v7, %v5012_v17 }
0x323c   :  { %v5019_v53 = vsel %vm65_vm0, %v8118_v28, 0.0 }
0x323d   :  { %5020 = vadd.xlane.f32.xlu2 %v5019_v53 }
0x3240   :  { %v5006_v43 = vpop.f32.mrf.mxu3 }
0x3241   :  { %v5013_v62 = vadd.f32 %v5006_v43, %v7858_v22 }
0x3243   :  { %v8123_v14 = vadd.f32 %v5015_v7, %v5013_v62 }
0x3245   :  { %v5022_v31 = vsel %vm65_vm0, %v8123_v14, 0.0 }
0x3246   :  { %5023 = vadd.xlane.f32.xlu0 %v5022_v31 }
0x3267   :  { %v5009_v18 = vpop.f32.mrf.mxu3 }
0x3268   :  { %v5014_v20 = vadd.f32 %v5009_v18, %v7853_v63 }
0x326a   :  { %v8128_v39 = vadd.f32 %v5015_v7, %v5014_v20 }
0x326c   :  { %v5025_v3 = vsel %vm1670_vm4, %v8128_v39, 0.0 }
0x326d   :  { %5026 = vadd.xlane.f32.xlu1 %v5025_v3  ;;  %v5165_v3 = vld [vmem:[%s8410_s16 + $0x38] sm:$0xff] }
0x326e   :  { %5183 = vmatpush.msrb.mxu2 %v5165_v3 }
0x32b0   :  { %v5021_v27 = vpop.xlane.xlu2 %5020 }
0x32b1   :  { %v5028_v30 = vmul.f32 %v5021_v27, %v6869_v45  ;;  %v5164_v27 = vld [vmem:[%s8410_s16 + $0x30] sm:$0xff] }
0x32b2   :  { %5184 = vmatpush.msrb.mxu2 %v5164_v27 }
0x32b3   :  { %v5031_v22 = vsub.f32 %v8118_v28, %v5028_v30  ;;  %v5163_v30 = vld [vmem:[%s8410_s16 + $0x28] sm:$0xff] }
0x32b4   :  { %5185 = vmatpush.msrb.mxu2 %v5163_v30 }
0x32b5   :  { %v5034_v41 = vmul.f32 %v5031_v22, %v5031_v22 }
0x32b7   :  { %v5037_v33 = vsel %vm65_vm0, %v5034_v41, 0.0  ;;  %v5161_v41 = vld [vmem:[%s8410_s16 + $0x18] sm:$0xff] }
0x32b8   :  { %5038 = vadd.xlane.f32.xlu2 %v5037_v33  ;;  %v5160_v33 = vld [vmem:[%s8410_s16 + $0x10] sm:$0xff] }
0x32b9   :  { %v5024_v35 = vpop.xlane.xlu0 %5023 }
0x32ba   :  { %v5029_v32 = vmul.f32 %v5024_v35, %v6869_v45  ;;  %v5159_v35 = vld [vmem:[%s8410_s16 + $0x8] sm:$0xff] }
0x32bc   :  { %v5032_v63 = vsub.f32 %v8123_v14, %v5029_v32  ;;  %v5158_v32 = vld [vmem:[%s8410_s16] sm:$0xff] }
0x32be   :  { %v5035_v50 = vmul.f32 %v5032_v63, %v5032_v63 }
0x32c0   :  { %v5040_v24 = vsel %vm65_vm0, %v5035_v50, 0.0 }
0x32c1   :  { %5041 = vadd.xlane.f32.xlu0 %v5040_v24 }
0x32e0   :  { %v5027_v40 = vpop.xlane.xlu1 %5026 }
0x32e1   :  { %v5030_v21 = vmul.f32 %v5027_v40, %v6869_v45 }
0x32e3   :  { %v5033_v56 = vsub.f32 %v8128_v39, %v5030_v21 }
0x32e5   :  { %v5036_v12 = vmul.f32 %v5033_v56, %v5033_v56 }
0x32e7   :  { %v5043_v49 = vsel %vm1670_vm4, %v5036_v12, 0.0 }
0x32e8   :  { %5044 = vadd.xlane.f32.xlu1 %v5043_v49 }
0x332b   :  { %v5039_v34 = vpop.xlane.xlu2 %5038 }
0x332c   :  { %v5046_v29 = vmul.f32 %v5039_v34, %v6869_v45 }
0x332e   :  { %v5049_v8 = vadd.f32 1e-05, %v5046_v29 }
0x3330   :  { %6086 = vrsqrt.f32 %v5049_v8  ;;  %vm5058_vm14 = vweird.f32 %v5049_v8 }
0x3334   :  { %v5042_v55 = vpop.xlane.xlu0 %5041 }
0x3335   :  { %v5047_v11 = vmul.f32 %v5042_v55, %v6869_v45 }
0x3336   :  { %v6087_v38 = vpop.eup %6086 }
0x3337   :  { %v5053_v16 = vmul.f32 %v6087_v38, %v5049_v8  ;;  %v5050_v15 = vadd.f32 1e-05, %v5047_v11  ;;  %vm5059_vm11 = vweird.f32 %v6087_v38 }
0x3338   :  { %vm5060_vm6 = vmor %vm5058_vm14, %vm5059_vm11 }
0x3339   :  { %v5054_v26 = vmul.f32 %v6087_v38, %v5053_v16  ;;  %6088 = vrsqrt.f32 %v5050_v15  ;;  %vm5068_vm9 = vweird.f32 %v5050_v15 }
0x333b   :  { %v5055_v44 = vmul.f32 0.5, %v5054_v26 }
0x333d   :  { %v5056_v10 = vsub.f32 1.5, %v5055_v44 }
0x333f   :  { %v6089_v9 = vpop.eup %6088  ;;  %v5057_v23 = vmul.f32 %v6087_v38, %v5056_v10 }
0x3340   :  { %v5063_v1 = vmul.f32 %v6089_v9, %v5050_v15  ;;  %vm5069_vm7 = vweird.f32 %v6089_v9 }
0x3341   :  { %v5061_v19 = vsel %vm5060_vm6, %v6087_v38, %v5057_v23  ;;  %vm5070_vm1 = vmor %vm5068_vm9, %vm5069_vm7 }
0x3342   :  { %v5082_v13 = vmul.f32 %v5061_v19, %v5031_v22  ;;  %v5064_v25 = vmul.f32 %v6089_v9, %v5063_v1  ;;  %v5162_v22 = vld [vmem:[%s8410_s16 + $0x20] sm:$0xff]  ;;  %s8416_s16 = sld [smem:[#allocation12_spill]] }
0x3343   :  { %5186 = vmatpush.msrb.mxu2 %v5162_v22 }
0x3344   :  { %v5086_v47 = vmul.f32 %v5085_v52, %v5082_v13  ;;  %v5065_v48 = vmul.f32 0.5, %v5064_v25 }
0x3345   :  { %5187 = vmatpush.msrb.mxu2 %v5161_v41 }
0x3346   :  { %v5090_v54 = vadd.f32 %v5089_v37, %v5086_v47  ;;  %v5066_v0 = vsub.f32 1.5, %v5065_v48 }
0x3347   :  { %5188 = vmatpush.msrb.mxu2 %v5160_v33 }
0x3348   :  { %v5067_v60 = vmul.f32 %v6089_v9, %v5066_v0  ;;  %5633 = vmatmul.msk.f32.vlgmr.msra.gmra.mxu1 %vm65_vm0, %v5090_v54 }
0x3349   :  { %5189 = vmatpush.msrb.mxu2 %v5159_v35 }
0x334a   :  { %v5071_v61 = vsel %vm5070_vm1, %v6089_v9, %v5067_v60  ;;  %v6113_v60 = vld [vmem:[%s8363_s18] sm:$0xff] }
0x334b   :  { %v5083_v46 = vmul.f32 %v5071_v61, %v5032_v63  ;;  %5190 = vmatpush.msrb.mxu2 %v5158_v32  ;;  %v5095_v63 = vperm.slane %v7897_v36, 7  ;;  %v5204_v61 = vperm.slane %v6113_v60, 5 }
0x334d   :  { %v5087_v4 = vmul.f32 %v5085_v52, %v5083_v46 }
0x334f   :  { %v5091_v59 = vadd.f32 %v5089_v37, %v5087_v4 }
0x3351   :  { %5634 = vmatmul.msk.f32.gmra.mxu1 %vm65_vm0, %v5091_v59 }
0x335b   :  { %v5045_v58 = vpop.xlane.xlu1 %5044 }
0x335c   :  { %v5048_v5 = vmul.f32 %v5045_v58, %v6869_v45 }
0x335e   :  { %v5051_v51 = vadd.f32 1e-05, %v5048_v5 }
0x3360   :  { %6090 = vrsqrt.f32 %v5051_v51  ;;  %vm5078_vm12 = vweird.f32 %v5051_v51 }
0x3366   :  { %v6091_v6 = vpop.eup %6090 }
0x3367   :  { %v5073_v7 = vmul.f32 %v6091_v6, %v5051_v51  ;;  %vm5079_vm2 = vweird.f32 %v6091_v6 }
0x3368   :  { %vm5080_vm10 = vmor %vm5078_vm12, %vm5079_vm2 }
0x3369   :  { %v5074_v2 = vmul.f32 %v6091_v6, %v5073_v7 }
0x336b   :  { %v5075_v17 = vmul.f32 0.5, %v5074_v2 }
0x336d   :  { %v5076_v53 = vsub.f32 1.5, %v5075_v17 }
0x336f   :  { %v5077_v43 = vmul.f32 %v6091_v6, %v5076_v53 }
0x3371   :  { %v5081_v62 = vsel %vm5080_vm10, %v6091_v6, %v5077_v43 }
0x3372   :  { %v5084_v31 = vmul.f32 %v5081_v62, %v5033_v56 }
0x3374   :  { %v5088_v18 = vmul.f32 %v5085_v52, %v5084_v31 }
0x3376   :  { %v5092_v20 = vadd.f32 %v5089_v37, %v5088_v18 }
0x3378   :  { %5635 = vmatmul.msk.f32.gmra.mxu1 %vm65_vm0, %v5092_v20 }
0x33c5   :  { %v5122_v50 = vpop.f32.mrf.mxu1 }
0x33c6   :  { %v5123_v24 = vadd.f32 %v5122_v50, %v5095_v63 }
0x33c8   :  { %v5131_v40 = vmul.f32 %v5123_v24, %v5123_v24 }
0x33ca   :  { %v5134_v21 = vmul.f32 %v5131_v40, %v5123_v24  ;;  %v5284_v40 = vld [vmem:[%s8414_s9] sm:$0xff] }
0x33cc   :  { %v5137_v56 = vmul.f32 0.044715, %v5134_v21 }
0x33ce   :  { %v5140_v12 = vadd.f32 %v5137_v56, %v5123_v24  ;;  %v5125_v49 = vpop.f32.mrf.mxu1 }
0x33cf   :  { %v5126_v42 = vadd.f32 %v5125_v49, %v5095_v63 }
0x33d0   :  { %v5143_v57 = vmul.f32 0.7978846, %v5140_v12 }
0x33d1   :  { %v5132_v34 = vmul.f32 %v5126_v42, %v5126_v42 }
0x33d2   :  { %6092 = vtanh.f32 %v5143_v57 }
0x33d3   :  { %v5135_v29 = vmul.f32 %v5132_v34, %v5126_v42 }
0x33d5   :  { %v5138_v8 = vmul.f32 0.044715, %v5135_v29 }
0x33d7   :  { %v5141_v55 = vadd.f32 %v5138_v8, %v5126_v42 }
0x33d8   :  { %v6093_v11 = vpop.eup %6092 }
0x33d9   :  { %v5149_v38 = vadd.f32 1.0, %v6093_v11  ;;  %v5144_v16 = vmul.f32 0.7978846, %v5141_v55 }
0x33db   :  { %v5152_v15 = vmul.f32 0.5, %v5149_v38  ;;  %6094 = vtanh.f32 %v5144_v16 }
0x33dd   :  { %v5155_v36 = vmul.f32 %v5152_v15, %v5123_v24  ;;  %v5285_v24 = vld [vmem:[%s8414_s9 + $0x8] sm:$0xff] }
0x33de   :  { %5314 = vmatpush.msra.mxu0 %v5285_v24 }
0x33df   :  { %5636 = vmatmul.msk.f32.vlgmr.msrb.gmra.mxu2 %vm8411_vm13, %v5155_v36 }
0x33e0   :  { %5315 = vmatpush.msra.mxu0 %v5284_v40 }
0x33e1   :  { %v6095_v26 = vpop.eup %6094 }
0x33e2   :  { %v5150_v44 = vadd.f32 1.0, %v6095_v26  ;;  %v5769_v26 = vld [vmem:[%s8415_s26] ss:$0 sm:$0xff] }
0x33e4   :  { %v5153_v10 = vmul.f32 0.5, %v5150_v44 }
0x33e6   :  { %v5156_v9 = vmul.f32 %v5153_v10, %v5126_v42 }
0x33e8   :  { %5637 = vmatmul.msk.f32.gmra.mxu2 %vm8412_vm3, %v5156_v9 }
0x33f5   :  { %v5128_v23 = vpop.f32.mrf.mxu1 }
0x33f6   :  { %v5129_v52 = vadd.f32 %v5128_v23, %v5095_v63 }
0x33f8   :  { %v5133_v1 = vmul.f32 %v5129_v52, %v5129_v52 }
0x33fa   :  { %v5136_v19 = vmul.f32 %v5133_v1, %v5129_v52 }
0x33fc   :  { %v5139_v37 = vmul.f32 0.044715, %v5136_v19 }
0x33fe   :  { %v5142_v13 = vadd.f32 %v5139_v37, %v5129_v52 }
0x3400   :  { %v5145_v25 = vmul.f32 0.7978846, %v5142_v13 }
0x3402   :  { %6096 = vtanh.f32 %v5145_v25 }
0x3408   :  { %v6097_v47 = vpop.eup %6096 }
0x3409   :  { %v5151_v48 = vadd.f32 1.0, %v6097_v47 }
0x340b   :  { %v5154_v54 = vmul.f32 0.5, %v5151_v48 }
0x340d   :  { %v5157_v0 = vmul.f32 %v5154_v54, %v5129_v52  ;;  %v5770_v52 = vld [vmem:[%s8415_s26 + $0x1] ss:$0 sm:$0xff] }
0x340f   :  { %5638 = vmatmul.msk.f32.gmra.mxu2 %vm8413_vm8, %v5157_v0 }
0x3462   :  { %v5192_v46 = vpop.f32.mrf.mxu2 }
0x3463   :  { %v5201_v4 = vadd.f32 %v5192_v46, %v8118_v28 }
0x3465   :  { %v5205_v59 = vadd.f32 %v5204_v61, %v5201_v4 }
0x3467   :  { %v5210_v58 = vsel %vm65_vm0, %v5205_v59, 0.0 }
0x3468   :  { %5211 = vadd.xlane.f32.xlu2 %v5210_v58 }
0x346b   :  { %v5195_v5 = vpop.f32.mrf.mxu2 }
0x346c   :  { %v5202_v51 = vadd.f32 %v5195_v5, %v8123_v14 }
0x346e   :  { %v5206_v6 = vadd.f32 %v5204_v61, %v5202_v51 }
0x3470   :  { %v5213_v7 = vsel %vm65_vm0, %v5206_v6, 0.0 }
0x3471   :  { %5214 = vadd.xlane.f32.xlu0 %v5213_v7 }
0x3492   :  { %v5198_v2 = vpop.f32.mrf.mxu2 }
0x3493   :  { %v5203_v17 = vadd.f32 %v5198_v2, %v8128_v39 }
0x3495   :  { %v5207_v53 = vadd.f32 %v5204_v61, %v5203_v17 }
0x3497   :  { %v5216_v43 = vsel %vm1670_vm4, %v5207_v53, 0.0 }
0x3498   :  { %5217 = vadd.xlane.f32.xlu1 %v5216_v43 }
0x34db   :  { %v5212_v62 = vpop.xlane.xlu2 %5211 }
0x34dc   :  { %v5219_v28 = vmul.f32 %v5212_v62, %v6869_v45 }
0x34de   :  { %v5222_v31 = vsub.f32 %v5205_v59, %v5219_v28 }
0x34e0   :  { %v5225_v18 = vmul.f32 %v5222_v31, %v5222_v31 }
0x34e2   :  { %v5228_v20 = vsel %vm65_vm0, %v5225_v18, 0.0 }
0x34e3   :  { %5229 = vadd.xlane.f32.xlu2 %v5228_v20 }
0x34e4   :  { %v5215_v14 = vpop.xlane.xlu0 %5214 }
0x34e5   :  { %v5220_v3 = vmul.f32 %v5215_v14, %v6869_v45 }
0x34e7   :  { %v5223_v27 = vsub.f32 %v5206_v6, %v5220_v3 }
0x34e9   :  { %v5226_v30 = vmul.f32 %v5223_v27, %v5223_v27 }
0x34eb   :  { %v5231_v22 = vsel %vm65_vm0, %v5226_v30, 0.0 }
0x34ec   :  { %5232 = vadd.xlane.f32.xlu0 %v5231_v22 }
0x350b   :  { %v5218_v39 = vpop.xlane.xlu1 %5217 }
0x350c   :  { %v5221_v41 = vmul.f32 %v5218_v39, %v6869_v45 }
0x350e   :  { %v8197_v33 = vsub.f32 %v5207_v53, %v5221_v41 }
0x3510   :  { %v5227_v35 = vmul.f32 %v8197_v33, %v8197_v33 }
0x3512   :  { %v5234_v32 = vsel %vm1670_vm4, %v5227_v35, 0.0 }
0x3513   :  { %5235 = vadd.xlane.f32.xlu1 %v5234_v32 }
0x3556   :  { %v5230_v63 = vpop.xlane.xlu2 %5229 }
0x3557   :  { %v5237_v50 = vmul.f32 %v5230_v63, %v6869_v45 }
0x3559   :  { %v5240_v21 = vadd.f32 1e-05, %v5237_v50 }
0x355b   :  { %6098 = vrsqrt.f32 %v5240_v21  ;;  %vm5249_vm5 = vweird.f32 %v5240_v21 }
0x355f   :  { %v5233_v56 = vpop.xlane.xlu0 %5232 }
0x3560   :  { %v5238_v12 = vmul.f32 %v5233_v56, %v6869_v45 }
0x3561   :  { %v6099_v49 = vpop.eup %6098 }
0x3562   :  { %v5244_v42 = vmul.f32 %v6099_v49, %v5240_v21  ;;  %v5241_v57 = vadd.f32 1e-05, %v5238_v12  ;;  %vm5250_vm4 = vweird.f32 %v6099_v49 }
0x3563   :  { %vm5251_vm11 = vmor %vm5249_vm5, %vm5250_vm4 }
0x3564   :  { %v5245_v34 = vmul.f32 %v6099_v49, %v5244_v42  ;;  %6100 = vrsqrt.f32 %v5241_v57  ;;  %vm5259_vm6 = vweird.f32 %v5241_v57 }
0x3566   :  { %v5246_v29 = vmul.f32 0.5, %v5245_v34 }
0x3568   :  { %v5247_v8 = vsub.f32 1.5, %v5246_v29 }
0x356a   :  { %v6101_v55 = vpop.eup %6100  ;;  %v5248_v11 = vmul.f32 %v6099_v49, %v5247_v8 }
0x356b   :  { %v5254_v38 = vmul.f32 %v6101_v55, %v5241_v57  ;;  %vm5260_vm14 = vweird.f32 %v6101_v55 }
0x356c   :  { %v5252_v16 = vsel %vm5251_vm11, %v6099_v49, %v5248_v11  ;;  %vm5261_vm7 = vmor %vm5259_vm6, %vm5260_vm14 }
0x356d   :  { %v5255_v15 = vmul.f32 %v6101_v55, %v5254_v38  ;;  %v5273_v44 = vmul.f32 %v5252_v16, %v5222_v31 }
0x356f   :  { %v5256_v36 = vmul.f32 0.5, %v5255_v15  ;;  %v5277_v23 = vmul.f32 %v5769_v26, %v5273_v44 }
0x3571   :  { %v5257_v10 = vsub.f32 1.5, %v5256_v36  ;;  %v5281_v13 = vadd.f32 %v5770_v52, %v5277_v23 }
0x3573   :  { %v5258_v9 = vmul.f32 %v6101_v55, %v5257_v10  ;;  %v5291_v47 = vrot.slane %v5281_v13, 1 }
0x3575   :  { %v5262_v1 = vsel %vm5261_vm7, %v6101_v55, %v5258_v9 }
0x3576   :  { %v5274_v19 = vmul.f32 %v5262_v1, %v5223_v27 }
0x3578   :  { %v5278_v37 = vmul.f32 %v5769_v26, %v5274_v19 }
0x357a   :  { %v5282_v25 = vadd.f32 %v5770_v52, %v5278_v37 }
0x357c   :  { %v5292_v48 = vrot.slane %v5282_v25, 1 }
0x357e   :  { %v5293_v54 = vsel %vm1610_vm15, %v5291_v47, %v5292_v48 }
0x357f   :  { %5639 = vmatmul.msk.f32.vlgmr.msra.gmra.mxu0 %vm65_vm0, %v5293_v54 }
0x3586   :  { %v5236_v0 = vpop.xlane.xlu1 %5235 }
0x3587   :  { %v5239_v60 = vmul.f32 %v5236_v0, %v6869_v45  ;;  %v5771_v45 = vld [vmem:[%s8415_s26 + $0x2] ss:$0 sm:$0xff] }
0x3589   :  { %v5242_v61 = vadd.f32 1e-05, %v5239_v60 }
0x358b   :  { %6102 = vrsqrt.f32 %v5242_v61  ;;  %vm5269_vm1 = vweird.f32 %v5242_v61 }
0x3591   :  { %v6103_v46 = vpop.eup %6102 }
0x3592   :  { %v5264_v4 = vmul.f32 %v6103_v46, %v5242_v61  ;;  %vm5270_vm9 = vweird.f32 %v6103_v46 }
0x3593   :  { %vm5271_vm2 = vmor %vm5269_vm1, %vm5270_vm9 }
0x3594   :  { %v5265_v59 = vmul.f32 %v6103_v46, %v5264_v4 }
0x3596   :  { %v5266_v58 = vmul.f32 0.5, %v5265_v59 }
0x3598   :  { %v5267_v5 = vsub.f32 1.5, %v5266_v58 }
0x359a   :  { %v5268_v51 = vmul.f32 %v6103_v46, %v5267_v5 }
0x359c   :  { %v5272_v6 = vsel %vm5271_vm2, %v6103_v46, %v5268_v51 }
0x359d   :  { %v5275_v7 = vmul.f32 %v5272_v6, %v8197_v33 }
0x359f   :  { %v5279_v2 = vmul.f32 %v5769_v26, %v5275_v7 }
0x35a1   :  { %v5283_v17 = vadd.f32 %v5770_v52, %v5279_v2 }
0x35a3   :  { %v5294_v53 = vrot.slane %v5283_v17, 1 }
0x35a5   :  { %v5295_v43 = vsel %vm1610_vm15, %v5292_v48, %v5294_v53 }
0x35a6   :  { %5640 = vmatmul.msk.f32.gmra.mxu0 %vm65_vm0, %v5295_v43 }
0x35fc   :  { %v5317_v62 = vpop.f32.mrf.mxu0 }
0x35fd   :  { %v5318_v28 = vadd.f32 %v5771_v45, %v5317_v62 }
0x35ff   :  { %5641 = vst [vmem:[%s8416_s16 + $0x10] sm:$0xff] %v5318_v28 }
0x3623   :  { %v5320_v31 = vpop.f32.mrf.mxu0 }
0x3624   :  { %v5321_v18 = vadd.f32 %v5771_v45, %v5320_v31 }
0x3626   :  { %5642 = vst [vmem:[%s8416_s16 + $0x18] sm:$0xff] %v5321_v18 }

</bundles_post_ra>
